<compile_context>
chip_gen: v7x
topology: tpu7x:2x2x1
jax: 0.10.0
libtpu: 0.0.40
codegen_flags: <defaults>
</compile_context>

<pallas_src>
import math
from functools import partial

import jax
import jax.numpy as jnp
from jax.experimental import pallas as pl
from jax.experimental.pallas import tpu as pltpu

# ---------------- synthetic config (small, consistent with the module) ----------------
HIDDEN = 32              # config.hidden_size
NUM_HEADS = 4            # config.num_heads
HEAD_DIM = HIDDEN // NUM_HEADS
MLP_DIM = 64             # config.mlp_dim
NUM_LAYERS = 4           # config.num_layers -> encoder loop runs NUM_LAYERS-1 = 3 blocks
PATCH_GRID = 4           # 4x4 patches -> patch_num = 16, N = 17 tokens (1 CLS + 16)
VOTE_PERHEAD = 4         # MultiHeadVoting vote_perhead (<= patch_num)
TOTAL_NUM = 6            # total selected tokens across encoder layers
DILATIONS = (1, 2, 4)
CONV_KERNEL = ((1.0, 2.0, 1.0), (2.0, 4.0, 2.0), (1.0, 2.0, 1.0))

# MXU operand dtype (f32 accumulation via preferred_element_type); all element-wise /
# LayerNorm / softmax math stays f32 (v5e has no bf16 VPU/EUP path).
MXU_DTYPE = jnp.bfloat16

FUSED_ORDER = ("n1g", "n1b", "wqkv", "bqkv", "wp", "bp", "ls1",
               "n2g", "n2b", "w1", "b1", "w2", "b2", "ls2")


# ---------------------------------------------------------------------------
# Pallas kernel: a stack of transformer blocks, one block per grid step.
# Inputs : x0 (B*N, C), cross-batch mask (B*N, B*N), per-layer stacked params,
#          optional fused final-LayerNorm params.
# Outputs: per-layer hidden states (L, B*N, C) and CLS-query attention rows
#          (L, H*B, B*N).  Hidden states are carried across layers in VMEM scratch.
# ---------------------------------------------------------------------------
def _stack_kernel(*refs, num_heads, head_dim, B, N, final_ln):
    n_in = 18 if final_ln else 16
    x0_ref, bmask_ref = refs[0], refs[1]
    (n1g_ref, n1b_ref, wqkv_ref, bqkv_ref, wp_ref, bp_ref, ls1_ref,
     n2g_ref, n2b_ref, w1_ref, b1_ref, w2_ref, b2_ref, ls2_ref) = refs[2:16]
    if final_ln:
        fng_ref, fnb_ref = refs[16], refs[17]
    xs_ref, cls_ref = refs[n_in], refs[n_in + 1]
    x_scr = refs[n_in + 2]

    BN = B * N
    C = num_heads * head_dim
    scale = 1.0 / math.sqrt(head_dim)

    @pl.when(pl.program_id(0) == 0)
    def _():
        x_scr[...] = x0_ref[...]

    def ln(v, g, b):
        # independent mean / mean-of-squares reductions (shorter XLU chain)
        mu = jnp.mean(v, axis=-1, keepdims=True)
        ms = jnp.mean(v * v, axis=-1, keepdims=True)
        var = jnp.maximum(ms - mu * mu, 0.0)
        return (v - mu) * jax.lax.rsqrt(var + 1e-6) * g + b

    x = x_scr[...]                                            # (BN, C) f32
    xn = ln(x, n1g_ref[0], n1b_ref[0])

    # fused QKV projection over the whole (B*N, C) slab; single bf16 cast afterwards
    qkv = jnp.dot(xn.astype(MXU_DTYPE), wqkv_ref[0],
                  preferred_element_type=jnp.float32) + bqkv_ref[0]      # (BN, 3C) f32
    qkv_bf = qkv.astype(MXU_DTYPE)

    bmask = bmask_ref[...]                                    # 0 in-batch, -1e30 else
    wp_all = wp_ref[0]                                        # (H, D, C) bf16

    attn_out = jnp.zeros((BN, C), jnp.float32)
    cls_rows = []
    for h in range(num_heads):                                # H=4, statically unrolled
        lo = h * head_dim
        qh = qkv_bf[:, lo:lo + head_dim]                      # (BN, D)
        kh = qkv_bf[:, C + lo:C + lo + head_dim]
        vh = qkv_bf[:, 2 * C + lo:2 * C + lo + head_dim]
        # q @ k^T batched over B via the additive cross-batch mask
        s = jax.lax.dot_general(qh, kh, (((1,), (1,)), ((), ())),
                                preferred_element_type=jnp.float32)      # (BN, BN)
        s = s * scale + bmask
        s = s - jnp.max(s, axis=-1, keepdims=True)
        e = jnp.exp(s)
        p = e / jnp.sum(e, axis=-1, keepdims=True)            # exact softmax (vote parity)
        ctx = jnp.dot(p.astype(MXU_DTYPE), vh,
                      preferred_element_type=jnp.float32)                # (BN, D)
        # fold the per-head output projection into an accumulator (no lane concat)
        attn_out = attn_out + jnp.dot(ctx.astype(MXU_DTYPE), wp_all[h],
                                      preferred_element_type=jnp.float32)
        # CLS-query rows for every batch element; the wrapper extracts the in-batch
        # key window (cross-batch entries are exactly zero anyway).
        cls_rows.append(jnp.concatenate([p[b * N:b * N + 1, :] for b in range(B)],
                                        axis=0))              # (B, BN)

    cls_ref[0] = jnp.concatenate(cls_rows, axis=0)            # (H*B, BN)

    x = x + ls1_ref[0] * (attn_out + bp_ref[0])               # LayerScale * (proj + bias)

    xn2 = ln(x, n2g_ref[0], n2b_ref[0])
    h1 = jnp.dot(xn2.astype(MXU_DTYPE), w1_ref[0],
                 preferred_element_type=jnp.float32) + b1_ref[0]
    # TODO(synk): torch nn.GELU is exact erf-GELU; tanh approximation used here
    # (guaranteed Mosaic lowering, EUP-friendly); divergence ~1e-3.
    h1 = jax.nn.gelu(h1, approximate=True)
    mlp = jnp.dot(h1.astype(MXU_DTYPE), w2_ref[0],
                  preferred_element_type=jnp.float32) + b2_ref[0]
    x = x + ls2_ref[0] * mlp

    if final_ln:                                              # fused clr_norm / key_norm
        x = ln(x, fng_ref[0], fnb_ref[0])

    x_scr[...] = x                                            # carry to next layer
    xs_ref[0] = x                                             # per-layer output slab


def _param_spec(arr):
    blk = (1,) + arr.shape[1:]
    if arr.ndim == 3:
        return pl.BlockSpec(blk, lambda l: (l, 0, 0))
    if arr.ndim == 4:
        return pl.BlockSpec(blk, lambda l: (l, 0, 0, 0))
    raise ValueError(f"unexpected stacked param rank: {arr.shape}")


def run_stack(stacked, x, final_norm=None):
    """Run L stacked transformer blocks in ONE gridded pallas_call.

    x: (B, N, C) -> (per-layer hidden states (L, B, N, C), CLS attention (L, B, H, N)).
    """
    B, N, C = x.shape
    L = stacked["wqkv"].shape[0]
    BN = B * N

    x2 = x.reshape(BN, C)
    # additive cross-batch mask, computed once in plain JAX (hoisted out of the kernel)
    bid = jnp.arange(BN, dtype=jnp.int32) // N
    bmask = jnp.where(bid[:, None] == bid[None, :], 0.0, -1e30).astype(jnp.float32)

    args = [x2, bmask] + [stacked[k] for k in FUSED_ORDER]
    in_specs = [pl.BlockSpec((BN, C), lambda l: (0, 0)),
                pl.BlockSpec((BN, BN), lambda l: (0, 0))]
    in_specs += [_param_spec(stacked[k]) for k in FUSED_ORDER]

    final_ln = final_norm is not None
    if final_ln:
        args += [final_norm[0].reshape(1, 1, C), final_norm[1].reshape(1, 1, C)]
        in_specs += [pl.BlockSpec((1, 1, C), lambda l: (0, 0, 0))] * 2

    kernel = partial(_stack_kernel, num_heads=NUM_HEADS, head_dim=HEAD_DIM,
                     B=B, N=N, final_ln=final_ln)
    xs, cls_full = pl.pallas_call(
        kernel,
        grid=(L,),
        in_specs=in_specs,
        out_specs=[pl.BlockSpec((1, BN, C), lambda l: (l, 0, 0)),
                   pl.BlockSpec((1, NUM_HEADS * B, BN), lambda l: (l, 0, 0))],
        out_shape=[jax.ShapeDtypeStruct((L, BN, C), jnp.float32),
                   jax.ShapeDtypeStruct((L, NUM_HEADS * B, BN), jnp.float32)],
        scratch_shapes=[pltpu.VMEM((BN, C), jnp.float32)],
        # Layer axis is a sequential dependency -> "arbitrary".  A "parallel" batch
        # grid axis (v7x second TC) is intentionally omitted at B=2: it would halve
        # MXU row occupancy of the batch-flattened matmuls and is a no-op on v5e/v6e.
        compiler_params=pltpu.CompilerParams(dimension_semantics=("arbitrary",)),
    )(*args)

    xs = xs.reshape(L, B, N, C)
    # (L, H*B, B*N) -> pick each batch's own key window -> (L, B, H, N)
    cls5 = cls_full.reshape(L, NUM_HEADS, B, B, N)
    cls_attn = jnp.einsum("lhbcn,bc->lbhn", cls5, jnp.eye(B, dtype=cls_full.dtype))
    return xs, cls_attn


# ---------------------------------------------------------------------------
# Pallas kernel: enhance_local — fixed 3x3 kernel, dilations (1,2,4), max over
# dilations; single batched launch with NO Python batch loop.
# ---------------------------------------------------------------------------
def _enhance_kernel(cp_ref, out_ref, *, Hh, maxd):
    cp = cp_ref[...]                                          # (Bt, Hh+2m, Hh+2m)
    best = None
    for d in DILATIONS:
        acc = jnp.zeros(out_ref.shape, jnp.float32)
        for a in range(3):
            for c in range(3):
                r0 = (maxd - d) + a * d
                c0 = (maxd - d) + c * d
                acc = acc + CONV_KERNEL[a][c] * cp[:, r0:r0 + Hh, c0:c0 + Hh]
        best = acc if best is None else jnp.maximum(best, acc)
    out_ref[...] = best


def enhance_local(count):
    Bt, patch_num = count.shape
    Hh = math.ceil(math.sqrt(patch_num))
    maxd = max(DILATIONS)
    padded = jnp.pad(count.reshape(Bt, Hh, Hh), ((0, 0), (maxd, maxd), (maxd, maxd)))
    vmem = pl.BlockSpec(memory_space=pltpu.MemorySpace.VMEM)
    out = pl.pallas_call(
        partial(_enhance_kernel, Hh=Hh, maxd=maxd),
        in_specs=[vmem],
        out_specs=vmem,
        out_shape=jax.ShapeDtypeStruct((Bt, Hh, Hh), jnp.float32),
    )(padded)
    return out.reshape(Bt, -1)


# ---------------------------------------------------------------------------
# MultiHeadVoting glue (top-k / bincount / argsort are data-dependent -> plain JAX),
# batched over arbitrary leading dims so it runs once for all encoder layers.
# ---------------------------------------------------------------------------
def vote_counts(cls_attn, vote_perhead):
    score = cls_attn[..., 1:]                                 # drop CLS key column
    patch_num = score.shape[-1]
    _, sel = jax.lax.top_k(score, vote_perhead)               # (..., H, k)
    sel = sel.reshape(sel.shape[:-2] + (-1,))                 # (..., H*k)
    onehot = jax.nn.one_hot(sel, patch_num, dtype=jnp.float32)
    return onehot.sum(axis=-2)                                # (..., patch_num)


# ---------------------------------------------------------------------------
# IELTEncoder forward (cam=True; dsm skipped: count < warm_steps; merge_inattentive=False)
# ---------------------------------------------------------------------------
def ielt_encoder_forward(params, hidden_states):
    B, N, C = hidden_states.shape
    L = NUM_LAYERS - 1
    select_num = int(round((1.0 / L) * TOTAL_NUM))            # uniform select_rate

    # --- all encoder blocks: one gridded pallas_call --------------------------------
    xs, cls_attn = run_stack(params["layers"], hidden_states)  # (L,B,N,C), (L,B,H,N)

    # --- MultiHeadVoting for all layers at once --------------------------------------
    counts = vote_counts(cls_attn, VOTE_PERHEAD)                # (L, B, patch_num)
    counts = enhance_local(counts.reshape(L * B, -1)).reshape(L, B, -1)
    order = jnp.argsort(-counts, axis=-1)
    sel = order[..., :select_num]                               # (L, B, sn)
    # NOTE: reproduces the reference indexing exactly — patch indices in [0, patch_num)
    # index the *full* token sequence (including the CLS slot).
    fwd = jnp.take_along_axis(xs, sel[..., None], axis=2)       # (L, B, sn, C)
    comp = jnp.transpose(fwd, (1, 0, 2, 3)).reshape(B, L * select_num, C)

    cls_token = xs[-1][:, 0:1, :]                               # (B, 1, C)
    # class_token_list is assembled by the reference but unused on the cam=True path.

    # --- CrossLayerRefinement: clr_layer block with clr_norm fused as epilogue -------
    clr_in = jnp.concatenate([cls_token, comp], axis=1)
    clr, clr_attn = run_stack(params["clr_layer"], clr_in,
                              final_norm=(params["clr_norm_g"], params["clr_norm_b"]))
    clr, clr_attn = clr[0], clr_attn[0]

    counts2 = vote_counts(clr_attn, VOTE_PERHEAD)
    order2 = jnp.argsort(-counts2, axis=-1)
    sort_idx = order2[:, :min(24, order2.shape[-1])]            # ref. [:, :24] truncates
    # TODO(synk): DSM select-rate EMA update (count_patch / update_layer_select) is
    # training-side stateful bookkeeping; skipped here (count < warm_steps).

    # --- CAM path: key_layer block with key_norm fused as epilogue -------------------
    out = jnp.take_along_axis(clr, sort_idx[..., None], axis=1)
    out = jnp.concatenate([cls_token, out], axis=1)
    key, _ = run_stack(params["key_layer"], out,
                       final_norm=(params["key_norm_g"], params["key_norm_b"]))
    key = key[0]

    return key[:, 0], clr[:, 0]


# ---------------------------------------------------------------------------
# Deterministic parameter init (per-head layout mirroring the module) + fusion/stacking
# ---------------------------------------------------------------------------
def init_block_params(key, C=HIDDEN, H=NUM_HEADS, D=HEAD_DIM, M=MLP_DIM):
    ks = jax.random.split(key, 6)
    s = 0.02
    return {
        "n1g": jnp.ones((C,), jnp.float32), "n1b": jnp.zeros((C,), jnp.float32),
        "wq": s * jax.random.normal(ks[0], (H, C, D), jnp.float32),
        "bq": jnp.zeros((H, D), jnp.float32),
        "wk": s * jax.random.normal(ks[1], (H, C, D), jnp.float32),
        "bk": jnp.zeros((H, D), jnp.float32),
        "wv": s * jax.random.normal(ks[2], (H, C, D), jnp.float32),
        "bv": jnp.zeros((H, D), jnp.float32),
        "wp": s * jax.random.normal(ks[3], (H, D, C), jnp.float32),
        "bp": jnp.zeros((C,), jnp.float32),
        "ls1": jnp.ones((C,), jnp.float32),                    # LayerScale gamma
        "n2g": jnp.ones((C,), jnp.float32), "n2b": jnp.zeros((C,), jnp.float32),
        "w1": s * jax.random.normal(ks[4], (C, M), jnp.float32),
        "b1": jnp.zeros((M,), jnp.float32),
        "w2": s * jax.random.normal(ks[5], (M, C), jnp.float32),
        "b2": jnp.zeros((C,), jnp.float32),
        "ls2": jnp.ones((C,), jnp.float32),
    }


def fuse_block_params(p, C=HIDDEN, H=NUM_HEADS, D=HEAD_DIM, M=MLP_DIM):
    """Fuse per-head QKV into one (C, 3C) matrix; keep the output projection stacked
    per head as (H, D, C) so the kernel accumulates ctx_h @ Wp[h] (no lane concat)."""
    wq = jnp.transpose(p["wq"], (1, 0, 2)).reshape(C, H * D)
    wk = jnp.transpose(p["wk"], (1, 0, 2)).reshape(C, H * D)
    wv = jnp.transpose(p["wv"], (1, 0, 2)).reshape(C, H * D)
    return {
        "n1g": p["n1g"].reshape(1, C), "n1b": p["n1b"].reshape(1, C),
        "wqkv": jnp.concatenate([wq, wk, wv], axis=1).astype(MXU_DTYPE),   # (C, 3C)
        "bqkv": jnp.concatenate([p["bq"].reshape(-1), p["bk"].reshape(-1),
                                 p["bv"].reshape(-1)]).reshape(1, 3 * C),
        "wp": p["wp"].astype(MXU_DTYPE),                                   # (H, D, C)
        "bp": p["bp"].reshape(1, C), "ls1": p["ls1"].reshape(1, C),
        "n2g": p["n2g"].reshape(1, C), "n2b": p["n2b"].reshape(1, C),
        "w1": p["w1"].astype(MXU_DTYPE), "b1": p["b1"].reshape(1, M),
        "w2": p["w2"].astype(MXU_DTYPE), "b2": p["b2"].reshape(1, C),
        "ls2": p["ls2"].reshape(1, C),
    }


def stack_block_params(fused_list):
    """Stack per-layer fused params along a leading layer axis for the gridded kernel."""
    return {k: jnp.stack([f[k] for f in fused_list], axis=0) for k in FUSED_ORDER}


if __name__ == "__main__":
    master = jax.random.PRNGKey(0)
    k_in, k_par = jax.random.split(master)

    B = 2
    patch_num = PATCH_GRID * PATCH_GRID
    N = patch_num + 1
    hidden_states = jax.random.normal(k_in, (B, N, HIDDEN), jnp.float32)

    block_keys = jax.random.split(k_par, (NUM_LAYERS - 1) + 2)
    params = {
        "layers": stack_block_params(
            [fuse_block_params(init_block_params(block_keys[i]))
             for i in range(NUM_LAYERS - 1)]),
        "clr_layer": stack_block_params(
            [fuse_block_params(init_block_params(block_keys[NUM_LAYERS - 1]))]),
        "key_layer": stack_block_params(
            [fuse_block_params(init_block_params(block_keys[NUM_LAYERS]))]),
        "clr_norm_g": jnp.ones((HIDDEN,), jnp.float32),
        "clr_norm_b": jnp.zeros((HIDDEN,), jnp.float32),
        "key_norm_g": jnp.ones((HIDDEN,), jnp.float32),
        "key_norm_b": jnp.zeros((HIDDEN,), jnp.float32),
    }

    forward = jax.jit(ielt_encoder_forward)
    key_cls, clr_cls = forward(params, hidden_states)
    jax.block_until_ready((key_cls, clr_cls))
    assert key_cls.shape == (B, HIDDEN) and clr_cls.shape == (B, HIDDEN)
    assert bool(jnp.all(jnp.isfinite(key_cls))) and bool(jnp.all(jnp.isfinite(clr_cls)))
    print("KERNEL_OK")
</pallas_src>

<mosaic_0001>
module attributes {stable_mosaic.version = 11 : i64} {
  func.func @_stack_kernel(%arg0: i32, %arg1: memref<34x32xf32, #tpu.memory_space<vmem>>, %arg2: memref<34x34xf32, #tpu.memory_space<vmem>>, %arg3: memref<1x1x32xf32, #tpu.memory_space<vmem>>, %arg4: memref<1x1x32xf32, #tpu.memory_space<vmem>>, %arg5: memref<1x32x96xbf16, #tpu.memory_space<vmem>>, %arg6: memref<1x1x96xf32, #tpu.memory_space<vmem>>, %arg7: memref<1x4x8x32xbf16, #tpu.memory_space<vmem>>, %arg8: memref<1x1x32xf32, #tpu.memory_space<vmem>>, %arg9: memref<1x1x32xf32, #tpu.memory_space<vmem>>, %arg10: memref<1x1x32xf32, #tpu.memory_space<vmem>>, %arg11: memref<1x1x32xf32, #tpu.memory_space<vmem>>, %arg12: memref<1x32x64xbf16, #tpu.memory_space<vmem>>, %arg13: memref<1x1x64xf32, #tpu.memory_space<vmem>>, %arg14: memref<1x64x32xbf16, #tpu.memory_space<vmem>>, %arg15: memref<1x1x32xf32, #tpu.memory_space<vmem>>, %arg16: memref<1x1x32xf32, #tpu.memory_space<vmem>>, %arg17: memref<1x34x32xf32, #tpu.memory_space<vmem>>, %arg18: memref<1x8x34xf32, #tpu.memory_space<vmem>>, %arg19: memref<34x32xf32, #tpu.memory_space<vmem>>) attributes {dimension_semantics = [#tpu.dimension_semantics<arbitrary>], iteration_bounds = array<i64: 3>, scalar_prefetch = 0 : i64, scratch_operands = 1 : i64, tpu.core_type = #tpu.core_type<tc>, window_params = [{pipeline_mode = #tpu.pipeline_mode<synchronous>, transform_indices = @transform_0, window_bounds = array<i64: 34, 32>}, {pipeline_mode = #tpu.pipeline_mode<synchronous>, transform_indices = @transform_1, window_bounds = array<i64: 34, 34>}, {transform_indices = @transform_2, window_bounds = array<i64: 1, 1, 32>}, {transform_indices = @transform_3, window_bounds = array<i64: 1, 1, 32>}, {transform_indices = @transform_4, window_bounds = array<i64: 1, 32, 96>}, {transform_indices = @transform_5, window_bounds = array<i64: 1, 1, 96>}, {transform_indices = @transform_6, window_bounds = array<i64: 1, 4, 8, 32>}, {transform_indices = @transform_7, window_bounds = array<i64: 1, 1, 32>}, {transform_indices = @transform_8, window_bounds = array<i64: 1, 1, 32>}, {transform_indices = @transform_9, window_bounds = array<i64: 1, 1, 32>}, {transform_indices = @transform_10, window_bounds = array<i64: 1, 1, 32>}, {transform_indices = @transform_11, window_bounds = array<i64: 1, 32, 64>}, {transform_indices = @transform_12, window_bounds = array<i64: 1, 1, 64>}, {transform_indices = @transform_13, window_bounds = array<i64: 1, 64, 32>}, {transform_indices = @transform_14, window_bounds = array<i64: 1, 1, 32>}, {transform_indices = @transform_15, window_bounds = array<i64: 1, 1, 32>}, {transform_indices = @transform_16, window_bounds = array<i64: 1, 34, 32>}, {transform_indices = @transform_17, window_bounds = array<i64: 1, 8, 34>}]} {
    %c0_i32 = arith.constant 0 : i32
    %0 = arith.cmpi eq, %arg0, %c0_i32 : i32
    %1 = arith.extui %0 : i1 to i32
    %c0_i32_0 = arith.constant 0 : i32
    %2 = arith.cmpi ne, %1, %c0_i32_0 : i32
    scf.if %2 {
      %c0_98 = arith.constant 0 : index
      %c0_99 = arith.constant 0 : index
      %228 = vector.load %arg1[%c0_98, %c0_99] : memref<34x32xf32, #tpu.memory_space<vmem>>, vector<34x32xf32>
      %c0_100 = arith.constant 0 : index
      %c0_101 = arith.constant 0 : index
      %229 = vector.load %arg19[%c0_100, %c0_101] : memref<34x32xf32, #tpu.memory_space<vmem>>, vector<34x32xf32>
      tpu.vector_store %arg19[%c0_100, %c0_101], %228 {strides = array<i32>} : memref<34x32xf32, #tpu.memory_space<vmem>>, vector<34x32xf32>,
    } else {
    }
    %c0 = arith.constant 0 : index
    %c0_1 = arith.constant 0 : index
    %3 = vector.load %arg19[%c0, %c0_1] : memref<34x32xf32, #tpu.memory_space<vmem>>, vector<34x32xf32>
    %c0_2 = arith.constant 0 : index
    %c0_3 = arith.constant 0 : index
    %c0_4 = arith.constant 0 : index
    %4 = vector.load %arg3[%c0_2, %c0_3, %c0_4] : memref<1x1x32xf32, #tpu.memory_space<vmem>>, vector<1x1x32xf32>
    %5 = vector.shape_cast %4 : vector<1x1x32xf32> to vector<1x32xf32>
    %c0_5 = arith.constant 0 : index
    %c0_6 = arith.constant 0 : index
    %c0_7 = arith.constant 0 : index
    %6 = vector.load %arg4[%c0_5, %c0_6, %c0_7] : memref<1x1x32xf32, #tpu.memory_space<vmem>>, vector<1x1x32xf32>
    %7 = vector.shape_cast %6 : vector<1x1x32xf32> to vector<1x32xf32>
    %cst = arith.constant dense<0.000000e+00> : vector<34xf32>
    %8 = vector.multi_reduction <add>, %3, %cst [1] : vector<34x32xf32> to vector<34xf32>
    %9 = vector.shape_cast %8 : vector<34xf32> to vector<34x1xf32>
    %cst_8 = arith.constant 3.200000e+01 : f32
    %10 = vector.broadcast %cst_8 : f32 to vector<34x1xf32>
    %11 = arith.divf %9, %10 : vector<34x1xf32>
    %12 = arith.mulf %3, %3 : vector<34x32xf32>
    %cst_9 = arith.constant dense<0.000000e+00> : vector<34xf32>
    %13 = vector.multi_reduction <add>, %12, %cst_9 [1] : vector<34x32xf32> to vector<34xf32>
    %14 = vector.shape_cast %13 : vector<34xf32> to vector<34x1xf32>
    %cst_10 = arith.constant 3.200000e+01 : f32
    %15 = vector.broadcast %cst_10 : f32 to vector<34x1xf32>
    %16 = arith.divf %14, %15 : vector<34x1xf32>
    %17 = arith.mulf %11, %11 : vector<34x1xf32>
    %18 = arith.subf %16, %17 : vector<34x1xf32>
    %cst_11 = arith.constant 0.000000e+00 : f32
    %19 = vector.broadcast %cst_11 : f32 to vector<34x1xf32>
    %20 = arith.maximumf %18, %19 : vector<34x1xf32>
    %21 = vector.broadcast %11 : vector<34x1xf32> to vector<34x32xf32>
    %22 = arith.subf %3, %21 : vector<34x32xf32>
    %cst_12 = arith.constant 9.99999997E-7 : f32
    %23 = vector.broadcast %cst_12 : f32 to vector<34x1xf32>
    %24 = arith.addf %20, %23 : vector<34x1xf32>
    %25 = math.rsqrt %24 : vector<34x1xf32>
    %26 = vector.broadcast %25 : vector<34x1xf32> to vector<34x32xf32>
    %27 = arith.mulf %22, %26 : vector<34x32xf32>
    %28 = vector.broadcast %5 : vector<1x32xf32> to vector<34x32xf32>
    %29 = arith.mulf %27, %28 : vector<34x32xf32>
    %30 = vector.broadcast %7 : vector<1x32xf32> to vector<34x32xf32>
    %31 = arith.addf %29, %30 : vector<34x32xf32>
    %32 = arith.truncf %31 : vector<34x32xf32> to vector<34x32xbf16>
    %c0_13 = arith.constant 0 : index
    %c0_14 = arith.constant 0 : index
    %c0_15 = arith.constant 0 : index
    %33 = vector.load %arg5[%c0_13, %c0_14, %c0_15] : memref<1x32x96xbf16, #tpu.memory_space<vmem>>, vector<1x32x96xbf16>
    %34 = vector.shape_cast %33 : vector<1x32x96xbf16> to vector<32x96xbf16>
    %cst_16 = arith.constant dense<0.000000e+00> : vector<34x96xf32>
    %35 = tpu.matmul %32, %34, %cst_16 {dimension_numbers = #tpu.dot_dimension_numbers<[1], [0], [0], [1], [0, 0, 1, 1], [], []>} : vector<34x32xbf16>, vector<32x96xbf16>, vector<34x96xf32> -> vector<34x96xf32>
    %c0_17 = arith.constant 0 : index
    %c0_18 = arith.constant 0 : index
    %c0_19 = arith.constant 0 : index
    %36 = vector.load %arg6[%c0_17, %c0_18, %c0_19] : memref<1x1x96xf32, #tpu.memory_space<vmem>>, vector<1x1x96xf32>
    %37 = vector.shape_cast %36 : vector<1x1x96xf32> to vector<1x96xf32>
    %38 = vector.broadcast %37 : vector<1x96xf32> to vector<34x96xf32>
    %39 = arith.addf %35, %38 : vector<34x96xf32>
    %40 = arith.truncf %39 : vector<34x96xf32> to vector<34x96xbf16>
    %c0_20 = arith.constant 0 : index
    %c0_21 = arith.constant 0 : index
    %41 = vector.load %arg2[%c0_20, %c0_21] : memref<34x34xf32, #tpu.memory_space<vmem>>, vector<34x34xf32>
    %c0_22 = arith.constant 0 : index
    %c0_23 = arith.constant 0 : index
    %c0_24 = arith.constant 0 : index
    %c0_25 = arith.constant 0 : index
    %42 = vector.load %arg7[%c0_22, %c0_23, %c0_24, %c0_25] : memref<1x4x8x32xbf16, #tpu.memory_space<vmem>>, vector<1x4x8x32xbf16>
    %43 = vector.shape_cast %42 : vector<1x4x8x32xbf16> to vector<4x8x32xbf16>
    %cst_26 = arith.constant 0.000000e+00 : f32
    %44 = vector.broadcast %cst_26 : f32 to vector<34x32xf32>
    %45 = vector.extract_strided_slice %40 {offsets = [0, 0], sizes = [34, 8], strides = [1, 1]} : vector<34x96xbf16> to vector<34x8xbf16>
    %46 = vector.extract_strided_slice %40 {offsets = [0, 32], sizes = [34, 8], strides = [1, 1]} : vector<34x96xbf16> to vector<34x8xbf16>
    %47 = vector.extract_strided_slice %40 {offsets = [0, 64], sizes = [34, 8], strides = [1, 1]} : vector<34x96xbf16> to vector<34x8xbf16>
    %cst_27 = arith.constant dense<0.000000e+00> : vector<34x34xf32>
    %48 = tpu.matmul %45, %46, %cst_27 {dimension_numbers = #tpu.dot_dimension_numbers<[1], [1], [0], [0], [0, 0, 1, 0], [], []>} : vector<34x8xbf16>, vector<34x8xbf16>, vector<34x34xf32> -> vector<34x34xf32>
    %cst_28 = arith.constant 0.353553385 : f32
    %49 = vector.broadcast %cst_28 : f32 to vector<34x34xf32>
    %50 = arith.mulf %48, %49 : vector<34x34xf32>
    %51 = arith.addf %50, %41 : vector<34x34xf32>
    %cst_29 = arith.constant dense<0xFF800000> : vector<34xf32>
    %52 = vector.multi_reduction <maximumf>, %51, %cst_29 [1] : vector<34x34xf32> to vector<34xf32>
    %53 = vector.shape_cast %52 : vector<34xf32> to vector<34x1xf32>
    %54 = vector.broadcast %53 : vector<34x1xf32> to vector<34x34xf32>
    %55 = arith.subf %51, %54 : vector<34x34xf32>
    %56 = math.exp %55 : vector<34x34xf32>
    %cst_30 = arith.constant dense<0.000000e+00> : vector<34xf32>
    %57 = vector.multi_reduction <add>, %56, %cst_30 [1] : vector<34x34xf32> to vector<34xf32>
    %58 = vector.shape_cast %57 : vector<34xf32> to vector<34x1xf32>
    %59 = vector.broadcast %58 : vector<34x1xf32> to vector<34x34xf32>
    %60 = arith.divf %56, %59 : vector<34x34xf32>
    %61 = arith.truncf %60 : vector<34x34xf32> to vector<34x34xbf16>
    %cst_31 = arith.constant dense<0.000000e+00> : vector<34x8xf32>
    %62 = tpu.matmul %61, %47, %cst_31 {dimension_numbers = #tpu.dot_dimension_numbers<[1], [0], [0], [1], [0, 0, 1, 1], [], []>} : vector<34x34xbf16>, vector<34x8xbf16>, vector<34x8xf32> -> vector<34x8xf32>
    %63 = arith.truncf %62 : vector<34x8xf32> to vector<34x8xbf16>
    %64 = vector.extract_strided_slice %43 {offsets = [0, 0, 0], sizes = [1, 8, 32], strides = [1, 1, 1]} : vector<4x8x32xbf16> to vector<1x8x32xbf16>
    %65 = vector.shape_cast %64 : vector<1x8x32xbf16> to vector<8x32xbf16>
    %cst_32 = arith.constant dense<0.000000e+00> : vector<34x32xf32>
    %66 = tpu.matmul %63, %65, %cst_32 {dimension_numbers = #tpu.dot_dimension_numbers<[1], [0], [0], [1], [0, 0, 1, 1], [], []>} : vector<34x8xbf16>, vector<8x32xbf16>, vector<34x32xf32> -> vector<34x32xf32>
    %67 = arith.addf %44, %66 : vector<34x32xf32>
    %68 = vector.extract_strided_slice %60 {offsets = [0, 0], sizes = [1, 34], strides = [1, 1]} : vector<34x34xf32> to vector<1x34xf32>
    %69 = vector.extract_strided_slice %60 {offsets = [17, 0], sizes = [1, 34], strides = [1, 1]} : vector<34x34xf32> to vector<1x34xf32>
    %70 = tpu.concatenate %68, %69 in 0 : vector<1x34xf32>, vector<1x34xf32> -> vector<2x34xf32>
    %71 = vector.extract_strided_slice %40 {offsets = [0, 8], sizes = [34, 8], strides = [1, 1]} : vector<34x96xbf16> to vector<34x8xbf16>
    %72 = vector.extract_strided_slice %40 {offsets = [0, 40], sizes = [34, 8], strides = [1, 1]} : vector<34x96xbf16> to vector<34x8xbf16>
    %73 = vector.extract_strided_slice %40 {offsets = [0, 72], sizes = [34, 8], strides = [1, 1]} : vector<34x96xbf16> to vector<34x8xbf16>
    %cst_33 = arith.constant dense<0.000000e+00> : vector<34x34xf32>
    %74 = tpu.matmul %71, %72, %cst_33 {dimension_numbers = #tpu.dot_dimension_numbers<[1], [1], [0], [0], [0, 0, 1, 0], [], []>} : vector<34x8xbf16>, vector<34x8xbf16>, vector<34x34xf32> -> vector<34x34xf32>
    %cst_34 = arith.constant 0.353553385 : f32
    %75 = vector.broadcast %cst_34 : f32 to vector<34x34xf32>
    %76 = arith.mulf %74, %75 : vector<34x34xf32>
    %77 = arith.addf %76, %41 : vector<34x34xf32>
    %cst_35 = arith.constant dense<0xFF800000> : vector<34xf32>
    %78 = vector.multi_reduction <maximumf>, %77, %cst_35 [1] : vector<34x34xf32> to vector<34xf32>
    %79 = vector.shape_cast %78 : vector<34xf32> to vector<34x1xf32>
    %80 = vector.broadcast %79 : vector<34x1xf32> to vector<34x34xf32>
    %81 = arith.subf %77, %80 : vector<34x34xf32>
    %82 = math.exp %81 : vector<34x34xf32>
    %cst_36 = arith.constant dense<0.000000e+00> : vector<34xf32>
    %83 = vector.multi_reduction <add>, %82, %cst_36 [1] : vector<34x34xf32> to vector<34xf32>
    %84 = vector.shape_cast %83 : vector<34xf32> to vector<34x1xf32>
    %85 = vector.broadcast %84 : vector<34x1xf32> to vector<34x34xf32>
    %86 = arith.divf %82, %85 : vector<34x34xf32>
    %87 = arith.truncf %86 : vector<34x34xf32> to vector<34x34xbf16>
    %cst_37 = arith.constant dense<0.000000e+00> : vector<34x8xf32>
    %88 = tpu.matmul %87, %73, %cst_37 {dimension_numbers = #tpu.dot_dimension_numbers<[1], [0], [0], [1], [0, 0, 1, 1], [], []>} : vector<34x34xbf16>, vector<34x8xbf16>, vector<34x8xf32> -> vector<34x8xf32>
    %89 = arith.truncf %88 : vector<34x8xf32> to vector<34x8xbf16>
    %90 = vector.extract_strided_slice %43 {offsets = [1, 0, 0], sizes = [1, 8, 32], strides = [1, 1, 1]} : vector<4x8x32xbf16> to vector<1x8x32xbf16>
    %91 = vector.shape_cast %90 : vector<1x8x32xbf16> to vector<8x32xbf16>
    %cst_38 = arith.constant dense<0.000000e+00> : vector<34x32xf32>
    %92 = tpu.matmul %89, %91, %cst_38 {dimension_numbers = #tpu.dot_dimension_numbers<[1], [0], [0], [1], [0, 0, 1, 1], [], []>} : vector<34x8xbf16>, vector<8x32xbf16>, vector<34x32xf32> -> vector<34x32xf32>
    %93 = arith.addf %67, %92 : vector<34x32xf32>
    %94 = vector.extract_strided_slice %86 {offsets = [0, 0], sizes = [1, 34], strides = [1, 1]} : vector<34x34xf32> to vector<1x34xf32>
    %95 = vector.extract_strided_slice %86 {offsets = [17, 0], sizes = [1, 34], strides = [1, 1]} : vector<34x34xf32> to vector<1x34xf32>
    %96 = tpu.concatenate %94, %95 in 0 : vector<1x34xf32>, vector<1x34xf32> -> vector<2x34xf32>
    %97 = vector.extract_strided_slice %40 {offsets = [0, 16], sizes = [34, 8], strides = [1, 1]} : vector<34x96xbf16> to vector<34x8xbf16>
    %98 = vector.extract_strided_slice %40 {offsets = [0, 48], sizes = [34, 8], strides = [1, 1]} : vector<34x96xbf16> to vector<34x8xbf16>
    %99 = vector.extract_strided_slice %40 {offsets = [0, 80], sizes = [34, 8], strides = [1, 1]} : vector<34x96xbf16> to vector<34x8xbf16>
    %cst_39 = arith.constant dense<0.000000e+00> : vector<34x34xf32>
    %100 = tpu.matmul %97, %98, %cst_39 {dimension_numbers = #tpu.dot_dimension_numbers<[1], [1], [0], [0], [0, 0, 1, 0], [], []>} : vector<34x8xbf16>, vector<34x8xbf16>, vector<34x34xf32> -> vector<34x34xf32>
    %cst_40 = arith.constant 0.353553385 : f32
    %101 = vector.broadcast %cst_40 : f32 to vector<34x34xf32>
    %102 = arith.mulf %100, %101 : vector<34x34xf32>
    %103 = arith.addf %102, %41 : vector<34x34xf32>
    %cst_41 = arith.constant dense<0xFF800000> : vector<34xf32>
    %104 = vector.multi_reduction <maximumf>, %103, %cst_41 [1] : vector<34x34xf32> to vector<34xf32>
    %105 = vector.shape_cast %104 : vector<34xf32> to vector<34x1xf32>
    %106 = vector.broadcast %105 : vector<34x1xf32> to vector<34x34xf32>
    %107 = arith.subf %103, %106 : vector<34x34xf32>
    %108 = math.exp %107 : vector<34x34xf32>
    %cst_42 = arith.constant dense<0.000000e+00> : vector<34xf32>
    %109 = vector.multi_reduction <add>, %108, %cst_42 [1] : vector<34x34xf32> to vector<34xf32>
    %110 = vector.shape_cast %109 : vector<34xf32> to vector<34x1xf32>
    %111 = vector.broadcast %110 : vector<34x1xf32> to vector<34x34xf32>
    %112 = arith.divf %108, %111 : vector<34x34xf32>
    %113 = arith.truncf %112 : vector<34x34xf32> to vector<34x34xbf16>
    %cst_43 = arith.constant dense<0.000000e+00> : vector<34x8xf32>
    %114 = tpu.matmul %113, %99, %cst_43 {dimension_numbers = #tpu.dot_dimension_numbers<[1], [0], [0], [1], [0, 0, 1, 1], [], []>} : vector<34x34xbf16>, vector<34x8xbf16>, vector<34x8xf32> -> vector<34x8xf32>
    %115 = arith.truncf %114 : vector<34x8xf32> to vector<34x8xbf16>
    %116 = vector.extract_strided_slice %43 {offsets = [2, 0, 0], sizes = [1, 8, 32], strides = [1, 1, 1]} : vector<4x8x32xbf16> to vector<1x8x32xbf16>
    %117 = vector.shape_cast %116 : vector<1x8x32xbf16> to vector<8x32xbf16>
    %cst_44 = arith.constant dense<0.000000e+00> : vector<34x32xf32>
    %118 = tpu.matmul %115, %117, %cst_44 {dimension_numbers = #tpu.dot_dimension_numbers<[1], [0], [0], [1], [0, 0, 1, 1], [], []>} : vector<34x8xbf16>, vector<8x32xbf16>, vector<34x32xf32> -> vector<34x32xf32>
    %119 = arith.addf %93, %118 : vector<34x32xf32>
    %120 = vector.extract_strided_slice %112 {offsets = [0, 0], sizes = [1, 34], strides = [1, 1]} : vector<34x34xf32> to vector<1x34xf32>
    %121 = vector.extract_strided_slice %112 {offsets = [17, 0], sizes = [1, 34], strides = [1, 1]} : vector<34x34xf32> to vector<1x34xf32>
    %122 = tpu.concatenate %120, %121 in 0 : vector<1x34xf32>, vector<1x34xf32> -> vector<2x34xf32>
    %123 = vector.extract_strided_slice %40 {offsets = [0, 24], sizes = [34, 8], strides = [1, 1]} : vector<34x96xbf16> to vector<34x8xbf16>
    %124 = vector.extract_strided_slice %40 {offsets = [0, 56], sizes = [34, 8], strides = [1, 1]} : vector<34x96xbf16> to vector<34x8xbf16>
    %125 = vector.extract_strided_slice %40 {offsets = [0, 88], sizes = [34, 8], strides = [1, 1]} : vector<34x96xbf16> to vector<34x8xbf16>
    %cst_45 = arith.constant dense<0.000000e+00> : vector<34x34xf32>
    %126 = tpu.matmul %123, %124, %cst_45 {dimension_numbers = #tpu.dot_dimension_numbers<[1], [1], [0], [0], [0, 0, 1, 0], [], []>} : vector<34x8xbf16>, vector<34x8xbf16>, vector<34x34xf32> -> vector<34x34xf32>
    %cst_46 = arith.constant 0.353553385 : f32
    %127 = vector.broadcast %cst_46 : f32 to vector<34x34xf32>
    %128 = arith.mulf %126, %127 : vector<34x34xf32>
    %129 = arith.addf %128, %41 : vector<34x34xf32>
    %cst_47 = arith.constant dense<0xFF800000> : vector<34xf32>
    %130 = vector.multi_reduction <maximumf>, %129, %cst_47 [1] : vector<34x34xf32> to vector<34xf32>
    %131 = vector.shape_cast %130 : vector<34xf32> to vector<34x1xf32>
    %132 = vector.broadcast %131 : vector<34x1xf32> to vector<34x34xf32>
    %133 = arith.subf %129, %132 : vector<34x34xf32>
    %134 = math.exp %133 : vector<34x34xf32>
    %cst_48 = arith.constant dense<0.000000e+00> : vector<34xf32>
    %135 = vector.multi_reduction <add>, %134, %cst_48 [1] : vector<34x34xf32> to vector<34xf32>
    %136 = vector.shape_cast %135 : vector<34xf32> to vector<34x1xf32>
    %137 = vector.broadcast %136 : vector<34x1xf32> to vector<34x34xf32>
    %138 = arith.divf %134, %137 : vector<34x34xf32>
    %139 = arith.truncf %138 : vector<34x34xf32> to vector<34x34xbf16>
    %cst_49 = arith.constant dense<0.000000e+00> : vector<34x8xf32>
    %140 = tpu.matmul %139, %125, %cst_49 {dimension_numbers = #tpu.dot_dimension_numbers<[1], [0], [0], [1], [0, 0, 1, 1], [], []>} : vector<34x34xbf16>, vector<34x8xbf16>, vector<34x8xf32> -> vector<34x8xf32>
    %141 = arith.truncf %140 : vector<34x8xf32> to vector<34x8xbf16>
    %142 = vector.extract_strided_slice %43 {offsets = [3, 0, 0], sizes = [1, 8, 32], strides = [1, 1, 1]} : vector<4x8x32xbf16> to vector<1x8x32xbf16>
    %143 = vector.shape_cast %142 : vector<1x8x32xbf16> to vector<8x32xbf16>
    %cst_50 = arith.constant dense<0.000000e+00> : vector<34x32xf32>
    %144 = tpu.matmul %141, %143, %cst_50 {dimension_numbers = #tpu.dot_dimension_numbers<[1], [0], [0], [1], [0, 0, 1, 1], [], []>} : vector<34x8xbf16>, vector<8x32xbf16>, vector<34x32xf32> -> vector<34x32xf32>
    %145 = arith.addf %119, %144 : vector<34x32xf32>
    %146 = vector.extract_strided_slice %138 {offsets = [0, 0], sizes = [1, 34], strides = [1, 1]} : vector<34x34xf32> to vector<1x34xf32>
    %147 = vector.extract_strided_slice %138 {offsets = [17, 0], sizes = [1, 34], strides = [1, 1]} : vector<34x34xf32> to vector<1x34xf32>
    %148 = tpu.concatenate %146, %147 in 0 : vector<1x34xf32>, vector<1x34xf32> -> vector<2x34xf32>
    %149 = tpu.concatenate %70, %96, %122, %148 in 0 : vector<2x34xf32>, vector<2x34xf32>, vector<2x34xf32>, vector<2x34xf32> -> vector<8x34xf32>
    %c0_51 = arith.constant 0 : index
    %c0_52 = arith.constant 0 : index
    %c0_53 = arith.constant 0 : index
    %150 = vector.load %arg18[%c0_51, %c0_52, %c0_53] : memref<1x8x34xf32, #tpu.memory_space<vmem>>, vector<1x8x34xf32>
    %151 = vector.shape_cast %150 : vector<1x8x34xf32> to vector<8x34xf32>
    %152 = vector.shape_cast %149 : vector<8x34xf32> to vector<1x8x34xf32>
    tpu.vector_store %arg18[%c0_51, %c0_52, %c0_53], %152 {strides = array<i32>} : memref<1x8x34xf32, #tpu.memory_space<vmem>>, vector<1x8x34xf32>,
    %c0_54 = arith.constant 0 : index
    %c0_55 = arith.constant 0 : index
    %c0_56 = arith.constant 0 : index
    %153 = vector.load %arg9[%c0_54, %c0_55, %c0_56] : memref<1x1x32xf32, #tpu.memory_space<vmem>>, vector<1x1x32xf32>
    %154 = vector.shape_cast %153 : vector<1x1x32xf32> to vector<1x32xf32>
    %c0_57 = arith.constant 0 : index
    %c0_58 = arith.constant 0 : index
    %c0_59 = arith.constant 0 : index
    %155 = vector.load %arg8[%c0_57, %c0_58, %c0_59] : memref<1x1x32xf32, #tpu.memory_space<vmem>>, vector<1x1x32xf32>
    %156 = vector.shape_cast %155 : vector<1x1x32xf32> to vector<1x32xf32>
    %157 = vector.broadcast %156 : vector<1x32xf32> to vector<34x32xf32>
    %158 = arith.addf %145, %157 : vector<34x32xf32>
    %159 = vector.broadcast %154 : vector<1x32xf32> to vector<34x32xf32>
    %160 = arith.mulf %159, %158 : vector<34x32xf32>
    %161 = arith.addf %3, %160 : vector<34x32xf32>
    %c0_60 = arith.constant 0 : index
    %c0_61 = arith.constant 0 : index
    %c0_62 = arith.constant 0 : index
    %162 = vector.load %arg10[%c0_60, %c0_61, %c0_62] : memref<1x1x32xf32, #tpu.memory_space<vmem>>, vector<1x1x32xf32>
    %163 = vector.shape_cast %162 : vector<1x1x32xf32> to vector<1x32xf32>
    %c0_63 = arith.constant 0 : index
    %c0_64 = arith.constant 0 : index
    %c0_65 = arith.constant 0 : index
    %164 = vector.load %arg11[%c0_63, %c0_64, %c0_65] : memref<1x1x32xf32, #tpu.memory_space<vmem>>, vector<1x1x32xf32>
    %165 = vector.shape_cast %164 : vector<1x1x32xf32> to vector<1x32xf32>
    %cst_66 = arith.constant dense<0.000000e+00> : vector<34xf32>
    %166 = vector.multi_reduction <add>, %161, %cst_66 [1] : vector<34x32xf32> to vector<34xf32>
    %167 = vector.shape_cast %166 : vector<34xf32> to vector<34x1xf32>
    %cst_67 = arith.constant 3.200000e+01 : f32
    %168 = vector.broadcast %cst_67 : f32 to vector<34x1xf32>
    %169 = arith.divf %167, %168 : vector<34x1xf32>
    %170 = arith.mulf %161, %161 : vector<34x32xf32>
    %cst_68 = arith.constant dense<0.000000e+00> : vector<34xf32>
    %171 = vector.multi_reduction <add>, %170, %cst_68 [1] : vector<34x32xf32> to vector<34xf32>
    %172 = vector.shape_cast %171 : vector<34xf32> to vector<34x1xf32>
    %cst_69 = arith.constant 3.200000e+01 : f32
    %173 = vector.broadcast %cst_69 : f32 to vector<34x1xf32>
    %174 = arith.divf %172, %173 : vector<34x1xf32>
    %175 = arith.mulf %169, %169 : vector<34x1xf32>
    %176 = arith.subf %174, %175 : vector<34x1xf32>
    %cst_70 = arith.constant 0.000000e+00 : f32
    %177 = vector.broadcast %cst_70 : f32 to vector<34x1xf32>
    %178 = arith.maximumf %176, %177 : vector<34x1xf32>
    %179 = vector.broadcast %169 : vector<34x1xf32> to vector<34x32xf32>
    %180 = arith.subf %161, %179 : vector<34x32xf32>
    %cst_71 = arith.constant 9.99999997E-7 : f32
    %181 = vector.broadcast %cst_71 : f32 to vector<34x1xf32>
    %182 = arith.addf %178, %181 : vector<34x1xf32>
    %183 = math.rsqrt %182 : vector<34x1xf32>
    %184 = vector.broadcast %183 : vector<34x1xf32> to vector<34x32xf32>
    %185 = arith.mulf %180, %184 : vector<34x32xf32>
    %186 = vector.broadcast %163 : vector<1x32xf32> to vector<34x32xf32>
    %187 = arith.mulf %185, %186 : vector<34x32xf32>
    %188 = vector.broadcast %165 : vector<1x32xf32> to vector<34x32xf32>
    %189 = arith.addf %187, %188 : vector<34x32xf32>
    %190 = arith.truncf %189 : vector<34x32xf32> to vector<34x32xbf16>
    %c0_72 = arith.constant 0 : index
    %c0_73 = arith.constant 0 : index
    %c0_74 = arith.constant 0 : index
    %191 = vector.load %arg12[%c0_72, %c0_73, %c0_74] : memref<1x32x64xbf16, #tpu.memory_space<vmem>>, vector<1x32x64xbf16>
    %192 = vector.shape_cast %191 : vector<1x32x64xbf16> to vector<32x64xbf16>
    %cst_75 = arith.constant dense<0.000000e+00> : vector<34x64xf32>
    %193 = tpu.matmul %190, %192, %cst_75 {dimension_numbers = #tpu.dot_dimension_numbers<[1], [0], [0], [1], [0, 0, 1, 1], [], []>} : vector<34x32xbf16>, vector<32x64xbf16>, vector<34x64xf32> -> vector<34x64xf32>
    %c0_76 = arith.constant 0 : index
    %c0_77 = arith.constant 0 : index
    %c0_78 = arith.constant 0 : index
    %194 = vector.load %arg13[%c0_76, %c0_77, %c0_78] : memref<1x1x64xf32, #tpu.memory_space<vmem>>, vector<1x1x64xf32>
    %195 = vector.shape_cast %194 : vector<1x1x64xf32> to vector<1x64xf32>
    %196 = vector.broadcast %195 : vector<1x64xf32> to vector<34x64xf32>
    %197 = arith.addf %193, %196 : vector<34x64xf32>
    %198 = arith.mulf %197, %197 : vector<34x64xf32>
    %199 = arith.mulf %197, %198 : vector<34x64xf32>
    %cst_79 = arith.constant 4.471500e-02 : f32
    %200 = vector.broadcast %cst_79 : f32 to vector<34x64xf32>
    %201 = arith.mulf %200, %199 : vector<34x64xf32>
    %202 = arith.addf %197, %201 : vector<34x64xf32>
    %cst_80 = arith.constant 0.797884583 : f32
    %203 = vector.broadcast %cst_80 : f32 to vector<34x64xf32>
    %204 = arith.mulf %203, %202 : vector<34x64xf32>
    %205 = math.tanh %204 : vector<34x64xf32>
    %cst_81 = arith.constant 1.000000e+00 : f32
    %206 = vector.broadcast %cst_81 : f32 to vector<34x64xf32>
    %207 = arith.addf %206, %205 : vector<34x64xf32>
    %cst_82 = arith.constant 5.000000e-01 : f32
    %208 = vector.broadcast %cst_82 : f32 to vector<34x64xf32>
    %209 = arith.mulf %208, %207 : vector<34x64xf32>
    %210 = arith.mulf %197, %209 : vector<34x64xf32>
    %211 = arith.truncf %210 : vector<34x64xf32> to vector<34x64xbf16>
    %c0_83 = arith.constant 0 : index
    %c0_84 = arith.constant 0 : index
    %c0_85 = arith.constant 0 : index
    %212 = vector.load %arg14[%c0_83, %c0_84, %c0_85] : memref<1x64x32xbf16, #tpu.memory_space<vmem>>, vector<1x64x32xbf16>
    %213 = vector.shape_cast %212 : vector<1x64x32xbf16> to vector<64x32xbf16>
    %cst_86 = arith.constant dense<0.000000e+00> : vector<34x32xf32>
    %214 = tpu.matmul %211, %213, %cst_86 {dimension_numbers = #tpu.dot_dimension_numbers<[1], [0], [0], [1], [0, 0, 1, 1], [], []>} : vector<34x64xbf16>, vector<64x32xbf16>, vector<34x32xf32> -> vector<34x32xf32>
    %c0_87 = arith.constant 0 : index
    %c0_88 = arith.constant 0 : index
    %c0_89 = arith.constant 0 : index
    %215 = vector.load %arg15[%c0_87, %c0_88, %c0_89] : memref<1x1x32xf32, #tpu.memory_space<vmem>>, vector<1x1x32xf32>
    %216 = vector.shape_cast %215 : vector<1x1x32xf32> to vector<1x32xf32>
    %217 = vector.broadcast %216 : vector<1x32xf32> to vector<34x32xf32>
    %218 = arith.addf %214, %217 : vector<34x32xf32>
    %c0_90 = arith.constant 0 : index
    %c0_91 = arith.constant 0 : index
    %c0_92 = arith.constant 0 : index
    %219 = vector.load %arg16[%c0_90, %c0_91, %c0_92] : memref<1x1x32xf32, #tpu.memory_space<vmem>>, vector<1x1x32xf32>
    %220 = vector.shape_cast %219 : vector<1x1x32xf32> to vector<1x32xf32>
    %221 = vector.broadcast %220 : vector<1x32xf32> to vector<34x32xf32>
    %222 = arith.mulf %221, %218 : vector<34x32xf32>
    %223 = arith.addf %161, %222 : vector<34x32xf32>
    %c0_93 = arith.constant 0 : index
    %c0_94 = arith.constant 0 : index
    %224 = vector.load %arg19[%c0_93, %c0_94] : memref<34x32xf32, #tpu.memory_space<vmem>>, vector<34x32xf32>
    tpu.vector_store %arg19[%c0_93, %c0_94], %223 {strides = array<i32>} : memref<34x32xf32, #tpu.memory_space<vmem>>, vector<34x32xf32>,
    %c0_95 = arith.constant 0 : index
    %c0_96 = arith.constant 0 : index
    %c0_97 = arith.constant 0 : index
    %225 = vector.load %arg17[%c0_95, %c0_96, %c0_97] : memref<1x34x32xf32, #tpu.memory_space<vmem>>, vector<1x34x32xf32>
    %226 = vector.shape_cast %225 : vector<1x34x32xf32> to vector<34x32xf32>
    %227 = vector.shape_cast %223 : vector<34x32xf32> to vector<1x34x32xf32>
    tpu.vector_store %arg17[%c0_95, %c0_96, %c0_97], %227 {strides = array<i32>} : memref<1x34x32xf32, #tpu.memory_space<vmem>>, vector<1x34x32xf32>,
    return
  }
  func.func @transform_0(%arg0: i32) -> (i32, i32) {
    %c0_i32 = arith.constant 0 : i32
    %c0_i32_0 = arith.constant 0 : i32
    %c0_i32_1 = arith.constant 0 : i32
    return %c0_i32, %c0_i32_0 : i32, i32
  }
  func.func @transform_1(%arg0: i32) -> (i32, i32) {
    %c0_i32 = arith.constant 0 : i32
    %c0_i32_0 = arith.constant 0 : i32
    %c0_i32_1 = arith.constant 0 : i32
    return %c0_i32, %c0_i32_0 : i32, i32
  }
  func.func @transform_2(%arg0: i32) -> (i32, i32, i32) {
    %c0_i32 = arith.constant 0 : i32
    %c0_i32_0 = arith.constant 0 : i32
    %c0_i32_1 = arith.constant 0 : i32
    return %arg0, %c0_i32, %c0_i32_0 : i32, i32, i32
  }
  func.func @transform_3(%arg0: i32) -> (i32, i32, i32) {
    %c0_i32 = arith.constant 0 : i32
    %c0_i32_0 = arith.constant 0 : i32
    %c0_i32_1 = arith.constant 0 : i32
    return %arg0, %c0_i32, %c0_i32_0 : i32, i32, i32
  }
  func.func @transform_4(%arg0: i32) -> (i32, i32, i32) {
    %c0_i32 = arith.constant 0 : i32
    %c0_i32_0 = arith.constant 0 : i32
    %c0_i32_1 = arith.constant 0 : i32
    return %arg0, %c0_i32, %c0_i32_0 : i32, i32, i32
  }
  func.func @transform_5(%arg0: i32) -> (i32, i32, i32) {
    %c0_i32 = arith.constant 0 : i32
    %c0_i32_0 = arith.constant 0 : i32
    %c0_i32_1 = arith.constant 0 : i32
    return %arg0, %c0_i32, %c0_i32_0 : i32, i32, i32
  }
  func.func @transform_6(%arg0: i32) -> (i32, i32, i32, i32) {
    %c0_i32 = arith.constant 0 : i32
    %c0_i32_0 = arith.constant 0 : i32
    %c0_i32_1 = arith.constant 0 : i32
    %c0_i32_2 = arith.constant 0 : i32
    return %arg0, %c0_i32, %c0_i32_0, %c0_i32_1 : i32, i32, i32, i32
  }
  func.func @transform_7(%arg0: i32) -> (i32, i32, i32) {
    %c0_i32 = arith.constant 0 : i32
    %c0_i32_0 = arith.constant 0 : i32
    %c0_i32_1 = arith.constant 0 : i32
    return %arg0, %c0_i32, %c0_i32_0 : i32, i32, i32
  }
  func.func @transform_8(%arg0: i32) -> (i32, i32, i32) {
    %c0_i32 = arith.constant 0 : i32
    %c0_i32_0 = arith.constant 0 : i32
    %c0_i32_1 = arith.constant 0 : i32
    return %arg0, %c0_i32, %c0_i32_0 : i32, i32, i32
  }
  func.func @transform_9(%arg0: i32) -> (i32, i32, i32) {
    %c0_i32 = arith.constant 0 : i32
    %c0_i32_0 = arith.constant 0 : i32
    %c0_i32_1 = arith.constant 0 : i32
    return %arg0, %c0_i32, %c0_i32_0 : i32, i32, i32
  }
  func.func @transform_10(%arg0: i32) -> (i32, i32, i32) {
    %c0_i32 = arith.constant 0 : i32
    %c0_i32_0 = arith.constant 0 : i32
    %c0_i32_1 = arith.constant 0 : i32
    return %arg0, %c0_i32, %c0_i32_0 : i32, i32, i32
  }
  func.func @transform_11(%arg0: i32) -> (i32, i32, i32) {
    %c0_i32 = arith.constant 0 : i32
    %c0_i32_0 = arith.constant 0 : i32
    %c0_i32_1 = arith.constant 0 : i32
    return %arg0, %c0_i32, %c0_i32_0 : i32, i32, i32
  }
  func.func @transform_12(%arg0: i32) -> (i32, i32, i32) {
    %c0_i32 = arith.constant 0 : i32
    %c0_i32_0 = arith.constant 0 : i32
    %c0_i32_1 = arith.constant 0 : i32
    return %arg0, %c0_i32, %c0_i32_0 : i32, i32, i32
  }
  func.func @transform_13(%arg0: i32) -> (i32, i32, i32) {
    %c0_i32 = arith.constant 0 : i32
    %c0_i32_0 = arith.constant 0 : i32
    %c0_i32_1 = arith.constant 0 : i32
    return %arg0, %c0_i32, %c0_i32_0 : i32, i32, i32
  }
  func.func @transform_14(%arg0: i32) -> (i32, i32, i32) {
    %c0_i32 = arith.constant 0 : i32
    %c0_i32_0 = arith.constant 0 : i32
    %c0_i32_1 = arith.constant 0 : i32
    return %arg0, %c0_i32, %c0_i32_0 : i32, i32, i32
  }
  func.func @transform_15(%arg0: i32) -> (i32, i32, i32) {
    %c0_i32 = arith.constant 0 : i32
    %c0_i32_0 = arith.constant 0 : i32
    %c0_i32_1 = arith.constant 0 : i32
    return %arg0, %c0_i32, %c0_i32_0 : i32, i32, i32
  }
  func.func @transform_16(%arg0: i32) -> (i32, i32, i32) {
    %c0_i32 = arith.constant 0 : i32
    %c0_i32_0 = arith.constant 0 : i32
    %c0_i32_1 = arith.constant 0 : i32
    return %arg0, %c0_i32, %c0_i32_0 : i32, i32, i32
  }
  func.func @transform_17(%arg0: i32) -> (i32, i32, i32) {
    %c0_i32 = arith.constant 0 : i32
    %c0_i32_0 = arith.constant 0 : i32
    %c0_i32_1 = arith.constant 0 : i32
    return %arg0, %c0_i32, %c0_i32_0 : i32, i32, i32
  }
}

module attributes {stable_mosaic.version = 11 : i64} {
  func.func @_enhance_kernel(%arg0: memref<6x12x12xf32, #tpu.memory_space<vmem>>, %arg1: memref<6x4x4xf32, #tpu.memory_space<vmem>>) attributes {dimension_semantics = [], scalar_prefetch = 0 : i64, scratch_operands = 0 : i64, tpu.core_type = #tpu.core_type<tc>} {
    %c0 = arith.constant 0 : index
    %c0_0 = arith.constant 0 : index
    %c0_1 = arith.constant 0 : index
    %0 = vector.load %arg0[%c0, %c0_0, %c0_1] : memref<6x12x12xf32, #tpu.memory_space<vmem>>, vector<6x12x12xf32>
    %cst = arith.constant 0.000000e+00 : f32
    %1 = vector.broadcast %cst : f32 to vector<6x4x4xf32>
    %2 = vector.extract_strided_slice %0 {offsets = [0, 3, 3], sizes = [6, 4, 4], strides = [1, 1, 1]} : vector<6x12x12xf32> to vector<6x4x4xf32>
    %cst_2 = arith.constant 1.000000e+00 : f32
    %3 = vector.broadcast %cst_2 : f32 to vector<6x4x4xf32>
    %4 = arith.mulf %3, %2 : vector<6x4x4xf32>
    %5 = arith.addf %1, %4 : vector<6x4x4xf32>
    %6 = vector.extract_strided_slice %0 {offsets = [0, 3, 4], sizes = [6, 4, 4], strides = [1, 1, 1]} : vector<6x12x12xf32> to vector<6x4x4xf32>
    %cst_3 = arith.constant 2.000000e+00 : f32
    %7 = vector.broadcast %cst_3 : f32 to vector<6x4x4xf32>
    %8 = arith.mulf %7, %6 : vector<6x4x4xf32>
    %9 = arith.addf %5, %8 : vector<6x4x4xf32>
    %10 = vector.extract_strided_slice %0 {offsets = [0, 3, 5], sizes = [6, 4, 4], strides = [1, 1, 1]} : vector<6x12x12xf32> to vector<6x4x4xf32>
    %cst_4 = arith.constant 1.000000e+00 : f32
    %11 = vector.broadcast %cst_4 : f32 to vector<6x4x4xf32>
    %12 = arith.mulf %11, %10 : vector<6x4x4xf32>
    %13 = arith.addf %9, %12 : vector<6x4x4xf32>
    %14 = vector.extract_strided_slice %0 {offsets = [0, 4, 3], sizes = [6, 4, 4], strides = [1, 1, 1]} : vector<6x12x12xf32> to vector<6x4x4xf32>
    %cst_5 = arith.constant 2.000000e+00 : f32
    %15 = vector.broadcast %cst_5 : f32 to vector<6x4x4xf32>
    %16 = arith.mulf %15, %14 : vector<6x4x4xf32>
    %17 = arith.addf %13, %16 : vector<6x4x4xf32>
    %18 = vector.extract_strided_slice %0 {offsets = [0, 4, 4], sizes = [6, 4, 4], strides = [1, 1, 1]} : vector<6x12x12xf32> to vector<6x4x4xf32>
    %cst_6 = arith.constant 4.000000e+00 : f32
    %19 = vector.broadcast %cst_6 : f32 to vector<6x4x4xf32>
    %20 = arith.mulf %19, %18 : vector<6x4x4xf32>
    %21 = arith.addf %17, %20 : vector<6x4x4xf32>
    %22 = vector.extract_strided_slice %0 {offsets = [0, 4, 5], sizes = [6, 4, 4], strides = [1, 1, 1]} : vector<6x12x12xf32> to vector<6x4x4xf32>
    %cst_7 = arith.constant 2.000000e+00 : f32
    %23 = vector.broadcast %cst_7 : f32 to vector<6x4x4xf32>
    %24 = arith.mulf %23, %22 : vector<6x4x4xf32>
    %25 = arith.addf %21, %24 : vector<6x4x4xf32>
    %26 = vector.extract_strided_slice %0 {offsets = [0, 5, 3], sizes = [6, 4, 4], strides = [1, 1, 1]} : vector<6x12x12xf32> to vector<6x4x4xf32>
    %cst_8 = arith.constant 1.000000e+00 : f32
    %27 = vector.broadcast %cst_8 : f32 to vector<6x4x4xf32>
    %28 = arith.mulf %27, %26 : vector<6x4x4xf32>
    %29 = arith.addf %25, %28 : vector<6x4x4xf32>
    %30 = vector.extract_strided_slice %0 {offsets = [0, 5, 4], sizes = [6, 4, 4], strides = [1, 1, 1]} : vector<6x12x12xf32> to vector<6x4x4xf32>
    %cst_9 = arith.constant 2.000000e+00 : f32
    %31 = vector.broadcast %cst_9 : f32 to vector<6x4x4xf32>
    %32 = arith.mulf %31, %30 : vector<6x4x4xf32>
    %33 = arith.addf %29, %32 : vector<6x4x4xf32>
    %34 = vector.extract_strided_slice %0 {offsets = [0, 5, 5], sizes = [6, 4, 4], strides = [1, 1, 1]} : vector<6x12x12xf32> to vector<6x4x4xf32>
    %cst_10 = arith.constant 1.000000e+00 : f32
    %35 = vector.broadcast %cst_10 : f32 to vector<6x4x4xf32>
    %36 = arith.mulf %35, %34 : vector<6x4x4xf32>
    %37 = arith.addf %33, %36 : vector<6x4x4xf32>
    %cst_11 = arith.constant 0.000000e+00 : f32
    %38 = vector.broadcast %cst_11 : f32 to vector<6x4x4xf32>
    %39 = vector.extract_strided_slice %0 {offsets = [0, 2, 2], sizes = [6, 4, 4], strides = [1, 1, 1]} : vector<6x12x12xf32> to vector<6x4x4xf32>
    %cst_12 = arith.constant 1.000000e+00 : f32
    %40 = vector.broadcast %cst_12 : f32 to vector<6x4x4xf32>
    %41 = arith.mulf %40, %39 : vector<6x4x4xf32>
    %42 = arith.addf %38, %41 : vector<6x4x4xf32>
    %43 = vector.extract_strided_slice %0 {offsets = [0, 2, 4], sizes = [6, 4, 4], strides = [1, 1, 1]} : vector<6x12x12xf32> to vector<6x4x4xf32>
    %cst_13 = arith.constant 2.000000e+00 : f32
    %44 = vector.broadcast %cst_13 : f32 to vector<6x4x4xf32>
    %45 = arith.mulf %44, %43 : vector<6x4x4xf32>
    %46 = arith.addf %42, %45 : vector<6x4x4xf32>
    %47 = vector.extract_strided_slice %0 {offsets = [0, 2, 6], sizes = [6, 4, 4], strides = [1, 1, 1]} : vector<6x12x12xf32> to vector<6x4x4xf32>
    %cst_14 = arith.constant 1.000000e+00 : f32
    %48 = vector.broadcast %cst_14 : f32 to vector<6x4x4xf32>
    %49 = arith.mulf %48, %47 : vector<6x4x4xf32>
    %50 = arith.addf %46, %49 : vector<6x4x4xf32>
    %51 = vector.extract_strided_slice %0 {offsets = [0, 4, 2], sizes = [6, 4, 4], strides = [1, 1, 1]} : vector<6x12x12xf32> to vector<6x4x4xf32>
    %cst_15 = arith.constant 2.000000e+00 : f32
    %52 = vector.broadcast %cst_15 : f32 to vector<6x4x4xf32>
    %53 = arith.mulf %52, %51 : vector<6x4x4xf32>
    %54 = arith.addf %50, %53 : vector<6x4x4xf32>
    %55 = vector.extract_strided_slice %0 {offsets = [0, 4, 4], sizes = [6, 4, 4], strides = [1, 1, 1]} : vector<6x12x12xf32> to vector<6x4x4xf32>
    %cst_16 = arith.constant 4.000000e+00 : f32
    %56 = vector.broadcast %cst_16 : f32 to vector<6x4x4xf32>
    %57 = arith.mulf %56, %55 : vector<6x4x4xf32>
    %58 = arith.addf %54, %57 : vector<6x4x4xf32>
    %59 = vector.extract_strided_slice %0 {offsets = [0, 4, 6], sizes = [6, 4, 4], strides = [1, 1, 1]} : vector<6x12x12xf32> to vector<6x4x4xf32>
    %cst_17 = arith.constant 2.000000e+00 : f32
    %60 = vector.broadcast %cst_17 : f32 to vector<6x4x4xf32>
    %61 = arith.mulf %60, %59 : vector<6x4x4xf32>
    %62 = arith.addf %58, %61 : vector<6x4x4xf32>
    %63 = vector.extract_strided_slice %0 {offsets = [0, 6, 2], sizes = [6, 4, 4], strides = [1, 1, 1]} : vector<6x12x12xf32> to vector<6x4x4xf32>
    %cst_18 = arith.constant 1.000000e+00 : f32
    %64 = vector.broadcast %cst_18 : f32 to vector<6x4x4xf32>
    %65 = arith.mulf %64, %63 : vector<6x4x4xf32>
    %66 = arith.addf %62, %65 : vector<6x4x4xf32>
    %67 = vector.extract_strided_slice %0 {offsets = [0, 6, 4], sizes = [6, 4, 4], strides = [1, 1, 1]} : vector<6x12x12xf32> to vector<6x4x4xf32>
    %cst_19 = arith.constant 2.000000e+00 : f32
    %68 = vector.broadcast %cst_19 : f32 to vector<6x4x4xf32>
    %69 = arith.mulf %68, %67 : vector<6x4x4xf32>
    %70 = arith.addf %66, %69 : vector<6x4x4xf32>
    %71 = vector.extract_strided_slice %0 {offsets = [0, 6, 6], sizes = [6, 4, 4], strides = [1, 1, 1]} : vector<6x12x12xf32> to vector<6x4x4xf32>
    %cst_20 = arith.constant 1.000000e+00 : f32
    %72 = vector.broadcast %cst_20 : f32 to vector<6x4x4xf32>
    %73 = arith.mulf %72, %71 : vector<6x4x4xf32>
    %74 = arith.addf %70, %73 : vector<6x4x4xf32>
    %75 = arith.maximumf %37, %74 : vector<6x4x4xf32>
    %cst_21 = arith.constant 0.000000e+00 : f32
    %76 = vector.broadcast %cst_21 : f32 to vector<6x4x4xf32>
    %77 = vector.extract_strided_slice %0 {offsets = [0, 0, 0], sizes = [6, 4, 4], strides = [1, 1, 1]} : vector<6x12x12xf32> to vector<6x4x4xf32>
    %cst_22 = arith.constant 1.000000e+00 : f32
    %78 = vector.broadcast %cst_22 : f32 to vector<6x4x4xf32>
    %79 = arith.mulf %78, %77 : vector<6x4x4xf32>
    %80 = arith.addf %76, %79 : vector<6x4x4xf32>
    %81 = vector.extract_strided_slice %0 {offsets = [0, 0, 4], sizes = [6, 4, 4], strides = [1, 1, 1]} : vector<6x12x12xf32> to vector<6x4x4xf32>
    %cst_23 = arith.constant 2.000000e+00 : f32
    %82 = vector.broadcast %cst_23 : f32 to vector<6x4x4xf32>
    %83 = arith.mulf %82, %81 : vector<6x4x4xf32>
    %84 = arith.addf %80, %83 : vector<6x4x4xf32>
    %85 = vector.extract_strided_slice %0 {offsets = [0, 0, 8], sizes = [6, 4, 4], strides = [1, 1, 1]} : vector<6x12x12xf32> to vector<6x4x4xf32>
    %cst_24 = arith.constant 1.000000e+00 : f32
    %86 = vector.broadcast %cst_24 : f32 to vector<6x4x4xf32>
    %87 = arith.mulf %86, %85 : vector<6x4x4xf32>
    %88 = arith.addf %84, %87 : vector<6x4x4xf32>
    %89 = vector.extract_strided_slice %0 {offsets = [0, 4, 0], sizes = [6, 4, 4], strides = [1, 1, 1]} : vector<6x12x12xf32> to vector<6x4x4xf32>
    %cst_25 = arith.constant 2.000000e+00 : f32
    %90 = vector.broadcast %cst_25 : f32 to vector<6x4x4xf32>
    %91 = arith.mulf %90, %89 : vector<6x4x4xf32>
    %92 = arith.addf %88, %91 : vector<6x4x4xf32>
    %93 = vector.extract_strided_slice %0 {offsets = [0, 4, 4], sizes = [6, 4, 4], strides = [1, 1, 1]} : vector<6x12x12xf32> to vector<6x4x4xf32>
    %cst_26 = arith.constant 4.000000e+00 : f32
    %94 = vector.broadcast %cst_26 : f32 to vector<6x4x4xf32>
    %95 = arith.mulf %94, %93 : vector<6x4x4xf32>
    %96 = arith.addf %92, %95 : vector<6x4x4xf32>
    %97 = vector.extract_strided_slice %0 {offsets = [0, 4, 8], sizes = [6, 4, 4], strides = [1, 1, 1]} : vector<6x12x12xf32> to vector<6x4x4xf32>
    %cst_27 = arith.constant 2.000000e+00 : f32
    %98 = vector.broadcast %cst_27 : f32 to vector<6x4x4xf32>
    %99 = arith.mulf %98, %97 : vector<6x4x4xf32>
    %100 = arith.addf %96, %99 : vector<6x4x4xf32>
    %101 = vector.extract_strided_slice %0 {offsets = [0, 8, 0], sizes = [6, 4, 4], strides = [1, 1, 1]} : vector<6x12x12xf32> to vector<6x4x4xf32>
    %cst_28 = arith.constant 1.000000e+00 : f32
    %102 = vector.broadcast %cst_28 : f32 to vector<6x4x4xf32>
    %103 = arith.mulf %102, %101 : vector<6x4x4xf32>
    %104 = arith.addf %100, %103 : vector<6x4x4xf32>
    %105 = vector.extract_strided_slice %0 {offsets = [0, 8, 4], sizes = [6, 4, 4], strides = [1, 1, 1]} : vector<6x12x12xf32> to vector<6x4x4xf32>
    %cst_29 = arith.constant 2.000000e+00 : f32
    %106 = vector.broadcast %cst_29 : f32 to vector<6x4x4xf32>
    %107 = arith.mulf %106, %105 : vector<6x4x4xf32>
    %108 = arith.addf %104, %107 : vector<6x4x4xf32>
    %109 = vector.extract_strided_slice %0 {offsets = [0, 8, 8], sizes = [6, 4, 4], strides = [1, 1, 1]} : vector<6x12x12xf32> to vector<6x4x4xf32>
    %cst_30 = arith.constant 1.000000e+00 : f32
    %110 = vector.broadcast %cst_30 : f32 to vector<6x4x4xf32>
    %111 = arith.mulf %110, %109 : vector<6x4x4xf32>
    %112 = arith.addf %108, %111 : vector<6x4x4xf32>
    %113 = arith.maximumf %75, %112 : vector<6x4x4xf32>
    %c0_31 = arith.constant 0 : index
    %c0_32 = arith.constant 0 : index
    %c0_33 = arith.constant 0 : index
    %114 = vector.load %arg1[%c0_31, %c0_32, %c0_33] : memref<6x4x4xf32, #tpu.memory_space<vmem>>, vector<6x4x4xf32>
    tpu.vector_store %arg1[%c0_31, %c0_32, %c0_33], %113 {strides = array<i32>} : memref<6x4x4xf32, #tpu.memory_space<vmem>>, vector<6x4x4xf32>,
    return
  }
}

module attributes {stable_mosaic.version = 11 : i64} {
  func.func @_stack_kernel(%arg0: i32, %arg1: memref<14x32xf32, #tpu.memory_space<vmem>>, %arg2: memref<14x14xf32, #tpu.memory_space<vmem>>, %arg3: memref<1x1x32xf32, #tpu.memory_space<vmem>>, %arg4: memref<1x1x32xf32, #tpu.memory_space<vmem>>, %arg5: memref<1x32x96xbf16, #tpu.memory_space<vmem>>, %arg6: memref<1x1x96xf32, #tpu.memory_space<vmem>>, %arg7: memref<1x4x8x32xbf16, #tpu.memory_space<vmem>>, %arg8: memref<1x1x32xf32, #tpu.memory_space<vmem>>, %arg9: memref<1x1x32xf32, #tpu.memory_space<vmem>>, %arg10: memref<1x1x32xf32, #tpu.memory_space<vmem>>, %arg11: memref<1x1x32xf32, #tpu.memory_space<vmem>>, %arg12: memref<1x32x64xbf16, #tpu.memory_space<vmem>>, %arg13: memref<1x1x64xf32, #tpu.memory_space<vmem>>, %arg14: memref<1x64x32xbf16, #tpu.memory_space<vmem>>, %arg15: memref<1x1x32xf32, #tpu.memory_space<vmem>>, %arg16: memref<1x1x32xf32, #tpu.memory_space<vmem>>, %arg17: memref<1x1x32xf32, #tpu.memory_space<vmem>>, %arg18: memref<1x1x32xf32, #tpu.memory_space<vmem>>, %arg19: memref<1x14x32xf32, #tpu.memory_space<vmem>>, %arg20: memref<1x8x14xf32, #tpu.memory_space<vmem>>, %arg21: memref<14x32xf32, #tpu.memory_space<vmem>>) attributes {dimension_semantics = [#tpu.dimension_semantics<arbitrary>], iteration_bounds = array<i64: 1>, scalar_prefetch = 0 : i64, scratch_operands = 1 : i64, tpu.core_type = #tpu.core_type<tc>, window_params = [{pipeline_mode = #tpu.pipeline_mode<synchronous>, transform_indices = @transform_0, window_bounds = array<i64: 14, 32>}, {pipeline_mode = #tpu.pipeline_mode<synchronous>, transform_indices = @transform_1, window_bounds = array<i64: 14, 14>}, {transform_indices = @transform_2, window_bounds = array<i64: 1, 1, 32>}, {transform_indices = @transform_3, window_bounds = array<i64: 1, 1, 32>}, {transform_indices = @transform_4, window_bounds = array<i64: 1, 32, 96>}, {transform_indices = @transform_5, window_bounds = array<i64: 1, 1, 96>}, {transform_indices = @transform_6, window_bounds = array<i64: 1, 4, 8, 32>}, {transform_indices = @transform_7, window_bounds = array<i64: 1, 1, 32>}, {transform_indices = @transform_8, window_bounds = array<i64: 1, 1, 32>}, {transform_indices = @transform_9, window_bounds = array<i64: 1, 1, 32>}, {transform_indices = @transform_10, window_bounds = array<i64: 1, 1, 32>}, {transform_indices = @transform_11, window_bounds = array<i64: 1, 32, 64>}, {transform_indices = @transform_12, window_bounds = array<i64: 1, 1, 64>}, {transform_indices = @transform_13, window_bounds = array<i64: 1, 64, 32>}, {transform_indices = @transform_14, window_bounds = array<i64: 1, 1, 32>}, {transform_indices = @transform_15, window_bounds = array<i64: 1, 1, 32>}, {pipeline_mode = #tpu.pipeline_mode<synchronous>, transform_indices = @transform_16, window_bounds = array<i64: 1, 1, 32>}, {pipeline_mode = #tpu.pipeline_mode<synchronous>, transform_indices = @transform_17, window_bounds = array<i64: 1, 1, 32>}, {transform_indices = @transform_18, window_bounds = array<i64: 1, 14, 32>}, {transform_indices = @transform_19, window_bounds = array<i64: 1, 8, 14>}]} {
    %c0_i32 = arith.constant 0 : i32
    %0 = arith.cmpi eq, %arg0, %c0_i32 : i32
    %1 = arith.extui %0 : i1 to i32
    %c0_i32_0 = arith.constant 0 : i32
    %2 = arith.cmpi ne, %1, %c0_i32_0 : i32
    scf.if %2 {
      %c0_110 = arith.constant 0 : index
      %c0_111 = arith.constant 0 : index
      %256 = vector.load %arg1[%c0_110, %c0_111] : memref<14x32xf32, #tpu.memory_space<vmem>>, vector<14x32xf32>
      %c0_112 = arith.constant 0 : index
      %c0_113 = arith.constant 0 : index
      %257 = vector.load %arg21[%c0_112, %c0_113] : memref<14x32xf32, #tpu.memory_space<vmem>>, vector<14x32xf32>
      tpu.vector_store %arg21[%c0_112, %c0_113], %256 {strides = array<i32>} : memref<14x32xf32, #tpu.memory_space<vmem>>, vector<14x32xf32>,
    } else {
    }
    %c0 = arith.constant 0 : index
    %c0_1 = arith.constant 0 : index
    %3 = vector.load %arg21[%c0, %c0_1] : memref<14x32xf32, #tpu.memory_space<vmem>>, vector<14x32xf32>
    %c0_2 = arith.constant 0 : index
    %c0_3 = arith.constant 0 : index
    %c0_4 = arith.constant 0 : index
    %4 = vector.load %arg3[%c0_2, %c0_3, %c0_4] : memref<1x1x32xf32, #tpu.memory_space<vmem>>, vector<1x1x32xf32>
    %5 = vector.shape_cast %4 : vector<1x1x32xf32> to vector<1x32xf32>
    %c0_5 = arith.constant 0 : index
    %c0_6 = arith.constant 0 : index
    %c0_7 = arith.constant 0 : index
    %6 = vector.load %arg4[%c0_5, %c0_6, %c0_7] : memref<1x1x32xf32, #tpu.memory_space<vmem>>, vector<1x1x32xf32>
    %7 = vector.shape_cast %6 : vector<1x1x32xf32> to vector<1x32xf32>
    %cst = arith.constant dense<0.000000e+00> : vector<14xf32>
    %8 = vector.multi_reduction <add>, %3, %cst [1] : vector<14x32xf32> to vector<14xf32>
    %9 = vector.shape_cast %8 : vector<14xf32> to vector<14x1xf32>
    %cst_8 = arith.constant 3.200000e+01 : f32
    %10 = vector.broadcast %cst_8 : f32 to vector<14x1xf32>
    %11 = arith.divf %9, %10 : vector<14x1xf32>
    %12 = arith.mulf %3, %3 : vector<14x32xf32>
    %cst_9 = arith.constant dense<0.000000e+00> : vector<14xf32>
    %13 = vector.multi_reduction <add>, %12, %cst_9 [1] : vector<14x32xf32> to vector<14xf32>
    %14 = vector.shape_cast %13 : vector<14xf32> to vector<14x1xf32>
    %cst_10 = arith.constant 3.200000e+01 : f32
    %15 = vector.broadcast %cst_10 : f32 to vector<14x1xf32>
    %16 = arith.divf %14, %15 : vector<14x1xf32>
    %17 = arith.mulf %11, %11 : vector<14x1xf32>
    %18 = arith.subf %16, %17 : vector<14x1xf32>
    %cst_11 = arith.constant 0.000000e+00 : f32
    %19 = vector.broadcast %cst_11 : f32 to vector<14x1xf32>
    %20 = arith.maximumf %18, %19 : vector<14x1xf32>
    %21 = vector.broadcast %11 : vector<14x1xf32> to vector<14x32xf32>
    %22 = arith.subf %3, %21 : vector<14x32xf32>
    %cst_12 = arith.constant 9.99999997E-7 : f32
    %23 = vector.broadcast %cst_12 : f32 to vector<14x1xf32>
    %24 = arith.addf %20, %23 : vector<14x1xf32>
    %25 = math.rsqrt %24 : vector<14x1xf32>
    %26 = vector.broadcast %25 : vector<14x1xf32> to vector<14x32xf32>
    %27 = arith.mulf %22, %26 : vector<14x32xf32>
    %28 = vector.broadcast %5 : vector<1x32xf32> to vector<14x32xf32>
    %29 = arith.mulf %27, %28 : vector<14x32xf32>
    %30 = vector.broadcast %7 : vector<1x32xf32> to vector<14x32xf32>
    %31 = arith.addf %29, %30 : vector<14x32xf32>
    %32 = arith.truncf %31 : vector<14x32xf32> to vector<14x32xbf16>
    %c0_13 = arith.constant 0 : index
    %c0_14 = arith.constant 0 : index
    %c0_15 = arith.constant 0 : index
    %33 = vector.load %arg5[%c0_13, %c0_14, %c0_15] : memref<1x32x96xbf16, #tpu.memory_space<vmem>>, vector<1x32x96xbf16>
    %34 = vector.shape_cast %33 : vector<1x32x96xbf16> to vector<32x96xbf16>
    %cst_16 = arith.constant dense<0.000000e+00> : vector<14x96xf32>
    %35 = tpu.matmul %32, %34, %cst_16 {dimension_numbers = #tpu.dot_dimension_numbers<[1], [0], [0], [1], [0, 0, 1, 1], [], []>} : vector<14x32xbf16>, vector<32x96xbf16>, vector<14x96xf32> -> vector<14x96xf32>
    %c0_17 = arith.constant 0 : index
    %c0_18 = arith.constant 0 : index
    %c0_19 = arith.constant 0 : index
    %36 = vector.load %arg6[%c0_17, %c0_18, %c0_19] : memref<1x1x96xf32, #tpu.memory_space<vmem>>, vector<1x1x96xf32>
    %37 = vector.shape_cast %36 : vector<1x1x96xf32> to vector<1x96xf32>
    %38 = vector.broadcast %37 : vector<1x96xf32> to vector<14x96xf32>
    %39 = arith.addf %35, %38 : vector<14x96xf32>
    %40 = arith.truncf %39 : vector<14x96xf32> to vector<14x96xbf16>
    %c0_20 = arith.constant 0 : index
    %c0_21 = arith.constant 0 : index
    %41 = vector.load %arg2[%c0_20, %c0_21] : memref<14x14xf32, #tpu.memory_space<vmem>>, vector<14x14xf32>
    %c0_22 = arith.constant 0 : index
    %c0_23 = arith.constant 0 : index
    %c0_24 = arith.constant 0 : index
    %c0_25 = arith.constant 0 : index
    %42 = vector.load %arg7[%c0_22, %c0_23, %c0_24, %c0_25] : memref<1x4x8x32xbf16, #tpu.memory_space<vmem>>, vector<1x4x8x32xbf16>
    %43 = vector.shape_cast %42 : vector<1x4x8x32xbf16> to vector<4x8x32xbf16>
    %cst_26 = arith.constant 0.000000e+00 : f32
    %44 = vector.broadcast %cst_26 : f32 to vector<14x32xf32>
    %45 = vector.extract_strided_slice %40 {offsets = [0, 0], sizes = [14, 8], strides = [1, 1]} : vector<14x96xbf16> to vector<14x8xbf16>
    %46 = vector.extract_strided_slice %40 {offsets = [0, 32], sizes = [14, 8], strides = [1, 1]} : vector<14x96xbf16> to vector<14x8xbf16>
    %47 = vector.extract_strided_slice %40 {offsets = [0, 64], sizes = [14, 8], strides = [1, 1]} : vector<14x96xbf16> to vector<14x8xbf16>
    %cst_27 = arith.constant dense<0.000000e+00> : vector<14x14xf32>
    %48 = tpu.matmul %45, %46, %cst_27 {dimension_numbers = #tpu.dot_dimension_numbers<[1], [1], [0], [0], [0, 0, 1, 0], [], []>} : vector<14x8xbf16>, vector<14x8xbf16>, vector<14x14xf32> -> vector<14x14xf32>
    %cst_28 = arith.constant 0.353553385 : f32
    %49 = vector.broadcast %cst_28 : f32 to vector<14x14xf32>
    %50 = arith.mulf %48, %49 : vector<14x14xf32>
    %51 = arith.addf %50, %41 : vector<14x14xf32>
    %cst_29 = arith.constant dense<0xFF800000> : vector<14xf32>
    %52 = vector.multi_reduction <maximumf>, %51, %cst_29 [1] : vector<14x14xf32> to vector<14xf32>
    %53 = vector.shape_cast %52 : vector<14xf32> to vector<14x1xf32>
    %54 = vector.broadcast %53 : vector<14x1xf32> to vector<14x14xf32>
    %55 = arith.subf %51, %54 : vector<14x14xf32>
    %56 = math.exp %55 : vector<14x14xf32>
    %cst_30 = arith.constant dense<0.000000e+00> : vector<14xf32>
    %57 = vector.multi_reduction <add>, %56, %cst_30 [1] : vector<14x14xf32> to vector<14xf32>
    %58 = vector.shape_cast %57 : vector<14xf32> to vector<14x1xf32>
    %59 = vector.broadcast %58 : vector<14x1xf32> to vector<14x14xf32>
    %60 = arith.divf %56, %59 : vector<14x14xf32>
    %61 = arith.truncf %60 : vector<14x14xf32> to vector<14x14xbf16>
    %cst_31 = arith.constant dense<0.000000e+00> : vector<14x8xf32>
    %62 = tpu.matmul %61, %47, %cst_31 {dimension_numbers = #tpu.dot_dimension_numbers<[1], [0], [0], [1], [0, 0, 1, 1], [], []>} : vector<14x14xbf16>, vector<14x8xbf16>, vector<14x8xf32> -> vector<14x8xf32>
    %63 = arith.truncf %62 : vector<14x8xf32> to vector<14x8xbf16>
    %64 = vector.extract_strided_slice %43 {offsets = [0, 0, 0], sizes = [1, 8, 32], strides = [1, 1, 1]} : vector<4x8x32xbf16> to vector<1x8x32xbf16>
    %65 = vector.shape_cast %64 : vector<1x8x32xbf16> to vector<8x32xbf16>
    %cst_32 = arith.constant dense<0.000000e+00> : vector<14x32xf32>
    %66 = tpu.matmul %63, %65, %cst_32 {dimension_numbers = #tpu.dot_dimension_numbers<[1], [0], [0], [1], [0, 0, 1, 1], [], []>} : vector<14x8xbf16>, vector<8x32xbf16>, vector<14x32xf32> -> vector<14x32xf32>
    %67 = arith.addf %44, %66 : vector<14x32xf32>
    %68 = vector.extract_strided_slice %60 {offsets = [0, 0], sizes = [1, 14], strides = [1, 1]} : vector<14x14xf32> to vector<1x14xf32>
    %69 = vector.extract_strided_slice %60 {offsets = [7, 0], sizes = [1, 14], strides = [1, 1]} : vector<14x14xf32> to vector<1x14xf32>
    %70 = tpu.concatenate %68, %69 in 0 : vector<1x14xf32>, vector<1x14xf32> -> vector<2x14xf32>
    %71 = vector.extract_strided_slice %40 {offsets = [0, 8], sizes = [14, 8], strides = [1, 1]} : vector<14x96xbf16> to vector<14x8xbf16>
    %72 = vector.extract_strided_slice %40 {offsets = [0, 40], sizes = [14, 8], strides = [1, 1]} : vector<14x96xbf16> to vector<14x8xbf16>
    %73 = vector.extract_strided_slice %40 {offsets = [0, 72], sizes = [14, 8], strides = [1, 1]} : vector<14x96xbf16> to vector<14x8xbf16>
    %cst_33 = arith.constant dense<0.000000e+00> : vector<14x14xf32>
    %74 = tpu.matmul %71, %72, %cst_33 {dimension_numbers = #tpu.dot_dimension_numbers<[1], [1], [0], [0], [0, 0, 1, 0], [], []>} : vector<14x8xbf16>, vector<14x8xbf16>, vector<14x14xf32> -> vector<14x14xf32>
    %cst_34 = arith.constant 0.353553385 : f32
    %75 = vector.broadcast %cst_34 : f32 to vector<14x14xf32>
    %76 = arith.mulf %74, %75 : vector<14x14xf32>
    %77 = arith.addf %76, %41 : vector<14x14xf32>
    %cst_35 = arith.constant dense<0xFF800000> : vector<14xf32>
    %78 = vector.multi_reduction <maximumf>, %77, %cst_35 [1] : vector<14x14xf32> to vector<14xf32>
    %79 = vector.shape_cast %78 : vector<14xf32> to vector<14x1xf32>
    %80 = vector.broadcast %79 : vector<14x1xf32> to vector<14x14xf32>
    %81 = arith.subf %77, %80 : vector<14x14xf32>
    %82 = math.exp %81 : vector<14x14xf32>
    %cst_36 = arith.constant dense<0.000000e+00> : vector<14xf32>
    %83 = vector.multi_reduction <add>, %82, %cst_36 [1] : vector<14x14xf32> to vector<14xf32>
    %84 = vector.shape_cast %83 : vector<14xf32> to vector<14x1xf32>
    %85 = vector.broadcast %84 : vector<14x1xf32> to vector<14x14xf32>
    %86 = arith.divf %82, %85 : vector<14x14xf32>
    %87 = arith.truncf %86 : vector<14x14xf32> to vector<14x14xbf16>
    %cst_37 = arith.constant dense<0.000000e+00> : vector<14x8xf32>
    %88 = tpu.matmul %87, %73, %cst_37 {dimension_numbers = #tpu.dot_dimension_numbers<[1], [0], [0], [1], [0, 0, 1, 1], [], []>} : vector<14x14xbf16>, vector<14x8xbf16>, vector<14x8xf32> -> vector<14x8xf32>
    %89 = arith.truncf %88 : vector<14x8xf32> to vector<14x8xbf16>
    %90 = vector.extract_strided_slice %43 {offsets = [1, 0, 0], sizes = [1, 8, 32], strides = [1, 1, 1]} : vector<4x8x32xbf16> to vector<1x8x32xbf16>
    %91 = vector.shape_cast %90 : vector<1x8x32xbf16> to vector<8x32xbf16>
    %cst_38 = arith.constant dense<0.000000e+00> : vector<14x32xf32>
    %92 = tpu.matmul %89, %91, %cst_38 {dimension_numbers = #tpu.dot_dimension_numbers<[1], [0], [0], [1], [0, 0, 1, 1], [], []>} : vector<14x8xbf16>, vector<8x32xbf16>, vector<14x32xf32> -> vector<14x32xf32>
    %93 = arith.addf %67, %92 : vector<14x32xf32>
    %94 = vector.extract_strided_slice %86 {offsets = [0, 0], sizes = [1, 14], strides = [1, 1]} : vector<14x14xf32> to vector<1x14xf32>
    %95 = vector.extract_strided_slice %86 {offsets = [7, 0], sizes = [1, 14], strides = [1, 1]} : vector<14x14xf32> to vector<1x14xf32>
    %96 = tpu.concatenate %94, %95 in 0 : vector<1x14xf32>, vector<1x14xf32> -> vector<2x14xf32>
    %97 = vector.extract_strided_slice %40 {offsets = [0, 16], sizes = [14, 8], strides = [1, 1]} : vector<14x96xbf16> to vector<14x8xbf16>
    %98 = vector.extract_strided_slice %40 {offsets = [0, 48], sizes = [14, 8], strides = [1, 1]} : vector<14x96xbf16> to vector<14x8xbf16>
    %99 = vector.extract_strided_slice %40 {offsets = [0, 80], sizes = [14, 8], strides = [1, 1]} : vector<14x96xbf16> to vector<14x8xbf16>
    %cst_39 = arith.constant dense<0.000000e+00> : vector<14x14xf32>
    %100 = tpu.matmul %97, %98, %cst_39 {dimension_numbers = #tpu.dot_dimension_numbers<[1], [1], [0], [0], [0, 0, 1, 0], [], []>} : vector<14x8xbf16>, vector<14x8xbf16>, vector<14x14xf32> -> vector<14x14xf32>
    %cst_40 = arith.constant 0.353553385 : f32
    %101 = vector.broadcast %cst_40 : f32 to vector<14x14xf32>
    %102 = arith.mulf %100, %101 : vector<14x14xf32>
    %103 = arith.addf %102, %41 : vector<14x14xf32>
    %cst_41 = arith.constant dense<0xFF800000> : vector<14xf32>
    %104 = vector.multi_reduction <maximumf>, %103, %cst_41 [1] : vector<14x14xf32> to vector<14xf32>
    %105 = vector.shape_cast %104 : vector<14xf32> to vector<14x1xf32>
    %106 = vector.broadcast %105 : vector<14x1xf32> to vector<14x14xf32>
    %107 = arith.subf %103, %106 : vector<14x14xf32>
    %108 = math.exp %107 : vector<14x14xf32>
    %cst_42 = arith.constant dense<0.000000e+00> : vector<14xf32>
    %109 = vector.multi_reduction <add>, %108, %cst_42 [1] : vector<14x14xf32> to vector<14xf32>
    %110 = vector.shape_cast %109 : vector<14xf32> to vector<14x1xf32>
    %111 = vector.broadcast %110 : vector<14x1xf32> to vector<14x14xf32>
    %112 = arith.divf %108, %111 : vector<14x14xf32>
    %113 = arith.truncf %112 : vector<14x14xf32> to vector<14x14xbf16>
    %cst_43 = arith.constant dense<0.000000e+00> : vector<14x8xf32>
    %114 = tpu.matmul %113, %99, %cst_43 {dimension_numbers = #tpu.dot_dimension_numbers<[1], [0], [0], [1], [0, 0, 1, 1], [], []>} : vector<14x14xbf16>, vector<14x8xbf16>, vector<14x8xf32> -> vector<14x8xf32>
    %115 = arith.truncf %114 : vector<14x8xf32> to vector<14x8xbf16>
    %116 = vector.extract_strided_slice %43 {offsets = [2, 0, 0], sizes = [1, 8, 32], strides = [1, 1, 1]} : vector<4x8x32xbf16> to vector<1x8x32xbf16>
    %117 = vector.shape_cast %116 : vector<1x8x32xbf16> to vector<8x32xbf16>
    %cst_44 = arith.constant dense<0.000000e+00> : vector<14x32xf32>
    %118 = tpu.matmul %115, %117, %cst_44 {dimension_numbers = #tpu.dot_dimension_numbers<[1], [0], [0], [1], [0, 0, 1, 1], [], []>} : vector<14x8xbf16>, vector<8x32xbf16>, vector<14x32xf32> -> vector<14x32xf32>
    %119 = arith.addf %93, %118 : vector<14x32xf32>
    %120 = vector.extract_strided_slice %112 {offsets = [0, 0], sizes = [1, 14], strides = [1, 1]} : vector<14x14xf32> to vector<1x14xf32>
    %121 = vector.extract_strided_slice %112 {offsets = [7, 0], sizes = [1, 14], strides = [1, 1]} : vector<14x14xf32> to vector<1x14xf32>
    %122 = tpu.concatenate %120, %121 in 0 : vector<1x14xf32>, vector<1x14xf32> -> vector<2x14xf32>
    %123 = vector.extract_strided_slice %40 {offsets = [0, 24], sizes = [14, 8], strides = [1, 1]} : vector<14x96xbf16> to vector<14x8xbf16>
    %124 = vector.extract_strided_slice %40 {offsets = [0, 56], sizes = [14, 8], strides = [1, 1]} : vector<14x96xbf16> to vector<14x8xbf16>
    %125 = vector.extract_strided_slice %40 {offsets = [0, 88], sizes = [14, 8], strides = [1, 1]} : vector<14x96xbf16> to vector<14x8xbf16>
    %cst_45 = arith.constant dense<0.000000e+00> : vector<14x14xf32>
    %126 = tpu.matmul %123, %124, %cst_45 {dimension_numbers = #tpu.dot_dimension_numbers<[1], [1], [0], [0], [0, 0, 1, 0], [], []>} : vector<14x8xbf16>, vector<14x8xbf16>, vector<14x14xf32> -> vector<14x14xf32>
    %cst_46 = arith.constant 0.353553385 : f32
    %127 = vector.broadcast %cst_46 : f32 to vector<14x14xf32>
    %128 = arith.mulf %126, %127 : vector<14x14xf32>
    %129 = arith.addf %128, %41 : vector<14x14xf32>
    %cst_47 = arith.constant dense<0xFF800000> : vector<14xf32>
    %130 = vector.multi_reduction <maximumf>, %129, %cst_47 [1] : vector<14x14xf32> to vector<14xf32>
    %131 = vector.shape_cast %130 : vector<14xf32> to vector<14x1xf32>
    %132 = vector.broadcast %131 : vector<14x1xf32> to vector<14x14xf32>
    %133 = arith.subf %129, %132 : vector<14x14xf32>
    %134 = math.exp %133 : vector<14x14xf32>
    %cst_48 = arith.constant dense<0.000000e+00> : vector<14xf32>
    %135 = vector.multi_reduction <add>, %134, %cst_48 [1] : vector<14x14xf32> to vector<14xf32>
    %136 = vector.shape_cast %135 : vector<14xf32> to vector<14x1xf32>
    %137 = vector.broadcast %136 : vector<14x1xf32> to vector<14x14xf32>
    %138 = arith.divf %134, %137 : vector<14x14xf32>
    %139 = arith.truncf %138 : vector<14x14xf32> to vector<14x14xbf16>
    %cst_49 = arith.constant dense<0.000000e+00> : vector<14x8xf32>
    %140 = tpu.matmul %139, %125, %cst_49 {dimension_numbers = #tpu.dot_dimension_numbers<[1], [0], [0], [1], [0, 0, 1, 1], [], []>} : vector<14x14xbf16>, vector<14x8xbf16>, vector<14x8xf32> -> vector<14x8xf32>
    %141 = arith.truncf %140 : vector<14x8xf32> to vector<14x8xbf16>
    %142 = vector.extract_strided_slice %43 {offsets = [3, 0, 0], sizes = [1, 8, 32], strides = [1, 1, 1]} : vector<4x8x32xbf16> to vector<1x8x32xbf16>
    %143 = vector.shape_cast %142 : vector<1x8x32xbf16> to vector<8x32xbf16>
    %cst_50 = arith.constant dense<0.000000e+00> : vector<14x32xf32>
    %144 = tpu.matmul %141, %143, %cst_50 {dimension_numbers = #tpu.dot_dimension_numbers<[1], [0], [0], [1], [0, 0, 1, 1], [], []>} : vector<14x8xbf16>, vector<8x32xbf16>, vector<14x32xf32> -> vector<14x32xf32>
    %145 = arith.addf %119, %144 : vector<14x32xf32>
    %146 = vector.extract_strided_slice %138 {offsets = [0, 0], sizes = [1, 14], strides = [1, 1]} : vector<14x14xf32> to vector<1x14xf32>
    %147 = vector.extract_strided_slice %138 {offsets = [7, 0], sizes = [1, 14], strides = [1, 1]} : vector<14x14xf32> to vector<1x14xf32>
    %148 = tpu.concatenate %146, %147 in 0 : vector<1x14xf32>, vector<1x14xf32> -> vector<2x14xf32>
    %149 = tpu.concatenate %70, %96, %122, %148 in 0 : vector<2x14xf32>, vector<2x14xf32>, vector<2x14xf32>, vector<2x14xf32> -> vector<8x14xf32>
    %c0_51 = arith.constant 0 : index
    %c0_52 = arith.constant 0 : index
    %c0_53 = arith.constant 0 : index
    %150 = vector.load %arg20[%c0_51, %c0_52, %c0_53] : memref<1x8x14xf32, #tpu.memory_space<vmem>>, vector<1x8x14xf32>
    %151 = vector.shape_cast %150 : vector<1x8x14xf32> to vector<8x14xf32>
    %152 = vector.shape_cast %149 : vector<8x14xf32> to vector<1x8x14xf32>
    tpu.vector_store %arg20[%c0_51, %c0_52, %c0_53], %152 {strides = array<i32>} : memref<1x8x14xf32, #tpu.memory_space<vmem>>, vector<1x8x14xf32>,
    %c0_54 = arith.constant 0 : index
    %c0_55 = arith.constant 0 : index
    %c0_56 = arith.constant 0 : index
    %153 = vector.load %arg9[%c0_54, %c0_55, %c0_56] : memref<1x1x32xf32, #tpu.memory_space<vmem>>, vector<1x1x32xf32>
    %154 = vector.shape_cast %153 : vector<1x1x32xf32> to vector<1x32xf32>
    %c0_57 = arith.constant 0 : index
    %c0_58 = arith.constant 0 : index
    %c0_59 = arith.constant 0 : index
    %155 = vector.load %arg8[%c0_57, %c0_58, %c0_59] : memref<1x1x32xf32, #tpu.memory_space<vmem>>, vector<1x1x32xf32>
    %156 = vector.shape_cast %155 : vector<1x1x32xf32> to vector<1x32xf32>
    %157 = vector.broadcast %156 : vector<1x32xf32> to vector<14x32xf32>
    %158 = arith.addf %145, %157 : vector<14x32xf32>
    %159 = vector.broadcast %154 : vector<1x32xf32> to vector<14x32xf32>
    %160 = arith.mulf %159, %158 : vector<14x32xf32>
    %161 = arith.addf %3, %160 : vector<14x32xf32>
    %c0_60 = arith.constant 0 : index
    %c0_61 = arith.constant 0 : index
    %c0_62 = arith.constant 0 : index
    %162 = vector.load %arg10[%c0_60, %c0_61, %c0_62] : memref<1x1x32xf32, #tpu.memory_space<vmem>>, vector<1x1x32xf32>
    %163 = vector.shape_cast %162 : vector<1x1x32xf32> to vector<1x32xf32>
    %c0_63 = arith.constant 0 : index
    %c0_64 = arith.constant 0 : index
    %c0_65 = arith.constant 0 : index
    %164 = vector.load %arg11[%c0_63, %c0_64, %c0_65] : memref<1x1x32xf32, #tpu.memory_space<vmem>>, vector<1x1x32xf32>
    %165 = vector.shape_cast %164 : vector<1x1x32xf32> to vector<1x32xf32>
    %cst_66 = arith.constant dense<0.000000e+00> : vector<14xf32>
    %166 = vector.multi_reduction <add>, %161, %cst_66 [1] : vector<14x32xf32> to vector<14xf32>
    %167 = vector.shape_cast %166 : vector<14xf32> to vector<14x1xf32>
    %cst_67 = arith.constant 3.200000e+01 : f32
    %168 = vector.broadcast %cst_67 : f32 to vector<14x1xf32>
    %169 = arith.divf %167, %168 : vector<14x1xf32>
    %170 = arith.mulf %161, %161 : vector<14x32xf32>
    %cst_68 = arith.constant dense<0.000000e+00> : vector<14xf32>
    %171 = vector.multi_reduction <add>, %170, %cst_68 [1] : vector<14x32xf32> to vector<14xf32>
    %172 = vector.shape_cast %171 : vector<14xf32> to vector<14x1xf32>
    %cst_69 = arith.constant 3.200000e+01 : f32
    %173 = vector.broadcast %cst_69 : f32 to vector<14x1xf32>
    %174 = arith.divf %172, %173 : vector<14x1xf32>
    %175 = arith.mulf %169, %169 : vector<14x1xf32>
    %176 = arith.subf %174, %175 : vector<14x1xf32>
    %cst_70 = arith.constant 0.000000e+00 : f32
    %177 = vector.broadcast %cst_70 : f32 to vector<14x1xf32>
    %178 = arith.maximumf %176, %177 : vector<14x1xf32>
    %179 = vector.broadcast %169 : vector<14x1xf32> to vector<14x32xf32>
    %180 = arith.subf %161, %179 : vector<14x32xf32>
    %cst_71 = arith.constant 9.99999997E-7 : f32
    %181 = vector.broadcast %cst_71 : f32 to vector<14x1xf32>
    %182 = arith.addf %178, %181 : vector<14x1xf32>
    %183 = math.rsqrt %182 : vector<14x1xf32>
    %184 = vector.broadcast %183 : vector<14x1xf32> to vector<14x32xf32>
    %185 = arith.mulf %180, %184 : vector<14x32xf32>
    %186 = vector.broadcast %163 : vector<1x32xf32> to vector<14x32xf32>
    %187 = arith.mulf %185, %186 : vector<14x32xf32>
    %188 = vector.broadcast %165 : vector<1x32xf32> to vector<14x32xf32>
    %189 = arith.addf %187, %188 : vector<14x32xf32>
    %190 = arith.truncf %189 : vector<14x32xf32> to vector<14x32xbf16>
    %c0_72 = arith.constant 0 : index
    %c0_73 = arith.constant 0 : index
    %c0_74 = arith.constant 0 : index
    %191 = vector.load %arg12[%c0_72, %c0_73, %c0_74] : memref<1x32x64xbf16, #tpu.memory_space<vmem>>, vector<1x32x64xbf16>
    %192 = vector.shape_cast %191 : vector<1x32x64xbf16> to vector<32x64xbf16>
    %cst_75 = arith.constant dense<0.000000e+00> : vector<14x64xf32>
    %193 = tpu.matmul %190, %192, %cst_75 {dimension_numbers = #tpu.dot_dimension_numbers<[1], [0], [0], [1], [0, 0, 1, 1], [], []>} : vector<14x32xbf16>, vector<32x64xbf16>, vector<14x64xf32> -> vector<14x64xf32>
    %c0_76 = arith.constant 0 : index
    %c0_77 = arith.constant 0 : index
    %c0_78 = arith.constant 0 : index
    %194 = vector.load %arg13[%c0_76, %c0_77, %c0_78] : memref<1x1x64xf32, #tpu.memory_space<vmem>>, vector<1x1x64xf32>
    %195 = vector.shape_cast %194 : vector<1x1x64xf32> to vector<1x64xf32>
    %196 = vector.broadcast %195 : vector<1x64xf32> to vector<14x64xf32>
    %197 = arith.addf %193, %196 : vector<14x64xf32>
    %198 = arith.mulf %197, %197 : vector<14x64xf32>
    %199 = arith.mulf %197, %198 : vector<14x64xf32>
    %cst_79 = arith.constant 4.471500e-02 : f32
    %200 = vector.broadcast %cst_79 : f32 to vector<14x64xf32>
    %201 = arith.mulf %200, %199 : vector<14x64xf32>
    %202 = arith.addf %197, %201 : vector<14x64xf32>
    %cst_80 = arith.constant 0.797884583 : f32
    %203 = vector.broadcast %cst_80 : f32 to vector<14x64xf32>
    %204 = arith.mulf %203, %202 : vector<14x64xf32>
    %205 = math.tanh %204 : vector<14x64xf32>
    %cst_81 = arith.constant 1.000000e+00 : f32
    %206 = vector.broadcast %cst_81 : f32 to vector<14x64xf32>
    %207 = arith.addf %206, %205 : vector<14x64xf32>
    %cst_82 = arith.constant 5.000000e-01 : f32
    %208 = vector.broadcast %cst_82 : f32 to vector<14x64xf32>
    %209 = arith.mulf %208, %207 : vector<14x64xf32>
    %210 = arith.mulf %197, %209 : vector<14x64xf32>
    %211 = arith.truncf %210 : vector<14x64xf32> to vector<14x64xbf16>
    %c0_83 = arith.constant 0 : index
    %c0_84 = arith.constant 0 : index
    %c0_85 = arith.constant 0 : index
    %212 = vector.load %arg14[%c0_83, %c0_84, %c0_85] : memref<1x64x32xbf16, #tpu.memory_space<vmem>>, vector<1x64x32xbf16>
    %213 = vector.shape_cast %212 : vector<1x64x32xbf16> to vector<64x32xbf16>
    %cst_86 = arith.constant dense<0.000000e+00> : vector<14x32xf32>
    %214 = tpu.matmul %211, %213, %cst_86 {dimension_numbers = #tpu.dot_dimension_numbers<[1], [0], [0], [1], [0, 0, 1, 1], [], []>} : vector<14x64xbf16>, vector<64x32xbf16>, vector<14x32xf32> -> vector<14x32xf32>
    %c0_87 = arith.constant 0 : index
    %c0_88 = arith.constant 0 : index
    %c0_89 = arith.constant 0 : index
    %215 = vector.load %arg15[%c0_87, %c0_88, %c0_89] : memref<1x1x32xf32, #tpu.memory_space<vmem>>, vector<1x1x32xf32>
    %216 = vector.shape_cast %215 : vector<1x1x32xf32> to vector<1x32xf32>
    %217 = vector.broadcast %216 : vector<1x32xf32> to vector<14x32xf32>
    %218 = arith.addf %214, %217 : vector<14x32xf32>
    %c0_90 = arith.constant 0 : index
    %c0_91 = arith.constant 0 : index
    %c0_92 = arith.constant 0 : index
    %219 = vector.load %arg16[%c0_90, %c0_91, %c0_92] : memref<1x1x32xf32, #tpu.memory_space<vmem>>, vector<1x1x32xf32>
    %220 = vector.shape_cast %219 : vector<1x1x32xf32> to vector<1x32xf32>
    %221 = vector.broadcast %220 : vector<1x32xf32> to vector<14x32xf32>
    %222 = arith.mulf %221, %218 : vector<14x32xf32>
    %223 = arith.addf %161, %222 : vector<14x32xf32>
    %c0_93 = arith.constant 0 : index
    %c0_94 = arith.constant 0 : index
    %c0_95 = arith.constant 0 : index
    %224 = vector.load %arg17[%c0_93, %c0_94, %c0_95] : memref<1x1x32xf32, #tpu.memory_space<vmem>>, vector<1x1x32xf32>
    %225 = vector.shape_cast %224 : vector<1x1x32xf32> to vector<1x32xf32>
    %c0_96 = arith.constant 0 : index
    %c0_97 = arith.constant 0 : index
    %c0_98 = arith.constant 0 : index
    %226 = vector.load %arg18[%c0_96, %c0_97, %c0_98] : memref<1x1x32xf32, #tpu.memory_space<vmem>>, vector<1x1x32xf32>
    %227 = vector.shape_cast %226 : vector<1x1x32xf32> to vector<1x32xf32>
    %cst_99 = arith.constant dense<0.000000e+00> : vector<14xf32>
    %228 = vector.multi_reduction <add>, %223, %cst_99 [1] : vector<14x32xf32> to vector<14xf32>
    %229 = vector.shape_cast %228 : vector<14xf32> to vector<14x1xf32>
    %cst_100 = arith.constant 3.200000e+01 : f32
    %230 = vector.broadcast %cst_100 : f32 to vector<14x1xf32>
    %231 = arith.divf %229, %230 : vector<14x1xf32>
    %232 = arith.mulf %223, %223 : vector<14x32xf32>
    %cst_101 = arith.constant dense<0.000000e+00> : vector<14xf32>
    %233 = vector.multi_reduction <add>, %232, %cst_101 [1] : vector<14x32xf32> to vector<14xf32>
    %234 = vector.shape_cast %233 : vector<14xf32> to vector<14x1xf32>
    %cst_102 = arith.constant 3.200000e+01 : f32
    %235 = vector.broadcast %cst_102 : f32 to vector<14x1xf32>
    %236 = arith.divf %234, %235 : vector<14x1xf32>
    %237 = arith.mulf %231, %231 : vector<14x1xf32>
    %238 = arith.subf %236, %237 : vector<14x1xf32>
    %cst_103 = arith.constant 0.000000e+00 : f32
    %239 = vector.broadcast %cst_103 : f32 to vector<14x1xf32>
    %240 = arith.maximumf %238, %239 : vector<14x1xf32>
    %241 = vector.broadcast %231 : vector<14x1xf32> to vector<14x32xf32>
    %242 = arith.subf %223, %241 : vector<14x32xf32>
    %cst_104 = arith.constant 9.99999997E-7 : f32
    %243 = vector.broadcast %cst_104 : f32 to vector<14x1xf32>
    %244 = arith.addf %240, %243 : vector<14x1xf32>
    %245 = math.rsqrt %244 : vector<14x1xf32>
    %246 = vector.broadcast %245 : vector<14x1xf32> to vector<14x32xf32>
    %247 = arith.mulf %242, %246 : vector<14x32xf32>
    %248 = vector.broadcast %225 : vector<1x32xf32> to vector<14x32xf32>
    %249 = arith.mulf %247, %248 : vector<14x32xf32>
    %250 = vector.broadcast %227 : vector<1x32xf32> to vector<14x32xf32>
    %251 = arith.addf %249, %250 : vector<14x32xf32>
    %c0_105 = arith.constant 0 : index
    %c0_106 = arith.constant 0 : index
    %252 = vector.load %arg21[%c0_105, %c0_106] : memref<14x32xf32, #tpu.memory_space<vmem>>, vector<14x32xf32>
    tpu.vector_store %arg21[%c0_105, %c0_106], %251 {strides = array<i32>} : memref<14x32xf32, #tpu.memory_space<vmem>>, vector<14x32xf32>,
    %c0_107 = arith.constant 0 : index
    %c0_108 = arith.constant 0 : index
    %c0_109 = arith.constant 0 : index
    %253 = vector.load %arg19[%c0_107, %c0_108, %c0_109] : memref<1x14x32xf32, #tpu.memory_space<vmem>>, vector<1x14x32xf32>
    %254 = vector.shape_cast %253 : vector<1x14x32xf32> to vector<14x32xf32>
    %255 = vector.shape_cast %251 : vector<14x32xf32> to vector<1x14x32xf32>
    tpu.vector_store %arg19[%c0_107, %c0_108, %c0_109], %255 {strides = array<i32>} : memref<1x14x32xf32, #tpu.memory_space<vmem>>, vector<1x14x32xf32>,
    return
  }
  func.func @transform_0(%arg0: i32) -> (i32, i32) {
    %c0_i32 = arith.constant 0 : i32
    %c0_i32_0 = arith.constant 0 : i32
    %c0_i32_1 = arith.constant 0 : i32
    return %c0_i32, %c0_i32_0 : i32, i32
  }
  func.func @transform_1(%arg0: i32) -> (i32, i32) {
    %c0_i32 = arith.constant 0 : i32
    %c0_i32_0 = arith.constant 0 : i32
    %c0_i32_1 = arith.constant 0 : i32
    return %c0_i32, %c0_i32_0 : i32, i32
  }
  func.func @transform_2(%arg0: i32) -> (i32, i32, i32) {
    %c0_i32 = arith.constant 0 : i32
    %c0_i32_0 = arith.constant 0 : i32
    %c0_i32_1 = arith.constant 0 : i32
    return %arg0, %c0_i32, %c0_i32_0 : i32, i32, i32
  }
  func.func @transform_3(%arg0: i32) -> (i32, i32, i32) {
    %c0_i32 = arith.constant 0 : i32
    %c0_i32_0 = arith.constant 0 : i32
    %c0_i32_1 = arith.constant 0 : i32
    return %arg0, %c0_i32, %c0_i32_0 : i32, i32, i32
  }
  func.func @transform_4(%arg0: i32) -> (i32, i32, i32) {
    %c0_i32 = arith.constant 0 : i32
    %c0_i32_0 = arith.constant 0 : i32
    %c0_i32_1 = arith.constant 0 : i32
    return %arg0, %c0_i32, %c0_i32_0 : i32, i32, i32
  }
  func.func @transform_5(%arg0: i32) -> (i32, i32, i32) {
    %c0_i32 = arith.constant 0 : i32
    %c0_i32_0 = arith.constant 0 : i32
    %c0_i32_1 = arith.constant 0 : i32
    return %arg0, %c0_i32, %c0_i32_0 : i32, i32, i32
  }
  func.func @transform_6(%arg0: i32) -> (i32, i32, i32, i32) {
    %c0_i32 = arith.constant 0 : i32
    %c0_i32_0 = arith.constant 0 : i32
    %c0_i32_1 = arith.constant 0 : i32
    %c0_i32_2 = arith.constant 0 : i32
    return %arg0, %c0_i32, %c0_i32_0, %c0_i32_1 : i32, i32, i32, i32
  }
  func.func @transform_7(%arg0: i32) -> (i32, i32, i32) {
    %c0_i32 = arith.constant 0 : i32
    %c0_i32_0 = arith.constant 0 : i32
    %c0_i32_1 = arith.constant 0 : i32
    return %arg0, %c0_i32, %c0_i32_0 : i32, i32, i32
  }
  func.func @transform_8(%arg0: i32) -> (i32, i32, i32) {
    %c0_i32 = arith.constant 0 : i32
    %c0_i32_0 = arith.constant 0 : i32
    %c0_i32_1 = arith.constant 0 : i32
    return %arg0, %c0_i32, %c0_i32_0 : i32, i32, i32
  }
  func.func @transform_9(%arg0: i32) -> (i32, i32, i32) {
    %c0_i32 = arith.constant 0 : i32
    %c0_i32_0 = arith.constant 0 : i32
    %c0_i32_1 = arith.constant 0 : i32
    return %arg0, %c0_i32, %c0_i32_0 : i32, i32, i32
  }
  func.func @transform_10(%arg0: i32) -> (i32, i32, i32) {
    %c0_i32 = arith.constant 0 : i32
    %c0_i32_0 = arith.constant 0 : i32
    %c0_i32_1 = arith.constant 0 : i32
    return %arg0, %c0_i32, %c0_i32_0 : i32, i32, i32
  }
  func.func @transform_11(%arg0: i32) -> (i32, i32, i32) {
    %c0_i32 = arith.constant 0 : i32
    %c0_i32_0 = arith.constant 0 : i32
    %c0_i32_1 = arith.constant 0 : i32
    return %arg0, %c0_i32, %c0_i32_0 : i32, i32, i32
  }
  func.func @transform_12(%arg0: i32) -> (i32, i32, i32) {
    %c0_i32 = arith.constant 0 : i32
    %c0_i32_0 = arith.constant 0 : i32
    %c0_i32_1 = arith.constant 0 : i32
    return %arg0, %c0_i32, %c0_i32_0 : i32, i32, i32
  }
  func.func @transform_13(%arg0: i32) -> (i32, i32, i32) {
    %c0_i32 = arith.constant 0 : i32
    %c0_i32_0 = arith.constant 0 : i32
    %c0_i32_1 = arith.constant 0 : i32
    return %arg0, %c0_i32, %c0_i32_0 : i32, i32, i32
  }
  func.func @transform_14(%arg0: i32) -> (i32, i32, i32) {
    %c0_i32 = arith.constant 0 : i32
    %c0_i32_0 = arith.constant 0 : i32
    %c0_i32_1 = arith.constant 0 : i32
    return %arg0, %c0_i32, %c0_i32_0 : i32, i32, i32
  }
  func.func @transform_15(%arg0: i32) -> (i32, i32, i32) {
    %c0_i32 = arith.constant 0 : i32
    %c0_i32_0 = arith.constant 0 : i32
    %c0_i32_1 = arith.constant 0 : i32
    return %arg0, %c0_i32, %c0_i32_0 : i32, i32, i32
  }
  func.func @transform_16(%arg0: i32) -> (i32, i32, i32) {
    %c0_i32 = arith.constant 0 : i32
    %c0_i32_0 = arith.constant 0 : i32
    %c0_i32_1 = arith.constant 0 : i32
    %c0_i32_2 = arith.constant 0 : i32
    return %c0_i32, %c0_i32_0, %c0_i32_1 : i32, i32, i32
  }
  func.func @transform_17(%arg0: i32) -> (i32, i32, i32) {
    %c0_i32 = arith.constant 0 : i32
    %c0_i32_0 = arith.constant 0 : i32
    %c0_i32_1 = arith.constant 0 : i32
    %c0_i32_2 = arith.constant 0 : i32
    return %c0_i32, %c0_i32_0, %c0_i32_1 : i32, i32, i32
  }
  func.func @transform_18(%arg0: i32) -> (i32, i32, i32) {
    %c0_i32 = arith.constant 0 : i32
    %c0_i32_0 = arith.constant 0 : i32
    %c0_i32_1 = arith.constant 0 : i32
    return %arg0, %c0_i32, %c0_i32_0 : i32, i32, i32
  }
  func.func @transform_19(%arg0: i32) -> (i32, i32, i32) {
    %c0_i32 = arith.constant 0 : i32
    %c0_i32_0 = arith.constant 0 : i32
    %c0_i32_1 = arith.constant 0 : i32
    return %arg0, %c0_i32, %c0_i32_0 : i32, i32, i32
  }
}

module attributes {stable_mosaic.version = 11 : i64} {
  func.func @_stack_kernel(%arg0: i32, %arg1: memref<14x32xf32, #tpu.memory_space<vmem>>, %arg2: memref<14x14xf32, #tpu.memory_space<vmem>>, %arg3: memref<1x1x32xf32, #tpu.memory_space<vmem>>, %arg4: memref<1x1x32xf32, #tpu.memory_space<vmem>>, %arg5: memref<1x32x96xbf16, #tpu.memory_space<vmem>>, %arg6: memref<1x1x96xf32, #tpu.memory_space<vmem>>, %arg7: memref<1x4x8x32xbf16, #tpu.memory_space<vmem>>, %arg8: memref<1x1x32xf32, #tpu.memory_space<vmem>>, %arg9: memref<1x1x32xf32, #tpu.memory_space<vmem>>, %arg10: memref<1x1x32xf32, #tpu.memory_space<vmem>>, %arg11: memref<1x1x32xf32, #tpu.memory_space<vmem>>, %arg12: memref<1x32x64xbf16, #tpu.memory_space<vmem>>, %arg13: memref<1x1x64xf32, #tpu.memory_space<vmem>>, %arg14: memref<1x64x32xbf16, #tpu.memory_space<vmem>>, %arg15: memref<1x1x32xf32, #tpu.memory_space<vmem>>, %arg16: memref<1x1x32xf32, #tpu.memory_space<vmem>>, %arg17: memref<1x1x32xf32, #tpu.memory_space<vmem>>, %arg18: memref<1x1x32xf32, #tpu.memory_space<vmem>>, %arg19: memref<1x14x32xf32, #tpu.memory_space<vmem>>, %arg20: memref<1x8x14xf32, #tpu.memory_space<vmem>>, %arg21: memref<14x32xf32, #tpu.memory_space<vmem>>) attributes {dimension_semantics = [#tpu.dimension_semantics<arbitrary>], iteration_bounds = array<i64: 1>, scalar_prefetch = 0 : i64, scratch_operands = 1 : i64, tpu.core_type = #tpu.core_type<tc>, window_params = [{pipeline_mode = #tpu.pipeline_mode<synchronous>, transform_indices = @transform_0, window_bounds = array<i64: 14, 32>}, {pipeline_mode = #tpu.pipeline_mode<synchronous>, transform_indices = @transform_1, window_bounds = array<i64: 14, 14>}, {transform_indices = @transform_2, window_bounds = array<i64: 1, 1, 32>}, {transform_indices = @transform_3, window_bounds = array<i64: 1, 1, 32>}, {transform_indices = @transform_4, window_bounds = array<i64: 1, 32, 96>}, {transform_indices = @transform_5, window_bounds = array<i64: 1, 1, 96>}, {transform_indices = @transform_6, window_bounds = array<i64: 1, 4, 8, 32>}, {transform_indices = @transform_7, window_bounds = array<i64: 1, 1, 32>}, {transform_indices = @transform_8, window_bounds = array<i64: 1, 1, 32>}, {transform_indices = @transform_9, window_bounds = array<i64: 1, 1, 32>}, {transform_indices = @transform_10, window_bounds = array<i64: 1, 1, 32>}, {transform_indices = @transform_11, window_bounds = array<i64: 1, 32, 64>}, {transform_indices = @transform_12, window_bounds = array<i64: 1, 1, 64>}, {transform_indices = @transform_13, window_bounds = array<i64: 1, 64, 32>}, {transform_indices = @transform_14, window_bounds = array<i64: 1, 1, 32>}, {transform_indices = @transform_15, window_bounds = array<i64: 1, 1, 32>}, {pipeline_mode = #tpu.pipeline_mode<synchronous>, transform_indices = @transform_16, window_bounds = array<i64: 1, 1, 32>}, {pipeline_mode = #tpu.pipeline_mode<synchronous>, transform_indices = @transform_17, window_bounds = array<i64: 1, 1, 32>}, {transform_indices = @transform_18, window_bounds = array<i64: 1, 14, 32>}, {transform_indices = @transform_19, window_bounds = array<i64: 1, 8, 14>}]} {
    %c0_i32 = arith.constant 0 : i32
    %0 = arith.cmpi eq, %arg0, %c0_i32 : i32
    %1 = arith.extui %0 : i1 to i32
    %c0_i32_0 = arith.constant 0 : i32
    %2 = arith.cmpi ne, %1, %c0_i32_0 : i32
    scf.if %2 {
      %c0_110 = arith.constant 0 : index
      %c0_111 = arith.constant 0 : index
      %256 = vector.load %arg1[%c0_110, %c0_111] : memref<14x32xf32, #tpu.memory_space<vmem>>, vector<14x32xf32>
      %c0_112 = arith.constant 0 : index
      %c0_113 = arith.constant 0 : index
      %257 = vector.load %arg21[%c0_112, %c0_113] : memref<14x32xf32, #tpu.memory_space<vmem>>, vector<14x32xf32>
      tpu.vector_store %arg21[%c0_112, %c0_113], %256 {strides = array<i32>} : memref<14x32xf32, #tpu.memory_space<vmem>>, vector<14x32xf32>,
    } else {
    }
    %c0 = arith.constant 0 : index
    %c0_1 = arith.constant 0 : index
    %3 = vector.load %arg21[%c0, %c0_1] : memref<14x32xf32, #tpu.memory_space<vmem>>, vector<14x32xf32>
    %c0_2 = arith.constant 0 : index
    %c0_3 = arith.constant 0 : index
    %c0_4 = arith.constant 0 : index
    %4 = vector.load %arg3[%c0_2, %c0_3, %c0_4] : memref<1x1x32xf32, #tpu.memory_space<vmem>>, vector<1x1x32xf32>
    %5 = vector.shape_cast %4 : vector<1x1x32xf32> to vector<1x32xf32>
    %c0_5 = arith.constant 0 : index
    %c0_6 = arith.constant 0 : index
    %c0_7 = arith.constant 0 : index
    %6 = vector.load %arg4[%c0_5, %c0_6, %c0_7] : memref<1x1x32xf32, #tpu.memory_space<vmem>>, vector<1x1x32xf32>
    %7 = vector.shape_cast %6 : vector<1x1x32xf32> to vector<1x32xf32>
    %cst = arith.constant dense<0.000000e+00> : vector<14xf32>
    %8 = vector.multi_reduction <add>, %3, %cst [1] : vector<14x32xf32> to vector<14xf32>
    %9 = vector.shape_cast %8 : vector<14xf32> to vector<14x1xf32>
    %cst_8 = arith.constant 3.200000e+01 : f32
    %10 = vector.broadcast %cst_8 : f32 to vector<14x1xf32>
    %11 = arith.divf %9, %10 : vector<14x1xf32>
    %12 = arith.mulf %3, %3 : vector<14x32xf32>
    %cst_9 = arith.constant dense<0.000000e+00> : vector<14xf32>
    %13 = vector.multi_reduction <add>, %12, %cst_9 [1] : vector<14x32xf32> to vector<14xf32>
    %14 = vector.shape_cast %13 : vector<14xf32> to vector<14x1xf32>
    %cst_10 = arith.constant 3.200000e+01 : f32
    %15 = vector.broadcast %cst_10 : f32 to vector<14x1xf32>
    %16 = arith.divf %14, %15 : vector<14x1xf32>
    %17 = arith.mulf %11, %11 : vector<14x1xf32>
    %18 = arith.subf %16, %17 : vector<14x1xf32>
    %cst_11 = arith.constant 0.000000e+00 : f32
    %19 = vector.broadcast %cst_11 : f32 to vector<14x1xf32>
    %20 = arith.maximumf %18, %19 : vector<14x1xf32>
    %21 = vector.broadcast %11 : vector<14x1xf32> to vector<14x32xf32>
    %22 = arith.subf %3, %21 : vector<14x32xf32>
    %cst_12 = arith.constant 9.99999997E-7 : f32
    %23 = vector.broadcast %cst_12 : f32 to vector<14x1xf32>
    %24 = arith.addf %20, %23 : vector<14x1xf32>
    %25 = math.rsqrt %24 : vector<14x1xf32>
    %26 = vector.broadcast %25 : vector<14x1xf32> to vector<14x32xf32>
    %27 = arith.mulf %22, %26 : vector<14x32xf32>
    %28 = vector.broadcast %5 : vector<1x32xf32> to vector<14x32xf32>
    %29 = arith.mulf %27, %28 : vector<14x32xf32>
    %30 = vector.broadcast %7 : vector<1x32xf32> to vector<14x32xf32>
    %31 = arith.addf %29, %30 : vector<14x32xf32>
    %32 = arith.truncf %31 : vector<14x32xf32> to vector<14x32xbf16>
    %c0_13 = arith.constant 0 : index
    %c0_14 = arith.constant 0 : index
    %c0_15 = arith.constant 0 : index
    %33 = vector.load %arg5[%c0_13, %c0_14, %c0_15] : memref<1x32x96xbf16, #tpu.memory_space<vmem>>, vector<1x32x96xbf16>
    %34 = vector.shape_cast %33 : vector<1x32x96xbf16> to vector<32x96xbf16>
    %cst_16 = arith.constant dense<0.000000e+00> : vector<14x96xf32>
    %35 = tpu.matmul %32, %34, %cst_16 {dimension_numbers = #tpu.dot_dimension_numbers<[1], [0], [0], [1], [0, 0, 1, 1], [], []>} : vector<14x32xbf16>, vector<32x96xbf16>, vector<14x96xf32> -> vector<14x96xf32>
    %c0_17 = arith.constant 0 : index
    %c0_18 = arith.constant 0 : index
    %c0_19 = arith.constant 0 : index
    %36 = vector.load %arg6[%c0_17, %c0_18, %c0_19] : memref<1x1x96xf32, #tpu.memory_space<vmem>>, vector<1x1x96xf32>
    %37 = vector.shape_cast %36 : vector<1x1x96xf32> to vector<1x96xf32>
    %38 = vector.broadcast %37 : vector<1x96xf32> to vector<14x96xf32>
    %39 = arith.addf %35, %38 : vector<14x96xf32>
    %40 = arith.truncf %39 : vector<14x96xf32> to vector<14x96xbf16>
    %c0_20 = arith.constant 0 : index
    %c0_21 = arith.constant 0 : index
    %41 = vector.load %arg2[%c0_20, %c0_21] : memref<14x14xf32, #tpu.memory_space<vmem>>, vector<14x14xf32>
    %c0_22 = arith.constant 0 : index
    %c0_23 = arith.constant 0 : index
    %c0_24 = arith.constant 0 : index
    %c0_25 = arith.constant 0 : index
    %42 = vector.load %arg7[%c0_22, %c0_23, %c0_24, %c0_25] : memref<1x4x8x32xbf16, #tpu.memory_space<vmem>>, vector<1x4x8x32xbf16>
    %43 = vector.shape_cast %42 : vector<1x4x8x32xbf16> to vector<4x8x32xbf16>
    %cst_26 = arith.constant 0.000000e+00 : f32
    %44 = vector.broadcast %cst_26 : f32 to vector<14x32xf32>
    %45 = vector.extract_strided_slice %40 {offsets = [0, 0], sizes = [14, 8], strides = [1, 1]} : vector<14x96xbf16> to vector<14x8xbf16>
    %46 = vector.extract_strided_slice %40 {offsets = [0, 32], sizes = [14, 8], strides = [1, 1]} : vector<14x96xbf16> to vector<14x8xbf16>
    %47 = vector.extract_strided_slice %40 {offsets = [0, 64], sizes = [14, 8], strides = [1, 1]} : vector<14x96xbf16> to vector<14x8xbf16>
    %cst_27 = arith.constant dense<0.000000e+00> : vector<14x14xf32>
    %48 = tpu.matmul %45, %46, %cst_27 {dimension_numbers = #tpu.dot_dimension_numbers<[1], [1], [0], [0], [0, 0, 1, 0], [], []>} : vector<14x8xbf16>, vector<14x8xbf16>, vector<14x14xf32> -> vector<14x14xf32>
    %cst_28 = arith.constant 0.353553385 : f32
    %49 = vector.broadcast %cst_28 : f32 to vector<14x14xf32>
    %50 = arith.mulf %48, %49 : vector<14x14xf32>
    %51 = arith.addf %50, %41 : vector<14x14xf32>
    %cst_29 = arith.constant dense<0xFF800000> : vector<14xf32>
    %52 = vector.multi_reduction <maximumf>, %51, %cst_29 [1] : vector<14x14xf32> to vector<14xf32>
    %53 = vector.shape_cast %52 : vector<14xf32> to vector<14x1xf32>
    %54 = vector.broadcast %53 : vector<14x1xf32> to vector<14x14xf32>
    %55 = arith.subf %51, %54 : vector<14x14xf32>
    %56 = math.exp %55 : vector<14x14xf32>
    %cst_30 = arith.constant dense<0.000000e+00> : vector<14xf32>
    %57 = vector.multi_reduction <add>, %56, %cst_30 [1] : vector<14x14xf32> to vector<14xf32>
    %58 = vector.shape_cast %57 : vector<14xf32> to vector<14x1xf32>
    %59 = vector.broadcast %58 : vector<14x1xf32> to vector<14x14xf32>
    %60 = arith.divf %56, %59 : vector<14x14xf32>
    %61 = arith.truncf %60 : vector<14x14xf32> to vector<14x14xbf16>
    %cst_31 = arith.constant dense<0.000000e+00> : vector<14x8xf32>
    %62 = tpu.matmul %61, %47, %cst_31 {dimension_numbers = #tpu.dot_dimension_numbers<[1], [0], [0], [1], [0, 0, 1, 1], [], []>} : vector<14x14xbf16>, vector<14x8xbf16>, vector<14x8xf32> -> vector<14x8xf32>
    %63 = arith.truncf %62 : vector<14x8xf32> to vector<14x8xbf16>
    %64 = vector.extract_strided_slice %43 {offsets = [0, 0, 0], sizes = [1, 8, 32], strides = [1, 1, 1]} : vector<4x8x32xbf16> to vector<1x8x32xbf16>
    %65 = vector.shape_cast %64 : vector<1x8x32xbf16> to vector<8x32xbf16>
    %cst_32 = arith.constant dense<0.000000e+00> : vector<14x32xf32>
    %66 = tpu.matmul %63, %65, %cst_32 {dimension_numbers = #tpu.dot_dimension_numbers<[1], [0], [0], [1], [0, 0, 1, 1], [], []>} : vector<14x8xbf16>, vector<8x32xbf16>, vector<14x32xf32> -> vector<14x32xf32>
    %67 = arith.addf %44, %66 : vector<14x32xf32>
    %68 = vector.extract_strided_slice %60 {offsets = [0, 0], sizes = [1, 14], strides = [1, 1]} : vector<14x14xf32> to vector<1x14xf32>
    %69 = vector.extract_strided_slice %60 {offsets = [7, 0], sizes = [1, 14], strides = [1, 1]} : vector<14x14xf32> to vector<1x14xf32>
    %70 = tpu.concatenate %68, %69 in 0 : vector<1x14xf32>, vector<1x14xf32> -> vector<2x14xf32>
    %71 = vector.extract_strided_slice %40 {offsets = [0, 8], sizes = [14, 8], strides = [1, 1]} : vector<14x96xbf16> to vector<14x8xbf16>
    %72 = vector.extract_strided_slice %40 {offsets = [0, 40], sizes = [14, 8], strides = [1, 1]} : vector<14x96xbf16> to vector<14x8xbf16>
    %73 = vector.extract_strided_slice %40 {offsets = [0, 72], sizes = [14, 8], strides = [1, 1]} : vector<14x96xbf16> to vector<14x8xbf16>
    %cst_33 = arith.constant dense<0.000000e+00> : vector<14x14xf32>
    %74 = tpu.matmul %71, %72, %cst_33 {dimension_numbers = #tpu.dot_dimension_numbers<[1], [1], [0], [0], [0, 0, 1, 0], [], []>} : vector<14x8xbf16>, vector<14x8xbf16>, vector<14x14xf32> -> vector<14x14xf32>
    %cst_34 = arith.constant 0.353553385 : f32
    %75 = vector.broadcast %cst_34 : f32 to vector<14x14xf32>
    %76 = arith.mulf %74, %75 : vector<14x14xf32>
    %77 = arith.addf %76, %41 : vector<14x14xf32>
    %cst_35 = arith.constant dense<0xFF800000> : vector<14xf32>
    %78 = vector.multi_reduction <maximumf>, %77, %cst_35 [1] : vector<14x14xf32> to vector<14xf32>
    %79 = vector.shape_cast %78 : vector<14xf32> to vector<14x1xf32>
    %80 = vector.broadcast %79 : vector<14x1xf32> to vector<14x14xf32>
    %81 = arith.subf %77, %80 : vector<14x14xf32>
    %82 = math.exp %81 : vector<14x14xf32>
    %cst_36 = arith.constant dense<0.000000e+00> : vector<14xf32>
    %83 = vector.multi_reduction <add>, %82, %cst_36 [1] : vector<14x14xf32> to vector<14xf32>
    %84 = vector.shape_cast %83 : vector<14xf32> to vector<14x1xf32>
    %85 = vector.broadcast %84 : vector<14x1xf32> to vector<14x14xf32>
    %86 = arith.divf %82, %85 : vector<14x14xf32>
    %87 = arith.truncf %86 : vector<14x14xf32> to vector<14x14xbf16>
    %cst_37 = arith.constant dense<0.000000e+00> : vector<14x8xf32>
    %88 = tpu.matmul %87, %73, %cst_37 {dimension_numbers = #tpu.dot_dimension_numbers<[1], [0], [0], [1], [0, 0, 1, 1], [], []>} : vector<14x14xbf16>, vector<14x8xbf16>, vector<14x8xf32> -> vector<14x8xf32>
    %89 = arith.truncf %88 : vector<14x8xf32> to vector<14x8xbf16>
    %90 = vector.extract_strided_slice %43 {offsets = [1, 0, 0], sizes = [1, 8, 32], strides = [1, 1, 1]} : vector<4x8x32xbf16> to vector<1x8x32xbf16>
    %91 = vector.shape_cast %90 : vector<1x8x32xbf16> to vector<8x32xbf16>
    %cst_38 = arith.constant dense<0.000000e+00> : vector<14x32xf32>
    %92 = tpu.matmul %89, %91, %cst_38 {dimension_numbers = #tpu.dot_dimension_numbers<[1], [0], [0], [1], [0, 0, 1, 1], [], []>} : vector<14x8xbf16>, vector<8x32xbf16>, vector<14x32xf32> -> vector<14x32xf32>
    %93 = arith.addf %67, %92 : vector<14x32xf32>
    %94 = vector.extract_strided_slice %86 {offsets = [0, 0], sizes = [1, 14], strides = [1, 1]} : vector<14x14xf32> to vector<1x14xf32>
    %95 = vector.extract_strided_slice %86 {offsets = [7, 0], sizes = [1, 14], strides = [1, 1]} : vector<14x14xf32> to vector<1x14xf32>
    %96 = tpu.concatenate %94, %95 in 0 : vector<1x14xf32>, vector<1x14xf32> -> vector<2x14xf32>
    %97 = vector.extract_strided_slice %40 {offsets = [0, 16], sizes = [14, 8], strides = [1, 1]} : vector<14x96xbf16> to vector<14x8xbf16>
    %98 = vector.extract_strided_slice %40 {offsets = [0, 48], sizes = [14, 8], strides = [1, 1]} : vector<14x96xbf16> to vector<14x8xbf16>
    %99 = vector.extract_strided_slice %40 {offsets = [0, 80], sizes = [14, 8], strides = [1, 1]} : vector<14x96xbf16> to vector<14x8xbf16>
    %cst_39 = arith.constant dense<0.000000e+00> : vector<14x14xf32>
    %100 = tpu.matmul %97, %98, %cst_39 {dimension_numbers = #tpu.dot_dimension_numbers<[1], [1], [0], [0], [0, 0, 1, 0], [], []>} : vector<14x8xbf16>, vector<14x8xbf16>, vector<14x14xf32> -> vector<14x14xf32>
    %cst_40 = arith.constant 0.353553385 : f32
    %101 = vector.broadcast %cst_40 : f32 to vector<14x14xf32>
    %102 = arith.mulf %100, %101 : vector<14x14xf32>
    %103 = arith.addf %102, %41 : vector<14x14xf32>
    %cst_41 = arith.constant dense<0xFF800000> : vector<14xf32>
    %104 = vector.multi_reduction <maximumf>, %103, %cst_41 [1] : vector<14x14xf32> to vector<14xf32>
    %105 = vector.shape_cast %104 : vector<14xf32> to vector<14x1xf32>
    %106 = vector.broadcast %105 : vector<14x1xf32> to vector<14x14xf32>
    %107 = arith.subf %103, %106 : vector<14x14xf32>
    %108 = math.exp %107 : vector<14x14xf32>
    %cst_42 = arith.constant dense<0.000000e+00> : vector<14xf32>
    %109 = vector.multi_reduction <add>, %108, %cst_42 [1] : vector<14x14xf32> to vector<14xf32>
    %110 = vector.shape_cast %109 : vector<14xf32> to vector<14x1xf32>
    %111 = vector.broadcast %110 : vector<14x1xf32> to vector<14x14xf32>
    %112 = arith.divf %108, %111 : vector<14x14xf32>
    %113 = arith.truncf %112 : vector<14x14xf32> to vector<14x14xbf16>
    %cst_43 = arith.constant dense<0.000000e+00> : vector<14x8xf32>
    %114 = tpu.matmul %113, %99, %cst_43 {dimension_numbers = #tpu.dot_dimension_numbers<[1], [0], [0], [1], [0, 0, 1, 1], [], []>} : vector<14x14xbf16>, vector<14x8xbf16>, vector<14x8xf32> -> vector<14x8xf32>
    %115 = arith.truncf %114 : vector<14x8xf32> to vector<14x8xbf16>
    %116 = vector.extract_strided_slice %43 {offsets = [2, 0, 0], sizes = [1, 8, 32], strides = [1, 1, 1]} : vector<4x8x32xbf16> to vector<1x8x32xbf16>
    %117 = vector.shape_cast %116 : vector<1x8x32xbf16> to vector<8x32xbf16>
    %cst_44 = arith.constant dense<0.000000e+00> : vector<14x32xf32>
    %118 = tpu.matmul %115, %117, %cst_44 {dimension_numbers = #tpu.dot_dimension_numbers<[1], [0], [0], [1], [0, 0, 1, 1], [], []>} : vector<14x8xbf16>, vector<8x32xbf16>, vector<14x32xf32> -> vector<14x32xf32>
    %119 = arith.addf %93, %118 : vector<14x32xf32>
    %120 = vector.extract_strided_slice %112 {offsets = [0, 0], sizes = [1, 14], strides = [1, 1]} : vector<14x14xf32> to vector<1x14xf32>
    %121 = vector.extract_strided_slice %112 {offsets = [7, 0], sizes = [1, 14], strides = [1, 1]} : vector<14x14xf32> to vector<1x14xf32>
    %122 = tpu.concatenate %120, %121 in 0 : vector<1x14xf32>, vector<1x14xf32> -> vector<2x14xf32>
    %123 = vector.extract_strided_slice %40 {offsets = [0, 24], sizes = [14, 8], strides = [1, 1]} : vector<14x96xbf16> to vector<14x8xbf16>
    %124 = vector.extract_strided_slice %40 {offsets = [0, 56], sizes = [14, 8], strides = [1, 1]} : vector<14x96xbf16> to vector<14x8xbf16>
    %125 = vector.extract_strided_slice %40 {offsets = [0, 88], sizes = [14, 8], strides = [1, 1]} : vector<14x96xbf16> to vector<14x8xbf16>
    %cst_45 = arith.constant dense<0.000000e+00> : vector<14x14xf32>
    %126 = tpu.matmul %123, %124, %cst_45 {dimension_numbers = #tpu.dot_dimension_numbers<[1], [1], [0], [0], [0, 0, 1, 0], [], []>} : vector<14x8xbf16>, vector<14x8xbf16>, vector<14x14xf32> -> vector<14x14xf32>
    %cst_46 = arith.constant 0.353553385 : f32
    %127 = vector.broadcast %cst_46 : f32 to vector<14x14xf32>
    %128 = arith.mulf %126, %127 : vector<14x14xf32>
    %129 = arith.addf %128, %41 : vector<14x14xf32>
    %cst_47 = arith.constant dense<0xFF800000> : vector<14xf32>
    %130 = vector.multi_reduction <maximumf>, %129, %cst_47 [1] : vector<14x14xf32> to vector<14xf32>
    %131 = vector.shape_cast %130 : vector<14xf32> to vector<14x1xf32>
    %132 = vector.broadcast %131 : vector<14x1xf32> to vector<14x14xf32>
    %133 = arith.subf %129, %132 : vector<14x14xf32>
    %134 = math.exp %133 : vector<14x14xf32>
    %cst_48 = arith.constant dense<0.000000e+00> : vector<14xf32>
    %135 = vector.multi_reduction <add>, %134, %cst_48 [1] : vector<14x14xf32> to vector<14xf32>
    %136 = vector.shape_cast %135 : vector<14xf32> to vector<14x1xf32>
    %137 = vector.broadcast %136 : vector<14x1xf32> to vector<14x14xf32>
    %138 = arith.divf %134, %137 : vector<14x14xf32>
    %139 = arith.truncf %138 : vector<14x14xf32> to vector<14x14xbf16>
    %cst_49 = arith.constant dense<0.000000e+00> : vector<14x8xf32>
    %140 = tpu.matmul %139, %125, %cst_49 {dimension_numbers = #tpu.dot_dimension_numbers<[1], [0], [0], [1], [0, 0, 1, 1], [], []>} : vector<14x14xbf16>, vector<14x8xbf16>, vector<14x8xf32> -> vector<14x8xf32>
    %141 = arith.truncf %140 : vector<14x8xf32> to vector<14x8xbf16>
    %142 = vector.extract_strided_slice %43 {offsets = [3, 0, 0], sizes = [1, 8, 32], strides = [1, 1, 1]} : vector<4x8x32xbf16> to vector<1x8x32xbf16>
    %143 = vector.shape_cast %142 : vector<1x8x32xbf16> to vector<8x32xbf16>
    %cst_50 = arith.constant dense<0.000000e+00> : vector<14x32xf32>
    %144 = tpu.matmul %141, %143, %cst_50 {dimension_numbers = #tpu.dot_dimension_numbers<[1], [0], [0], [1], [0, 0, 1, 1], [], []>} : vector<14x8xbf16>, vector<8x32xbf16>, vector<14x32xf32> -> vector<14x32xf32>
    %145 = arith.addf %119, %144 : vector<14x32xf32>
    %146 = vector.extract_strided_slice %138 {offsets = [0, 0], sizes = [1, 14], strides = [1, 1]} : vector<14x14xf32> to vector<1x14xf32>
    %147 = vector.extract_strided_slice %138 {offsets = [7, 0], sizes = [1, 14], strides = [1, 1]} : vector<14x14xf32> to vector<1x14xf32>
    %148 = tpu.concatenate %146, %147 in 0 : vector<1x14xf32>, vector<1x14xf32> -> vector<2x14xf32>
    %149 = tpu.concatenate %70, %96, %122, %148 in 0 : vector<2x14xf32>, vector<2x14xf32>, vector<2x14xf32>, vector<2x14xf32> -> vector<8x14xf32>
    %c0_51 = arith.constant 0 : index
    %c0_52 = arith.constant 0 : index
    %c0_53 = arith.constant 0 : index
    %150 = vector.load %arg20[%c0_51, %c0_52, %c0_53] : memref<1x8x14xf32, #tpu.memory_space<vmem>>, vector<1x8x14xf32>
    %151 = vector.shape_cast %150 : vector<1x8x14xf32> to vector<8x14xf32>
    %152 = vector.shape_cast %149 : vector<8x14xf32> to vector<1x8x14xf32>
    tpu.vector_store %arg20[%c0_51, %c0_52, %c0_53], %152 {strides = array<i32>} : memref<1x8x14xf32, #tpu.memory_space<vmem>>, vector<1x8x14xf32>,
    %c0_54 = arith.constant 0 : index
    %c0_55 = arith.constant 0 : index
    %c0_56 = arith.constant 0 : index
    %153 = vector.load %arg9[%c0_54, %c0_55, %c0_56] : memref<1x1x32xf32, #tpu.memory_space<vmem>>, vector<1x1x32xf32>
    %154 = vector.shape_cast %153 : vector<1x1x32xf32> to vector<1x32xf32>
    %c0_57 = arith.constant 0 : index
    %c0_58 = arith.constant 0 : index
    %c0_59 = arith.constant 0 : index
    %155 = vector.load %arg8[%c0_57, %c0_58, %c0_59] : memref<1x1x32xf32, #tpu.memory_space<vmem>>, vector<1x1x32xf32>
    %156 = vector.shape_cast %155 : vector<1x1x32xf32> to vector<1x32xf32>
    %157 = vector.broadcast %156 : vector<1x32xf32> to vector<14x32xf32>
    %158 = arith.addf %145, %157 : vector<14x32xf32>
    %159 = vector.broadcast %154 : vector<1x32xf32> to vector<14x32xf32>
    %160 = arith.mulf %159, %158 : vector<14x32xf32>
    %161 = arith.addf %3, %160 : vector<14x32xf32>
    %c0_60 = arith.constant 0 : index
    %c0_61 = arith.constant 0 : index
    %c0_62 = arith.constant 0 : index
    %162 = vector.load %arg10[%c0_60, %c0_61, %c0_62] : memref<1x1x32xf32, #tpu.memory_space<vmem>>, vector<1x1x32xf32>
    %163 = vector.shape_cast %162 : vector<1x1x32xf32> to vector<1x32xf32>
    %c0_63 = arith.constant 0 : index
    %c0_64 = arith.constant 0 : index
    %c0_65 = arith.constant 0 : index
    %164 = vector.load %arg11[%c0_63, %c0_64, %c0_65] : memref<1x1x32xf32, #tpu.memory_space<vmem>>, vector<1x1x32xf32>
    %165 = vector.shape_cast %164 : vector<1x1x32xf32> to vector<1x32xf32>
    %cst_66 = arith.constant dense<0.000000e+00> : vector<14xf32>
    %166 = vector.multi_reduction <add>, %161, %cst_66 [1] : vector<14x32xf32> to vector<14xf32>
    %167 = vector.shape_cast %166 : vector<14xf32> to vector<14x1xf32>
    %cst_67 = arith.constant 3.200000e+01 : f32
    %168 = vector.broadcast %cst_67 : f32 to vector<14x1xf32>
    %169 = arith.divf %167, %168 : vector<14x1xf32>
    %170 = arith.mulf %161, %161 : vector<14x32xf32>
    %cst_68 = arith.constant dense<0.000000e+00> : vector<14xf32>
    %171 = vector.multi_reduction <add>, %170, %cst_68 [1] : vector<14x32xf32> to vector<14xf32>
    %172 = vector.shape_cast %171 : vector<14xf32> to vector<14x1xf32>
    %cst_69 = arith.constant 3.200000e+01 : f32
    %173 = vector.broadcast %cst_69 : f32 to vector<14x1xf32>
    %174 = arith.divf %172, %173 : vector<14x1xf32>
    %175 = arith.mulf %169, %169 : vector<14x1xf32>
    %176 = arith.subf %174, %175 : vector<14x1xf32>
    %cst_70 = arith.constant 0.000000e+00 : f32
    %177 = vector.broadcast %cst_70 : f32 to vector<14x1xf32>
    %178 = arith.maximumf %176, %177 : vector<14x1xf32>
    %179 = vector.broadcast %169 : vector<14x1xf32> to vector<14x32xf32>
    %180 = arith.subf %161, %179 : vector<14x32xf32>
    %cst_71 = arith.constant 9.99999997E-7 : f32
    %181 = vector.broadcast %cst_71 : f32 to vector<14x1xf32>
    %182 = arith.addf %178, %181 : vector<14x1xf32>
    %183 = math.rsqrt %182 : vector<14x1xf32>
    %184 = vector.broadcast %183 : vector<14x1xf32> to vector<14x32xf32>
    %185 = arith.mulf %180, %184 : vector<14x32xf32>
    %186 = vector.broadcast %163 : vector<1x32xf32> to vector<14x32xf32>
    %187 = arith.mulf %185, %186 : vector<14x32xf32>
    %188 = vector.broadcast %165 : vector<1x32xf32> to vector<14x32xf32>
    %189 = arith.addf %187, %188 : vector<14x32xf32>
    %190 = arith.truncf %189 : vector<14x32xf32> to vector<14x32xbf16>
    %c0_72 = arith.constant 0 : index
    %c0_73 = arith.constant 0 : index
    %c0_74 = arith.constant 0 : index
    %191 = vector.load %arg12[%c0_72, %c0_73, %c0_74] : memref<1x32x64xbf16, #tpu.memory_space<vmem>>, vector<1x32x64xbf16>
    %192 = vector.shape_cast %191 : vector<1x32x64xbf16> to vector<32x64xbf16>
    %cst_75 = arith.constant dense<0.000000e+00> : vector<14x64xf32>
    %193 = tpu.matmul %190, %192, %cst_75 {dimension_numbers = #tpu.dot_dimension_numbers<[1], [0], [0], [1], [0, 0, 1, 1], [], []>} : vector<14x32xbf16>, vector<32x64xbf16>, vector<14x64xf32> -> vector<14x64xf32>
    %c0_76 = arith.constant 0 : index
    %c0_77 = arith.constant 0 : index
    %c0_78 = arith.constant 0 : index
    %194 = vector.load %arg13[%c0_76, %c0_77, %c0_78] : memref<1x1x64xf32, #tpu.memory_space<vmem>>, vector<1x1x64xf32>
    %195 = vector.shape_cast %194 : vector<1x1x64xf32> to vector<1x64xf32>
    %196 = vector.broadcast %195 : vector<1x64xf32> to vector<14x64xf32>
    %197 = arith.addf %193, %196 : vector<14x64xf32>
    %198 = arith.mulf %197, %197 : vector<14x64xf32>
    %199 = arith.mulf %197, %198 : vector<14x64xf32>
    %cst_79 = arith.constant 4.471500e-02 : f32
    %200 = vector.broadcast %cst_79 : f32 to vector<14x64xf32>
    %201 = arith.mulf %200, %199 : vector<14x64xf32>
    %202 = arith.addf %197, %201 : vector<14x64xf32>
    %cst_80 = arith.constant 0.797884583 : f32
    %203 = vector.broadcast %cst_80 : f32 to vector<14x64xf32>
    %204 = arith.mulf %203, %202 : vector<14x64xf32>
    %205 = math.tanh %204 : vector<14x64xf32>
    %cst_81 = arith.constant 1.000000e+00 : f32
    %206 = vector.broadcast %cst_81 : f32 to vector<14x64xf32>
    %207 = arith.addf %206, %205 : vector<14x64xf32>
    %cst_82 = arith.constant 5.000000e-01 : f32
    %208 = vector.broadcast %cst_82 : f32 to vector<14x64xf32>
    %209 = arith.mulf %208, %207 : vector<14x64xf32>
    %210 = arith.mulf %197, %209 : vector<14x64xf32>
    %211 = arith.truncf %210 : vector<14x64xf32> to vector<14x64xbf16>
    %c0_83 = arith.constant 0 : index
    %c0_84 = arith.constant 0 : index
    %c0_85 = arith.constant 0 : index
    %212 = vector.load %arg14[%c0_83, %c0_84, %c0_85] : memref<1x64x32xbf16, #tpu.memory_space<vmem>>, vector<1x64x32xbf16>
    %213 = vector.shape_cast %212 : vector<1x64x32xbf16> to vector<64x32xbf16>
    %cst_86 = arith.constant dense<0.000000e+00> : vector<14x32xf32>
    %214 = tpu.matmul %211, %213, %cst_86 {dimension_numbers = #tpu.dot_dimension_numbers<[1], [0], [0], [1], [0, 0, 1, 1], [], []>} : vector<14x64xbf16>, vector<64x32xbf16>, vector<14x32xf32> -> vector<14x32xf32>
    %c0_87 = arith.constant 0 : index
    %c0_88 = arith.constant 0 : index
    %c0_89 = arith.constant 0 : index
    %215 = vector.load %arg15[%c0_87, %c0_88, %c0_89] : memref<1x1x32xf32, #tpu.memory_space<vmem>>, vector<1x1x32xf32>
    %216 = vector.shape_cast %215 : vector<1x1x32xf32> to vector<1x32xf32>
    %217 = vector.broadcast %216 : vector<1x32xf32> to vector<14x32xf32>
    %218 = arith.addf %214, %217 : vector<14x32xf32>
    %c0_90 = arith.constant 0 : index
    %c0_91 = arith.constant 0 : index
    %c0_92 = arith.constant 0 : index
    %219 = vector.load %arg16[%c0_90, %c0_91, %c0_92] : memref<1x1x32xf32, #tpu.memory_space<vmem>>, vector<1x1x32xf32>
    %220 = vector.shape_cast %219 : vector<1x1x32xf32> to vector<1x32xf32>
    %221 = vector.broadcast %220 : vector<1x32xf32> to vector<14x32xf32>
    %222 = arith.mulf %221, %218 : vector<14x32xf32>
    %223 = arith.addf %161, %222 : vector<14x32xf32>
    %c0_93 = arith.constant 0 : index
    %c0_94 = arith.constant 0 : index
    %c0_95 = arith.constant 0 : index
    %224 = vector.load %arg17[%c0_93, %c0_94, %c0_95] : memref<1x1x32xf32, #tpu.memory_space<vmem>>, vector<1x1x32xf32>
    %225 = vector.shape_cast %224 : vector<1x1x32xf32> to vector<1x32xf32>
    %c0_96 = arith.constant 0 : index
    %c0_97 = arith.constant 0 : index
    %c0_98 = arith.constant 0 : index
    %226 = vector.load %arg18[%c0_96, %c0_97, %c0_98] : memref<1x1x32xf32, #tpu.memory_space<vmem>>, vector<1x1x32xf32>
    %227 = vector.shape_cast %226 : vector<1x1x32xf32> to vector<1x32xf32>
    %cst_99 = arith.constant dense<0.000000e+00> : vector<14xf32>
    %228 = vector.multi_reduction <add>, %223, %cst_99 [1] : vector<14x32xf32> to vector<14xf32>
    %229 = vector.shape_cast %228 : vector<14xf32> to vector<14x1xf32>
    %cst_100 = arith.constant 3.200000e+01 : f32
    %230 = vector.broadcast %cst_100 : f32 to vector<14x1xf32>
    %231 = arith.divf %229, %230 : vector<14x1xf32>
    %232 = arith.mulf %223, %223 : vector<14x32xf32>
    %cst_101 = arith.constant dense<0.000000e+00> : vector<14xf32>
    %233 = vector.multi_reduction <add>, %232, %cst_101 [1] : vector<14x32xf32> to vector<14xf32>
    %234 = vector.shape_cast %233 : vector<14xf32> to vector<14x1xf32>
    %cst_102 = arith.constant 3.200000e+01 : f32
    %235 = vector.broadcast %cst_102 : f32 to vector<14x1xf32>
    %236 = arith.divf %234, %235 : vector<14x1xf32>
    %237 = arith.mulf %231, %231 : vector<14x1xf32>
    %238 = arith.subf %236, %237 : vector<14x1xf32>
    %cst_103 = arith.constant 0.000000e+00 : f32
    %239 = vector.broadcast %cst_103 : f32 to vector<14x1xf32>
    %240 = arith.maximumf %238, %239 : vector<14x1xf32>
    %241 = vector.broadcast %231 : vector<14x1xf32> to vector<14x32xf32>
    %242 = arith.subf %223, %241 : vector<14x32xf32>
    %cst_104 = arith.constant 9.99999997E-7 : f32
    %243 = vector.broadcast %cst_104 : f32 to vector<14x1xf32>
    %244 = arith.addf %240, %243 : vector<14x1xf32>
    %245 = math.rsqrt %244 : vector<14x1xf32>
    %246 = vector.broadcast %245 : vector<14x1xf32> to vector<14x32xf32>
    %247 = arith.mulf %242, %246 : vector<14x32xf32>
    %248 = vector.broadcast %225 : vector<1x32xf32> to vector<14x32xf32>
    %249 = arith.mulf %247, %248 : vector<14x32xf32>
    %250 = vector.broadcast %227 : vector<1x32xf32> to vector<14x32xf32>
    %251 = arith.addf %249, %250 : vector<14x32xf32>
    %c0_105 = arith.constant 0 : index
    %c0_106 = arith.constant 0 : index
    %252 = vector.load %arg21[%c0_105, %c0_106] : memref<14x32xf32, #tpu.memory_space<vmem>>, vector<14x32xf32>
    tpu.vector_store %arg21[%c0_105, %c0_106], %251 {strides = array<i32>} : memref<14x32xf32, #tpu.memory_space<vmem>>, vector<14x32xf32>,
    %c0_107 = arith.constant 0 : index
    %c0_108 = arith.constant 0 : index
    %c0_109 = arith.constant 0 : index
    %253 = vector.load %arg19[%c0_107, %c0_108, %c0_109] : memref<1x14x32xf32, #tpu.memory_space<vmem>>, vector<1x14x32xf32>
    %254 = vector.shape_cast %253 : vector<1x14x32xf32> to vector<14x32xf32>
    %255 = vector.shape_cast %251 : vector<14x32xf32> to vector<1x14x32xf32>
    tpu.vector_store %arg19[%c0_107, %c0_108, %c0_109], %255 {strides = array<i32>} : memref<1x14x32xf32, #tpu.memory_space<vmem>>, vector<1x14x32xf32>,
    return
  }
  func.func @transform_0(%arg0: i32) -> (i32, i32) {
    %c0_i32 = arith.constant 0 : i32
    %c0_i32_0 = arith.constant 0 : i32
    %c0_i32_1 = arith.constant 0 : i32
    return %c0_i32, %c0_i32_0 : i32, i32
  }
  func.func @transform_1(%arg0: i32) -> (i32, i32) {
    %c0_i32 = arith.constant 0 : i32
    %c0_i32_0 = arith.constant 0 : i32
    %c0_i32_1 = arith.constant 0 : i32
    return %c0_i32, %c0_i32_0 : i32, i32
  }
  func.func @transform_2(%arg0: i32) -> (i32, i32, i32) {
    %c0_i32 = arith.constant 0 : i32
    %c0_i32_0 = arith.constant 0 : i32
    %c0_i32_1 = arith.constant 0 : i32
    return %arg0, %c0_i32, %c0_i32_0 : i32, i32, i32
  }
  func.func @transform_3(%arg0: i32) -> (i32, i32, i32) {
    %c0_i32 = arith.constant 0 : i32
    %c0_i32_0 = arith.constant 0 : i32
    %c0_i32_1 = arith.constant 0 : i32
    return %arg0, %c0_i32, %c0_i32_0 : i32, i32, i32
  }
  func.func @transform_4(%arg0: i32) -> (i32, i32, i32) {
    %c0_i32 = arith.constant 0 : i32
    %c0_i32_0 = arith.constant 0 : i32
    %c0_i32_1 = arith.constant 0 : i32
    return %arg0, %c0_i32, %c0_i32_0 : i32, i32, i32
  }
  func.func @transform_5(%arg0: i32) -> (i32, i32, i32) {
    %c0_i32 = arith.constant 0 : i32
    %c0_i32_0 = arith.constant 0 : i32
    %c0_i32_1 = arith.constant 0 : i32
    return %arg0, %c0_i32, %c0_i32_0 : i32, i32, i32
  }
  func.func @transform_6(%arg0: i32) -> (i32, i32, i32, i32) {
    %c0_i32 = arith.constant 0 : i32
    %c0_i32_0 = arith.constant 0 : i32
    %c0_i32_1 = arith.constant 0 : i32
    %c0_i32_2 = arith.constant 0 : i32
    return %arg0, %c0_i32, %c0_i32_0, %c0_i32_1 : i32, i32, i32, i32
  }
  func.func @transform_7(%arg0: i32) -> (i32, i32, i32) {
    %c0_i32 = arith.constant 0 : i32
    %c0_i32_0 = arith.constant 0 : i32
    %c0_i32_1 = arith.constant 0 : i32
    return %arg0, %c0_i32, %c0_i32_0 : i32, i32, i32
  }
  func.func @transform_8(%arg0: i32) -> (i32, i32, i32) {
    %c0_i32 = arith.constant 0 : i32
    %c0_i32_0 = arith.constant 0 : i32
    %c0_i32_1 = arith.constant 0 : i32
    return %arg0, %c0_i32, %c0_i32_0 : i32, i32, i32
  }
  func.func @transform_9(%arg0: i32) -> (i32, i32, i32) {
    %c0_i32 = arith.constant 0 : i32
    %c0_i32_0 = arith.constant 0 : i32
    %c0_i32_1 = arith.constant 0 : i32
    return %arg0, %c0_i32, %c0_i32_0 : i32, i32, i32
  }
  func.func @transform_10(%arg0: i32) -> (i32, i32, i32) {
    %c0_i32 = arith.constant 0 : i32
    %c0_i32_0 = arith.constant 0 : i32
    %c0_i32_1 = arith.constant 0 : i32
    return %arg0, %c0_i32, %c0_i32_0 : i32, i32, i32
  }
  func.func @transform_11(%arg0: i32) -> (i32, i32, i32) {
    %c0_i32 = arith.constant 0 : i32
    %c0_i32_0 = arith.constant 0 : i32
    %c0_i32_1 = arith.constant 0 : i32
    return %arg0, %c0_i32, %c0_i32_0 : i32, i32, i32
  }
  func.func @transform_12(%arg0: i32) -> (i32, i32, i32) {
    %c0_i32 = arith.constant 0 : i32
    %c0_i32_0 = arith.constant 0 : i32
    %c0_i32_1 = arith.constant 0 : i32
    return %arg0, %c0_i32, %c0_i32_0 : i32, i32, i32
  }
  func.func @transform_13(%arg0: i32) -> (i32, i32, i32) {
    %c0_i32 = arith.constant 0 : i32
    %c0_i32_0 = arith.constant 0 : i32
    %c0_i32_1 = arith.constant 0 : i32
    return %arg0, %c0_i32, %c0_i32_0 : i32, i32, i32
  }
  func.func @transform_14(%arg0: i32) -> (i32, i32, i32) {
    %c0_i32 = arith.constant 0 : i32
    %c0_i32_0 = arith.constant 0 : i32
    %c0_i32_1 = arith.constant 0 : i32
    return %arg0, %c0_i32, %c0_i32_0 : i32, i32, i32
  }
  func.func @transform_15(%arg0: i32) -> (i32, i32, i32) {
    %c0_i32 = arith.constant 0 : i32
    %c0_i32_0 = arith.constant 0 : i32
    %c0_i32_1 = arith.constant 0 : i32
    return %arg0, %c0_i32, %c0_i32_0 : i32, i32, i32
  }
  func.func @transform_16(%arg0: i32) -> (i32, i32, i32) {
    %c0_i32 = arith.constant 0 : i32
    %c0_i32_0 = arith.constant 0 : i32
    %c0_i32_1 = arith.constant 0 : i32
    %c0_i32_2 = arith.constant 0 : i32
    return %c0_i32, %c0_i32_0, %c0_i32_1 : i32, i32, i32
  }
  func.func @transform_17(%arg0: i32) -> (i32, i32, i32) {
    %c0_i32 = arith.constant 0 : i32
    %c0_i32_0 = arith.constant 0 : i32
    %c0_i32_1 = arith.constant 0 : i32
    %c0_i32_2 = arith.constant 0 : i32
    return %c0_i32, %c0_i32_0, %c0_i32_1 : i32, i32, i32
  }
  func.func @transform_18(%arg0: i32) -> (i32, i32, i32) {
    %c0_i32 = arith.constant 0 : i32
    %c0_i32_0 = arith.constant 0 : i32
    %c0_i32_1 = arith.constant 0 : i32
    return %arg0, %c0_i32, %c0_i32_0 : i32, i32, i32
  }
  func.func @transform_19(%arg0: i32) -> (i32, i32, i32) {
    %c0_i32 = arith.constant 0 : i32
    %c0_i32_0 = arith.constant 0 : i32
    %c0_i32_1 = arith.constant 0 : i32
    return %arg0, %c0_i32, %c0_i32_0 : i32, i32, i32
  }
}

</mosaic_0001>

<bundles_post_ra>
// kernel: neg.0
= control target key start
LH: loop header
LB: loop body
LE: loop exit
PB: predicated region body
PF: predicated region fallthrough
CT: control target
= control target key end

     0   :  { %s104_s0 = inlined_call_operand.vmem [shape: f32[6,4,4], index: 0, kind: input, shape index: {}]   ;;  %s105_s1 = inlined_call_operand.vmem [shape: f32[6,4,4], index: 1, kind: output, shape index: {}]  }
   0x1   :  { %v2_v0 = vld [vmem:[%s104_s0] sm:$0xf]  ;;  %v48_v1 = vld [vmem:[%s104_s0 + $0x4] sm:$0xf]  ;;  %v50_v2 = vld [vmem:[%s104_s0 + $0x8] sm:$0xf] }
   0x2   :  { %v5_v3 = vxor.u32 2147483648, %v2_v0  ;;  %v12_v4 = vxor.u32 2147483648, %v48_v1  ;;  %v20_v5 = vxor.u32 2147483648, %v50_v2  ;;  %v52_v6 = vld [vmem:[%s104_s0 + $0xc] sm:$0xf] }
   0x3   :  { %v28_v7 = vxor.u32 2147483648, %v52_v6  ;;  %v54_v8 = vld [vmem:[%s104_s0 + $0x10] sm:$0xf]  ;;  %v56_v9 = vld [vmem:[%s104_s0 + $0x14] sm:$0xf] }
   0x4   :  { %7 = vst [vmem:[%s105_s1] sm:$0xf] %v5_v3  ;;  %49 = vst [vmem:[%s105_s1 + $0x4] sm:$0xf] %v12_v4  ;;  %v36_v10 = vxor.u32 2147483648, %v54_v8  ;;  %v44_v11 = vxor.u32 2147483648, %v56_v9 }
   0x5   :  { %51 = vst [vmem:[%s105_s1 + $0x8] sm:$0xf] %v20_v5  ;;  %53 = vst [vmem:[%s105_s1 + $0xc] sm:$0xf] %v28_v7 }
   0x6   :  { %55 = vst [vmem:[%s105_s1 + $0x10] sm:$0xf] %v36_v10  ;;  %57 = vst [vmem:[%s105_s1 + $0x14] sm:$0xf] %v44_v11 }

// kernel: ielt_encoder_forward.5
= control target key start
LH: loop header
LB: loop body
LE: loop exit
PB: predicated region body
PF: predicated region fallthrough
CT: control target
= control target key end

     0   :  { %s784_s14 = smov 127   ;;  %s785_s19 = smov 126   ;;  %vm182_vm0 = vcmask 1045504   ;;  %vm405_vm1 = vcmask 1043456   ;;  %vm766_vm2 = vcmask 30723   ;;  %s1509_s0 = inlined_call_operand.vmem [shape: f32[6,12,12], index: 0, kind: input, shape index: {}]   ;;  %s1510_s1 = inlined_call_operand.vmem [shape: f32[6,4,4], index: 1, kind: output, shape index: {}]  }
   0x1   :  { %v804_v0 = vld [vmem:[%s1509_s0 + $0x20] sm:$0xff]  ;;  %v814_v2 = vld [vmem:[%s1509_s0 + $0x30] sm:$0xff]  ;;  %v908_v26 = vld [vmem:[%s1509_s0 + $0x18] sm:$0xf]  ;;  %s786_s28 = smov 124   ;;  %s787_s29 = smov 120  }
   0x2   :  { %1541 = vst [vmem:[#allocation2_spill] sm:$0xff] %v804_v0  ;;  %v809_v1 = vld [vmem:[%s1509_s0] sm:$0xff]  ;;  %1543 = vst [vmem:[#allocation4_spill] sm:$0xff] %v814_v2  ;;  %v817_v3 = vmul.f32 2.0, %v804_v0  ;;  %v825_v5 = vld [vmem:[%s1509_s0 + $0x10] sm:$0xff]  ;;  %v832_v6 = vmul.f32 2.0, %v814_v2 }
   0x3   :  { %1542 = vst [vmem:[#allocation3_spill] sm:$0xff] %v809_v1  ;;  %v820_v4 = vmul.f32 2.0, %v809_v1  ;;  %1546 = vst [vmem:[#allocation7_spill] sm:$0xff] %v825_v5  ;;  %v835_v7 = vmul.f32 2.0, %v825_v5  ;;  %v840_v8 = vld [vmem:[%s1509_s0 + $0x50] sm:$0xff]  ;;  %v845_v9 = vld [vmem:[%s1509_s0 + $0x40] sm:$0xff] }
   0x4   :  { %1544 = vst [vmem:[#allocation5_spill] sm:$0xff] %v817_v3  ;;  %42 = vrot.lane.b32.xlu1 %v817_v3, %s784_s14  ;;  %1547 = vst [vmem:[#allocation8_spill] sm:$0xff] %v832_v6  ;;  %v852_v10 = vmul.f32 2.0, %v840_v8  ;;  %v855_v11 = vmul.f32 2.0, %v845_v9  ;;  %v870_v12 = vmul.f32 4.0, %v825_v5  ;;  %v873_v13 = vmul.f32 4.0, %v809_v1 }
   0x5   :  { %1545 = vst [vmem:[#allocation6_spill] sm:$0xff] %v820_v4  ;;  %38 = vrot.lane.b32.xlu0 %v820_v4, %s784_s14  ;;  %1548 = vst [vmem:[#allocation9_spill] sm:$0xff] %v835_v7  ;;  %v882_v16 = vmul.f32 4.0, %v814_v2  ;;  %v885_v17 = vmul.f32 4.0, %v804_v0  ;;  %v892_v20 = vmul.f32 4.0, %v840_v8  ;;  %v895_v21 = vmul.f32 4.0, %v845_v9 }
   0x6   :  { %1549 = vst [vmem:[#allocation10_spill] sm:$0xff] %v840_v8  ;;  %1550 = vst [vmem:[#allocation11_spill] sm:$0xff] %v845_v9  ;;  %v123_v14 = vrot.slane %v870_v12, 1  ;;  %v122_v15 = vrot.slane %v873_v13, 1  ;;  %v1516_v24 = vrot.slane %v835_v7, 1  ;;  %v1515_v25 = vrot.slane %v820_v4, 1 }
   0x7   :  { %1551 = vst [vmem:[#allocation12_spill] sm:$0xff] %v852_v10  ;;  %1552 = vst [vmem:[#allocation13_spill] sm:$0xff] %v855_v11  ;;  %v125_v18 = vrot.slane %v882_v16, 1  ;;  %v124_v19 = vrot.slane %v885_v17, 1  ;;  %v127_v22 = vrot.slane %v892_v20, 1  ;;  %v126_v23 = vrot.slane %v895_v21, 1 }
   0x8   :  { %44 = vrot.lane.b32.xlu1 %v832_v6, %s784_s14  ;;  %1553 = vst [vmem:[#allocation14_spill] sm:$0xff] %v908_v26  ;;  %v913_v27 = vld [vmem:[%s1509_s0 + $0x8] sm:$0xf]  ;;  %v1514_v28 = vrot.slane %v832_v6, 1  ;;  %v1513_v29 = vrot.slane %v817_v3, 1  ;;  %v924_v30 = vmul.f32 2.0, %v908_v26 }
   0x9   :  { %40 = vrot.lane.b32.xlu0 %v835_v7, %s784_s14  ;;  %1554 = vst [vmem:[#allocation15_spill] sm:$0xff] %v913_v27  ;;  %v927_v31 = vmul.f32 2.0, %v913_v27  ;;  %v932_v32 = vld [vmem:[%s1509_s0 + $0x38] sm:$0xf]  ;;  %v937_v33 = vld [vmem:[%s1509_s0 + $0x28] sm:$0xf] }
   0xa   :  { %1555 = vst [vmem:[#allocation16_spill] sm:$0xff] %v932_v32  ;;  %1556 = vst [vmem:[#allocation17_spill] sm:$0xff] %v937_v33  ;;  %v1512_v34 = vrot.slane %v852_v10, 1  ;;  %v1511_v35 = vrot.slane %v855_v11, 1  ;;  %v948_v36 = vrot.slane %v835_v7, 2  ;;  %v951_v37 = vrot.slane %v820_v4, 2 }
   0xb   :  { %v229_v38 = vrot.slane %v924_v30, 2  ;;  %v226_v39 = vrot.slane %v927_v31, 2  ;;  %v956_v40 = vmul.f32 2.0, %v932_v32  ;;  %v959_v41 = vmul.f32 2.0, %v937_v33  ;;  %s789_s5 = smov 3   ;;  %s790_s6 = smov 125  }
   0xc   :  { %48 = vrot.lane.b32.xlu1 %v852_v10, %s784_s14  ;;  %v968_v42 = vrot.slane %v832_v6, 2  ;;  %v971_v43 = vrot.slane %v817_v3, 2  ;;  %v352_v50 = vrot.slane %v870_v12, 2  ;;  %v351_v51 = vrot.slane %v873_v13, 2 }
   0xd   :  { %46 = vrot.lane.b32.xlu0 %v855_v11, %s784_s14  ;;  %v230_v44 = vsel %vm182_vm0, %v948_v36, %v229_v38  ;;  %v227_v45 = vsel %vm182_vm0, %v951_v37, %v226_v39  ;;  %v235_v46 = vrot.slane %v956_v40, 2  ;;  %v232_v47 = vrot.slane %v959_v41, 2 }
   0xe   :  { %v354_v52 = vrot.slane %v882_v16, 2  ;;  %v353_v53 = vrot.slane %v885_v17, 2  ;;  %v356_v54 = vrot.slane %v892_v20, 2  ;;  %v355_v55 = vrot.slane %v895_v21, 2 }
   0xf   :  { %v236_v48 = vsel %vm182_vm0, %v968_v42, %v235_v46  ;;  %v233_v49 = vsel %vm182_vm0, %v971_v43, %v232_v47  ;;  %v1064_v60 = vrot.slane %v852_v10, 2  ;;  %v1067_v61 = vrot.slane %v855_v11, 2 }
  0x10   :  { %70 = vrot.lane.b32.xlu1 %v825_v5, %s785_s19 }
  0x11   :  { %68 = vrot.lane.b32.xlu0 %v809_v1, %s785_s19 }
  0x14   :  { %74 = vrot.lane.b32.xlu1 %v814_v2, %s785_s19 }
  0x15   :  { %72 = vrot.lane.b32.xlu0 %v804_v0, %s785_s19 }
  0x18   :  { %78 = vrot.lane.b32.xlu1 %v840_v8, %s785_s19 }
  0x19   :  { %76 = vrot.lane.b32.xlu0 %v845_v9, %s785_s19 }
  0x1c   :  { %130 = vrot.lane.b32.xlu1 %v123_v14, %s784_s14  ;;  %v599_v14 = vrot.slane %v870_v12, 4  ;;  %v603_v12 = vrot.slane %v892_v20, 4  ;;  %v1116_v20 = vrot.slane %v832_v6, 4 }
  0x1d   :  { %128 = vrot.lane.b32.xlu0 %v122_v15, %s784_s14  ;;  %v598_v15 = vrot.slane %v873_v13, 4  ;;  %v602_v13 = vrot.slane %v895_v21, 4  ;;  %v1119_v21 = vrot.slane %v817_v3, 4 }
  0x20   :  { %134 = vrot.lane.b32.xlu1 %v125_v18, %s784_s14 }
  0x21   :  { %132 = vrot.lane.b32.xlu0 %v124_v19, %s784_s14 }
  0x24   :  { %138 = vrot.lane.b32.xlu1 %v127_v22, %s784_s14  ;;  %v601_v22 = vrot.slane %v882_v16, 4  ;;  %v1102_v16 = vrot.slane %v835_v7, 4 }
  0x25   :  { %136 = vrot.lane.b32.xlu0 %v126_v23, %s784_s14  ;;  %v600_v23 = vrot.slane %v885_v17, 4  ;;  %v1105_v17 = vrot.slane %v820_v4, 4 }
  0x28   :  { %154 = vrot.lane.b32.xlu1 %v1516_v24, %s785_s19 }
  0x29   :  { %152 = vrot.lane.b32.xlu0 %v1515_v25, %s785_s19 }
  0x2c   :  { %158 = vrot.lane.b32.xlu1 %v1514_v28, %s785_s19 }
  0x2d   :  { %156 = vrot.lane.b32.xlu0 %v1513_v29, %s785_s19 }
  0x30   :  { %162 = vrot.lane.b32.xlu1 %v1512_v34, %s785_s19  ;;  %v443_v34 = vrot.slane %v959_v41, 4 }
  0x31   :  { %160 = vrot.lane.b32.xlu0 %v1511_v35, %s785_s19  ;;  %v446_v35 = vrot.slane %v956_v40, 4 }
  0x34   :  { %245 = vrot.lane.b32.xlu1 %v230_v44, %s784_s14 }
  0x35   :  { %243 = vrot.lane.b32.xlu0 %v227_v45, %s784_s14 }
  0x38   :  { %249 = vrot.lane.b32.xlu1 %v236_v48, %s784_s14 }
  0x39   :  { %247 = vrot.lane.b32.xlu0 %v233_v49, %s784_s14 }
  0x3c   :  { %293 = vrot.lane.b32.xlu1 %v835_v7, %s785_s19 }
  0x3d   :  { %291 = vrot.lane.b32.xlu0 %v820_v4, %s785_s19 }
  0x40   :  { %297 = vrot.lane.b32.xlu1 %v832_v6, %s785_s19 }
  0x41   :  { %295 = vrot.lane.b32.xlu0 %v817_v3, %s785_s19 }
  0x44   :  { %301 = vrot.lane.b32.xlu1 %v852_v10, %s785_s19 }
  0x45   :  { %299 = vrot.lane.b32.xlu0 %v855_v11, %s785_s19 }
  0x48   :  { %317 = vrot.lane.b32.xlu1 %v825_v5, %s786_s28 }
  0x49   :  { %315 = vrot.lane.b32.xlu0 %v809_v1, %s786_s28 }
  0x4c   :  { %321 = vrot.lane.b32.xlu1 %v814_v2, %s786_s28 }
  0x4d   :  { %319 = vrot.lane.b32.xlu0 %v804_v0, %s786_s28 }
  0x50   :  { %325 = vrot.lane.b32.xlu1 %v840_v8, %s786_s28 }
  0x51   :  { %323 = vrot.lane.b32.xlu0 %v845_v9, %s786_s28 }
  0x54   :  { %540 = vrot.lane.b32.xlu1 %v835_v7, %s786_s28 }
  0x55   :  { %538 = vrot.lane.b32.xlu0 %v820_v4, %s786_s28 }
  0x58   :  { %544 = vrot.lane.b32.xlu1 %v832_v6, %s786_s28 }
  0x59   :  { %542 = vrot.lane.b32.xlu0 %v817_v3, %s786_s28 }
  0x5c   :  { %548 = vrot.lane.b32.xlu1 %v852_v10, %s786_s28 }
  0x5d   :  { %546 = vrot.lane.b32.xlu0 %v855_v11, %s786_s28 }
  0x60   :  { %564 = vrot.lane.b32.xlu1 %v825_v5, %s787_s29 }
  0x61   :  { %562 = vrot.lane.b32.xlu0 %v809_v1, %s787_s29 }
  0x64   :  { %568 = vrot.lane.b32.xlu1 %v814_v2, %s787_s29 }
  0x65   :  { %566 = vrot.lane.b32.xlu0 %v804_v0, %s787_s29 }
  0x68   :  { %572 = vrot.lane.b32.xlu1 %v840_v8, %s787_s29 }
  0x69   :  { %570 = vrot.lane.b32.xlu0 %v845_v9, %s787_s29 }
  0x6c   :  { %359 = vrot.lane.b32.xlu1 %v352_v50, %s785_s19  ;;  %v1130_v50 = vrot.slane %v852_v10, 4 }
  0x6d   :  { %357 = vrot.lane.b32.xlu0 %v351_v51, %s785_s19  ;;  %v1133_v51 = vrot.slane %v855_v11, 4  ;;  %v409_v11 = vrot.slane %v825_v5, 4 }
  0x70   :  { %363 = vrot.lane.b32.xlu1 %v354_v52, %s785_s19  ;;  %v440_v52 = vrot.slane %v924_v30, 4 }
  0x71   :  { %361 = vrot.lane.b32.xlu0 %v353_v53, %s785_s19  ;;  %v437_v53 = vrot.slane %v927_v31, 4 }
  0x74   :  { %367 = vrot.lane.b32.xlu1 %v356_v54, %s785_s19  ;;  %v1140_v54 = vld [vmem:[%s1509_s0 + $0x58] sm:$0xf] }
  0x75   :  { %365 = vrot.lane.b32.xlu0 %v355_v55, %s785_s19  ;;  %1573 = vst [vmem:[#allocation34_spill] sm:$0xff] %v1140_v54  ;;  %v1145_v55 = vld [vmem:[%s1509_s0 + $0x48] sm:$0xf]  ;;  %s788_s0 = smov 1  }
  0x76   :  { %v1047_v56 = vpop.permute.xlu1 %42  ;;  %1574 = vst [vmem:[#allocation35_spill] sm:$0xff] %v1145_v55 }
  0x77   :  { %1557 = vst [vmem:[#allocation18_spill] sm:$0xff] %v1047_v56  ;;  %v1049_v57 = vpop.permute.xlu0 %38 }
  0x78   :  { %1558 = vst [vmem:[#allocation19_spill] sm:$0xff] %v1049_v57  ;;  %383 = vrot.lane.b32.xlu1 %v948_v36, %s786_s28 }
  0x79   :  { %381 = vrot.lane.b32.xlu0 %v951_v37, %s786_s28 }
  0x7a   :  { %v1055_v58 = vpop.permute.xlu1 %44 }
  0x7b   :  { %1559 = vst [vmem:[#allocation20_spill] sm:$0xff] %v1055_v58  ;;  %v1057_v59 = vpop.permute.xlu0 %40 }
  0x7c   :  { %1560 = vst [vmem:[#allocation21_spill] sm:$0xff] %v1057_v59  ;;  %387 = vrot.lane.b32.xlu1 %v968_v42, %s786_s28 }
  0x7d   :  { %385 = vrot.lane.b32.xlu0 %v971_v43, %s786_s28 }
  0x7e   :  { %v1069_v62 = vpop.permute.xlu1 %48 }
  0x7f   :  { %1561 = vst [vmem:[#allocation22_spill] sm:$0xff] %v1069_v62  ;;  %v1071_v63 = vpop.permute.xlu0 %46 }
  0x80   :  { %1562 = vst [vmem:[#allocation23_spill] sm:$0xff] %v1071_v63  ;;  %391 = vrot.lane.b32.xlu1 %v1064_v60, %s786_s28 }
  0x81   :  { %389 = vrot.lane.b32.xlu0 %v1067_v61, %s786_s28 }
  0x82   :  { %v1079_v18 = vpop.permute.xlu1 %70 }
  0x83   :  { %1563 = vst [vmem:[#allocation24_spill] sm:$0xff] %v1079_v18  ;;  %v1081_v19 = vpop.permute.xlu0 %68 }
  0x84   :  { %1564 = vst [vmem:[#allocation25_spill] sm:$0xff] %v1081_v19  ;;  %606 = vrot.lane.b32.xlu1 %v599_v14, %s786_s28 }
  0x85   :  { %604 = vrot.lane.b32.xlu0 %v598_v15, %s786_s28 }
  0x86   :  { %v1087_v38 = vpop.permute.xlu1 %74 }
  0x87   :  { %1565 = vst [vmem:[#allocation26_spill] sm:$0xff] %v1087_v38  ;;  %v1089_v39 = vpop.permute.xlu0 %72 }
  0x88   :  { %1566 = vst [vmem:[#allocation27_spill] sm:$0xff] %v1089_v39  ;;  %610 = vrot.lane.b32.xlu1 %v601_v22, %s786_s28  ;;  %v1156_v22 = vmul.f32 2.0, %v1140_v54 }
  0x89   :  { %608 = vrot.lane.b32.xlu0 %v600_v23, %s786_s28  ;;  %v1159_v23 = vmul.f32 2.0, %v1145_v55 }
  0x8a   :  { %v1095_v44 = vpop.permute.xlu1 %78  ;;  %v452_v25 = vrot.slane %v1156_v22, 4 }
  0x8b   :  { %1567 = vst [vmem:[#allocation28_spill] sm:$0xff] %v1095_v44  ;;  %v1097_v45 = vpop.permute.xlu0 %76  ;;  %v449_v24 = vrot.slane %v1159_v23, 4  ;;  %v190_v44 = vrot.slane %v937_v33, 2 }
  0x8c   :  { %1568 = vst [vmem:[#allocation29_spill] sm:$0xff] %v1097_v45  ;;  %614 = vrot.lane.b32.xlu1 %v603_v12, %s786_s28  ;;  %v441_v12 = vsel %vm405_vm1, %v1102_v16, %v440_v52  ;;  %v447_v52 = vsel %vm405_vm1, %v1116_v20, %v446_v35  ;;  %v410_v35 = vrot.slane %v908_v26, 4  ;;  %v192_v45 = vrot.slane %v814_v2, 2 }
  0x8d   :  { %612 = vrot.lane.b32.xlu0 %v602_v13, %s786_s28  ;;  %v438_v13 = vsel %vm405_vm1, %v1105_v17, %v437_v53  ;;  %v444_v53 = vsel %vm405_vm1, %v1119_v21, %v443_v34  ;;  %v406_v34 = vrot.slane %v809_v1, 4 }
  0x8e   :  { %v1107_v46 = vpop.permute.xlu1 %130 }
  0x8f   :  { %1569 = vst [vmem:[#allocation30_spill] sm:$0xff] %v1107_v46  ;;  %v1109_v47 = vpop.permute.xlu0 %128 }
  0x90   :  { %1570 = vst [vmem:[#allocation31_spill] sm:$0xff] %v1109_v47  ;;  %630 = vrot.lane.b32.xlu1 %v1102_v16, %s787_s29 }
  0x91   :  { %628 = vrot.lane.b32.xlu0 %v1105_v17, %s787_s29 }
  0x92   :  { %v1121_v48 = vpop.permute.xlu1 %134 }
  0x93   :  { %1571 = vst [vmem:[#allocation32_spill] sm:$0xff] %v1121_v48  ;;  %v1123_v49 = vpop.permute.xlu0 %132 }
  0x94   :  { %1572 = vst [vmem:[#allocation33_spill] sm:$0xff] %v1123_v49  ;;  %634 = vrot.lane.b32.xlu1 %v1116_v20, %s787_s29  ;;  %v1204_v49 = vsel %vm405_vm1, %v409_v11, %v410_v35  ;;  %v421_v11 = vrot.slane %v840_v8, 4  ;;  %v418_v35 = vrot.slane %v845_v9, 4 }
  0x95   :  { %632 = vrot.lane.b32.xlu0 %v1119_v21, %s787_s29 }
  0x96   :  { %v1147_v14 = vpop.permute.xlu1 %138 }
  0x97   :  { %1575 = vst [vmem:[#allocation36_spill] sm:$0xff] %v1147_v14  ;;  %v1149_v15 = vpop.permute.xlu0 %136 }
  0x98   :  { %1576 = vst [vmem:[#allocation37_spill] sm:$0xff] %v1149_v15  ;;  %638 = vrot.lane.b32.xlu1 %v1130_v50, %s787_s29 }
  0x99   :  { %636 = vrot.lane.b32.xlu0 %v1133_v51, %s787_s29 }
  0x9a   :  { %v1167_v29 = vpop.permute.xlu1 %154 }
  0x9b   :  { %1577 = vst [vmem:[#allocation38_spill] sm:$0xff] %v1167_v29  ;;  %v1169_v28 = vpop.permute.xlu0 %152 }
  0x9c   :  { %1578 = vst [vmem:[#allocation39_spill] sm:$0xff] %v1169_v28  ;;  %456 = vrot.lane.b32.xlu1 %v441_v12, %s785_s19  ;;  %v453_v12 = vsel %vm405_vm1, %v1130_v50, %v452_v25  ;;  %v415_v25 = vrot.slane %v814_v2, 4 }
  0x9d   :  { %454 = vrot.lane.b32.xlu0 %v438_v13, %s785_s19  ;;  %v450_v13 = vsel %vm405_vm1, %v1133_v51, %v449_v24  ;;  %v416_v24 = vrot.slane %v932_v32, 4 }
  0x9e   :  { %v1179_v15 = vpop.permute.xlu1 %158 }
  0x9f   :  { %1579 = vst [vmem:[#allocation40_spill] sm:$0xff] %v1179_v15  ;;  %v1181_v14 = vpop.permute.xlu0 %156  ;;  %v407_v15 = vrot.slane %v913_v27, 4 }
  0xa0   :  { %1580 = vst [vmem:[#allocation41_spill] sm:$0xff] %v1181_v14  ;;  %460 = vrot.lane.b32.xlu1 %v447_v52, %s785_s19  ;;  %v412_v52 = vrot.slane %v804_v0, 4 }
  0xa1   :  { %458 = vrot.lane.b32.xlu0 %v444_v53, %s785_s19  ;;  %v413_v53 = vrot.slane %v937_v33, 4  ;;  %v1207_v48 = vsel %vm405_vm1, %v406_v34, %v407_v15  ;;  %v422_v15 = vrot.slane %v1140_v54, 4  ;;  %v419_v34 = vrot.slane %v1145_v55, 4 }
  0xa2   :  { %v1193_v10 = vpop.permute.xlu1 %162 }
  0xa3   :  { %1581 = vst [vmem:[#allocation42_spill] sm:$0xff] %v1193_v10  ;;  %v1195_v14 = vpop.permute.xlu0 %160 }
  0xa4   :  { %1582 = vst [vmem:[#allocation43_spill] sm:$0xff] %v1195_v14  ;;  %464 = vrot.lane.b32.xlu1 %v453_v12, %s785_s19  ;;  %v1218_v12 = vsel %vm405_vm1, %v415_v25, %v416_v24  ;;  %v1236_v25 = vsel %vm405_vm1, %v421_v11, %v422_v15  ;;  %v1239_v24 = vsel %vm405_vm1, %v418_v35, %v419_v34 }
  0xa5   :  { %462 = vrot.lane.b32.xlu0 %v450_v13, %s785_s19  ;;  %v1221_v13 = vsel %vm405_vm1, %v412_v52, %v413_v53 }
  0xa6   :  { %v1209_v10 = vpop.permute.xlu1 %245 }
  0xa7   :  { %1583 = vst [vmem:[#allocation44_spill] sm:$0xff] %v1209_v10  ;;  %v1211_v14 = vpop.permute.xlu0 %243 }
  0xa8   :  { %1584 = vst [vmem:[#allocation45_spill] sm:$0xff] %v1211_v14  ;;  %480 = vrot.lane.b32.xlu1 %v1204_v49, %s786_s28 }
  0xa9   :  { %478 = vrot.lane.b32.xlu0 %v1207_v48, %s786_s28 }
  0xaa   :  { %v1227_v14 = vpop.permute.xlu1 %249 }
  0xab   :  { %1585 = vst [vmem:[#allocation46_spill] sm:$0xff] %v1227_v14  ;;  %v1229_v10 = vpop.permute.xlu0 %247 }
  0xac   :  { %1586 = vst [vmem:[#allocation47_spill] sm:$0xff] %v1229_v10  ;;  %484 = vrot.lane.b32.xlu1 %v1218_v12, %s786_s28 }
  0xad   :  { %482 = vrot.lane.b32.xlu0 %v1221_v13, %s786_s28 }
  0xae   :  { %v294_v52 = vpop.permute.xlu1 %293 }
  0xaf   :  { %v292_v53 = vpop.permute.xlu0 %291  ;;  %v310_v35 = vadd.f32 %v294_v52, %v825_v5 }
  0xb0   :  { %488 = vrot.lane.b32.xlu1 %v1236_v25, %s786_s28  ;;  %v309_v34 = vadd.f32 %v292_v53, %v809_v1 }
  0xb1   :  { %486 = vrot.lane.b32.xlu0 %v1239_v24, %s786_s28 }
  0xb2   :  { %v298_v10 = vpop.permute.xlu1 %297 }
  0xb3   :  { %v296_v14 = vpop.permute.xlu0 %295 }
  0xb4   :  { %660 = vrot.lane.b32.xlu1 %v924_v30, %s786_s28 }
  0xb5   :  { %658 = vrot.lane.b32.xlu0 %v927_v31, %s786_s28  ;;  %v312_v31 = vadd.f32 %v298_v10, %v814_v2 }
  0xb6   :  { %v302_v11 = vpop.permute.xlu1 %301 }
  0xb7   :  { %v300_v15 = vpop.permute.xlu0 %299 }
  0xb8   :  { %664 = vrot.lane.b32.xlu1 %v956_v40, %s786_s28  ;;  %v311_v40 = vadd.f32 %v296_v14, %v804_v0 }
  0xb9   :  { %662 = vrot.lane.b32.xlu0 %v959_v41, %s786_s28 }
  0xba   :  { %v318_v28 = vpop.permute.xlu1 %317 }
  0xbb   :  { %v316_v29 = vpop.permute.xlu0 %315  ;;  %v1255_v3 = vadd.f32 %v318_v28, %v310_v35  ;;  %v314_v28 = vadd.f32 %v302_v11, %v840_v8 }
  0xbc   :  { %v1257_v30 = vadd.f32 %v316_v29, %v309_v34  ;;  %668 = vrot.lane.b32.xlu1 %v1156_v22, %s786_s28  ;;  %v313_v29 = vadd.f32 %v300_v15, %v845_v9 }
  0xbd   :  { %666 = vrot.lane.b32.xlu0 %v1159_v23, %s786_s28  ;;  %v346_v57 = vadd.f32 %v1255_v3, %v948_v36 }
  0xbe   :  { %v322_v41 = vpop.permute.xlu1 %321 }
  0xbf   :  { %v320_v52 = vpop.permute.xlu0 %319  ;;  %v1265_v6 = vadd.f32 %v322_v41, %v312_v31  ;;  %v241_v31 = vrot.slane %v1156_v22, 2  ;;  %v186_v22 = vrot.slane %v825_v5, 2 }
  0xc0   :  { %v1267_v53 = vadd.f32 %v320_v52, %v311_v40  ;;  %684 = vrot.lane.b32.xlu1 %v908_v26, %s787_s29  ;;  %v238_v40 = vrot.slane %v1159_v23, 2  ;;  %v187_v23 = vrot.slane %v908_v26, 2 }
  0xc1   :  { %682 = vrot.lane.b32.xlu0 %v913_v27, %s787_s29  ;;  %v242_v15 = vsel %vm182_vm0, %v1064_v60, %v241_v31  ;;  %v193_v31 = vrot.slane %v932_v32, 2 }
  0xc2   :  { %v326_v35 = vpop.permute.xlu1 %325  ;;  %v239_v52 = vsel %vm182_vm0, %v1067_v61, %v238_v40  ;;  %v189_v40 = vrot.slane %v804_v0, 2  ;;  %v1304_v63 = vsel %vm182_vm0, %v186_v22, %v187_v23 }
  0xc3   :  { %v324_v10 = vpop.permute.xlu0 %323  ;;  %v1275_v34 = vadd.f32 %v326_v35, %v314_v28  ;;  %v183_v35 = vrot.slane %v809_v1, 2  ;;  %1587 = vst [vmem:[#allocation48_spill] sm:$0xff] %v1304_v63  ;;  %v1316_v4 = vsel %vm182_vm0, %v192_v45, %v193_v31 }
  0xc4   :  { %v1277_v14 = vadd.f32 %v324_v10, %v313_v29  ;;  %688 = vrot.lane.b32.xlu1 %v932_v32, %s787_s29  ;;  %v184_v10 = vrot.slane %v913_v27, 2  ;;  %1589 = vst [vmem:[#allocation50_spill] sm:$0xff] %v1316_v4  ;;  %v1319_v7 = vsel %vm182_vm0, %v189_v40, %v190_v44 }
  0xc5   :  { %686 = vrot.lane.b32.xlu0 %v937_v33, %s787_s29  ;;  %1590 = vst [vmem:[#allocation51_spill] sm:$0xff] %v1319_v7  ;;  %v348_v33 = vadd.f32 %v1265_v6, %v968_v42  ;;  %v350_v3 = vadd.f32 %v1275_v34, %v1064_v60 }
  0xc6   :  { %v541_v41 = vpop.permute.xlu1 %540  ;;  %v1307_v62 = vsel %vm182_vm0, %v183_v35, %v184_v10  ;;  %v198_v35 = vrot.slane %v840_v8, 2  ;;  %v199_v10 = vrot.slane %v1140_v54, 2 }
  0xc7   :  { %v539_v11 = vpop.permute.xlu0 %538  ;;  %1588 = vst [vmem:[#allocation49_spill] sm:$0xff] %v1307_v62 }
  0xc8   :  { %692 = vrot.lane.b32.xlu1 %v1140_v54, %s787_s29 }
  0xc9   :  { %690 = vrot.lane.b32.xlu0 %v1145_v55, %s787_s29 }
  0xca   :  { %v545_v28 = vpop.permute.xlu1 %544 }
  0xcb   :  { %v543_v29 = vpop.permute.xlu0 %542  ;;  %v559_v44 = vadd.f32 %v545_v28, %v814_v2 }
  0xcc   :  { %253 = vrot.lane.b32.xlu1 %v242_v15, %s784_s14  ;;  %v557_v15 = vadd.f32 %v541_v41, %v825_v5  ;;  %v195_v41 = vrot.slane %v845_v9, 2  ;;  %v558_v45 = vadd.f32 %v543_v29, %v804_v0 }
  0xcd   :  { %251 = vrot.lane.b32.xlu0 %v239_v52, %s784_s14  ;;  %v556_v52 = vadd.f32 %v539_v11, %v809_v1  ;;  %v196_v11 = vrot.slane %v1145_v55, 2  ;;  %v345_v1 = vadd.f32 %v1257_v30, %v951_v37 }
  0xce   :  { %v549_v47 = vpop.permute.xlu1 %548 }
  0xcf   :  { %v547_v46 = vpop.permute.xlu0 %546  ;;  %v561_v28 = vadd.f32 %v549_v47, %v840_v8 }
  0xd0   :  { %269 = vrot.lane.b32.xlu1 %v1304_v63, %s785_s19  ;;  %v560_v29 = vadd.f32 %v547_v46, %v845_v9 }
  0xd1   :  { %267 = vrot.lane.b32.xlu0 %v1307_v62, %s785_s19 }
  0xd2   :  { %v565_v22 = vpop.permute.xlu1 %564 }
  0xd3   :  { %v563_v23 = vpop.permute.xlu0 %562  ;;  %v1323_v63 = vadd.f32 %v565_v22, %v557_v15  ;;  %v1340_v22 = vsel %vm182_vm0, %v198_v35, %v199_v10 }
  0xd4   :  { %v1325_v39 = vadd.f32 %v563_v23, %v556_v52  ;;  %273 = vrot.lane.b32.xlu1 %v1316_v4, %s785_s19  ;;  %1591 = vst [vmem:[#allocation52_spill] sm:$0xff] %v1340_v22  ;;  %v1343_v23 = vsel %vm182_vm0, %v195_v41, %v196_v11 }
  0xd5   :  { %271 = vrot.lane.b32.xlu0 %v1319_v7, %s785_s19  ;;  %1592 = vst [vmem:[#allocation53_spill] sm:$0xff] %v1343_v23 }
  0xd6   :  { %v569_v31 = vpop.permute.xlu1 %568 }
  0xd7   :  { %v567_v40 = vpop.permute.xlu0 %566  ;;  %v1335_v15 = vadd.f32 %v569_v31, %v559_v44 }
  0xd8   :  { %v1337_v52 = vadd.f32 %v567_v40, %v558_v45  ;;  %277 = vrot.lane.b32.xlu1 %v1340_v22, %s785_s19 }
  0xd9   :  { %275 = vrot.lane.b32.xlu0 %v1343_v23, %s785_s19 }
  0xda   :  { %v573_v44 = vpop.permute.xlu1 %572 }
  0xdb   :  { %v571_v31 = vpop.permute.xlu0 %570  ;;  %v1351_v45 = vadd.f32 %v573_v44, %v561_v28 }
  0xdc   :  { %v1353_v40 = vadd.f32 %v571_v31, %v560_v29 }
  0xde   :  { %v360_v35 = vpop.permute.xlu1 %359 }
  0xdf   :  { %v358_v10 = vpop.permute.xlu0 %357  ;;  %v376_v55 = vadd.f32 %v360_v35, %v346_v57 }
  0xe0   :  { %v375_v54 = vadd.f32 %v358_v10, %v345_v1  ;;  %v349_v1 = vadd.f32 %v1277_v14, %v1067_v61 }
  0xe2   :  { %v364_v41 = vpop.permute.xlu1 %363 }
  0xe3   :  { %v362_v11 = vpop.permute.xlu0 %361  ;;  %v378_v27 = vadd.f32 %v364_v41, %v348_v33 }
  0xe6   :  { %v368_v7 = vpop.permute.xlu1 %367 }
  0xe7   :  { %v366_v4 = vpop.permute.xlu0 %365  ;;  %v380_v30 = vadd.f32 %v368_v7, %v350_v3  ;;  %v595_v3 = vadd.f32 %v1335_v15, %v1116_v20  ;;  %v596_v15 = vadd.f32 %v1353_v40, %v1133_v51  ;;  %v1606_v40 = vld [vmem:[#allocation17_spill] sm:$0xff] }
  0xea   :  { %v384_v22 = vpop.permute.xlu1 %383 }
  0xeb   :  { %v382_v62 = vpop.permute.xlu0 %381 }
  0xee   :  { %v388_v38 = vpop.permute.xlu1 %387 }
  0xef   :  { %v386_v23 = vpop.permute.xlu0 %385  ;;  %v402_v36 = vadd.f32 %v388_v38, %v378_v27 }
  0xf2   :  { %v392_v58 = vpop.permute.xlu1 %391 }
  0xf3   :  { %v390_v47 = vpop.permute.xlu0 %389  ;;  %v404_v33 = vadd.f32 %v392_v58, %v380_v30 }
  0xf6   :  { %v1355_v8 = vpop.permute.xlu1 %606 }
  0xf7   :  { %v1357_v46 = vpop.permute.xlu0 %604 }
  0xfa   :  { %v1359_v28 = vpop.permute.xlu1 %610 }
  0xfb   :  { %v1361_v29 = vpop.permute.xlu0 %608 }
  0xfe   :  { %v1363_v44 = vpop.permute.xlu1 %614 }
  0xff   :  { %1593 = vst [vmem:[#allocation54_spill] sm:$0xff] %v1363_v44  ;;  %v1365_v31 = vpop.permute.xlu0 %612  ;;  %v400_v44 = vadd.f32 %v384_v22, %v376_v55 }
 0x100   :  { %1594 = vst [vmem:[#allocation55_spill] sm:$0xff] %v1365_v31 }
 0x101   :  { %v431_v6 = vadd.f32 %v1204_v49, %v400_v44  ;;  %v592_v44 = vadd.f32 %v1325_v39, %v1105_v17  ;;  %v625_v39 = vadd.f32 %v1359_v28, %v595_v3 }
 0x102   :  { %v1367_v9 = vpop.permute.xlu1 %630 }
 0x103   :  { %v1369_v2 = vpop.permute.xlu0 %628 }
 0x106   :  { %v1371_v56 = vpop.permute.xlu1 %634  ;;  %v1601_v30 = vld [vmem:[#allocation54_spill] sm:$0xff] }
 0x107   :  { %v1373_v0 = vpop.permute.xlu0 %632  ;;  %v649_v17 = vadd.f32 %v1371_v56, %v625_v39  ;;  %v1604_v56 = vld [vmem:[#allocation16_spill] sm:$0xff] }
 0x108   :  { %1595 = vst [vmem:[#allocation56_spill] sm:$0xff] %v1373_v0 }
 0x10a   :  { %v1375_v19 = vpop.permute.xlu1 %638 }
 0x10b   :  { %1596 = vst [vmem:[#allocation57_spill] sm:$0xff] %v1375_v19  ;;  %v1377_v18 = vpop.permute.xlu0 %636  ;;  %v347_v19 = vadd.f32 %v1267_v53, %v971_v43  ;;  %v379_v43 = vadd.f32 %v366_v4, %v349_v1  ;;  %v594_v1 = vadd.f32 %v1337_v52, %v1119_v21  ;;  %v1599_v52 = vld [vmem:[#allocation14_spill] sm:$0xff] }
 0x10c   :  { %1597 = vst [vmem:[#allocation58_spill] sm:$0xff] %v1377_v18  ;;  %v399_v18 = vadd.f32 %v382_v62, %v375_v54 }
 0x10d   :  { %v377_v26 = vadd.f32 %v362_v11, %v347_v19  ;;  %v433_v19 = vadd.f32 %v1218_v12, %v402_v36  ;;  %v403_v27 = vadd.f32 %v390_v47, %v379_v43  ;;  %v1602_v43 = vld [vmem:[#allocation55_spill] sm:$0xff] }
 0x10e   :  { %v457_v59 = vpop.permute.xlu1 %456  ;;  %v430_v42 = vadd.f32 %v1207_v48, %v399_v18  ;;  %v435_v18 = vadd.f32 %v1236_v25, %v404_v33  ;;  %v655_v33 = vadd.f32 %v649_v17, %v1604_v56  ;;  %v1613_v17 = vld [vmem:[#allocation24_spill] sm:$0xff] }
 0x10f   :  { %v455_v5 = vpop.permute.xlu0 %454  ;;  %v401_v57 = vadd.f32 %v386_v23, %v377_v26  ;;  %v473_v55 = vadd.f32 %v457_v59, %v431_v6  ;;  %v1598_v6 = vld [vmem:[#allocation56_spill] sm:$0xff] }
 0x110   :  { %v472_v62 = vadd.f32 %v455_v5, %v430_v42  ;;  %v434_v5 = vadd.f32 %v1239_v24, %v403_v27  ;;  %v593_v24 = vadd.f32 %v1323_v63, %v1102_v16  ;;  %v624_v16 = vadd.f32 %v1361_v29, %v594_v1  ;;  %v1600_v42 = vld [vmem:[#allocation15_spill] sm:$0xff] }
 0x111   :  { %v432_v38 = vadd.f32 %v1221_v13, %v401_v57  ;;  %v626_v29 = vadd.f32 %v1602_v43, %v596_v15  ;;  %v1619_v43 = vld [vmem:[#allocation26_spill] sm:$0xff] }
 0x112   :  { %v461_v32 = vpop.permute.xlu1 %460  ;;  %v648_v21 = vadd.f32 %v1598_v6, %v624_v16  ;;  %v1615_v6 = vld [vmem:[#allocation2_spill] sm:$0xff] }
 0x113   :  { %v459_v31 = vpop.permute.xlu0 %458  ;;  %v475_v61 = vadd.f32 %v461_v32, %v433_v19 }
 0x114   :  { %v474_v26 = vadd.f32 %v459_v31, %v432_v38  ;;  %v622_v31 = vadd.f32 %v1357_v46, %v592_v44  ;;  %v654_v27 = vadd.f32 %v648_v21, %v1606_v40  ;;  %v1616_v21 = vld [vmem:[#allocation18_spill] sm:$0xff] }
 0x116   :  { %v465_v0 = vpop.permute.xlu1 %464  ;;  %v646_v63 = vadd.f32 %v1369_v2, %v622_v31 }
 0x117   :  { %v463_v37 = vpop.permute.xlu0 %462  ;;  %v477_v48 = vadd.f32 %v465_v0, %v435_v18  ;;  %v623_v0 = vadd.f32 %v1355_v8, %v593_v24  ;;  %v597_v8 = vadd.f32 %v1351_v45, %v1130_v50  ;;  %v1603_v50 = vld [vmem:[#allocation57_spill] sm:$0xff] }
 0x118   :  { %v476_v12 = vadd.f32 %v463_v37, %v434_v5  ;;  %v652_v2 = vadd.f32 %v646_v63, %v1600_v42  ;;  %v1608_v5 = vld [vmem:[#allocation35_spill] sm:$0xff]  ;;  %v1612_v63 = vld [vmem:[#allocation21_spill] sm:$0xff]  ;;  %v1618_v42 = vld [vmem:[#allocation20_spill] sm:$0xff] }
 0x119   :  { %v647_v57 = vadd.f32 %v1367_v9, %v623_v0  ;;  %v627_v28 = vadd.f32 %v1601_v30, %v597_v8 }
 0x11a   :  { %v481_v54 = vpop.permute.xlu1 %480 }
 0x11b   :  { %v479_v60 = vpop.permute.xlu0 %478  ;;  %v497_v53 = vadd.f32 %v481_v54, %v473_v55  ;;  %v653_v9 = vadd.f32 %v647_v57, %v1599_v52  ;;  %v651_v45 = vadd.f32 %v1603_v50, %v627_v28  ;;  %v1611_v57 = vld [vmem:[#allocation7_spill] sm:$0xff]  ;;  %v58_v52 = vadd.f32 %v1616_v21, %v1615_v6  ;;  %v1621_v50 = vld [vmem:[#allocation9_spill] sm:$0xff] }
 0x11c   :  { %v496_v34 = vadd.f32 %v479_v60, %v472_v62  ;;  %v1605_v60 = vld [vmem:[#allocation58_spill] sm:$0xff]  ;;  %v57_v39 = vadd.f32 %v1612_v63, %v1611_v57  ;;  %v1646_v6 = vld [vmem:[#allocation41_spill] sm:$0xff] }
 0x11d   :  { %v509_v14 = vrot.slane %v497_v53, 7  ;;  %v650_v51 = vadd.f32 %v1605_v60, %v626_v29  ;;  %v1625_v60 = vld [vmem:[#allocation10_spill] sm:$0xff] }
 0x11e   :  { %v508_v49 = vrot.slane %v496_v34, 7  ;;  %v485_v7 = vpop.permute.xlu1 %484 }
 0x11f   :  { %v483_v4 = vpop.permute.xlu0 %482  ;;  %v499_v58 = vadd.f32 %v485_v7, %v475_v61  ;;  %516 = vrot.lane.b32.xlu1 %v509_v14, %s788_s0 }
 0x120   :  { %v498_v59 = vadd.f32 %v483_v4, %v474_v26  ;;  %514 = vrot.lane.b32.xlu0 %v508_v49, %s788_s0  ;;  %v1607_v49 = vld [vmem:[#allocation34_spill] sm:$0xff] }
 0x121   :  { %v511_v13 = vrot.slane %v499_v58, 7  ;;  %v657_v18 = vadd.f32 %v651_v45, %v1607_v49  ;;  %v656_v58 = vadd.f32 %v650_v51, %v1608_v5  ;;  %v1622_v45 = vrot.slane %v1621_v50, 1  ;;  %v1626_v51 = vld [vmem:[#allocation22_spill] sm:$0xff]  ;;  %v1631_v49 = vld [vmem:[#allocation28_spill] sm:$0xff] }
 0x122   :  { %v510_v22 = vrot.slane %v498_v59, 7  ;;  %v489_v23 = vpop.permute.xlu1 %488  ;;  %v61_v40 = vadd.f32 %v1626_v51, %v1625_v60  ;;  %v1633_v5 = vld [vmem:[#allocation8_spill] sm:$0xff]  ;;  %v1654_v60 = vld [vmem:[#allocation43_spill] sm:$0xff] }
 0x123   :  { %v487_v32 = vpop.permute.xlu0 %486  ;;  %v501_v35 = vadd.f32 %v489_v23, %v477_v48  ;;  %520 = vrot.lane.b32.xlu1 %v511_v13, %s788_s0  ;;  %v1651_v50 = vld [vmem:[#allocation44_spill] sm:$0xff] }
 0x124   :  { %v500_v10 = vadd.f32 %v487_v32, %v476_v12  ;;  %518 = vrot.lane.b32.xlu0 %v510_v22, %s788_s0 }
 0x125   :  { %v513_v25 = vrot.slane %v501_v35, 7 }
 0x126   :  { %v512_v41 = vrot.slane %v500_v10, 7  ;;  %v661_v11 = vpop.permute.xlu1 %660 }
 0x127   :  { %v659_v47 = vpop.permute.xlu0 %658  ;;  %524 = vrot.lane.b32.xlu1 %v513_v25, %s788_s0  ;;  %v677_v55 = vadd.f32 %v661_v11, %v653_v9  ;;  %v1617_v9 = vld [vmem:[#allocation4_spill] sm:$0xff] }
 0x128   :  { %522 = vrot.lane.b32.xlu0 %v512_v41, %s788_s0  ;;  %v676_v62 = vadd.f32 %v659_v47, %v652_v2  ;;  %v59_v2 = vadd.f32 %v1618_v42, %v1617_v9  ;;  %v1648_v42 = vld [vmem:[#allocation49_spill] sm:$0xff] }
 0x12a   :  { %v665_v36 = vpop.permute.xlu1 %664  ;;  %v89_v29 = vadd.f32 %v1619_v43, %v59_v2  ;;  %v1649_v43 = vld [vmem:[#allocation36_spill] sm:$0xff] }
 0x12b   :  { %v663_v37 = vpop.permute.xlu0 %662  ;;  %v679_v34 = vadd.f32 %v665_v36, %v655_v33  ;;  %v1609_v36 = vld [vmem:[#allocation3_spill] sm:$0xff]  ;;  %v1623_v33 = vld [vmem:[#allocation6_spill] sm:$0xff] }
 0x12c   :  { %v678_v61 = vadd.f32 %v663_v37, %v654_v27  ;;  %v1610_v37 = vld [vmem:[#allocation19_spill] sm:$0xff] }
 0x12d   :  { %v56_v1 = vadd.f32 %v1610_v37, %v1609_v36  ;;  %v1627_v27 = vld [vmem:[#allocation11_spill] sm:$0xff]  ;;  %v1640_v36 = vld [vmem:[#allocation33_spill] sm:$0xff] }
 0x12e   :  { %v669_v46 = vpop.permute.xlu1 %668 }
 0x12f   :  { %v667_v20 = vpop.permute.xlu0 %666  ;;  %v681_v12 = vadd.f32 %v669_v46, %v657_v18  ;;  %v87_v46 = vadd.f32 %v1613_v17, %v57_v39  ;;  %v91_v18 = vadd.f32 %v1631_v49, %v61_v40  ;;  %v1643_v39 = vld [vmem:[#allocation13_spill] sm:$0xff]  ;;  %v1657_v49 = vld [vmem:[#allocation46_spill] sm:$0xff] }
 0x130   :  { %v680_v13 = vadd.f32 %v667_v20, %v656_v58  ;;  %v1614_v20 = vld [vmem:[#allocation25_spill] sm:$0xff]  ;;  %v1634_v58 = vrot.slane %v1633_v5, 1  ;;  %v1644_v17 = vrot.slane %v1643_v39, 1 }
 0x131   :  { %v86_v15 = vadd.f32 %v1614_v20, %v56_v1  ;;  %v105_v56 = vadd.f32 %v1622_v45, %v87_v46  ;;  %v1641_v1 = vld [vmem:[#allocation12_spill] sm:$0xff] }
 0x132   :  { %v685_v19 = vpop.permute.xlu1 %684  ;;  %v1642_v57 = vrot.slane %v1641_v1, 1  ;;  %v1645_v20 = vld [vmem:[#allocation40_spill] sm:$0xff] }
 0x133   :  { %v683_v54 = vpop.permute.xlu0 %682  ;;  %v701_v38 = vadd.f32 %v685_v19, %v677_v55  ;;  %v1620_v55 = vld [vmem:[#allocation27_spill] sm:$0xff]  ;;  %v1624_v19 = vrot.slane %v1623_v33, 1 }
 0x134   :  { %v700_v53 = vadd.f32 %v683_v54, %v676_v62  ;;  %v88_v62 = vadd.f32 %v1620_v55, %v58_v52  ;;  %v109_v63 = vadd.f32 %v1642_v57, %v91_v18  ;;  %v1647_v52 = vld [vmem:[#allocation48_spill] sm:$0xff]  ;;  %v1650_v55 = vld [vmem:[#allocation37_spill] sm:$0xff] }
 0x135   :  { %v713_v26 = vrot.slane %v701_v38, 5  ;;  %v104_v54 = vadd.f32 %v1624_v19, %v86_v15  ;;  %v1628_v38 = vld [vmem:[#allocation23_spill] sm:$0xff]  ;;  %v1653_v19 = vld [vmem:[#allocation42_spill] sm:$0xff] }
 0x136   :  { %v712_v14 = vrot.slane %v700_v53, 5  ;;  %v689_v7 = vpop.permute.xlu1 %688  ;;  %v60_v53 = vadd.f32 %v1628_v38, %v1627_v27  ;;  %v1655_v38 = vld [vmem:[#allocation50_spill] sm:$0xff] }
 0x137   :  { %v687_v4 = vpop.permute.xlu0 %686  ;;  %v703_v59 = vadd.f32 %v689_v7, %v679_v34  ;;  %720 = vrot.lane.b32.xlu1 %v713_v26, %s789_s5  ;;  %v1629_v34 = vld [vmem:[#allocation30_spill] sm:$0xff]  ;;  %v1630_v26 = vld [vmem:[#allocation31_spill] sm:$0xff]  ;;  %v1632_v7 = vld [vmem:[#allocation29_spill] sm:$0xff] }
 0x138   :  { %v702_v48 = vadd.f32 %v687_v4, %v678_v61  ;;  %718 = vrot.lane.b32.xlu0 %v712_v14, %s789_s5  ;;  %v147_v61 = vadd.f32 %v1629_v34, %v105_v56  ;;  %v146_v14 = vadd.f32 %v1630_v26, %v104_v54  ;;  %v90_v4 = vadd.f32 %v1632_v7, %v60_v53  ;;  %v1652_v56 = vld [vmem:[#allocation45_spill] sm:$0xff]  ;;  %v1656_v34 = vld [vmem:[#allocation51_spill] sm:$0xff] }
 0x139   :  { %v715_v22 = vrot.slane %v703_v59, 5  ;;  %v107_v59 = vadd.f32 %v1634_v58, %v89_v29  ;;  %v151_v29 = vadd.f32 %v1649_v43, %v109_v63  ;;  %v1658_v7 = vld [vmem:[#allocation47_spill] sm:$0xff] }
 0x13a   :  { %v714_v23 = vrot.slane %v702_v48, 5  ;;  %v693_v32 = vpop.permute.xlu1 %692  ;;  %v1635_v48 = vld [vmem:[#allocation5_spill] sm:$0xff]  ;;  %v108_v46 = vadd.f32 %v1644_v17, %v90_v4 }
 0x13b   :  { %v691_v35 = vpop.permute.xlu0 %690  ;;  %v705_v10 = vadd.f32 %v693_v32, %v681_v12  ;;  %724 = vrot.lane.b32.xlu1 %v715_v22, %s789_s5  ;;  %v1636_v12 = vrot.slane %v1635_v48, 1  ;;  %v1637_v22 = vld [vmem:[#allocation38_spill] sm:$0xff]  ;;  %v1638_v32 = vld [vmem:[#allocation39_spill] sm:$0xff]  ;;  %v175_v54 = vadd.f32 %v1653_v19, %v151_v29 }
 0x13c   :  { %v704_v25 = vadd.f32 %v691_v35, %v680_v13  ;;  %722 = vrot.lane.b32.xlu0 %v714_v23, %s789_s5  ;;  %v171_v23 = vadd.f32 %v1637_v22, %v147_v61  ;;  %v170_v35 = vadd.f32 %v1638_v32, %v146_v14 }
 0x13d   :  { %v717_v41 = vrot.slane %v705_v10, 5  ;;  %v106_v13 = vadd.f32 %v1636_v12, %v88_v62  ;;  %v150_v62 = vadd.f32 %v1650_v55, %v108_v46  ;;  %v1660_v12 = vld [vmem:[#allocation53_spill] sm:$0xff] }
 0x13e   :  { %v716_v11 = vrot.slane %v704_v25, 5  ;;  %v1427_v47 = vpop.permute.xlu1 %253  ;;  %v208_v9 = vadd.f32 %v1647_v52, %v171_v23  ;;  %v207_v2 = vadd.f32 %v1648_v42, %v170_v35 }
 0x13f   :  { %728 = vrot.lane.b32.xlu1 %v717_v41, %s789_s5  ;;  %v1429_v24 = vpop.permute.xlu0 %251  ;;  %v1639_v41 = vld [vmem:[#allocation32_spill] sm:$0xff]  ;;  %v148_v37 = vadd.f32 %v1640_v36, %v106_v13  ;;  %v174_v51 = vadd.f32 %v1654_v60, %v150_v62 }
 0x140   :  { %726 = vrot.lane.b32.xlu0 %v716_v11, %s789_s5  ;;  %v149_v11 = vadd.f32 %v1639_v41, %v107_v59  ;;  %v262_v45 = vadd.f32 %v1651_v50, %v208_v9  ;;  %v261_v33 = vadd.f32 %v1652_v56, %v207_v2  ;;  %v1659_v59 = vld [vmem:[#allocation52_spill] sm:$0xff] }
 0x141   :  { %v172_v21 = vadd.f32 %v1646_v6, %v148_v37  ;;  %v212_v48 = vadd.f32 %v1659_v59, %v175_v54  ;;  %v211_v13 = vadd.f32 %v1660_v12, %v174_v51 }
 0x142   :  { %v270_v44 = vpop.permute.xlu1 %269  ;;  %v173_v15 = vadd.f32 %v1645_v20, %v149_v11 }
 0x143   :  { %v268_v0 = vpop.permute.xlu0 %267  ;;  %v209_v61 = vadd.f32 %v1656_v34, %v172_v21  ;;  %v286_v26 = vadd.f32 %v270_v44, %v262_v45  ;;  %v266_v36 = vadd.f32 %v1427_v47, %v212_v48  ;;  %v265_v44 = vadd.f32 %v1429_v24, %v211_v13 }
 0x144   :  { %v210_v53 = vadd.f32 %v1655_v38, %v173_v15  ;;  %v285_v14 = vadd.f32 %v268_v0, %v261_v33 }
 0x145   :  { %v263_v4 = vadd.f32 %v1658_v7, %v209_v61 }
 0x146   :  { %v274_v31 = vpop.permute.xlu1 %273  ;;  %v264_v18 = vadd.f32 %v1657_v49, %v210_v53 }
 0x147   :  { %v272_v3 = vpop.permute.xlu0 %271 }
 0x148   :  { %v288_v32 = vadd.f32 %v274_v31, %v264_v18  ;;  %v287_v35 = vadd.f32 %v272_v3, %v263_v4 }
 0x14a   :  { %v1435_v16 = vpop.permute.xlu1 %277 }
 0x14b   :  { %v1437_v8 = vpop.permute.xlu0 %275  ;;  %v290_v1 = vadd.f32 %v1435_v16, %v266_v36 }
 0x14c   :  { %v289_v57 = vadd.f32 %v1437_v8, %v265_v44 }
 0x191   :  { %v517_v30 = vpop.permute.xlu1 %516 }
 0x192   :  { %v515_v28 = vpop.permute.xlu0 %514  ;;  %v533_v5 = vmax.f32 %v286_v26, %v517_v30 }
 0x193   :  { %v532_v58 = vmax.f32 %v285_v14, %v515_v28 }
 0x195   :  { %v521_v10 = vpop.permute.xlu1 %520 }
 0x196   :  { %v519_v25 = vpop.permute.xlu0 %518  ;;  %v535_v0 = vmax.f32 %v288_v32, %v521_v10 }
 0x197   :  { %v534_v37 = vmax.f32 %v287_v35, %v519_v25 }
 0x199   :  { %v525_v40 = vpop.permute.xlu1 %524 }
 0x19a   :  { %v523_v27 = vpop.permute.xlu0 %522  ;;  %v537_v3 = vmax.f32 %v290_v1, %v525_v40 }
 0x19b   :  { %v536_v39 = vmax.f32 %v289_v57, %v523_v27 }
 0x1a9   :  { %v721_v22 = vpop.permute.xlu1 %720 }
 0x1aa   :  { %v719_v23 = vpop.permute.xlu0 %718  ;;  %v737_v41 = vmax.f32 %v533_v5, %v721_v22 }
 0x1ab   :  { %v736_v11 = vmax.f32 %v532_v58, %v719_v23 }
 0x1ac   :  { %750 = vrot.lane.b32.xlu1 %v737_v41, %s790_s6 }
 0x1ad   :  { %748 = vrot.lane.b32.xlu0 %v736_v11, %s790_s6  ;;  %v725_v30 = vpop.permute.xlu1 %724 }
 0x1ae   :  { %v723_v28 = vpop.permute.xlu0 %722  ;;  %v739_v63 = vmax.f32 %v535_v0, %v725_v30 }
 0x1af   :  { %v738_v31 = vmax.f32 %v534_v37, %v723_v28 }
 0x1b0   :  { %754 = vrot.lane.b32.xlu1 %v739_v63, %s790_s6 }
 0x1b1   :  { %752 = vrot.lane.b32.xlu0 %v738_v31, %s790_s6  ;;  %v729_v47 = vpop.permute.xlu1 %728 }
 0x1b2   :  { %v727_v17 = vpop.permute.xlu0 %726  ;;  %v741_v24 = vmax.f32 %v537_v3, %v729_v47 }
 0x1b3   :  { %v740_v10 = vmax.f32 %v536_v39, %v727_v17 }
 0x1b4   :  { %758 = vrot.lane.b32.xlu1 %v741_v24, %s790_s6 }
 0x1b5   :  { %756 = vrot.lane.b32.xlu0 %v740_v10, %s790_s6 }
 0x21e   :  { %v751_v25 = vpop.permute.xlu1 %750 }
 0x21f   :  { %v749_v46 = vpop.permute.xlu0 %748  ;;  %768 = vst.msk [vmem:[%s1510_s1 + $0x1] sm:$0x78] %vm766_vm2, %v751_v25 }
 0x220   :  { %767 = vst.msk [vmem:[%s1510_s1 - $0x3] sm:$0x78] %vm766_vm2, %v749_v46 }
 0x222   :  { %v755_v16 = vpop.permute.xlu1 %754 }
 0x223   :  { %v753_v8 = vpop.permute.xlu0 %752  ;;  %770 = vst.msk [vmem:[%s1510_s1 + $0x9] sm:$0x78] %vm766_vm2, %v755_v16 }
 0x224   :  { %769 = vst.msk [vmem:[%s1510_s1 + $0x5] sm:$0x78] %vm766_vm2, %v753_v8 }
 0x226   :  { %v759_v20 = vpop.permute.xlu1 %758 }
 0x227   :  { %v757_v15 = vpop.permute.xlu0 %756  ;;  %772 = vst.msk [vmem:[%s1510_s1 + $0x11] sm:$0x78] %vm766_vm2, %v759_v20 }
 0x228   :  { %771 = vst.msk [vmem:[%s1510_s1 + $0xd] sm:$0x78] %vm766_vm2, %v757_v15 }

// kernel: neg.3
= control target key start
LH: loop header
LB: loop body
LE: loop exit
PB: predicated region body
PF: predicated region fallthrough
CT: control target
= control target key end

     0   :  { %s24_s0 = inlined_call_operand.vmem [shape: f32[2,6], index: 0, kind: input, shape index: {}]   ;;  %s25_s1 = inlined_call_operand.vmem [shape: f32[2,6], index: 1, kind: output, shape index: {}]  }
   0x1   :  { %v2_v0 = vld [vmem:[%s24_s0] sm:$0x3f] }
   0x2   :  { %v5_v1 = vxor.u32 2147483648, %v2_v0 }
   0x4   :  { %7 = vst [vmem:[%s25_s1] sm:$0xff] %v5_v1 }

// kernel: ielt_encoder_forward.4
= control target key start
LH: loop header
LB: loop body
LE: loop exit
PB: predicated region body
PF: predicated region fallthrough
CT: control target
= control target key end

     0   :  { %s3518_s24 = smov 0   ;;  %s4215_s0 = inlined_call_operand.vmem [shape: f32[34,32], index: 0, kind: input, shape index: {}]   ;;  %s4216_s1 = inlined_call_operand.vmem [shape: f32[34,34], index: 1, kind: input, shape index: {}]   ;;  %s4217_s2 = inlined_call_operand.vmem [shape: f32[3,1,32], index: 2, kind: input, shape index: {}]   ;;  %s4218_s3 = inlined_call_operand.vmem [shape: f32[3,1,32], index: 3, kind: input, shape index: {}]   ;;  %s4219_s4 = inlined_call_operand.vmem [shape: bf16[3,32,96], index: 4, kind: input, shape index: {}]   ;;  %s4220_s5 = inlined_call_operand.vmem [shape: f32[3,1,96], index: 5, kind: input, shape index: {}]   ;;  %s4221_s6 = inlined_call_operand.vmem [shape: bf16[3,4,8,32], index: 6, kind: input, shape index: {}]   ;;  %s4222_s7 = inlined_call_operand.vmem [shape: f32[3,1,32], index: 7, kind: input, shape index: {}]   ;;  %s4223_s8 = inlined_call_operand.vmem [shape: f32[3,1,32], index: 8, kind: input, shape index: {}]   ;;  %s4224_s9 = inlined_call_operand.vmem [shape: f32[3,1,32], index: 9, kind: input, shape index: {}]   ;;  %s4225_s10 = inlined_call_operand.vmem [shape: f32[3,1,32], index: 10, kind: input, shape index: {}]   ;;  %s4226_s11 = inlined_call_operand.vmem [shape: bf16[3,32,64], index: 11, kind: input, shape index: {}]   ;;  %s4227_s12 = inlined_call_operand.vmem [shape: f32[3,1,64], index: 12, kind: input, shape index: {}]   ;;  %s4228_s13 = inlined_call_operand.vmem [shape: bf16[3,64,32], index: 13, kind: input, shape index: {}]   ;;  %s4229_s14 = inlined_call_operand.vmem [shape: f32[3,1,32], index: 14, kind: input, shape index: {}]   ;;  %s4230_s15 = inlined_call_operand.vmem [shape: f32[3,1,32], index: 15, kind: input, shape index: {}]   ;;  %s4231_s16 = inlined_call_operand.vmem [shape: f32[3,34,32], index: 16, kind: output, shape index: {0}]   ;;  %s4232_s17 = inlined_call_operand.vmem [shape: f32[3,8,34], index: 17, kind: output, shape index: {1}]  }
   0x1   :  { %4236 = sst [smem:[#allocation4_spill]] %s4215_s0 }
   0x2   :  { %4237 = sst [smem:[#allocation5_spill]] %s4216_s1 }
   0x3   :  { %4238 = sst [smem:[#allocation6_spill]] %s4217_s2 }
   0x4   :  { %4239 = sst [smem:[#allocation7_spill]] %s4218_s3 }
   0x5   :  { %4240 = sst [smem:[#allocation8_spill]] %s4219_s4 }
   0x6   :  { %4241 = sst [smem:[#allocation9_spill]] %s4220_s5 }
   0x7   :  { %4242 = sst [smem:[#allocation10_spill]] %s4221_s6 }
   0x8   :  { %4243 = sst [smem:[#allocation11_spill]] %s4226_s11 }
   0x9   :  { %4244 = sst [smem:[#allocation12_spill]] %s4231_s16 }
   0xa LB: > { %4245 = sst [smem:[#allocation3_spill]] %s3413_s24  ;;  %s2843_s25 = sadd.s32 4294967295, %s3413_s24   ;;  %s3413_s24 = sphi %s3518_s24, %s28_s24  }
   0xb   : > { %p2847_p0 = scmp.ge.s32.totalorder %s3413_s24, 1  ;;  %p600_p1 = scmp.lt.s32.totalorder %s3413_s24, 4 }
   0xd   : > { %p601_p2 = pnand %p2847_p0, %p600_p1 }
   0xe   : > { %p701_p3 = scmp.lt.s32.totalorder (!%p601_p2), %s2843_s25, 2  ;;  %s4249_s4 = sld [smem:[#allocation8_spill]] (!%p601_p2) }
   0xf   : > { %604 = sbr.rel (%p601_p2) target bundleno = 3627 (0xe2b), region = 84  ;;  %s4250_s6 = sld [smem:[#allocation10_spill]] (!%p601_p2) }
  0x10   : > { %s4251_s11 = sld [smem:[#allocation11_spill]] (!%p601_p2)  ;;  %s4252_s3 = sld [smem:[#allocation12_spill]] (!%p601_p2) }
  0x11   : > { %p2858_p4 = scmp.ne.s32.totalorder (!%p601_p2), %s2843_s25, 0 }
  0x16   : > { %s3526_s26 = scalar_select %p701_p3, %s2843_s25, 2 }
  0x17   : > { %764 = sbr.rel (%p2858_p4) target bundleno = 33 (0x21), region = 88  ;;  %s4253_s20 = sld [smem:[#allocation4_spill]] (!%p2858_p4)  ;;  %vm770_vm0 = vcmask (!%p2858_p4), 261120   ;;  %vm775_vm1 = vcmask (!%p2858_p4), 254976  }
  0x18   : > { %s2924_s19 = sshll.u32 %s3526_s26, 4  ;;  %s2927_s30 = sshll.u32 %s3526_s26, 5 }
  0x19   : > { %s3544_s27 = scalar_lea.vmem %s4249_s4, %s2924_s19  ;;  %s3549_s29 = scalar_lea.vmem %s4250_s6, %s2924_s19 }
  0x1a   : > { %s3570_s28 = scalar_lea.vmem %s4251_s11, %s2924_s19  ;;  %s747_s16 = scalar_lea.vmem %s4229_s14, %s3526_s26 }
  0x1b   : > { %s3584_s21 = scalar_lea.vmem %s4228_s13, %s2927_s30  ;;  %s3261_s19 = smul.u32 40, %s3526_s26 }
  0x1c   : > { %s2857_s24 = sshll.u32 %s3526_s26, 3 }
  0x1d   : > { %s3595_s6 = scalar_lea.vmem %s4232_s17, %s2857_s24  ;;  %s3600_s18 = scalar_lea.vmem %s4252_s3, %s3261_s19  ;;  %v765_v0 = vld [vmem:[%s4253_s20] sm:$0xff] (!%p2858_p4)  ;;  %v766_v1 = vld [vmem:[%s4253_s20 + $0x8] sm:$0xff] (!%p2858_p4)  ;;  %v767_v2 = vld [vmem:[%s4253_s20 + $0x10] sm:$0xff] (!%p2858_p4) }
  0x1e   : > { %771 = vst.msk [vmem:[#allocation2] sm:$0xff] %vm770_vm0, %v765_v0  ;;  %772 = vst.msk [vmem:[#allocation2 + $0x8] sm:$0xff] %vm770_vm0, %v766_v1  ;;  %v768_v3 = vld [vmem:[%s4253_s20 + $0x18] sm:$0xff]  ;;  %v769_v4 = vld [vmem:[%s4253_s20 + $0x20] sm:$0x3] }
  0x1f   : > { %773 = vst.msk [vmem:[#allocation2 + $0x10] sm:$0xff] %vm770_vm0, %v767_v2  ;;  %774 = vst.msk [vmem:[#allocation2 + $0x18] sm:$0xff] %vm770_vm0, %v768_v3 }
  0x20   : > { %776 = vst.msk [vmem:[#allocation2 + $0x20] sm:$0x3] %vm775_vm1, %v769_v4 }
  0x21 PF: > { %vm784_vm2 = vcmask 261120   ;;  %vm797_vm3 = vcmask 254976   ;;  %v3283_v25 = vld [vmem:[%s3544_s27] sm:$0xff]   ;;  %v3415_v26 = vmov 0.0   ;;  %v3284_v27 = vld [vmem:[%s3544_s27 + $0x8] sm:$0xff]   ;;  %vm3416_vm4 = vmmov 0   ;;  %s4261_s4 = scalar_lea.vmem %s4222_s7, %s3526_s26 }
  0x22   : > { %3009 = vmatprep.subr.bf16.mxu0 %v3415_v26  ;;  %3025 = vmatprep.subr.bf16.mxu1 %v3415_v26  ;;  %s4254_s24 = sld [smem:[#allocation6_spill]]  ;;  %s4256_s1 = sld [smem:[#allocation7_spill]]  ;;  %vm1001_vm5 = vcmask 64512   ;;  %vm1086_vm6 = vcmask 277504   ;;  %vm1099_vm7 = vcmask 271360   ;;  %vm1163_vm8 = vcmask 1040384  }
  0x23   : > { %3010 = vmatpush3.bf16.msra.mxu0 %v3283_v25  ;;  %3013 = vmatprep.mubr.msk.bf16.mxu0 %vm3416_vm4, %v3415_v26  ;;  %s4258_s11 = sld [smem:[#allocation9_spill]]  ;;  %s3417_s0 = smov 96   ;;  %vm2221_vm9 = vcmask 1041408   ;;  %vm1469_vm10 = vcmask 1043456   ;;  %vm2224_vm11 = vcmask 1045504   ;;  %vm2538_vm12 = vcmask 523264  }
  0x24   : > { %3011 = vmatprep.subr.bf16.mxu0 %v3415_v26  ;;  %3031 = vmatprep.mubr.msk.bf16.mxu1 %vm3416_vm4, %v3415_v26  ;;  %s3418_s19 = smov 88   ;;  %s3419_s27 = smov 120  }
  0x25   : > { %s3423_s5 = smov 112   ;;  %s3425_s3 = smov 72  }
  0x26   : > { %v3627_v10 = vld [vmem:[#allocation2 + $0x10] sm:$0xff]  ;;  %v3632_v13 = vld [vmem:[#allocation2 + $0x18] sm:$0xff]  ;;  %s3426_s30 = smov 104   ;;  %s3427_s23 = smov 40  }
  0x27   : > { %v791_v15 = vsel %vm784_vm2, %v3627_v10, 0.0  ;;  %v809_v16 = vmul.f32 %v3627_v10, %v3627_v10  ;;  %v794_v17 = vsel %vm784_vm2, %v3632_v13, 0.0  ;;  %v810_v18 = vmul.f32 %v3632_v13, %v3632_v13  ;;  %v3643_v19 = vld [vmem:[#allocation2 + $0x20] sm:$0x3]  ;;  %3012 = vmatpush3.bf16.msra.mxu0 %v3284_v27 }
  0x28   : > { %v3617_v5 = vld [vmem:[#allocation2] sm:$0xff]  ;;  %v3619_v6 = vld [vmem:[#allocation2 + $0x8] sm:$0xff]  ;;  %v811_v22 = vmul.f32 %v3643_v19, %v3643_v19  ;;  %v798_v23 = vsel %vm797_vm3, %v3643_v19, 0.0  ;;  %3043 = vmatprep.subr.bf16.mxu0 %v3415_v26  ;;  %s4255_s2 = scalar_lea.vmem %s4254_s24, %s3526_s26  ;;  %s4257_s22 = scalar_lea.vmem %s4256_s1, %s3526_s26 }
  0x29   : > { %v785_v7 = vsel %vm784_vm2, %v3617_v5, 0.0  ;;  %v807_v8 = vmul.f32 %v3617_v5, %v3617_v5  ;;  %v808_v9 = vmul.f32 %v3619_v6, %v3619_v6  ;;  %v788_v12 = vsel %vm784_vm2, %v3619_v6, 0.0  ;;  %s4259_s25 = scalar_lea.vmem %s4258_s11, %s3526_s26  ;;  %s3424_s24 = smov 48  }
  0x2a   : > { %786 = vadd.xlane.f32.xlu0 %v785_v7  ;;  %v818_v20 = vsel %vm784_vm2, %v809_v16, 0.0  ;;  %v821_v21 = vsel %vm784_vm2, %v810_v18, 0.0  ;;  %v824_v24 = vsel %vm797_vm3, %v811_v22, 0.0  ;;  %v2859_v7 = vld [vmem:[%s4255_s2] ss:$0 sm:$0xff]  ;;  %s4260_s2 = sld [smem:[#allocation5_spill]] }
  0x2b   : > { %v812_v11 = vsel %vm784_vm2, %v807_v8, 0.0  ;;  %v815_v14 = vsel %vm784_vm2, %v808_v9, 0.0 }
  0x2c   : > { %813 = vadd.xlane.f32.xlu1 %v812_v11 }
  0x2e   : > { %789 = vadd.xlane.f32.xlu0 %v788_v12 }
  0x30   : > { %816 = vadd.xlane.f32.xlu1 %v815_v14 }
  0x32   : > { %792 = vadd.xlane.f32.xlu0 %v791_v15 }
  0x34   : > { %795 = vadd.xlane.f32.xlu1 %v794_v17 }
  0x36   : > { %819 = vadd.xlane.f32.xlu0 %v818_v20 }
  0x38   : > { %822 = vadd.xlane.f32.xlu1 %v821_v21 }
  0x3a   : > { %799 = vadd.xlane.f32.xlu0 %v798_v23 }
  0x3c   : > { %825 = vadd.xlane.f32.xlu1 %v824_v24 }
  0xb7   : > { %v787_v28 = vpop.xlane.xlu0 %786 }
  0xb8   : > { %v802_v29 = vmul.f32 0.03125, %v787_v28 }
  0xb9   : > { %v814_v30 = vpop.xlane.xlu1 %813 }
  0xba   : > { %v832_v31 = vmul.f32 %v802_v29, %v802_v29  ;;  %v827_v32 = vmul.f32 0.03125, %v814_v30  ;;  %v847_v63 = vsub.f32 %v3617_v5, %v802_v29  ;;  %v2860_v5 = vld [vmem:[%s4257_s22] ss:$0 sm:$0xff]  ;;  %s4265_s22 = scalar_lea.vmem %s4227_s12, %s3526_s26 }
  0xbb   : > { %v790_v33 = vpop.xlane.xlu0 %789 }
  0xbc   : > { %v837_v34 = vsub.f32 %v827_v32, %v832_v31  ;;  %v803_v35 = vmul.f32 0.03125, %v790_v33 }
  0xbd   : > { %v817_v36 = vpop.xlane.xlu1 %816 }
  0xbe   : > { %v842_v37 = vmax.f32 %v837_v34, 0.0  ;;  %v833_v38 = vmul.f32 %v803_v35, %v803_v35  ;;  %v828_v39 = vmul.f32 0.03125, %v817_v36  ;;  %v848_v8 = vsub.f32 %v3619_v6, %v803_v35 }
  0xbf   : > { %v793_v40 = vpop.xlane.xlu0 %792 }
  0xc0   : > { %v852_v41 = vadd.f32 1e-06, %v842_v37  ;;  %v838_v42 = vsub.f32 %v828_v39, %v833_v38  ;;  %v804_v43 = vmul.f32 0.03125, %v793_v40 }
  0xc1   : > { %v796_v44 = vpop.xlane.xlu1 %795 }
  0xc2   : > { %3291 = vrsqrt.f32 %v852_v41  ;;  %v843_v45 = vmax.f32 %v838_v42, 0.0  ;;  %v834_v46 = vmul.f32 %v804_v43, %v804_v43  ;;  %v805_v47 = vmul.f32 0.03125, %v796_v44 }
  0xc3   : > { %v820_v48 = vpop.xlane.xlu0 %819  ;;  %v849_v17 = vsub.f32 %v3627_v10, %v804_v43 }
  0xc4   : > { %v853_v49 = vadd.f32 1e-06, %v843_v45  ;;  %v829_v50 = vmul.f32 0.03125, %v820_v48  ;;  %v835_v52 = vmul.f32 %v805_v47, %v805_v47  ;;  %v850_v22 = vsub.f32 %v3632_v13, %v805_v47 }
  0xc5   : > { %v823_v51 = vpop.xlane.xlu1 %822 }
  0xc6   : > { %3293 = vrsqrt.f32 %v853_v49  ;;  %v839_v53 = vsub.f32 %v829_v50, %v834_v46  ;;  %v830_v54 = vmul.f32 0.03125, %v823_v51 }
  0xc7   : > { %v800_v55 = vpop.xlane.xlu0 %799 }
  0xc8   : > { %v844_v56 = vmax.f32 %v839_v53, 0.0  ;;  %v840_v57 = vsub.f32 %v830_v54, %v835_v52  ;;  %v806_v58 = vmul.f32 0.03125, %v800_v55 }
  0xc9   : > { %v826_v59 = vpop.xlane.xlu1 %825 }
  0xca   : > { %v854_v60 = vadd.f32 1e-06, %v844_v56  ;;  %v845_v61 = vmax.f32 %v840_v57, 0.0  ;;  %v836_v62 = vmul.f32 %v806_v58, %v806_v58  ;;  %v831_v0 = vmul.f32 0.03125, %v826_v59 }
  0xcb   : > { %v851_v29 = vsub.f32 %v3643_v19, %v806_v58  ;;  %v2861_v19 = vld [vmem:[%s4259_s25] ss:$0 sm:$0xff] }
  0xcc   : > { %v3292_v1 = vpop.eup %3291  ;;  %3295 = vrsqrt.f32 %v854_v60  ;;  %v855_v2 = vadd.f32 1e-06, %v845_v61  ;;  %v841_v3 = vsub.f32 %v831_v0, %v836_v62 }
  0xcd   : > { %v862_v4 = vmul.f32 %v3292_v1, %v847_v63 }
  0xce   : > { %3297 = vrsqrt.f32 %v855_v2  ;;  %v846_v9 = vmax.f32 %v841_v3, 0.0 }
  0xcf   : > { %v873_v15 = vmul.f32 %v2859_v7, %v862_v4 }
  0xd0   : > { %v3294_v11 = vpop.eup %3293  ;;  %v856_v12 = vadd.f32 1e-06, %v846_v9 }
  0xd1   : > { %v863_v14 = vmul.f32 %v3294_v11, %v848_v8  ;;  %v884_v18 = vadd.f32 %v2860_v5, %v873_v15  ;;  %v3742_v11 = vld [vmem:[%s4260_s2] sm:$0xff] }
  0xd2   : > { %3299 = vrsqrt.f32 %v856_v12 }
  0xd3   : > { %v874_v16 = vmul.f32 %v2859_v7, %v863_v14 }
  0xd5   : > { %v885_v20 = vadd.f32 %v2860_v5, %v874_v16 }
  0xd6   : > { %v3296_v21 = vpop.eup %3295 }
  0xd7   : > { %v889_v6 = vpack.c.bf16 %v885_v20, %v884_v18  ;;  %v864_v23 = vmul.f32 %v3296_v21, %v849_v17 }
  0xd8   : > { %v3298_v24 = vpop.eup %3297 }
  0xd9   : > { %3014 = vmatmul.mubr.msk.bf16.vlgmr.msra.gmra.mrb[0].mxu0 %vm784_vm2, %v889_v6  ;;  %v865_v25 = vmul.f32 %v3298_v24, %v850_v22  ;;  %v875_v27 = vmul.f32 %v2859_v7, %v864_v23  ;;  %v3762_v23 = vld [vmem:[%s4260_s2 + $0x10] sm:$0xff] }
  0xda   : > { %3017 = vmatprep.mubr.msk.bf16.mxu0 %vm3416_vm4, %v3415_v26 }
  0xdb   : > { %v876_v28 = vmul.f32 %v2859_v7, %v865_v25  ;;  %v886_v30 = vadd.f32 %v2860_v5, %v875_v27 }
  0xdc   : > { %v3300_v10 = vpop.eup %3299 }
  0xdd   : > { %v887_v31 = vadd.f32 %v2860_v5, %v876_v28  ;;  %v866_v32 = vmul.f32 %v3300_v10, %v851_v29  ;;  %v3767_v28 = vld [vmem:[%s4260_s2 + $0x18] sm:$0xff] }
  0xdf   : > { %v890_v33 = vpack.c.bf16 %v887_v31, %v886_v30  ;;  %v877_v13 = vmul.f32 %v2859_v7, %v866_v32 }
  0xe1   : > { %3018 = vmatmul.mubr.msk.bf16.gmra.mrb[4].mxu0 %vm784_vm2, %v890_v33  ;;  %v888_v34 = vadd.f32 %v2860_v5, %v877_v13  ;;  %v3747_v5 = vld [vmem:[%s4260_s2 + $0x8] sm:$0xff]  ;;  %v3777_v13 = vld [vmem:[%s4260_s2 + $0x20] sm:$0x3] }
  0xe2   : > { %3021 = vmatprep.mubr.msk.bf16.mxu0 %vm3416_vm4, %v3415_v26 }
  0xe3   : > { %v891_v35 = vpack.c.bf16 %v888_v34, %v888_v34 }
  0xe9   : > { %3022 = vmatmul.mubr.msk.bf16.gmra.mrb[8].mxu0 %vm784_vm2, %v891_v35 }
  0xea   : > { %3049 = vmatprep.mubr.msk.bf16.mxu0 %vm3416_vm4, %v3415_v26 }
 0x1ac   : > { %v958_v36 = vpop.f32.mrb[0].mxu0 }
 0x1ad   : > { %v3015_v37 = vpop.f32.mrb[1].mxu0  ;;  %v959_v39 = vadd.f32 %v2861_v19, %v958_v36 }
 0x1ae   : > { %v961_v38 = vpop.f32.mrb[2].mxu0 }
 0x1af   : > { %v962_v40 = vadd.f32 %v2861_v19, %v961_v38  ;;  %v3016_v41 = vpop.f32.mrb[3].mxu0 }
 0x1b1   : > { %v3691_v42 = vpack.c.bf16 %v962_v40, %v959_v39 }
 0x1b3   : > { %995 = vrot.lane.b32.xlu0 %v3691_v42, %s3417_s0 }
 0x1b4   : > { %v966_v43 = vpop.f32.mrb[4].mxu0 }
 0x1b5   : > { %v3019_v44 = vpop.f32.mrb[5].mxu0  ;;  %v967_v46 = vadd.f32 %v2861_v19, %v966_v43 }
 0x1b6   : > { %v969_v45 = vpop.f32.mrb[6].mxu0 }
 0x1b7   : > { %v970_v47 = vadd.f32 %v2861_v19, %v969_v45  ;;  %v3020_v48 = vpop.f32.mrb[7].mxu0 }
 0x1b9   : > { %v3694_v49 = vpack.c.bf16 %v970_v47, %v967_v46 }
 0x1bb   : > { %1235 = vrot.lane.b32.xlu0 %v3694_v49, %s3418_s19  ;;  %997 = vrot.lane.b32.xlu1 %v3694_v49, %s3417_s0 }
 0x1bc   : > { %v974_v50 = vpop.f32.mrb[8].mxu0 }
 0x1bd   : > { %v975_v51 = vadd.f32 %v2861_v19, %v974_v50  ;;  %v3023_v52 = vpop.f32.mrb[9].mxu0 }
 0x1be   : > { %v977_v53 = vpop.f32.mrb[10].mxu0 }
 0x1bf   : > { %v3698_v54 = vpack.c.bf16 %v975_v51, %v975_v51  ;;  %1227 = vrot.lane.b32.xlu0 %v3691_v42, %s3419_s27  ;;  %v3024_v55 = vpop.f32.mrb[11].mxu0 }
 0x1c1   : > { %999 = vrot.lane.b32.xlu1 %v3698_v54, %s3417_s0  ;;  %s3420_s0 = smov 64  }
 0x1c3   : > { %1231 = vrot.lane.b32.xlu0 %v3698_v54, %s3419_s27 }
 0x1c5   : > { %1233 = vrot.lane.b32.xlu1 %v3691_v42, %s3418_s19 }
 0x1c9   : > { %1237 = vrot.lane.b32.xlu1 %v3698_v54, %s3418_s19  ;;  %s3421_s19 = smov 56  }
 0x1cd   : > { %1229 = vrot.lane.b32.xlu1 %v3694_v49, %s3419_s27  ;;  %s3422_s27 = smov 80  }
 0x225   : > { %v996_v56 = vpop.permute.xlu0 %995 }
 0x226   : > { %v1012_v57 = vsel %vm1001_vm5, %v996_v56, 0 }
 0x227   : > { %3026 = vmatpush3.bf16.xpose.msra.mxu1 %v1012_v57 }
 0x228   : > { %3027 = vmatprep.subr.bf16.mxu1 %v3415_v26 }
 0x22d   : > { %v998_v58 = vpop.permute.xlu1 %997  ;;  %v1236_v0 = vpop.permute.xlu0 %1235 }
 0x22e   : > { %v1015_v59 = vsel %vm1001_vm5, %v998_v58, 0  ;;  %v1252_v1 = vsel %vm1001_vm5, %v1236_v0, 0 }
 0x22f   : > { %3028 = vmatpush3.bf16.xpose.msra.mxu1 %v1015_v59 }
 0x230   : > { %3029 = vmatprep.subr.bf16.mxu1 %v3415_v26 }
 0x231   : > { %v1228_v4 = vpop.permute.xlu0 %1227 }
 0x233   : > { %v1000_v60 = vpop.permute.xlu1 %999 }
 0x234   : > { %v1018_v61 = vsel %vm1001_vm5, %v1000_v60, 0 }
 0x235   : > { %v1232_v8 = vpop.permute.xlu0 %1231 }
 0x237   : > { %3030 = vmatpush3.bf16.xpose.msra.mxu1 %v1018_v61  ;;  %v1234_v62 = vpop.permute.xlu1 %1233 }
 0x238   : > { %3061 = vmatprep.subr.bf16.mxu1 %v3415_v26  ;;  %v1249_v63 = vsel %vm1001_vm5, %v1234_v62, 0 }
 0x23b   : > { %v1238_v2 = vpop.permute.xlu1 %1237 }
 0x23c   : > { %v1255_v3 = vsel %vm1001_vm5, %v1238_v2, 0 }
 0x23e   : > { %3032 = vmatmul.mubr.msk.bf16.vlgmr.msra.gmra.mrb[0].mxu1 %vm1001_vm5, %v3691_v42 }
 0x23f   : > { %3062 = vmatpush3.bf16.xpose.msra.mxu1 %v1249_v63  ;;  %3035 = vmatprep.mubr.msk.bf16.mxu1 %vm3416_vm4, %v3415_v26  ;;  %v1230_v7 = vpop.permute.xlu1 %1229 }
 0x240   : > { %3063 = vmatprep.subr.bf16.mxu1 %v3415_v26 }
 0x246   : > { %3036 = vmatmul.mubr.msk.bf16.gmra.mrb[4].mxu1 %vm1001_vm5, %v3694_v49 }
 0x247   : > { %3064 = vmatpush3.bf16.xpose.msra.mxu1 %v1252_v1  ;;  %3039 = vmatprep.mubr.msk.bf16.mxu1 %vm3416_vm4, %v3415_v26 }
 0x248   : > { %3065 = vmatprep.subr.bf16.mxu1 %v3415_v26 }
 0x24e   : > { %3040 = vmatmul.mubr.msk.bf16.gmra.mrb[8].mxu1 %vm1001_vm5, %v3698_v54 }
 0x24f   : > { %3066 = vmatpush3.bf16.xpose.msra.mxu1 %v1255_v3  ;;  %3067 = vmatprep.mubr.msk.bf16.mxu1 %vm3416_vm4, %v3415_v26 }
 0x250   : > { %3097 = vmatprep.subr.bf16.mxu1 %v3415_v26 }
 0x256   : > { %3068 = vmatmul.mubr.msk.bf16.vlgmr.msra.gmra.mrb[12].mxu1 %vm1001_vm5, %v1228_v4 }
 0x257   : > { %3071 = vmatprep.mubr.msk.bf16.mxu1 %vm3416_vm4, %v3415_v26 }
 0x25e   : > { %3072 = vmatmul.mubr.msk.bf16.gmra.mrb[16].mxu1 %vm1001_vm5, %v1230_v7 }
 0x25f   : > { %3075 = vmatprep.mubr.msk.bf16.mxu1 %vm3416_vm4, %v3415_v26 }
 0x266   : > { %3076 = vmatmul.mubr.msk.bf16.gmra.mrb[20].mxu1 %vm1001_vm5, %v1232_v8 }
 0x267   : > { %3099 = vmatprep.mubr.msk.bf16.mxu1 %vm3416_vm4, %v3415_v26 }
 0x311   : > { %v1054_v9 = vpop.f32.mrb[0].mxu1 }
 0x312   : > { %v1076_v12 = vmul.f32 0.35355338, %v1054_v9  ;;  %v3033_v14 = vpop.f32.mrb[1].mxu1 }
 0x313   : > { %v1057_v15 = vpop.f32.mrb[2].mxu1 }
 0x314   : > { %v1077_v16 = vmul.f32 0.35355338, %v1057_v15  ;;  %v3034_v17 = vpop.f32.mrb[3].mxu1  ;;  %v3750_v18 = vadd.f32 %v1076_v12, %v3742_v11 }
 0x316   : > { %v1087_v20 = vsel %vm1086_vm6, %v3750_v18, -inf  ;;  %v3755_v21 = vadd.f32 %v1077_v16, %v3747_v5 }
 0x317   : > { %1088 = vmax.xlane.f32.xlu1 %v1087_v20 }
 0x318   : > { %v1090_v22 = vsel %vm1086_vm6, %v3755_v21, -inf }
 0x319   : > { %1091 = vmax.xlane.f32.xlu0 %v1090_v22  ;;  %v1062_v6 = vpop.f32.mrb[4].mxu1 }
 0x31a   : > { %v1078_v24 = vmul.f32 0.35355338, %v1062_v6  ;;  %v3037_v25 = vpop.f32.mrb[5].mxu1 }
 0x31b   : > { %v1065_v27 = vpop.f32.mrb[6].mxu1 }
 0x31c   : > { %v1079_v29 = vmul.f32 0.35355338, %v1065_v27  ;;  %v3038_v10 = vpop.f32.mrb[7].mxu1  ;;  %v1083_v30 = vadd.f32 %v1078_v24, %v3762_v23 }
 0x31e   : > { %v1093_v31 = vsel %vm1086_vm6, %v1083_v30, -inf  ;;  %v3772_v32 = vadd.f32 %v1079_v29, %v3767_v28 }
 0x31f   : > { %1094 = vmax.xlane.f32.xlu0 %v1093_v31 }
 0x320   : > { %v1096_v19 = vsel %vm1086_vm6, %v3772_v32, -inf }
 0x321   : > { %v1070_v33 = vpop.f32.mrb[8].mxu1 }
 0x322   : > { %v1080_v34 = vmul.f32 0.35355338, %v1070_v33  ;;  %v3041_v35 = vpop.f32.mrb[9].mxu1 }
 0x323   : > { %1097 = vmax.xlane.f32.xlu0 %v1096_v19  ;;  %v1073_v36 = vpop.f32.mrb[10].mxu1 }
 0x324   : > { %v3042_v37 = vpop.f32.mrb[11].mxu1  ;;  %v1085_v38 = vadd.f32 %v1080_v34, %v3777_v13 }
 0x326   : > { %v1100_v39 = vsel %vm1099_vm7, %v1085_v38, -inf }
 0x327   : > { %1101 = vmax.xlane.f32.xlu1 %v1100_v39 }
 0x329   : > { %v1291_v40 = vpop.f32.mrb[12].mxu1 }
 0x32a   : > { %v1313_v41 = vmul.f32 0.35355338, %v1291_v40  ;;  %v3069_v43 = vpop.f32.mrb[13].mxu1 }
 0x32b   : > { %v1294_v44 = vpop.f32.mrb[14].mxu1 }
 0x32c   : > { %v1314_v45 = vmul.f32 0.35355338, %v1294_v44  ;;  %v3070_v46 = vpop.f32.mrb[15].mxu1  ;;  %v1318_v47 = vadd.f32 %v1313_v41, %v3742_v11 }
 0x32e   : > { %v1323_v48 = vsel %vm1086_vm6, %v1318_v47, -inf  ;;  %v3786_v50 = vadd.f32 %v1314_v45, %v3747_v5 }
 0x32f   : > { %1324 = vmax.xlane.f32.xlu0 %v1323_v48 }
 0x330   : > { %v1326_v51 = vsel %vm1086_vm6, %v3786_v50, -inf }
 0x331   : > { %1327 = vmax.xlane.f32.xlu1 %v1326_v51  ;;  %v1299_v52 = vpop.f32.mrb[16].mxu1 }
 0x332   : > { %v1315_v53 = vmul.f32 0.35355338, %v1299_v52  ;;  %v3073_v55 = vpop.f32.mrb[17].mxu1 }
 0x333   : > { %v1302_v56 = vpop.f32.mrb[18].mxu1 }
 0x334   : > { %v1316_v57 = vmul.f32 0.35355338, %v1302_v56  ;;  %v3074_v58 = vpop.f32.mrb[19].mxu1  ;;  %v1320_v59 = vadd.f32 %v1315_v53, %v3762_v23 }
 0x336   : > { %v1329_v60 = vsel %vm1086_vm6, %v1320_v59, -inf  ;;  %v1321_v61 = vadd.f32 %v1316_v57, %v3767_v28 }
 0x337   : > { %1330 = vmax.xlane.f32.xlu0 %v1329_v60 }
 0x338   : > { %v1332_v62 = vsel %vm1086_vm6, %v1321_v61, -inf }
 0x339   : > { %1333 = vmax.xlane.f32.xlu1 %v1332_v62  ;;  %v1307_v63 = vpop.f32.mrb[20].mxu1 }
 0x33a   : > { %v3077_v0 = vpop.f32.mrb[21].mxu1  ;;  %v1317_v3 = vmul.f32 0.35355338, %v1307_v63 }
 0x33b   : > { %v1310_v1 = vpop.f32.mrb[22].mxu1 }
 0x33c   : > { %v3078_v2 = vpop.f32.mrb[23].mxu1  ;;  %v3799_v4 = vadd.f32 %v1317_v3, %v3777_v13 }
 0x33e   : > { %v1335_v7 = vsel %vm1099_vm7, %v3799_v4, -inf }
 0x34a   : > { %1148 = vrot.lane.b32.xlu1 %v3694_v49, %s3420_s0 }
 0x34d   : > { %1146 = vrot.lane.b32.xlu0 %v3691_v42, %s3420_s0 }
 0x36c   : > { %1336 = vmax.xlane.f32.xlu0 %v1335_v7 }
 0x3a4   : > { %v1089_v8 = vpop.xlane.xlu1 %1088 }
 0x3a5   : > { %v1103_v9 = vsub.f32 %v3750_v18, %v1089_v8 }
 0x3a6   : > { %v1092_v12 = vpop.xlane.xlu0 %1091 }
 0x3a7   : > { %v1108_v14 = vmul.f32 1.442695, %v1103_v9  ;;  %v1104_v15 = vsub.f32 %v3755_v21, %v1092_v12 }
 0x3a9   : > { %3301 = vpow2.f32 %v1108_v14  ;;  %v1110_v16 = vmul.f32 1.442695, %v1104_v15 }
 0x3ab   : > { %3303 = vpow2.f32 %v1110_v16 }
 0x3ac   : > { %v1095_v17 = vpop.xlane.xlu0 %1094 }
 0x3ad   : > { %v1105_v20 = vsub.f32 %v1083_v30, %v1095_v17 }
 0x3af   : > { %v1112_v22 = vmul.f32 1.442695, %v1105_v20 }
 0x3b0   : > { %v1098_v6 = vpop.xlane.xlu0 %1097 }
 0x3b1   : > { %3305 = vpow2.f32 %v1112_v22  ;;  %v1106_v24 = vsub.f32 %v3772_v32, %v1098_v6 }
 0x3b3   : > { %v3806_v25 = vpop.eup %3301  ;;  %v1114_v27 = vmul.f32 1.442695, %v1106_v24 }
 0x3b4   : > { %v1102_v29 = vpop.xlane.xlu1 %1101  ;;  %v1118_v18 = vsel %vm1086_vm6, %v3806_v25, 0.0 }
 0x3b5   : > { %v3810_v10 = vpop.eup %3303  ;;  %3307 = vpow2.f32 %v1114_v27  ;;  %v1107_v21 = vsub.f32 %v1085_v38, %v1102_v29  ;;  %1119 = vadd.xlane.f32.xlu1 %v1118_v18 }
 0x3b6   : > { %v1121_v30 = vsel %vm1086_vm6, %v3810_v10, 0.0 }
 0x3b7   : > { %v1116_v31 = vmul.f32 1.442695, %v1107_v21  ;;  %1122 = vadd.xlane.f32.xlu0 %v1121_v30 }
 0x3b9   : > { %3309 = vpow2.f32 %v1116_v31 }
 0x3bb   : > { %v3814_v33 = vpop.eup %3305 }
 0x3bc   : > { %v1325_v32 = vpop.xlane.xlu0 %1324  ;;  %v1124_v34 = vsel %vm1086_vm6, %v3814_v33, 0.0 }
 0x3bd   : > { %v1338_v35 = vsub.f32 %v1318_v47, %v1325_v32  ;;  %1125 = vadd.xlane.f32.xlu1 %v1124_v34 }
 0x3be   : > { %v1328_v38 = vpop.xlane.xlu1 %1327 }
 0x3bf   : > { %v3818_v19 = vpop.eup %3307  ;;  %v1343_v36 = vmul.f32 1.442695, %v1338_v35 }
 0x3c0   : > { %v1127_v37 = vsel %vm1086_vm6, %v3818_v19, 0.0 }
 0x3c1   : > { %3311 = vpow2.f32 %v1343_v36  ;;  %1128 = vadd.xlane.f32.xlu0 %v1127_v37 }
 0x3c3   : > { %v3822_v39 = vpop.eup %3309 }
 0x3c4   : > { %v1331_v40 = vpop.xlane.xlu0 %1330  ;;  %v1130_v41 = vsel %vm1099_vm7, %v3822_v39, 0.0 }
 0x3c5   : > { %v1340_v43 = vsub.f32 %v1320_v59, %v1331_v40  ;;  %1131 = vadd.xlane.f32.xlu1 %v1130_v41  ;;  %v1339_v59 = vsub.f32 %v3786_v50, %v1328_v38 }
 0x3c6   : > { %v1334_v44 = vpop.xlane.xlu1 %1333 }
 0x3c7   : > { %v1347_v45 = vmul.f32 1.442695, %v1340_v43  ;;  %v1341_v46 = vsub.f32 %v1321_v61, %v1334_v44  ;;  %v1345_v60 = vmul.f32 1.442695, %v1339_v59 }
 0x3c8   : > { %v1147_v47 = vpop.permute.xlu0 %1146 }
 0x3c9   : > { %3313 = vpow2.f32 %v1347_v45  ;;  %v1349_v48 = vmul.f32 1.442695, %v1341_v46  ;;  %3044 = vmatpush3.bf16.msra.mxu0 %v1147_v47 }
 0x3ca   : > { %3045 = vmatprep.subr.bf16.mxu0 %v3415_v26  ;;  %v1149_v52 = vpop.permute.xlu1 %1148 }
 0x3cb   : > { %v3827_v51 = vpop.eup %3311  ;;  %3315 = vpow2.f32 %v1349_v48 }
 0x3cc   : > { %v1353_v53 = vsel %vm1086_vm6, %v3827_v51, 0.0  ;;  %3317 = vpow2.f32 %v1345_v60 }
 0x3cd   : > { %1354 = vadd.xlane.f32.xlu1 %v1353_v53  ;;  %3046 = vmatpush3.bf16.msra.mxu0 %v1149_v52 }
 0x3ce   : > { %3047 = vmatprep.subr.bf16.mxu0 %v3415_v26 }
 0x3d3   : > { %v3832_v55 = vpop.eup %3313 }
 0x3d4   : > { %v1359_v56 = vsel %vm1086_vm6, %v3832_v55, 0.0 }
 0x3d5   : > { %v3836_v57 = vpop.eup %3315  ;;  %1360 = vadd.xlane.f32.xlu1 %v1359_v56 }
 0x3d6   : > { %v1362_v58 = vsel %vm1086_vm6, %v3836_v57, 0.0  ;;  %v3843_v61 = vpop.eup %3317 }
 0x3d7   : > { %1150 = vrot.lane.b32.xlu0 %v3698_v54, %s3420_s0  ;;  %v1356_v62 = vsel %vm1086_vm6, %v3843_v61, 0.0  ;;  %s4262_s0 = scalar_lea.vmem %s4223_s8, %s3526_s26 }
 0x3d9   : > { %1363 = vadd.xlane.f32.xlu1 %v1362_v58 }
 0x3f6   : > { %1357 = vadd.xlane.f32.xlu0 %v1356_v62 }
 0x3f9   : > { %v1337_v63 = vpop.xlane.xlu0 %1336 }
 0x3fa   : > { %v1342_v0 = vsub.f32 %v3799_v4, %v1337_v63 }
 0x3fc   : > { %v1351_v1 = vmul.f32 1.442695, %v1342_v0 }
 0x3fe   : > { %3319 = vpow2.f32 %v1351_v1 }
 0x408   : > { %v3848_v2 = vpop.eup %3319 }
 0x409   : > { %v1365_v3 = vsel %vm1099_vm7, %v3848_v2, 0.0 }
 0x40a   : > { %1366 = vadd.xlane.f32.xlu1 %v1365_v3 }
 0x40c   : > { %1383 = vrot.lane.b32.xlu0 %v3694_v49, %s3421_s19 }
 0x410   : > { %1385 = vrot.lane.b32.xlu0 %v3698_v54, %s3421_s19 }
 0x414   : > { %1606 = vrot.lane.b32.xlu0 %v3694_v49, %s3422_s27 }
 0x418   : > { %1598 = vrot.lane.b32.xlu0 %v3691_v42, %s3423_s5 }
 0x41b   : > { %1381 = vrot.lane.b32.xlu1 %v3691_v42, %s3421_s19 }
 0x41c   : > { %1602 = vrot.lane.b32.xlu0 %v3698_v54, %s3423_s5 }
 0x41f   : > { %1604 = vrot.lane.b32.xlu1 %v3691_v42, %s3422_s27 }
 0x423   : > { %1608 = vrot.lane.b32.xlu1 %v3698_v54, %s3422_s27  ;;  %s4263_s27 = scalar_lea.vmem %s4224_s9, %s3526_s26 }
 0x427   : > { %1600 = vrot.lane.b32.xlu1 %v3694_v49, %s3423_s5 }
 0x442   : > { %v1120_v50 = vpop.xlane.xlu1 %1119 }
 0x444   : > { %v1123_v4 = vpop.xlane.xlu0 %1122 }
 0x445   : > { %3321 = vrcp.f32 %v1123_v4 }
 0x446   : > { %3323 = vrcp.f32 %v1120_v50 }
 0x44a   : > { %v1126_v7 = vpop.xlane.xlu1 %1125 }
 0x44b   : > { %3325 = vrcp.f32 %v1126_v7 }
 0x44e   : > { %v1129_v8 = vpop.xlane.xlu0 %1128 }
 0x44f   : > { %v3322_v9 = vpop.eup %3321  ;;  %3327 = vrcp.f32 %v1129_v8 }
 0x450   : > { %v3324_v12 = vpop.eup %3323  ;;  %v1136_v14 = vmul.f32 %v3322_v9, %v3810_v10 }
 0x451   : > { %v1134_v17 = vmul.f32 %v3324_v12, %v3806_v25 }
 0x452   : > { %v1132_v15 = vpop.xlane.xlu1 %1131  ;;  %v1151_v16 = vpop.permute.xlu0 %1150 }
 0x453   : > { %v1165_v20 = vsel %vm1163_vm8, %v1151_v16, 0  ;;  %3329 = vrcp.f32 %v1132_v15  ;;  %v1143_v6 = vpack.c.bf16 %v1136_v14, %v1134_v17 }
 0x454   : > { %3048 = vmatpush3.bf16.msra.mxu0 %v1165_v20 }
 0x455   : > { %v3326_v22 = vpop.eup %3325  ;;  %3079 = vmatprep.subr.bf16.mxu0 %v3415_v26 }
 0x456   : > { %v1138_v24 = vmul.f32 %v3326_v22, %v3814_v33 }
 0x457   : > { %3050 = vmatmul.mubr.msk.bf16.vlgmr.msra.gmra.mrb[12].mxu0 %vm1086_vm6, %v1143_v6 }
 0x458   : > { %3053 = vmatprep.mubr.msk.bf16.mxu0 %vm3416_vm4, %v3415_v26  ;;  %v1226_v27 = vsel %vm1163_vm8, %v1134_v17, %v1138_v24 }
 0x459   : > { %v3328_v29 = vpop.eup %3327 }
 0x45a   : > { %v1140_v25 = vmul.f32 %v3328_v29, %v3818_v19  ;;  %v1355_v21 = vpop.xlane.xlu1 %1354 }
 0x45b   : > { %3331 = vrcp.f32 %v1355_v21 }
 0x45c   : > { %v1144_v18 = vpack.c.bf16 %v1140_v25, %v1138_v24 }
 0x45d   : > { %v3330_v10 = vpop.eup %3329 }
 0x45e   : > { %v1142_v30 = vmul.f32 %v3330_v10, %v3822_v39 }
 0x45f   : > { %3054 = vmatmul.mubr.msk.bf16.gmra.mrb[16].mxu0 %vm1086_vm6, %v1144_v18 }
 0x460   : > { %3057 = vmatprep.mubr.msk.bf16.mxu0 %vm3416_vm4, %v3415_v26  ;;  %v1145_v33 = vpack.c.bf16 %v1142_v30, %v1142_v30 }
 0x462   : > { %v1361_v31 = vpop.xlane.xlu1 %1360 }
 0x463   : > { %3333 = vrcp.f32 %v1361_v31 }
 0x465   : > { %v3332_v32 = vpop.eup %3331 }
 0x466   : > { %v1369_v35 = vmul.f32 %v3332_v32, %v3827_v51  ;;  %v1364_v40 = vpop.xlane.xlu1 %1363 }
 0x467   : > { %3058 = vmatmul.mubr.msk.bf16.gmra.mrb[20].mxu0 %vm1086_vm6, %v1145_v33 }
 0x468   : > { %3085 = vmatprep.mubr.msk.bf16.mxu0 %vm3416_vm4, %v3415_v26 }
 0x46d   : > { %v3334_v34 = vpop.eup %3333 }
 0x46e   : > { %v1373_v19 = vmul.f32 %v3334_v34, %v3832_v55  ;;  %v988_v55 = vld [vmem:[%s3549_s29] sm:$0xf] }
 0x46f   : > { %v1539_v56 = vsel %vm1469_vm10, %v988_v55, 0 }
 0x470   : > { %v1597_v36 = vsel %vm1163_vm8, %v1369_v35, %v1373_v19 }
 0x471   : > { %v2213_v37 = vrot.slane %v1597_v36, 6 }
 0x473   : > { %v3881_v38 = vsel %vm2221_vm9, %v1226_v27, %v2213_v37 }
 0x483   : > { %v1358_v39 = vpop.xlane.xlu0 %1357 }
 0x484   : > { %3335 = vrcp.f32 %v1358_v39 }
 0x485   : > { %3337 = vrcp.f32 %v1364_v40 }
 0x487   : > { %v1384_v43 = vpop.permute.xlu0 %1383 }
 0x48b   : > { %v1386_v46 = vpop.permute.xlu0 %1385 }
 0x48c   : > { %v1399_v48 = vsel %vm1163_vm8, %v1386_v46, 0 }
 0x48e   : > { %v3336_v45 = vpop.eup %3335 }
 0x48f   : > { %v1371_v47 = vmul.f32 %v3336_v45, %v3843_v61  ;;  %v3338_v52 = vpop.eup %3337  ;;  %v1607_v21 = vpop.permute.xlu0 %1606 }
 0x490   : > { %v1375_v53 = vmul.f32 %v3338_v52, %v3836_v57  ;;  %v989_v57 = vld [vmem:[%s3549_s29 + $0x4] sm:$0xf]  ;;  %v1623_v32 = vsel %vm1001_vm5, %v1607_v21, 0 }
 0x491   : > { %v1378_v51 = vpack.c.bf16 %v1371_v47, %v1369_v35  ;;  %v1471_v62 = vsel %vm1469_vm10, %v989_v57, 0 }
 0x492   : > { %v1379_v58 = vpack.c.bf16 %v1375_v53, %v1373_v19  ;;  %3098 = vmatpush3.bf16.msra.mxu1 %v1471_v62 }
 0x493   : > { %3125 = vmatprep.subr.bf16.mxu1 %v3415_v26 }
 0x497   : > { %v1367_v41 = vpop.xlane.xlu1 %1366 }
 0x498   : > { %3339 = vrcp.f32 %v1367_v41  ;;  %v1599_v41 = vpop.permute.xlu0 %1598 }
 0x49b   : > { %v1382_v44 = vpop.permute.xlu1 %1381 }
 0x49c   : > { %3080 = vmatpush3.bf16.msra.mxu0 %v1382_v44  ;;  %v1603_v44 = vpop.permute.xlu0 %1602 }
 0x49d   : > { %3081 = vmatprep.subr.bf16.mxu0 %v3415_v26 }
 0x49f   : > { %v1605_v6 = vpop.permute.xlu1 %1604 }
 0x4a0   : > { %3082 = vmatpush3.bf16.msra.mxu0 %v1384_v43  ;;  %v1620_v25 = vsel %vm1001_vm5, %v1605_v6, 0 }
 0x4a1   : > { %3083 = vmatprep.subr.bf16.mxu0 %v3415_v26 }
 0x4a2   : > { %v3340_v59 = vpop.eup %3339 }
 0x4a3   : > { %v1377_v60 = vmul.f32 %v3340_v59, %v3848_v2  ;;  %v1609_v19 = vpop.permute.xlu1 %1608 }
 0x4a4   : > { %3084 = vmatpush3.bf16.msra.mxu0 %v1399_v48  ;;  %v1626_v40 = vsel %vm1001_vm5, %v1609_v19, 0 }
 0x4a5   : > { %3111 = vmatprep.subr.bf16.mxu0 %v3415_v26  ;;  %v1380_v61 = vpack.c.bf16 %v1377_v60, %v1377_v60 }
 0x4a7   : > { %3086 = vmatmul.mubr.msk.bf16.vlgmr.msra.gmra.mrb[24].mxu0 %vm1086_vm6, %v1378_v51  ;;  %v1601_v43 = vpop.permute.xlu1 %1600 }
 0x4a8   : > { %3089 = vmatprep.mubr.msk.bf16.mxu0 %vm3416_vm4, %v3415_v26  ;;  %3112 = vmatpush3.bf16.msra.mxu0 %v1539_v56 }
 0x4a9   : > { %3143 = vmatprep.subr.bf16.mxu0 %v3415_v26 }
 0x4af   : > { %3090 = vmatmul.mubr.msk.bf16.gmra.mrb[28].mxu0 %vm1086_vm6, %v1379_v58 }
 0x4b0   : > { %3093 = vmatprep.mubr.msk.bf16.mxu0 %vm3416_vm4, %v3415_v26 }
 0x4b7   : > { %3094 = vmatmul.mubr.msk.bf16.gmra.mrb[32].mxu0 %vm1086_vm6, %v1380_v61 }
 0x4b8   : > { %3113 = vmatprep.mubr.msk.bf16.mxu0 %vm3416_vm4, %v3415_v26 }
 0x52a   : > { %v1201_v63 = vpop.f32.mrb[12].mxu0 }
 0x52b   : > { %v3051_v0 = vpop.f32.mrb[13].mxu0 }
 0x52c   : > { %v1204_v1 = vpop.f32.mrb[14].mxu0 }
 0x52d   : > { %v1223_v3 = vpack.c.bf16 %v1204_v1, %v1201_v63  ;;  %v3052_v50 = vpop.f32.mrb[15].mxu0 }
 0x52f   : > { %3114 = vmatmul.mubr.msk.bf16.vlgmr.msra.gmra.mrb[36].mxu0 %vm1001_vm5, %v1223_v3 }
 0x530   : > { %3117 = vmatprep.mubr.msk.bf16.mxu0 %vm3416_vm4, %v3415_v26 }
 0x532   : > { %v1209_v2 = vpop.f32.mrb[16].mxu0 }
 0x533   : > { %v3055_v4 = vpop.f32.mrb[17].mxu0 }
 0x534   : > { %v1212_v7 = vpop.f32.mrb[18].mxu0 }
 0x535   : > { %v1224_v8 = vpack.c.bf16 %v1212_v7, %v1209_v2  ;;  %v3056_v9 = vpop.f32.mrb[19].mxu0 }
 0x537   : > { %3118 = vmatmul.mubr.msk.bf16.gmra.mrb[40].mxu0 %vm1001_vm5, %v1224_v8 }
 0x538   : > { %3121 = vmatprep.mubr.msk.bf16.mxu0 %vm3416_vm4, %v3415_v26 }
 0x53a   : > { %v1217_v12 = vpop.f32.mrb[20].mxu0 }
 0x53b   : > { %v3059_v14 = vpop.f32.mrb[21].mxu0  ;;  %v1225_v16 = vpack.c.bf16 %v1217_v12, %v1217_v12 }
 0x53c   : > { %v1220_v15 = vpop.f32.mrb[22].mxu0 }
 0x53d   : > { %v3060_v17 = vpop.f32.mrb[23].mxu0 }
 0x53f   : > { %3122 = vmatmul.mubr.msk.bf16.gmra.mrb[44].mxu0 %vm1001_vm5, %v1225_v16 }
 0x540   : > { %3149 = vmatprep.mubr.msk.bf16.mxu0 %vm3416_vm4, %v3415_v26 }
 0x57a   : > { %v1435_v20 = vpop.f32.mrb[24].mxu0 }
 0x57b   : > { %v3087_v22 = vpop.f32.mrb[25].mxu0 }
 0x57c   : > { %v1438_v24 = vpop.f32.mrb[26].mxu0 }
 0x57d   : > { %v1457_v27 = vpack.c.bf16 %v1438_v24, %v1435_v20  ;;  %v3088_v29 = vpop.f32.mrb[27].mxu0 }
 0x57f   : > { %3100 = vmatmul.mubr.msk.bf16.vlgmr.msra.gmra.mrb[24].mxu1 %vm1001_vm5, %v1457_v27 }
 0x580   : > { %3126 = vmatpush3.bf16.xpose.msra.mxu1 %v1620_v25  ;;  %3103 = vmatprep.mubr.msk.bf16.mxu1 %vm3416_vm4, %v3415_v26 }
 0x581   : > { %3127 = vmatprep.subr.bf16.mxu1 %v3415_v26 }
 0x582   : > { %v1443_v18 = vpop.f32.mrb[28].mxu0 }
 0x583   : > { %v3091_v10 = vpop.f32.mrb[29].mxu0 }
 0x584   : > { %v1446_v30 = vpop.f32.mrb[30].mxu0 }
 0x585   : > { %v1458_v31 = vpack.c.bf16 %v1446_v30, %v1443_v18  ;;  %v3092_v33 = vpop.f32.mrb[31].mxu0 }
 0x587   : > { %3104 = vmatmul.mubr.msk.bf16.gmra.mrb[28].mxu1 %vm1001_vm5, %v1458_v31 }
 0x588   : > { %3128 = vmatpush3.bf16.xpose.msra.mxu1 %v1623_v32  ;;  %3107 = vmatprep.mubr.msk.bf16.mxu1 %vm3416_vm4, %v3415_v26 }
 0x589   : > { %3129 = vmatprep.subr.bf16.mxu1 %v3415_v26 }
 0x58a   : > { %v1451_v34 = vpop.f32.mrb[32].mxu0 }
 0x58b   : > { %v3095_v35 = vpop.f32.mrb[33].mxu0  ;;  %v1459_v37 = vpack.c.bf16 %v1451_v34, %v1451_v34 }
 0x58c   : > { %v1454_v36 = vpop.f32.mrb[34].mxu0 }
 0x58d   : > { %v3096_v39 = vpop.f32.mrb[35].mxu0 }
 0x58f   : > { %3108 = vmatmul.mubr.msk.bf16.gmra.mrb[32].mxu1 %vm1001_vm5, %v1459_v37 }
 0x590   : > { %3130 = vmatpush3.bf16.xpose.msra.mxu1 %v1626_v40  ;;  %3131 = vmatprep.mubr.msk.bf16.mxu1 %vm3416_vm4, %v3415_v26 }
 0x591   : > { %3161 = vmatprep.subr.bf16.mxu1 %v3415_v26 }
 0x597   : > { %3132 = vmatmul.mubr.msk.bf16.vlgmr.msra.gmra.mrb[36].mxu1 %vm1001_vm5, %v1599_v41 }
 0x598   : > { %3135 = vmatprep.mubr.msk.bf16.mxu1 %vm3416_vm4, %v3415_v26 }
 0x59f   : > { %3136 = vmatmul.mubr.msk.bf16.gmra.mrb[40].mxu1 %vm1001_vm5, %v1601_v43 }
 0x5a0   : > { %3139 = vmatprep.mubr.msk.bf16.mxu1 %vm3416_vm4, %v3415_v26 }
 0x5a7   : > { %3140 = vmatmul.mubr.msk.bf16.gmra.mrb[44].mxu1 %vm1001_vm5, %v1603_v44 }
 0x5a8   : > { %3163 = vmatprep.mubr.msk.bf16.mxu1 %vm3416_vm4, %v3415_v26 }
 0x602   : > { %v1575_v45 = vpop.f32.mrb[36].mxu0 }
 0x603   : > { %v3115_v46 = vpop.f32.mrb[37].mxu0 }
 0x604   : > { %v1578_v47 = vpop.f32.mrb[38].mxu0 }
 0x605   : > { %v3116_v48 = vpop.f32.mrb[39].mxu0 }
 0x60a   : > { %v1583_v51 = vpop.f32.mrb[40].mxu0 }
 0x60b   : > { %v3119_v52 = vpop.f32.mrb[41].mxu0 }
 0x60c   : > { %v1586_v53 = vpop.f32.mrb[42].mxu0 }
 0x60d   : > { %v3120_v55 = vpop.f32.mrb[43].mxu0 }
 0x612   : > { %v1591_v56 = vpop.f32.mrb[44].mxu0 }
 0x613   : > { %v3123_v58 = vpop.f32.mrb[45].mxu0 }
 0x614   : > { %v1594_v59 = vpop.f32.mrb[46].mxu0 }
 0x615   : > { %v3124_v60 = vpop.f32.mrb[47].mxu0 }
 0x652   : > { %v1507_v61 = vpop.f32.mrb[24].mxu1 }
 0x653   : > { %v3938_v57 = vadd.f32 %v1575_v45, %v1507_v61  ;;  %v3101_v62 = vpop.f32.mrb[25].mxu1 }
 0x654   : > { %v1510_v63 = vpop.f32.mrb[26].mxu1 }
 0x655   : > { %v3940_v0 = vadd.f32 %v1578_v47, %v1510_v63  ;;  %v3102_v1 = vpop.f32.mrb[27].mxu1 }
 0x65a   : > { %v1515_v3 = vpop.f32.mrb[28].mxu1 }
 0x65b   : > { %v3942_v50 = vadd.f32 %v1583_v51, %v1515_v3  ;;  %v3105_v2 = vpop.f32.mrb[29].mxu1 }
 0x65c   : > { %v1518_v4 = vpop.f32.mrb[30].mxu1 }
 0x65d   : > { %v3944_v7 = vadd.f32 %v1586_v53, %v1518_v4  ;;  %v3106_v8 = vpop.f32.mrb[31].mxu1 }
 0x662   : > { %v1523_v9 = vpop.f32.mrb[32].mxu1 }
 0x663   : > { %v3946_v12 = vadd.f32 %v1591_v56, %v1523_v9  ;;  %v3109_v14 = vpop.f32.mrb[33].mxu1 }
 0x664   : > { %v1526_v15 = vpop.f32.mrb[34].mxu1 }
 0x665   : > { %v3110_v16 = vpop.f32.mrb[35].mxu1 }
 0x66a   : > { %v1662_v17 = vpop.f32.mrb[36].mxu1 }
 0x66b   : > { %v1684_v20 = vmul.f32 0.35355338, %v1662_v17  ;;  %v3133_v22 = vpop.f32.mrb[37].mxu1 }
 0x66c   : > { %v1665_v6 = vpop.f32.mrb[38].mxu1 }
 0x66d   : > { %v1685_v24 = vmul.f32 0.35355338, %v1665_v6  ;;  %v3134_v27 = vpop.f32.mrb[39].mxu1  ;;  %v1689_v29 = vadd.f32 %v1684_v20, %v3742_v11 }
 0x66f   : > { %v1694_v25 = vsel %vm1086_vm6, %v1689_v29, -inf  ;;  %v1690_v18 = vadd.f32 %v1685_v24, %v3747_v5 }
 0x670   : > { %1695 = vmax.xlane.f32.xlu1 %v1694_v25 }
 0x671   : > { %v1697_v10 = vsel %vm1086_vm6, %v1690_v18, -inf }
 0x672   : > { %1698 = vmax.xlane.f32.xlu0 %v1697_v10  ;;  %v1670_v21 = vpop.f32.mrb[40].mxu1 }
 0x673   : > { %v1686_v30 = vmul.f32 0.35355338, %v1670_v21  ;;  %v3137_v31 = vpop.f32.mrb[41].mxu1 }
 0x674   : > { %v1673_v33 = vpop.f32.mrb[42].mxu1 }
 0x675   : > { %v1687_v32 = vmul.f32 0.35355338, %v1673_v33  ;;  %v3138_v34 = vpop.f32.mrb[43].mxu1  ;;  %v1691_v35 = vadd.f32 %v1686_v30, %v3762_v23 }
 0x677   : > { %v1700_v19 = vsel %vm1086_vm6, %v1691_v35, -inf  ;;  %v1692_v11 = vadd.f32 %v1687_v32, %v3767_v28 }
 0x678   : > { %1701 = vmax.xlane.f32.xlu0 %v1700_v19 }
 0x679   : > { %v1703_v40 = vsel %vm1086_vm6, %v1692_v11, -inf }
 0x67a   : > { %v1678_v36 = vpop.f32.mrb[44].mxu1 }
 0x67b   : > { %v1688_v37 = vmul.f32 0.35355338, %v1678_v36  ;;  %v3141_v39 = vpop.f32.mrb[45].mxu1 }
 0x67c   : > { %1704 = vmax.xlane.f32.xlu0 %v1703_v40  ;;  %v1681_v41 = vpop.f32.mrb[46].mxu1 }
 0x67d   : > { %v3142_v43 = vpop.f32.mrb[47].mxu1  ;;  %v1693_v44 = vadd.f32 %v1688_v37, %v3777_v13 }
 0x67f   : > { %v1706_v45 = vsel %vm1099_vm7, %v1693_v44, -inf }
 0x680   : > { %1707 = vmax.xlane.f32.xlu1 %v1706_v45 }
 0x691   : > { %1754 = vrot.lane.b32.xlu1 %v3694_v49, %s3424_s24 }
 0x692   : > { %1752 = vrot.lane.b32.xlu0 %v3691_v42, %s3424_s24 }
 0x695   : > { %1756 = vrot.lane.b32.xlu1 %v3698_v54, %s3424_s24 }
 0x6fd   : > { %v1696_v46 = vpop.xlane.xlu1 %1695 }
 0x6fe   : > { %v1709_v47 = vsub.f32 %v1689_v29, %v1696_v46 }
 0x6ff   : > { %v1699_v48 = vpop.xlane.xlu0 %1698 }
 0x700   : > { %v1714_v51 = vmul.f32 1.442695, %v1709_v47  ;;  %v1710_v52 = vsub.f32 %v1690_v18, %v1699_v48 }
 0x702   : > { %3341 = vpow2.f32 %v1714_v51  ;;  %v1716_v53 = vmul.f32 1.442695, %v1710_v52 }
 0x704   : > { %3343 = vpow2.f32 %v1716_v53 }
 0x705   : > { %v1702_v55 = vpop.xlane.xlu0 %1701 }
 0x706   : > { %v1711_v56 = vsub.f32 %v1691_v35, %v1702_v55 }
 0x708   : > { %v1718_v58 = vmul.f32 1.442695, %v1711_v56 }
 0x709   : > { %v1705_v59 = vpop.xlane.xlu0 %1704 }
 0x70a   : > { %3345 = vpow2.f32 %v1718_v58  ;;  %v1712_v60 = vsub.f32 %v1692_v11, %v1705_v59  ;;  %v990_v58 = vld [vmem:[%s3549_s29 + $0x8] sm:$0xf] }
 0x70b   : > { %v1841_v59 = vsel %vm1469_vm10, %v990_v58, 0 }
 0x70c   : > { %v3342_v61 = vpop.eup %3341  ;;  %v1720_v62 = vmul.f32 1.442695, %v1712_v60  ;;  %3162 = vmatpush3.bf16.msra.mxu1 %v1841_v59 }
 0x70d   : > { %v1708_v63 = vpop.xlane.xlu1 %1707  ;;  %v1753_v1 = vpop.permute.xlu0 %1752  ;;  %v1724_v3 = vsel %vm1086_vm6, %v3342_v61, 0.0  ;;  %3193 = vmatprep.subr.bf16.mxu1 %v3415_v26 }
 0x70e   : > { %v3344_v2 = vpop.eup %3343  ;;  %3347 = vpow2.f32 %v1720_v62  ;;  %v1713_v4 = vsub.f32 %v1693_v44, %v1708_v63  ;;  %1725 = vadd.xlane.f32.xlu0 %v1724_v3  ;;  %3144 = vmatpush3.bf16.msra.mxu0 %v1753_v1 }
 0x70f   : > { %v1727_v8 = vsel %vm1086_vm6, %v3344_v2, 0.0  ;;  %3145 = vmatprep.subr.bf16.mxu0 %v3415_v26 }
 0x710   : > { %v1722_v9 = vmul.f32 1.442695, %v1713_v4  ;;  %1728 = vadd.xlane.f32.xlu1 %v1727_v8 }
 0x711   : > { %v1755_v14 = vpop.permute.xlu1 %1754 }
 0x712   : > { %3349 = vpow2.f32 %v1722_v9  ;;  %3146 = vmatpush3.bf16.msra.mxu0 %v1755_v14 }
 0x713   : > { %3147 = vmatprep.subr.bf16.mxu0 %v3415_v26 }
 0x714   : > { %v3346_v15 = vpop.eup %3345 }
 0x715   : > { %v1757_v16 = vpop.permute.xlu1 %1756  ;;  %v1730_v17 = vsel %vm1086_vm6, %v3346_v15, 0.0 }
 0x716   : > { %v1770_v20 = vsel %vm1163_vm8, %v1757_v16, 0  ;;  %1731 = vadd.xlane.f32.xlu0 %v1730_v17 }
 0x717   : > { %3148 = vmatpush3.bf16.msra.mxu0 %v1770_v20 }
 0x718   : > { %v3348_v22 = vpop.eup %3347  ;;  %3175 = vmatprep.subr.bf16.mxu0 %v3415_v26 }
 0x719   : > { %v1733_v6 = vsel %vm1086_vm6, %v3348_v22, 0.0 }
 0x71a   : > { %1734 = vadd.xlane.f32.xlu1 %v1733_v6 }
 0x71c   : > { %v3350_v24 = vpop.eup %3349 }
 0x71d   : > { %v1736_v27 = vsel %vm1099_vm7, %v3350_v24, 0.0 }
 0x71e   : > { %1737 = vadd.xlane.f32.xlu1 %v1736_v27 }
 0x72c   : > { %1911 = vrot.lane.b32.xlu0 %v3691_v42, %s3425_s3 }
 0x72f   : > { %1913 = vrot.lane.b32.xlu1 %v3694_v49, %s3425_s3 }
 0x730   : > { %1915 = vrot.lane.b32.xlu0 %v3698_v54, %s3425_s3  ;;  %s4264_s3 = scalar_lea.vmem %s4225_s10, %s3526_s26 }
 0x733   : > { %1905 = vrot.lane.b32.xlu1 %v3691_v42, %s3426_s30 }
 0x734   : > { %1907 = vrot.lane.b32.xlu0 %v3694_v49, %s3426_s30 }
 0x737   : > { %1909 = vrot.lane.b32.xlu1 %v3698_v54, %s3426_s30 }
 0x79b   : > { %v1726_v29 = vpop.xlane.xlu0 %1725 }
 0x79c   : > { %3351 = vrcp.f32 %v1726_v29 }
 0x79d   : > { %v1729_v25 = vpop.xlane.xlu1 %1728 }
 0x79e   : > { %3353 = vrcp.f32 %v1729_v25 }
 0x7a3   : > { %v1732_v18 = vpop.xlane.xlu0 %1731 }
 0x7a4   : > { %3355 = vrcp.f32 %v1732_v18  ;;  %v3401_v18 = vld [vmem:[%s4260_s2] sm:$0xff] }
 0x7a6   : > { %v3352_v10 = vpop.eup %3351 }
 0x7a7   : > { %v1735_v21 = vpop.xlane.xlu1 %1734  ;;  %v1740_v31 = vmul.f32 %v3352_v10, %v3342_v61  ;;  %v1912_v32 = vpop.permute.xlu0 %1911 }
 0x7a8   : > { %v3354_v30 = vpop.eup %3353  ;;  %3357 = vrcp.f32 %v1735_v21  ;;  %v1927_v19 = vsel %vm1001_vm5, %v1912_v32, 0 }
 0x7a9   : > { %v1742_v33 = vmul.f32 %v3354_v30, %v3344_v2 }
 0x7ab   : > { %v1749_v34 = vpack.c.bf16 %v1742_v33, %v1740_v31  ;;  %v1738_v35 = vpop.xlane.xlu1 %1737  ;;  %v1916_v51 = vpop.permute.xlu0 %1915 }
 0x7ac   : > { %3359 = vrcp.f32 %v1738_v35  ;;  %v1933_v52 = vsel %vm1001_vm5, %v1916_v51, 0 }
 0x7ad   : > { %3150 = vmatmul.mubr.msk.bf16.vlgmr.msra.gmra.mrb[48].mxu0 %vm1086_vm6, %v1749_v34 }
 0x7ae   : > { %v3356_v11 = vpop.eup %3355  ;;  %3176 = vmatpush3.bf16.xpose.msra.mxu0 %v1927_v19  ;;  %3153 = vmatprep.mubr.msk.bf16.mxu0 %vm3416_vm4, %v3415_v26 }
 0x7af   : > { %3177 = vmatprep.subr.bf16.mxu0 %v3415_v26  ;;  %v1744_v36 = vmul.f32 %v3356_v11, %v3346_v15  ;;  %v1914_v40 = vpop.permute.xlu1 %1913  ;;  %v1908_v55 = vpop.permute.xlu0 %1907 }
 0x7b0   : > { %v1930_v45 = vsel %vm1001_vm5, %v1914_v40, 0 }
 0x7b1   : > { %v1904_v37 = vsel %vm1163_vm8, %v1740_v31, %v1744_v36 }
 0x7b2   : > { %v3358_v39 = vpop.eup %3357  ;;  %v2216_v41 = vrot.slane %v1904_v37, 4 }
 0x7b3   : > { %v1746_v43 = vmul.f32 %v3358_v39, %v3348_v22 }
 0x7b4   : > { %v3984_v44 = vsel %vm1469_vm10, %v3881_v38, %v2216_v41  ;;  %v1906_v38 = vpop.permute.xlu1 %1905 }
 0x7b5   : > { %v1750_v46 = vpack.c.bf16 %v1746_v43, %v1744_v36 }
 0x7b6   : > { %v3360_v47 = vpop.eup %3359  ;;  %3178 = vmatpush3.bf16.xpose.msra.mxu0 %v1930_v45 }
 0x7b7   : > { %3154 = vmatmul.mubr.msk.bf16.gmra.mrb[52].mxu0 %vm1086_vm6, %v1750_v46  ;;  %3179 = vmatprep.subr.bf16.mxu0 %v3415_v26  ;;  %v1748_v48 = vmul.f32 %v3360_v47, %v3350_v24 }
 0x7b8   : > { %3157 = vmatprep.mubr.msk.bf16.mxu0 %vm3416_vm4, %v3415_v26  ;;  %v1910_v56 = vpop.permute.xlu1 %1909 }
 0x7b9   : > { %v1751_v53 = vpack.c.bf16 %v1748_v48, %v1748_v48 }
 0x7be   : > { %3180 = vmatpush3.bf16.xpose.msra.mxu0 %v1933_v52 }
 0x7bf   : > { %3158 = vmatmul.mubr.msk.bf16.gmra.mrb[56].mxu0 %vm1086_vm6, %v1751_v53  ;;  %3211 = vmatprep.subr.bf16.mxu0 %v3415_v26 }
 0x7c0   : > { %3181 = vmatprep.mubr.msk.bf16.mxu0 %vm3416_vm4, %v3415_v26 }
 0x7c7   : > { %3182 = vmatmul.mubr.msk.bf16.vlgmr.msra.gmra.mrb[60].mxu0 %vm1001_vm5, %v1906_v38 }
 0x7c8   : > { %3185 = vmatprep.mubr.msk.bf16.mxu0 %vm3416_vm4, %v3415_v26 }
 0x7cf   : > { %3186 = vmatmul.mubr.msk.bf16.gmra.mrb[64].mxu0 %vm1001_vm5, %v1908_v55 }
 0x7d0   : > { %3189 = vmatprep.mubr.msk.bf16.mxu0 %vm3416_vm4, %v3415_v26 }
 0x7d7   : > { %3190 = vmatmul.mubr.msk.bf16.gmra.mrb[68].mxu0 %vm1001_vm5, %v1910_v56 }
 0x7d8   : > { %3213 = vmatprep.mubr.msk.bf16.mxu0 %vm3416_vm4, %v3415_v26 }
 0x880   : > { %v1806_v60 = vpop.f32.mrb[48].mxu0 }
 0x881   : > { %v3151_v61 = vpop.f32.mrb[49].mxu0 }
 0x882   : > { %v1809_v62 = vpop.f32.mrb[50].mxu0 }
 0x883   : > { %v1828_v63 = vpack.c.bf16 %v1809_v62, %v1806_v60  ;;  %v3152_v1 = vpop.f32.mrb[51].mxu0 }
 0x885   : > { %3164 = vmatmul.mubr.msk.bf16.vlgmr.msra.gmra.mrb[48].mxu1 %vm1001_vm5, %v1828_v63 }
 0x886   : > { %3167 = vmatprep.mubr.msk.bf16.mxu1 %vm3416_vm4, %v3415_v26 }
 0x88a   : > { %v1814_v3 = vpop.f32.mrb[52].mxu0 }
 0x88b   : > { %v3155_v2 = vpop.f32.mrb[53].mxu0 }
 0x88c   : > { %v1817_v4 = vpop.f32.mrb[54].mxu0 }
 0x88d   : > { %v1829_v8 = vpack.c.bf16 %v1817_v4, %v1814_v3  ;;  %v3156_v9 = vpop.f32.mrb[55].mxu0 }
 0x88f   : > { %3168 = vmatmul.mubr.msk.bf16.gmra.mrb[52].mxu1 %vm1001_vm5, %v1829_v8 }
 0x890   : > { %3171 = vmatprep.mubr.msk.bf16.mxu1 %vm3416_vm4, %v3415_v26 }
 0x892   : > { %v1822_v14 = vpop.f32.mrb[56].mxu0 }
 0x893   : > { %v3159_v15 = vpop.f32.mrb[57].mxu0  ;;  %v1830_v17 = vpack.c.bf16 %v1822_v14, %v1822_v14 }
 0x894   : > { %v1825_v16 = vpop.f32.mrb[58].mxu0 }
 0x895   : > { %v3160_v20 = vpop.f32.mrb[59].mxu0 }
 0x897   : > { %3172 = vmatmul.mubr.msk.bf16.gmra.mrb[56].mxu1 %vm1001_vm5, %v1830_v17 }
 0x898   : > { %3199 = vmatprep.mubr.msk.bf16.mxu1 %vm3416_vm4, %v3415_v26 }
 0x89a   : > { %v1969_v22 = vpop.f32.mrb[60].mxu0 }
 0x89b   : > { %v1991_v6 = vmul.f32 0.35355338, %v1969_v22  ;;  %v3183_v24 = vpop.f32.mrb[61].mxu0 }
 0x89c   : > { %v1972_v27 = vpop.f32.mrb[62].mxu0 }
 0x89d   : > { %v1992_v29 = vmul.f32 0.35355338, %v1972_v27  ;;  %v3184_v25 = vpop.f32.mrb[63].mxu0  ;;  %v1996_v10 = vadd.f32 %v3401_v18, %v1991_v6 }
 0x89f   : > { %v2001_v21 = vsel %vm1086_vm6, %v1996_v10, -inf  ;;  %v1997_v30 = vadd.f32 %v1992_v29, %v3747_v5 }
 0x8a0   : > { %2002 = vmax.xlane.f32.xlu0 %v2001_v21 }
 0x8a1   : > { %v2004_v31 = vsel %vm1086_vm6, %v1997_v30, -inf }
 0x8a2   : > { %2005 = vmax.xlane.f32.xlu1 %v2004_v31  ;;  %v1977_v33 = vpop.f32.mrb[64].mxu0 }
 0x8a3   : > { %v1993_v32 = vmul.f32 0.35355338, %v1977_v33  ;;  %v3187_v34 = vpop.f32.mrb[65].mxu0 }
 0x8a4   : > { %v1980_v35 = vpop.f32.mrb[66].mxu0  ;;  %v991_v34 = vld [vmem:[%s3549_s29 + $0xc] sm:$0xf] }
 0x8a5   : > { %v1994_v19 = vmul.f32 0.35355338, %v1980_v35  ;;  %v3188_v11 = vpop.f32.mrb[67].mxu0  ;;  %v1998_v36 = vadd.f32 %v1993_v32, %v3762_v23 }
 0x8a7   : > { %v2007_v37 = vsel %vm1086_vm6, %v1998_v36, -inf  ;;  %v1999_v39 = vadd.f32 %v1994_v19, %v3767_v28 }
 0x8a8   : > { %2008 = vmax.xlane.f32.xlu0 %v2007_v37 }
 0x8a9   : > { %v2010_v43 = vsel %vm1086_vm6, %v1999_v39, -inf }
 0x8aa   : > { %v1985_v40 = vpop.f32.mrb[68].mxu0 }
 0x8ab   : > { %v1995_v41 = vmul.f32 0.35355338, %v1985_v40  ;;  %v3191_v5 = vpop.f32.mrb[69].mxu0 }
 0x8ac   : > { %2011 = vmax.xlane.f32.xlu0 %v2010_v43  ;;  %v1988_v45 = vpop.f32.mrb[70].mxu0 }
 0x8ad   : > { %v3192_v46 = vpop.f32.mrb[71].mxu0  ;;  %v2000_v47 = vadd.f32 %v1995_v41, %v3777_v13 }
 0x8af   : > { %v2013_v48 = vsel %vm1099_vm7, %v2000_v47, -inf }
 0x8b0   : > { %2014 = vmax.xlane.f32.xlu0 %v2013_v48 }
 0x8b3   : > { %2059 = vrot.lane.b32.xlu1 %v3691_v42, %s3427_s23 }
 0x92d   : > { %v2003_v23 = vpop.xlane.xlu0 %2002 }
 0x92e   : > { %v2016_v28 = vsub.f32 %v1996_v10, %v2003_v23 }
 0x92f   : > { %v2006_v51 = vpop.xlane.xlu1 %2005 }
 0x930   : > { %v2021_v52 = vmul.f32 1.442695, %v2016_v28  ;;  %v2017_v53 = vsub.f32 %v1997_v30, %v2006_v51 }
 0x932   : > { %3361 = vpow2.f32 %v2021_v52  ;;  %v2023_v38 = vmul.f32 1.442695, %v2017_v53 }
 0x933   : > { %v2060_v55 = vpop.permute.xlu1 %2059 }
 0x934   : > { %3363 = vpow2.f32 %v2023_v38  ;;  %3194 = vmatpush3.bf16.msra.mxu1 %v2060_v55 }
 0x935   : > { %v2009_v56 = vpop.xlane.xlu0 %2008  ;;  %3195 = vmatprep.subr.bf16.mxu1 %v3415_v26 }
 0x936   : > { %v2018_v13 = vsub.f32 %v1998_v36, %v2009_v56 }
 0x938   : > { %v2025_v58 = vmul.f32 1.442695, %v2018_v13 }
 0x939   : > { %v2012_v59 = vpop.xlane.xlu0 %2011 }
 0x93a   : > { %3365 = vpow2.f32 %v2025_v58  ;;  %v2019_v60 = vsub.f32 %v1999_v39, %v2012_v59 }
 0x93c   : > { %v3362_v61 = vpop.eup %3361  ;;  %v2027_v42 = vmul.f32 1.442695, %v2019_v60 }
 0x93d   : > { %v2015_v62 = vpop.xlane.xlu0 %2014  ;;  %v2031_v63 = vsel %vm1086_vm6, %v3362_v61, 0.0 }
 0x93e   : > { %v3364_v1 = vpop.eup %3363  ;;  %3367 = vpow2.f32 %v2027_v42  ;;  %v2020_v3 = vsub.f32 %v2000_v47, %v2015_v62  ;;  %2032 = vadd.xlane.f32.xlu1 %v2031_v63 }
 0x93f   : > { %v2034_v2 = vsel %vm1086_vm6, %v3364_v1, 0.0 }
 0x940   : > { %v2029_v4 = vmul.f32 1.442695, %v2020_v3  ;;  %2035 = vadd.xlane.f32.xlu0 %v2034_v2 }
 0x942   : > { %3369 = vpow2.f32 %v2029_v4 }
 0x944   : > { %v3366_v8 = vpop.eup %3365 }
 0x945   : > { %v2037_v9 = vsel %vm1086_vm6, %v3366_v8, 0.0 }
 0x946   : > { %2038 = vadd.xlane.f32.xlu1 %v2037_v9 }
 0x948   : > { %v3368_v14 = vpop.eup %3367 }
 0x949   : > { %v2040_v15 = vsel %vm1086_vm6, %v3368_v14, 0.0 }
 0x94a   : > { %2041 = vadd.xlane.f32.xlu0 %v2040_v15 }
 0x94c   : > { %v4036_v16 = vpop.eup %3369 }
 0x94d   : > { %v2043_v17 = vsel %vm1099_vm7, %v4036_v16, 0.0 }
 0x94e   : > { %2044 = vadd.xlane.f32.xlu0 %v2043_v17  ;;  %v2904_v17 = vld [vmem:[%s4262_s0] ss:$0 sm:$0xff] }
 0x957   : > { %2063 = vrot.lane.b32.xlu1 %v3698_v54, %s3427_s23 }
 0x958   : > { %v1877_v20 = vpop.f32.mrb[48].mxu1 }
 0x959   : > { %v4043_v22 = vadd.f32 %v1877_v20, %v3938_v57  ;;  %v3165_v6 = vpop.f32.mrb[49].mxu1 }
 0x95a   : > { %v1880_v24 = vpop.f32.mrb[50].mxu1 }
 0x95b   : > { %v4046_v27 = vadd.f32 %v1880_v24, %v3940_v0  ;;  %v3166_v29 = vpop.f32.mrb[51].mxu1 }
 0x962   : > { %v1885_v25 = vpop.f32.mrb[52].mxu1 }
 0x963   : > { %v4049_v18 = vadd.f32 %v1885_v25, %v3942_v50  ;;  %v3169_v10 = vpop.f32.mrb[53].mxu1  ;;  %v2148_v50 = vsel %vm1469_vm10, %v991_v34, 0 }
 0x964   : > { %v1888_v21 = vpop.f32.mrb[54].mxu1  ;;  %2061 = vrot.lane.b32.xlu0 %v3694_v49, %s3427_s23  ;;  %3212 = vmatpush3.bf16.msra.mxu0 %v2148_v50 }
 0x965   : > { %v4054_v54 = vadd.f32 %v1888_v21, %v3944_v7  ;;  %v3170_v57 = vpop.f32.mrb[55].mxu1  ;;  %3241 = vmatprep.subr.bf16.mxu0 %v3415_v26  ;;  %v3402_v21 = vld [vmem:[#allocation2] sm:$0xff] }
 0x96a   : > { %v1893_v30 = vpop.f32.mrb[56].mxu1 }
 0x96b   : > { %v4057_v31 = vadd.f32 %v1893_v30, %v3946_v12  ;;  %v3173_v0 = vpop.f32.mrb[57].mxu1 }
 0x96c   : > { %v1896_v33 = vpop.f32.mrb[58].mxu1 }
 0x96d   : > { %v3174_v32 = vpop.f32.mrb[59].mxu1  ;;  %v3403_v33 = vld [vmem:[#allocation2 + $0x8] sm:$0xff] }
 0x9cb   : > { %v2033_v35 = vpop.xlane.xlu1 %2032 }
 0x9cc   : > { %3371 = vrcp.f32 %v2033_v35 }
 0x9cd   : > { %v2036_v19 = vpop.xlane.xlu0 %2035 }
 0x9ce   : > { %3373 = vrcp.f32 %v2036_v19 }
 0x9d3   : > { %v2039_v49 = vpop.xlane.xlu1 %2038 }
 0x9d4   : > { %3375 = vrcp.f32 %v2039_v49 }
 0x9d6   : > { %v3372_v36 = vpop.eup %3371 }
 0x9d7   : > { %v2042_v7 = vpop.xlane.xlu0 %2041  ;;  %v2047_v39 = vmul.f32 %v3372_v36, %v3362_v61  ;;  %v2064_v5 = vpop.permute.xlu1 %2063 }
 0x9d8   : > { %3377 = vrcp.f32 %v2042_v7  ;;  %v3374_v12 = vpop.eup %3373  ;;  %v2077_v47 = vsel %vm1163_vm8, %v2064_v5, 0 }
 0x9d9   : > { %v2049_v43 = vmul.f32 %v3374_v12, %v3364_v1 }
 0x9db   : > { %v2045_v11 = vpop.xlane.xlu0 %2044  ;;  %v2056_v23 = vpack.c.bf16 %v2049_v43, %v2047_v39  ;;  %v3405_v43 = vld [vmem:[#allocation2 + $0x18] sm:$0xff] }
 0x9dc   : > { %3379 = vrcp.f32 %v2045_v11 }
 0x9de   : > { %v3376_v37 = vpop.eup %3375 }
 0x9df   : > { %v2062_v40 = vpop.permute.xlu0 %2061  ;;  %v2051_v41 = vmul.f32 %v3376_v37, %v3366_v8 }
 0x9e0   : > { %3196 = vmatpush3.bf16.msra.mxu1 %v2062_v40 }
 0x9e1   : > { %3197 = vmatprep.subr.bf16.mxu1 %v3415_v26  ;;  %v2211_v45 = vsel %vm1163_vm8, %v2047_v39, %v2051_v41  ;;  %v3404_v39 = vld [vmem:[#allocation2 + $0x10] sm:$0xff] }
 0x9e2   : > { %v2219_v46 = vrot.slane %v2211_v45, 2  ;;  %v3378_v28 = vpop.eup %3377 }
 0x9e3   : > { %v2053_v51 = vmul.f32 %v3378_v28, %v3368_v14  ;;  %v2903_v14 = vld [vmem:[%s4261_s4] ss:$0 sm:$0xff]  ;;  %s4266_s4 = scalar_lea.vmem %s4230_s15, %s3526_s26 }
 0x9e4   : > { %3198 = vmatpush3.bf16.msra.mxu1 %v2077_v47  ;;  %v2225_v48 = vsel %vm2224_vm11, %v3984_v44, %v2219_v46 }
 0x9e5   : > { %2226 = vst.msk [vmem:[%s3595_s6] sm:$0xff] %vm1086_vm6, %v2225_v48  ;;  %3225 = vmatprep.subr.bf16.mxu1 %v3415_v26  ;;  %v2057_v52 = vpack.c.bf16 %v2053_v51, %v2051_v41 }
 0x9e6   : > { %v3380_v53 = vpop.eup %3379 }
 0x9e7   : > { %3200 = vmatmul.mubr.msk.bf16.vlgmr.msra.gmra.mrb[60].mxu1 %vm1086_vm6, %v2056_v23  ;;  %v2055_v44 = vmul.f32 %v3380_v53, %v4036_v16 }
 0x9e8   : > { %3203 = vmatprep.mubr.msk.bf16.mxu1 %vm3416_vm4, %v3415_v26 }
 0x9e9   : > { %v2058_v38 = vpack.c.bf16 %v2055_v44, %v2055_v44 }
 0x9ef   : > { %3204 = vmatmul.mubr.msk.bf16.gmra.mrb[64].mxu1 %vm1086_vm6, %v2057_v52 }
 0x9f0   : > { %3207 = vmatprep.mubr.msk.bf16.mxu1 %vm3416_vm4, %v3415_v26 }
 0x9f7   : > { %3208 = vmatmul.mubr.msk.bf16.gmra.mrb[68].mxu1 %vm1086_vm6, %v2058_v38 }
 0x9f8   : > { %3229 = vmatprep.mubr.msk.bf16.mxu1 %vm3416_vm4, %v3415_v26 }
 0xaba   : > { %v2113_v55 = vpop.f32.mrb[60].mxu1 }
 0xabb   : > { %v3201_v56 = vpop.f32.mrb[61].mxu1 }
 0xabc   : > { %v2116_v13 = vpop.f32.mrb[62].mxu1 }
 0xabd   : > { %v2135_v58 = vpack.c.bf16 %v2116_v13, %v2113_v55  ;;  %v3202_v59 = vpop.f32.mrb[63].mxu1  ;;  %v3406_v55 = vld [vmem:[#allocation2 + $0x20] sm:$0x3] }
 0xabf   : > { %3214 = vmatmul.mubr.msk.bf16.vlgmr.msra.gmra.mrb[72].mxu0 %vm1001_vm5, %v2135_v58 }
 0xac0   : > { %3217 = vmatprep.mubr.msk.bf16.mxu0 %vm3416_vm4, %v3415_v26 }
 0xac2   : > { %v2121_v60 = vpop.f32.mrb[64].mxu1 }
 0xac3   : > { %v3205_v61 = vpop.f32.mrb[65].mxu1 }
 0xac4   : > { %v2124_v42 = vpop.f32.mrb[66].mxu1  ;;  %v3285_v61 = vld [vmem:[%s3570_s28] sm:$0xff]  }
 0xac5   : > { %v2136_v62 = vpack.c.bf16 %v2124_v42, %v2121_v60  ;;  %v3206_v63 = vpop.f32.mrb[67].mxu1  ;;  %3226 = vmatpush3.bf16.msra.mxu1 %v3285_v61  ;;  %v3286_v42 = vld [vmem:[%s3570_s28 + $0x8] sm:$0xff]  }
 0xac6   : > { %3227 = vmatprep.subr.bf16.mxu1 %v3415_v26 }
 0xac7   : > { %3218 = vmatmul.mubr.msk.bf16.gmra.mrb[76].mxu0 %vm1001_vm5, %v2136_v62 }
 0xac8   : > { %3221 = vmatprep.mubr.msk.bf16.mxu0 %vm3416_vm4, %v3415_v26 }
 0xac9   : > { %3228 = vmatpush3.bf16.msra.mxu1 %v3286_v42 }
 0xaca   : > { %v2129_v1 = vpop.f32.mrb[68].mxu1 }
 0xacb   : > { %v3209_v3 = vpop.f32.mrb[69].mxu1  ;;  %v2137_v4 = vpack.c.bf16 %v2129_v1, %v2129_v1 }
 0xacc   : > { %v2132_v2 = vpop.f32.mrb[70].mxu1 }
 0xacd   : > { %v3210_v8 = vpop.f32.mrb[71].mxu1 }
 0xacf   : > { %3222 = vmatmul.mubr.msk.bf16.gmra.mrb[80].mxu0 %vm1001_vm5, %v2137_v4 }
 0xad0   : > { %3249 = vmatprep.mubr.msk.bf16.mxu0 %vm3416_vm4, %v3415_v26 }
 0xb92   : > { %v2184_v9 = vpop.f32.mrb[72].mxu0 }
 0xb93   : > { %v2206_v15 = vadd.f32 %v2184_v9, %v4043_v22  ;;  %v3215_v16 = vpop.f32.mrb[73].mxu0 }
 0xb94   : > { %v2187_v20 = vpop.f32.mrb[74].mxu0 }
 0xb95   : > { %v2235_v6 = vadd.f32 %v2903_v14, %v2206_v15  ;;  %v2207_v24 = vadd.f32 %v2187_v20, %v4046_v27  ;;  %v3216_v29 = vpop.f32.mrb[75].mxu0 }
 0xb97   : > { %v2246_v25 = vmul.f32 %v2904_v17, %v2235_v6  ;;  %v2236_v10 = vadd.f32 %v2903_v14, %v2207_v24 }
 0xb99   : > { %v4100_v57 = vadd.f32 %v3402_v21, %v2246_v25  ;;  %v2247_v30 = vmul.f32 %v2904_v17, %v2236_v10 }
 0xb9a   : > { %v2192_v0 = vpop.f32.mrb[76].mxu0 }
 0xb9b   : > { %v4102_v22 = vadd.f32 %v3403_v33, %v2247_v30  ;;  %v2208_v32 = vadd.f32 %v2192_v0, %v4049_v18  ;;  %v3219_v34 = vpop.f32.mrb[77].mxu0  ;;  %v2258_v50 = vsel %vm784_vm2, %v4100_v57, 0.0  ;;  %v2278_v27 = vmul.f32 %v4100_v57, %v4100_v57 }
 0xb9c   : > { %2259 = vadd.xlane.f32.xlu1 %v2258_v50  ;;  %v2195_v35 = vpop.f32.mrb[78].mxu0 }
 0xb9d   : > { %v2237_v19 = vadd.f32 %v2903_v14, %v2208_v32  ;;  %v2209_v49 = vadd.f32 %v2195_v35, %v4054_v54  ;;  %v3220_v7 = vpop.f32.mrb[79].mxu0  ;;  %v2261_v11 = vsel %vm784_vm2, %v4102_v22, 0.0  ;;  %v2279_v18 = vmul.f32 %v4102_v22, %v4102_v22 }
 0xb9e   : > { %2262 = vadd.xlane.f32.xlu0 %v2261_v11  ;;  %v2283_v37 = vsel %vm784_vm2, %v2278_v27, 0.0 }
 0xb9f   : > { %v2248_v36 = vmul.f32 %v2904_v17, %v2237_v19  ;;  %v2238_v12 = vadd.f32 %v2903_v14, %v2209_v49  ;;  %v2286_v5 = vsel %vm784_vm2, %v2279_v18, 0.0 }
 0xba0   : > { %2284 = vadd.xlane.f32.xlu1 %v2283_v37 }
 0xba1   : > { %v4115_v40 = vadd.f32 %v3404_v39, %v2248_v36  ;;  %v2249_v41 = vmul.f32 %v2904_v17, %v2238_v12 }
 0xba2   : > { %2287 = vadd.xlane.f32.xlu0 %v2286_v5  ;;  %v2200_v54 = vpop.f32.mrb[80].mxu0 }
 0xba3   : > { %v4118_v45 = vadd.f32 %v3405_v43, %v2249_v41  ;;  %v2210_v46 = vadd.f32 %v2200_v54, %v4057_v31  ;;  %v3223_v47 = vpop.f32.mrb[81].mxu0  ;;  %v2264_v48 = vsel %vm784_vm2, %v4115_v40, 0.0  ;;  %v2280_v23 = vmul.f32 %v4115_v40, %v4115_v40 }
 0xba4   : > { %2265 = vadd.xlane.f32.xlu1 %v2264_v48  ;;  %v2203_v28 = vpop.f32.mrb[82].mxu0 }
 0xba5   : > { %v2239_v51 = vadd.f32 %v2903_v14, %v2210_v46  ;;  %v3224_v52 = vpop.f32.mrb[83].mxu0  ;;  %v2267_v53 = vsel %vm784_vm2, %v4118_v45, 0.0  ;;  %v2281_v44 = vmul.f32 %v4118_v45, %v4118_v45  ;;  %v2289_v38 = vsel %vm784_vm2, %v2280_v23, 0.0  ;;  %v2905_v46 = vld [vmem:[%s4263_s27] ss:$0 sm:$0xff] }
 0xba6   : > { %2268 = vadd.xlane.f32.xlu0 %v2267_v53 }
 0xba7   : > { %v2250_v31 = vmul.f32 %v2904_v17, %v2239_v51  ;;  %v2292_v13 = vsel %vm784_vm2, %v2281_v44, 0.0  ;;  %v2906_v44 = vld [vmem:[%s4264_s3] ss:$0 sm:$0xff] }
 0xba8   : > { %2290 = vadd.xlane.f32.xlu1 %v2289_v38 }
 0xba9   : > { %v4130_v56 = vadd.f32 %v3406_v55, %v2250_v31 }
 0xbaa   : > { %2293 = vadd.xlane.f32.xlu0 %v2292_v13 }
 0xbab   : > { %v2270_v58 = vsel %vm797_vm3, %v4130_v56, 0.0  ;;  %v2282_v59 = vmul.f32 %v4130_v56, %v4130_v56 }
 0xbac   : > { %2271 = vadd.xlane.f32.xlu1 %v2270_v58 }
 0xbad   : > { %v2295_v60 = vsel %vm797_vm3, %v2282_v59, 0.0 }
 0xbae   : > { %2296 = vadd.xlane.f32.xlu0 %v2295_v60 }
 0xc29   : > { %v2260_v62 = vpop.xlane.xlu1 %2259 }
 0xc2a   : > { %v2273_v63 = vmul.f32 0.03125, %v2260_v62 }
 0xc2b   : > { %v2263_v1 = vpop.xlane.xlu0 %2262 }
 0xc2c   : > { %v2274_v3 = vmul.f32 0.03125, %v2263_v1  ;;  %v2303_v4 = vmul.f32 %v2273_v63, %v2273_v63  ;;  %v2318_v5 = vsub.f32 %v4100_v57, %v2273_v63 }
 0xc2d   : > { %v2285_v2 = vpop.xlane.xlu1 %2284 }
 0xc2e   : > { %v2298_v8 = vmul.f32 0.03125, %v2285_v2  ;;  %v2304_v14 = vmul.f32 %v2274_v3, %v2274_v3  ;;  %v2319_v47 = vsub.f32 %v4102_v22, %v2274_v3 }
 0xc2f   : > { %v2288_v9 = vpop.xlane.xlu0 %2287 }
 0xc30   : > { %v2308_v15 = vsub.f32 %v2298_v8, %v2303_v4  ;;  %v2299_v16 = vmul.f32 0.03125, %v2288_v9 }
 0xc31   : > { %v2266_v17 = vpop.xlane.xlu1 %2265 }
 0xc32   : > { %v2313_v20 = vmax.f32 %v2308_v15, 0.0  ;;  %v2309_v6 = vsub.f32 %v2299_v16, %v2304_v14  ;;  %v2275_v24 = vmul.f32 0.03125, %v2266_v17 }
 0xc33   : > { %v2269_v29 = vpop.xlane.xlu0 %2268 }
 0xc34   : > { %v2323_v25 = vadd.f32 1e-06, %v2313_v20  ;;  %v2314_v10 = vmax.f32 %v2309_v6, 0.0  ;;  %v2276_v21 = vmul.f32 0.03125, %v2269_v29  ;;  %v2305_v33 = vmul.f32 %v2275_v24, %v2275_v24  ;;  %v3287_v20 = vld [vmem:[%s3584_s21] sm:$0xff]   ;;  %v3288_v6 = vld [vmem:[%s3584_s21 + $0x8] sm:$0xff]  }
 0xc35   : > { %v2291_v30 = vpop.xlane.xlu1 %2290  ;;  %v2320_v13 = vsub.f32 %v4115_v40, %v2275_v24  ;;  %3242 = vmatpush3.bf16.msra.mxu0 %v3287_v20  ;;  %v3289_v24 = vld [vmem:[%s3584_s21 + $0x10] sm:$0xff]   ;;  %v3290_v29 = vld [vmem:[%s3584_s21 + $0x18] sm:$0xff]  }
 0xc36   : > { %3381 = vrsqrt.f32 %v2323_v25  ;;  %v2324_v0 = vadd.f32 1e-06, %v2314_v10  ;;  %v2300_v32 = vmul.f32 0.03125, %v2291_v30  ;;  %v2306_v50 = vmul.f32 %v2276_v21, %v2276_v21  ;;  %3243 = vmatprep.subr.bf16.mxu0 %v3415_v26  ;;  %v2907_v25 = vld [vmem:[%s4265_s22] ss:$0 sm:$0xff] }
 0xc37   : > { %v2294_v34 = vpop.xlane.xlu0 %2293  ;;  %v2321_v59 = vsub.f32 %v4118_v45, %v2276_v21 }
 0xc38   : > { %3383 = vrsqrt.f32 %v2324_v0  ;;  %v2310_v27 = vsub.f32 %v2300_v32, %v2305_v33  ;;  %v2301_v35 = vmul.f32 0.03125, %v2294_v34 }
 0xc39   : > { %v2272_v19 = vpop.xlane.xlu1 %2271  ;;  %3244 = vmatpush3.bf16.msra.mxu0 %v3288_v6 }
 0xc3a   : > { %v2315_v49 = vmax.f32 %v2310_v27, 0.0  ;;  %v2311_v7 = vsub.f32 %v2301_v35, %v2306_v50  ;;  %v2277_v11 = vmul.f32 0.03125, %v2272_v19  ;;  %3245 = vmatprep.subr.bf16.mxu0 %v3415_v26 }
 0xc3b   : > { %v2297_v18 = vpop.xlane.xlu0 %2296 }
 0xc3c   : > { %v2325_v36 = vadd.f32 1e-06, %v2315_v49  ;;  %v2316_v12 = vmax.f32 %v2311_v7, 0.0  ;;  %v2307_v37 = vmul.f32 %v2277_v11, %v2277_v11  ;;  %v2302_v39 = vmul.f32 0.03125, %v2297_v18 }
 0xc3d   : > { %v2322_v3 = vsub.f32 %v4130_v56, %v2277_v11  ;;  %3246 = vmatpush3.bf16.msra.mxu0 %v3289_v24 }
 0xc3e   : > { %3385 = vrsqrt.f32 %v2325_v36  ;;  %v2326_v41 = vadd.f32 1e-06, %v2316_v12  ;;  %v2312_v54 = vsub.f32 %v2302_v39, %v2307_v37  ;;  %3247 = vmatprep.subr.bf16.mxu0 %v3415_v26 }
 0xc40   : > { %v3382_v43 = vpop.eup %3381  ;;  %3387 = vrsqrt.f32 %v2326_v41  ;;  %v2317_v23 = vmax.f32 %v2312_v54, 0.0 }
 0xc41   : > { %v2333_v48 = vmul.f32 %v3382_v43, %v2318_v5  ;;  %3248 = vmatpush3.bf16.msra.mxu0 %v3290_v29 }
 0xc42   : > { %v3384_v28 = vpop.eup %3383  ;;  %v2327_v53 = vadd.f32 1e-06, %v2317_v23 }
 0xc43   : > { %v2344_v51 = vmul.f32 %v2905_v46, %v2333_v48  ;;  %v2334_v52 = vmul.f32 %v3384_v28, %v2319_v47 }
 0xc44   : > { %3389 = vrsqrt.f32 %v2327_v53 }
 0xc45   : > { %v2345_v31 = vmul.f32 %v2905_v46, %v2334_v52  ;;  %v2355_v38 = vadd.f32 %v2906_v44, %v2344_v51 }
 0xc47   : > { %v2356_v55 = vadd.f32 %v2906_v44, %v2345_v31 }
 0xc48   : > { %v3386_v58 = vpop.eup %3385 }
 0xc49   : > { %v2360_v60 = vpack.c.bf16 %v2356_v55, %v2355_v38  ;;  %v2335_v61 = vmul.f32 %v3386_v58, %v2320_v13 }
 0xc4a   : > { %v3388_v42 = vpop.eup %3387 }
 0xc4b   : > { %3230 = vmatmul.mubr.msk.bf16.vlgmr.msra.gmra.mrb[72].mxu1 %vm784_vm2, %v2360_v60  ;;  %v2336_v62 = vmul.f32 %v3388_v42, %v2321_v59  ;;  %v2346_v63 = vmul.f32 %v2905_v46, %v2335_v61 }
 0xc4c   : > { %3233 = vmatprep.mubr.msk.bf16.mxu1 %vm3416_vm4, %v3415_v26 }
 0xc4d   : > { %v2347_v1 = vmul.f32 %v2905_v46, %v2336_v62  ;;  %v2357_v4 = vadd.f32 %v2906_v44, %v2346_v63 }
 0xc4e   : > { %v3390_v2 = vpop.eup %3389 }
 0xc4f   : > { %v2358_v8 = vadd.f32 %v2906_v44, %v2347_v1  ;;  %v2337_v9 = vmul.f32 %v3390_v2, %v2322_v3 }
 0xc51   : > { %v2361_v14 = vpack.c.bf16 %v2358_v8, %v2357_v4  ;;  %v2348_v15 = vmul.f32 %v2905_v46, %v2337_v9 }
 0xc53   : > { %3234 = vmatmul.mubr.msk.bf16.gmra.mrb[76].mxu1 %vm784_vm2, %v2361_v14  ;;  %v2359_v16 = vadd.f32 %v2906_v44, %v2348_v15 }
 0xc54   : > { %3237 = vmatprep.mubr.msk.bf16.mxu1 %vm3416_vm4, %v3415_v26 }
 0xc55   : > { %v2362_v17 = vpack.c.bf16 %v2359_v16, %v2359_v16 }
 0xc5b   : > { %3238 = vmatmul.mubr.msk.bf16.gmra.mrb[80].mxu1 %vm784_vm2, %v2362_v17 }
 0xd1e   : > { %v2429_v10 = vpop.f32.mrb[72].mxu1 }
 0xd1f   : > { %v2430_v21 = vadd.f32 %v2907_v25, %v2429_v10  ;;  %v3231_v30 = vpop.f32.mrb[73].mxu1 }
 0xd20   : > { %v2432_v0 = vpop.f32.mrb[74].mxu1 }
 0xd21   : > { %v2451_v33 = vmul.f32 %v2430_v21, %v2430_v21  ;;  %v2433_v32 = vadd.f32 %v2907_v25, %v2432_v0  ;;  %v3232_v34 = vpop.f32.mrb[75].mxu1 }
 0xd23   : > { %v2456_v50 = vmul.f32 %v2451_v33, %v2430_v21  ;;  %v2452_v27 = vmul.f32 %v2433_v32, %v2433_v32 }
 0xd25   : > { %v2461_v35 = vmul.f32 0.044715, %v2456_v50  ;;  %v2457_v19 = vmul.f32 %v2452_v27, %v2433_v32  ;;  %v2913_v50 = vld [vmem:[%s747_s16] ss:$0 sm:$0xff] }
 0xd26   : > { %v2437_v49 = vpop.f32.mrb[76].mxu1 }
 0xd27   : > { %v2466_v7 = vadd.f32 %v2461_v35, %v2430_v21  ;;  %v2462_v11 = vmul.f32 0.044715, %v2457_v19  ;;  %v2438_v18 = vadd.f32 %v2907_v25, %v2437_v49  ;;  %v3235_v36 = vpop.f32.mrb[77].mxu1  ;;  %v2921_v35 = vld [vmem:[%s4266_s4] ss:$0 sm:$0xff] }
 0xd28   : > { %v2440_v12 = vpop.f32.mrb[78].mxu1 }
 0xd29   : > { %v2471_v37 = vmul.f32 0.7978846, %v2466_v7  ;;  %v2467_v39 = vadd.f32 %v2462_v11, %v2433_v32  ;;  %v2453_v41 = vmul.f32 %v2438_v18, %v2438_v18  ;;  %v2441_v5 = vadd.f32 %v2907_v25, %v2440_v12  ;;  %v3236_v54 = vpop.f32.mrb[79].mxu1 }
 0xd2b   : > { %3391 = vtanh.f32 %v2471_v37  ;;  %v2472_v43 = vmul.f32 0.7978846, %v2467_v39  ;;  %v2458_v46 = vmul.f32 %v2453_v41, %v2438_v18  ;;  %v2454_v47 = vmul.f32 %v2441_v5, %v2441_v5 }
 0xd2d   : > { %3393 = vtanh.f32 %v2472_v43  ;;  %v2463_v48 = vmul.f32 0.044715, %v2458_v46  ;;  %v2459_v23 = vmul.f32 %v2454_v47, %v2441_v5 }
 0xd2e   : > { %v2445_v28 = vpop.f32.mrb[80].mxu1 }
 0xd2f   : > { %v2468_v51 = vadd.f32 %v2463_v48, %v2438_v18  ;;  %v2464_v52 = vmul.f32 0.044715, %v2459_v23  ;;  %v2446_v53 = vadd.f32 %v2907_v25, %v2445_v28  ;;  %v3239_v44 = vpop.f32.mrb[81].mxu1 }
 0xd30   : > { %v2448_v31 = vpop.f32.mrb[82].mxu1 }
 0xd31   : > { %v2473_v38 = vmul.f32 0.7978846, %v2468_v51  ;;  %v2469_v55 = vadd.f32 %v2464_v52, %v2441_v5  ;;  %v2455_v13 = vmul.f32 %v2446_v53, %v2446_v53  ;;  %v3240_v58 = vpop.f32.mrb[83].mxu1 }
 0xd33   : > { %3395 = vtanh.f32 %v2473_v38  ;;  %v2474_v59 = vmul.f32 0.7978846, %v2469_v55  ;;  %v2460_v60 = vmul.f32 %v2455_v13, %v2446_v53 }
 0xd35   : > { %v3392_v61 = vpop.eup %3391  ;;  %3397 = vtanh.f32 %v2474_v59  ;;  %v2465_v42 = vmul.f32 0.044715, %v2460_v60 }
 0xd36   : > { %v2481_v62 = vadd.f32 1.0, %v3392_v61 }
 0xd37   : > { %v3394_v63 = vpop.eup %3393  ;;  %v2470_v1 = vadd.f32 %v2465_v42, %v2446_v53 }
 0xd38   : > { %v2486_v3 = vmul.f32 0.5, %v2481_v62  ;;  %v2482_v2 = vadd.f32 1.0, %v3394_v63 }
 0xd39   : > { %v2475_v4 = vmul.f32 0.7978846, %v2470_v1 }
 0xd3a   : > { %v2487_v8 = vmul.f32 0.5, %v2482_v2  ;;  %v2491_v9 = vmul.f32 %v2486_v3, %v2430_v21 }
 0xd3b   : > { %3399 = vtanh.f32 %v2475_v4 }
 0xd3c   : > { %v2492_v14 = vmul.f32 %v2487_v8, %v2433_v32 }
 0xd3d   : > { %v3396_v15 = vpop.eup %3395 }
 0xd3e   : > { %v2496_v16 = vpack.c.bf16 %v2492_v14, %v2491_v9  ;;  %v2483_v17 = vadd.f32 1.0, %v3396_v15 }
 0xd3f   : > { %v3398_v20 = vpop.eup %3397 }
 0xd40   : > { %v2488_v6 = vmul.f32 0.5, %v2483_v17  ;;  %v2484_v24 = vadd.f32 1.0, %v3398_v20  ;;  %3250 = vmatmul.mubr.msk.bf16.vlgmr.msra.gmra.mrb[84].mxu0 %vm2538_vm12, %v2496_v16 }
 0xd41   : > { %3253 = vmatprep.mubr.msk.bf16.mxu0 %vm3416_vm4, %v3415_v26 }
 0xd42   : > { %v2489_v29 = vmul.f32 0.5, %v2484_v24  ;;  %v2493_v25 = vmul.f32 %v2488_v6, %v2438_v18 }
 0xd44   : > { %v2494_v10 = vmul.f32 %v2489_v29, %v2441_v5 }
 0xd45   : > { %v3400_v30 = vpop.eup %3399 }
 0xd46   : > { %v2497_v21 = vpack.c.bf16 %v2494_v10, %v2493_v25  ;;  %v2485_v0 = vadd.f32 1.0, %v3400_v30 }
 0xd48   : > { %3254 = vmatmul.mubr.msk.bf16.gmra.mrb[88].mxu0 %vm2538_vm12, %v2497_v21  ;;  %v2490_v33 = vmul.f32 0.5, %v2485_v0 }
 0xd49   : > { %3257 = vmatprep.mubr.msk.bf16.mxu0 %vm3416_vm4, %v3415_v26 }
 0xd4a   : > { %v2495_v32 = vmul.f32 %v2490_v33, %v2446_v53 }
 0xd4c   : > { %v2498_v34 = vpack.c.bf16 %v2495_v32, %v2495_v32 }
 0xd50   : > { %3258 = vmatmul.mubr.msk.bf16.gmra.mrb[92].mxu0 %vm2538_vm12, %v2498_v34 }
 0xe13   : > { %v2582_v27 = vpop.f32.mrb[84].mxu0 }
 0xe14   : > { %v2583_v19 = vadd.f32 %v2913_v50, %v2582_v27  ;;  %v3251_v49 = vpop.f32.mrb[85].mxu0 }
 0xe15   : > { %v2585_v26 = vpop.f32.mrb[86].mxu0 }
 0xe16   : > { %v2611_v7 = vmul.f32 %v2921_v35, %v2583_v19  ;;  %v2586_v11 = vadd.f32 %v2913_v50, %v2585_v26  ;;  %v3252_v18 = vpop.f32.mrb[87].mxu0 }
 0xe18   : > { %v2616_v36 = vadd.f32 %v2611_v7, %v4100_v57  ;;  %v2612_v12 = vmul.f32 %v2921_v35, %v2586_v11 }
 0xe1a   : > { %2621 = vst.msk [vmem:[#allocation2] sm:$0xff] %vm784_vm2, %v2616_v36  ;;  %2626 = vst.msk [vmem:[%s3600_s18] sm:$0xff] %vm784_vm2, %v2616_v36  ;;  %v2617_v37 = vadd.f32 %v2612_v12, %v4102_v22 }
 0xe1b   : > { %v2590_v39 = vpop.f32.mrb[88].mxu0 }
 0xe1c   : > { %2622 = vst.msk [vmem:[#allocation2 + $0x8] sm:$0xff] %vm784_vm2, %v2617_v37  ;;  %2627 = vst.msk [vmem:[%s3600_s18 + $0x8] sm:$0xff] %vm784_vm2, %v2617_v37  ;;  %v2591_v41 = vadd.f32 %v2913_v50, %v2590_v39  ;;  %v3255_v5 = vpop.f32.mrb[89].mxu0 }
 0xe1d   : > { %v2593_v54 = vpop.f32.mrb[90].mxu0 }
 0xe1e   : > { %v2613_v43 = vmul.f32 %v2921_v35, %v2591_v41  ;;  %v2594_v46 = vadd.f32 %v2913_v50, %v2593_v54  ;;  %v3256_v57 = vpop.f32.mrb[91].mxu0 }
 0xe20   : > { %v2618_v47 = vadd.f32 %v2613_v43, %v4115_v40  ;;  %v2614_v48 = vmul.f32 %v2921_v35, %v2594_v46 }
 0xe22   : > { %2623 = vst.msk [vmem:[#allocation2 + $0x10] sm:$0xff] %vm784_vm2, %v2618_v47  ;;  %2628 = vst.msk [vmem:[%s3600_s18 + $0x10] sm:$0xff] %vm784_vm2, %v2618_v47  ;;  %v2619_v22 = vadd.f32 %v2614_v48, %v4118_v45 }
 0xe23   : > { %v2598_v23 = vpop.f32.mrb[92].mxu0 }
 0xe24   : > { %2624 = vst.msk [vmem:[#allocation2 + $0x18] sm:$0xff] %vm784_vm2, %v2619_v22  ;;  %2629 = vst.msk [vmem:[%s3600_s18 + $0x18] sm:$0xff] %vm784_vm2, %v2619_v22  ;;  %v2599_v28 = vadd.f32 %v2913_v50, %v2598_v23  ;;  %v3259_v51 = vpop.f32.mrb[93].mxu0 }
 0xe25   : > { %v2601_v52 = vpop.f32.mrb[94].mxu0 }
 0xe26   : > { %v2615_v53 = vmul.f32 %v2921_v35, %v2599_v28  ;;  %v3260_v44 = vpop.f32.mrb[95].mxu0 }
 0xe28   : > { %v2620_v31 = vadd.f32 %v2615_v53, %v4130_v56 }
 0xe2a   : > { %2625 = vst.msk [vmem:[#allocation2 + $0x20] sm:$0x3] %vm797_vm3, %v2620_v31  ;;  %2630 = vst.msk [vmem:[%s3600_s18 + $0x20] sm:$0x3] %vm797_vm3, %v2620_v31 }
 0xe2b PF: > { %s4267_s16 = sld [smem:[#allocation3_spill]] }
 0xe31   : > { %s28_s24 = sadd.s32 1, %s4267_s16  }
 0xe32   : > { %p25_p5 = scmp.ge.s32.totalorder %s28_s24, 5  }
 0xe34   :  { %27 = sbr.rel (!%p25_p5) target bundleno = 10 (0xa), region = 169 }

// kernel: ielt_encoder_forward.6
= control target key start
LH: loop header
LB: loop body
LE: loop exit
PB: predicated region body
PF: predicated region fallthrough
CT: control target
= control target key end

     0   :  { %vm68_vm0 = vcmask 261120   ;;  %vm70_vm1 = vcmask 259072   ;;  %v1495_v10 = vmov 0.0   ;;  %vm1496_vm2 = vmmov 0   ;;  %s1497_s21 = smov 88   ;;  %s1499_s22 = smov 120   ;;  %s1883_s0 = inlined_call_operand.vmem [shape: f32[14,32], index: 0, kind: input, shape index: {}]   ;;  %s1884_s4 = inlined_call_operand.vmem [shape: bf16[1,32,96], index: 4, kind: input, shape index: {}]   ;;  %s1885_s2 = inlined_call_operand.vmem [shape: f32[1,1,32], index: 2, kind: input, shape index: {}]   ;;  %s1886_s3 = inlined_call_operand.vmem [shape: f32[1,1,32], index: 3, kind: input, shape index: {}]   ;;  %s1887_s5 = inlined_call_operand.vmem [shape: f32[1,1,96], index: 5, kind: input, shape index: {}]   ;;  %s1888_s1 = inlined_call_operand.vmem [shape: f32[14,14], index: 1, kind: input, shape index: {}]   ;;  %s1889_s6 = inlined_call_operand.vmem [shape: bf16[1,4,8,32], index: 6, kind: input, shape index: {}]   ;;  %s1890_s19 = inlined_call_operand.vmem [shape: f32[1,8,14], index: 19, kind: output, shape index: {1}]   ;;  %s1891_s7 = inlined_call_operand.vmem [shape: f32[1,1,32], index: 7, kind: input, shape index: {}]   ;;  %s1892_s8 = inlined_call_operand.vmem [shape: f32[1,1,32], index: 8, kind: input, shape index: {}]   ;;  %s1893_s11 = inlined_call_operand.vmem [shape: bf16[1,32,64], index: 11, kind: input, shape index: {}]   ;;  %s1894_s9 = inlined_call_operand.vmem [shape: f32[1,1,32], index: 9, kind: input, shape index: {}]   ;;  %s1895_s10 = inlined_call_operand.vmem [shape: f32[1,1,32], index: 10, kind: input, shape index: {}]   ;;  %s1896_s13 = inlined_call_operand.vmem [shape: bf16[1,64,32], index: 13, kind: input, shape index: {}]   ;;  %s1897_s12 = inlined_call_operand.vmem [shape: f32[1,1,64], index: 12, kind: input, shape index: {}]   ;;  %s1898_s14 = inlined_call_operand.vmem [shape: f32[1,1,32], index: 14, kind: input, shape index: {}]   ;;  %s1899_s15 = inlined_call_operand.vmem [shape: f32[1,1,32], index: 15, kind: input, shape index: {}]   ;;  %s1900_s16 = inlined_call_operand.vmem [shape: f32[1,1,32], index: 16, kind: input, shape index: {}]   ;;  %s1901_s17 = inlined_call_operand.vmem [shape: f32[1,1,32], index: 17, kind: input, shape index: {}]   ;;  %s1902_s18 = inlined_call_operand.vmem [shape: f32[1,14,32], index: 18, kind: output, shape index: {0}]  }
   0x1   :  { %1905 = sst [smem:[#allocation3_spill]] %s1883_s0  ;;  %1326 = vmatprep.subr.bf16.mxu1 %v1495_v10  ;;  %1330 = vmatprep.mubr.msk.bf16.mxu1 %vm1496_vm2, %v1495_v10  ;;  %v1258_v42 = vld [vmem:[%s1887_s5] ss:$0 sm:$0xff]  ;;  %vm205_vm3 = vcmask 64512   ;;  %vm257_vm4 = vcmask 113664   ;;  %vm261_vm5 = vcmask 111616  }
   0x2   :  { %1906 = sst [smem:[#allocation4_spill]] %s1884_s4  ;;  %s1909_s20 = sld [smem:[#allocation3_spill]]  ;;  %1340 = vmatprep.subr.bf16.mxu0 %v1495_v10  ;;  %1342 = vmatprep.mubr.msk.bf16.mxu0 %vm1496_vm2, %v1495_v10  ;;  %v1677_v56 = vld [vmem:[%s1888_s1] sm:$0xff]  ;;  %v1682_v60 = vld [vmem:[%s1888_s1 + $0x8] sm:$0x3f]  ;;  %vm287_vm6 = vcmask 1046528  }
   0x3   :  { %1907 = sst [smem:[#allocation5_spill]] %s1885_s2  ;;  %s1910_s23 = sld [smem:[#allocation4_spill]]  ;;  %vm336_vm7 = vcmask 1040384   ;;  %vm936_vm8 = vcmask 1041408   ;;  %vm469_vm9 = vcmask 1043456   ;;  %vm939_vm10 = vcmask 1045504  }
   0x4   :  { %1908 = sst [smem:[#allocation6_spill]] %s1886_s3  ;;  %s1911_s27 = sld [smem:[#allocation5_spill]]  ;;  %vm1138_vm11 = vcmask 523264  }
   0x5   :  { %s1912_s0 = sld [smem:[#allocation6_spill]]  ;;  %s1498_s4 = smov 96  }
   0x6   :  { %s1500_s1 = smov 64   ;;  %s1501_s25 = smov 80  }
   0x7   :  { %s1502_s3 = smov 112   ;;  %s1503_s26 = smov 56  }
   0x8   :  { %v66_v0 = vld [vmem:[%s1909_s20] sm:$0xff]  ;;  %v67_v1 = vld [vmem:[%s1909_s20 + $0x8] sm:$0x3f]  ;;  %s1504_s30 = smov 48   ;;  %s1505_s20 = smov 104  }
   0x9   :  { %69 = vst.msk [vmem:[#allocation2] sm:$0xff] %vm68_vm0, %v66_v0  ;;  %v1439_v11 = vld [vmem:[%s1910_s23] sm:$0xff]   ;;  %v1440_v12 = vld [vmem:[%s1910_s23 + $0x8] sm:$0xff]   ;;  %s1507_s5 = smov 40  }
   0xa   :  { %71 = vst.msk [vmem:[#allocation2 + $0x8] sm:$0x3f] %vm70_vm1, %v67_v1  ;;  %1327 = vmatpush3.bf16.msra.mxu1 %v1439_v11  ;;  %v1256_v32 = vld [vmem:[%s1911_s27] ss:$0 sm:$0xff] }
   0xb   :  { %1328 = vmatprep.subr.bf16.mxu1 %v1495_v10  ;;  %v1257_v37 = vld [vmem:[%s1912_s0] ss:$0 sm:$0xff] }
   0xe   :  { %1329 = vmatpush3.bf16.msra.mxu1 %v1440_v12 }
   0xf   :  { %1334 = vmatprep.subr.bf16.mxu1 %v1495_v10 }
  0x10   :  { %v1616_v2 = vld [vmem:[#allocation2] sm:$0xff] }
  0x11   :  { %v1618_v3 = vld [vmem:[#allocation2 + $0x8] sm:$0x3f]  ;;  %v77_v4 = vsel %vm68_vm0, %v1616_v2, 0.0  ;;  %v87_v5 = vmul.f32 %v1616_v2, %v1616_v2 }
  0x12   :  { %v88_v6 = vmul.f32 %v1618_v3, %v1618_v3  ;;  %78 = vadd.xlane.f32.xlu0 %v77_v4  ;;  %v81_v8 = vsel %vm70_vm1, %v1618_v3, 0.0 }
  0x13   :  { %v89_v7 = vsel %vm68_vm0, %v87_v5, 0.0 }
  0x14   :  { %90 = vadd.xlane.f32.xlu1 %v89_v7  ;;  %v92_v9 = vsel %vm70_vm1, %v88_v6, 0.0 }
  0x16   :  { %82 = vadd.xlane.f32.xlu0 %v81_v8 }
  0x18   :  { %93 = vadd.xlane.f32.xlu1 %v92_v9 }
  0x9f   :  { %v79_v13 = vpop.xlane.xlu0 %78 }
  0xa0   :  { %v85_v14 = vmul.f32 0.03125, %v79_v13 }
  0xa1   :  { %v91_v15 = vpop.xlane.xlu1 %90 }
  0xa2   :  { %v97_v16 = vmul.f32 %v85_v14, %v85_v14  ;;  %v95_v17 = vmul.f32 0.03125, %v91_v15  ;;  %v103_v29 = vsub.f32 %v1616_v2, %v85_v14 }
  0xa3   :  { %v83_v18 = vpop.xlane.xlu0 %82 }
  0xa4   :  { %v99_v19 = vsub.f32 %v95_v17, %v97_v16  ;;  %v86_v20 = vmul.f32 0.03125, %v83_v18 }
  0xa5   :  { %v94_v21 = vpop.xlane.xlu1 %93 }
  0xa6   :  { %v101_v22 = vmax.f32 %v99_v19, 0.0  ;;  %v98_v23 = vmul.f32 %v86_v20, %v86_v20  ;;  %v96_v24 = vmul.f32 0.03125, %v94_v21  ;;  %v104_v33 = vsub.f32 %v1618_v3, %v86_v20 }
  0xa8   :  { %v105_v25 = vadd.f32 1e-06, %v101_v22  ;;  %v100_v26 = vsub.f32 %v96_v24, %v98_v23 }
  0xaa   :  { %1447 = vrsqrt.f32 %v105_v25  ;;  %v102_v27 = vmax.f32 %v100_v26, 0.0 }
  0xac   :  { %v106_v28 = vadd.f32 1e-06, %v102_v27 }
  0xae   :  { %1449 = vrsqrt.f32 %v106_v28 }
  0xb4   :  { %v1448_v30 = vpop.eup %1447 }
  0xb5   :  { %v109_v31 = vmul.f32 %v1448_v30, %v103_v29 }
  0xb7   :  { %v117_v36 = vmul.f32 %v1256_v32, %v109_v31 }
  0xb8   :  { %v1450_v34 = vpop.eup %1449 }
  0xb9   :  { %v110_v35 = vmul.f32 %v1450_v34, %v104_v33  ;;  %v125_v39 = vadd.f32 %v1257_v37, %v117_v36 }
  0xbb   :  { %v118_v38 = vmul.f32 %v1256_v32, %v110_v35 }
  0xbd   :  { %v126_v40 = vadd.f32 %v1257_v37, %v118_v38 }
  0xbf   :  { %v127_v41 = vpack.c.bf16 %v126_v40, %v125_v39 }
  0xc1   :  { %1331 = vmatmul.mubr.msk.bf16.vlgmr.msra.gmra.mrb[0].mxu1 %vm68_vm0, %v127_v41 }
  0xc2   :  { %1336 = vmatprep.mubr.msk.bf16.mxu1 %vm1496_vm2, %v1495_v10 }
 0x194   :  { %v188_v43 = vpop.f32.mrb[0].mxu1 }
 0x195   :  { %v1332_v44 = vpop.f32.mrb[1].mxu1  ;;  %v189_v46 = vadd.f32 %v1258_v42, %v188_v43 }
 0x196   :  { %v191_v45 = vpop.f32.mrb[2].mxu1 }
 0x197   :  { %v192_v47 = vadd.f32 %v1258_v42, %v191_v45  ;;  %v1333_v48 = vpop.f32.mrb[3].mxu1 }
 0x199   :  { %v1658_v49 = vpack.c.bf16 %v192_v47, %v189_v46 }
 0x19b   :  { %340 = vrot.lane.b32.xlu1 %v1658_v49, %s1497_s21  ;;  %203 = vrot.lane.b32.xlu0 %v1658_v49, %s1498_s4  ;;  %s1506_s21 = smov 72  }
 0x19f   :  { %338 = vrot.lane.b32.xlu1 %v1658_v49, %s1499_s22 }
 0x20d   :  { %v204_v50 = vpop.permute.xlu0 %203  ;;  %v341_v52 = vpop.permute.xlu1 %340 }
 0x20e   :  { %v210_v51 = vsel %vm205_vm3, %v204_v50, 0  ;;  %v346_v53 = vsel %vm205_vm3, %v341_v52, 0 }
 0x20f   :  { %1335 = vmatpush3.bf16.xpose.msra.mxu1 %v210_v51 }
 0x210   :  { %1346 = vmatprep.subr.bf16.mxu1 %v1495_v10 }
 0x211   :  { %v339_v54 = vpop.permute.xlu1 %338 }
 0x216   :  { %1337 = vmatmul.mubr.msk.bf16.vlgmr.msra.gmra.mrb[4].mxu1 %vm205_vm3, %v1658_v49 }
 0x217   :  { %1347 = vmatpush3.bf16.xpose.msra.mxu1 %v346_v53  ;;  %1348 = vmatprep.mubr.msk.bf16.mxu1 %vm1496_vm2, %v1495_v10 }
 0x218   :  { %1358 = vmatprep.subr.bf16.mxu1 %v1495_v10 }
 0x21e   :  { %1349 = vmatmul.mubr.msk.bf16.vlgmr.msra.gmra.mrb[8].mxu1 %vm205_vm3, %v339_v54 }
 0x21f   :  { %1360 = vmatprep.mubr.msk.bf16.mxu1 %vm1496_vm2, %v1495_v10 }
 0x2e9   :  { %v246_v55 = vpop.f32.mrb[4].mxu1 }
 0x2ea   :  { %v253_v57 = vmul.f32 0.35355338, %v246_v55  ;;  %v1338_v58 = vpop.f32.mrb[5].mxu1 }
 0x2eb   :  { %v249_v59 = vpop.f32.mrb[6].mxu1 }
 0x2ec   :  { %v254_v61 = vmul.f32 0.35355338, %v249_v59  ;;  %v1339_v62 = vpop.f32.mrb[7].mxu1  ;;  %v255_v63 = vadd.f32 %v253_v57, %v1677_v56 }
 0x2ee   :  { %v258_v0 = vsel %vm257_vm4, %v255_v63, -inf  ;;  %v256_v1 = vadd.f32 %v254_v61, %v1682_v60 }
 0x2ef   :  { %259 = vmax.xlane.f32.xlu1 %v258_v0 }
 0x2f0   :  { %v262_v4 = vsel %vm261_vm5, %v256_v1, -inf }
 0x2f1   :  { %263 = vmax.xlane.f32.xlu0 %v262_v4  ;;  %v382_v5 = vpop.f32.mrb[8].mxu1 }
 0x2f2   :  { %v389_v6 = vmul.f32 0.35355338, %v382_v5  ;;  %v1350_v7 = vpop.f32.mrb[9].mxu1 }
 0x2f3   :  { %v385_v8 = vpop.f32.mrb[10].mxu1 }
 0x2f4   :  { %v390_v9 = vmul.f32 0.35355338, %v385_v8  ;;  %v1351_v11 = vpop.f32.mrb[11].mxu1  ;;  %v391_v12 = vadd.f32 %v389_v6, %v1677_v56 }
 0x2f6   :  { %v393_v13 = vsel %vm257_vm4, %v391_v12, -inf  ;;  %v392_v14 = vadd.f32 %v390_v9, %v1682_v60 }
 0x2f7   :  { %394 = vmax.xlane.f32.xlu0 %v393_v13 }
 0x2f8   :  { %v396_v15 = vsel %vm261_vm5, %v392_v14, -inf }
 0x2fb   :  { %397 = vmax.xlane.f32.xlu0 %v396_v15 }
 0x37c   :  { %v260_v16 = vpop.xlane.xlu1 %259 }
 0x37d   :  { %v265_v17 = vsub.f32 %v255_v63, %v260_v16  ;;  %v198_v63 = vld [vmem:[%s1889_s6] sm:$0xf] }
 0x37e   :  { %v264_v18 = vpop.xlane.xlu0 %263  ;;  %v518_v0 = vsel %vm469_vm9, %v198_v63, 0 }
 0x37f   :  { %v267_v19 = vmul.f32 1.442695, %v265_v17  ;;  %v266_v20 = vsub.f32 %v256_v1, %v264_v18  ;;  %v199_v1 = vld [vmem:[%s1889_s6 + $0x4] sm:$0xf] }
 0x380   :  { %v471_v4 = vsel %vm469_vm9, %v199_v1, 0 }
 0x381   :  { %1451 = vpow2.f32 %v267_v19  ;;  %v269_v21 = vmul.f32 1.442695, %v266_v20  ;;  %1359 = vmatpush3.bf16.msra.mxu1 %v471_v4 }
 0x382   :  { %1370 = vmatprep.subr.bf16.mxu1 %v1495_v10 }
 0x383   :  { %1453 = vpow2.f32 %v269_v21 }
 0x384   :  { %v395_v22 = vpop.xlane.xlu0 %394 }
 0x385   :  { %v399_v23 = vsub.f32 %v391_v12, %v395_v22 }
 0x387   :  { %v401_v24 = vmul.f32 1.442695, %v399_v23 }
 0x388   :  { %v398_v25 = vpop.xlane.xlu0 %397 }
 0x389   :  { %1455 = vpow2.f32 %v401_v24  ;;  %v400_v26 = vsub.f32 %v392_v14, %v398_v25 }
 0x38b   :  { %v1452_v27 = vpop.eup %1451  ;;  %v403_v28 = vmul.f32 1.442695, %v400_v26 }
 0x38c   :  { %v271_v29 = vsel %vm257_vm4, %v1452_v27, 0.0 }
 0x38d   :  { %v1454_v30 = vpop.eup %1453  ;;  %1457 = vpow2.f32 %v403_v28  ;;  %272 = vadd.xlane.f32.xlu1 %v271_v29 }
 0x38e   :  { %v274_v31 = vsel %vm261_vm5, %v1454_v30, 0.0 }
 0x38f   :  { %275 = vadd.xlane.f32.xlu0 %v274_v31 }
 0x393   :  { %v1456_v32 = vpop.eup %1455 }
 0x394   :  { %v405_v33 = vsel %vm257_vm4, %v1456_v32, 0.0 }
 0x395   :  { %406 = vadd.xlane.f32.xlu1 %v405_v33 }
 0x397   :  { %v1458_v34 = vpop.eup %1457 }
 0x398   :  { %v408_v35 = vsel %vm261_vm5, %v1458_v34, 0.0 }
 0x399   :  { %409 = vadd.xlane.f32.xlu0 %v408_v35 }
 0x3a6   :  { %282 = vrot.lane.b32.xlu1 %v1658_v49, %s1500_s1 }
 0x3aa   :  { %567 = vrot.lane.b32.xlu1 %v1658_v49, %s1501_s25 }
 0x3ae   :  { %565 = vrot.lane.b32.xlu1 %v1658_v49, %s1502_s3 }
 0x3af   :  { %416 = vrot.lane.b32.xlu0 %v1658_v49, %s1503_s26 }
 0x41a   :  { %v273_v36 = vpop.xlane.xlu1 %272 }
 0x41b   :  { %1459 = vrcp.f32 %v273_v36 }
 0x41c   :  { %v276_v37 = vpop.xlane.xlu0 %275 }
 0x41d   :  { %1461 = vrcp.f32 %v276_v37 }
 0x422   :  { %v407_v38 = vpop.xlane.xlu1 %406 }
 0x423   :  { %1463 = vrcp.f32 %v407_v38 }
 0x425   :  { %v1460_v39 = vpop.eup %1459 }
 0x426   :  { %v283_v40 = vpop.permute.xlu1 %282  ;;  %v410_v41 = vpop.xlane.xlu0 %409  ;;  %v278_v44 = vmul.f32 %v1460_v39, %v1452_v27 }
 0x427   :  { %v1462_v42 = vpop.eup %1461  ;;  %1465 = vrcp.f32 %v410_v41  ;;  %v289_v43 = vsel %vm287_vm6, %v283_v40, 0 }
 0x428   :  { %1341 = vmatpush3.bf16.msra.mxu0 %v289_v43  ;;  %v280_v45 = vmul.f32 %v1462_v42, %v1454_v30  ;;  %v334_v52 = vrot.slane %v278_v44, 6 }
 0x429   :  { %1352 = vmatprep.subr.bf16.mxu0 %v1495_v10 }
 0x42a   :  { %v417_v46 = vpop.permute.xlu0 %416  ;;  %v281_v47 = vpack.c.bf16 %v280_v45, %v278_v44  ;;  %v337_v59 = vsel %vm336_vm7, %v278_v44, %v334_v52  ;;  %v568_v13 = vpop.permute.xlu1 %567 }
 0x42b   :  { %v422_v48 = vsel %vm287_vm6, %v417_v46, 0  ;;  %v573_v17 = vsel %vm205_vm3, %v568_v13, 0 }
 0x42c   :  { %1343 = vmatmul.mubr.msk.bf16.vlgmr.msra.gmra.mrb[0].mxu0 %vm257_vm4, %v281_v47 }
 0x42d   :  { %v1464_v50 = vpop.eup %1463  ;;  %1353 = vmatpush3.bf16.msra.mxu0 %v422_v48  ;;  %1354 = vmatprep.mubr.msk.bf16.mxu0 %vm1496_vm2, %v1495_v10 }
 0x42e   :  { %v412_v51 = vmul.f32 %v1464_v50, %v1456_v32  ;;  %1364 = vmatprep.subr.bf16.mxu0 %v1495_v10  ;;  %v566_v18 = vpop.permute.xlu1 %565 }
 0x430   :  { %v562_v53 = vrot.slane %v412_v51, 6 }
 0x431   :  { %v1466_v54 = vpop.eup %1465 }
 0x432   :  { %v564_v55 = vsel %vm336_vm7, %v412_v51, %v562_v53  ;;  %v414_v57 = vmul.f32 %v1466_v54, %v1458_v34 }
 0x433   :  { %v928_v58 = vrot.slane %v564_v55, 6 }
 0x434   :  { %v415_v61 = vpack.c.bf16 %v414_v57, %v412_v51 }
 0x435   :  { %v1709_v62 = vsel %vm936_vm8, %v337_v59, %v928_v58 }
 0x436   :  { %1355 = vmatmul.mubr.msk.bf16.vlgmr.msra.gmra.mrb[4].mxu0 %vm257_vm4, %v415_v61 }
 0x437   :  { %1366 = vmatprep.mubr.msk.bf16.mxu0 %vm1496_vm2, %v1495_v10  ;;  %1365 = vmatpush3.bf16.msra.mxu0 %v518_v0 }
 0x438   :  { %1376 = vmatprep.subr.bf16.mxu0 %v1495_v10 }
 0x4ff   :  { %v325_v5 = vpop.f32.mrb[0].mxu0 }
 0x500   :  { %v1344_v6 = vpop.f32.mrb[1].mxu0 }
 0x501   :  { %v328_v7 = vpop.f32.mrb[2].mxu0 }
 0x502   :  { %v332_v8 = vpack.c.bf16 %v328_v7, %v325_v5  ;;  %v1345_v9 = vpop.f32.mrb[3].mxu0 }
 0x504   :  { %1367 = vmatmul.mubr.msk.bf16.vlgmr.msra.gmra.mrb[8].mxu0 %vm205_vm3, %v332_v8 }
 0x505   :  { %1378 = vmatprep.mubr.msk.bf16.mxu0 %vm1496_vm2, %v1495_v10 }
 0x509   :  { %v458_v11 = vpop.f32.mrb[4].mxu0 }
 0x50a   :  { %v1356_v12 = vpop.f32.mrb[5].mxu0 }
 0x50b   :  { %v461_v14 = vpop.f32.mrb[6].mxu0 }
 0x50c   :  { %v465_v15 = vpack.c.bf16 %v461_v14, %v458_v11  ;;  %v1357_v16 = vpop.f32.mrb[7].mxu0 }
 0x50e   :  { %1361 = vmatmul.mubr.msk.bf16.vlgmr.msra.gmra.mrb[12].mxu1 %vm205_vm3, %v465_v15 }
 0x50f   :  { %1371 = vmatpush3.bf16.xpose.msra.mxu1 %v573_v17  ;;  %1372 = vmatprep.mubr.msk.bf16.mxu1 %vm1496_vm2, %v1495_v10 }
 0x510   :  { %1382 = vmatprep.subr.bf16.mxu1 %v1495_v10 }
 0x516   :  { %1373 = vmatmul.mubr.msk.bf16.vlgmr.msra.gmra.mrb[16].mxu1 %vm205_vm3, %v566_v18 }
 0x517   :  { %1384 = vmatprep.mubr.msk.bf16.mxu1 %vm1496_vm2, %v1495_v10 }
 0x5d7   :  { %v554_v19 = vpop.f32.mrb[8].mxu0 }
 0x5d8   :  { %v1368_v20 = vpop.f32.mrb[9].mxu0 }
 0x5d9   :  { %v557_v21 = vpop.f32.mrb[10].mxu0 }
 0x5da   :  { %v1369_v22 = vpop.f32.mrb[11].mxu0 }
 0x5e1   :  { %v507_v23 = vpop.f32.mrb[12].mxu1 }
 0x5e2   :  { %v1735_v24 = vadd.f32 %v554_v19, %v507_v23  ;;  %v1362_v25 = vpop.f32.mrb[13].mxu1 }
 0x5e3   :  { %v510_v26 = vpop.f32.mrb[14].mxu1 }
 0x5e4   :  { %v1737_v27 = vadd.f32 %v557_v21, %v510_v26  ;;  %v1363_v28 = vpop.f32.mrb[15].mxu1 }
 0x5e9   :  { %v609_v29 = vpop.f32.mrb[16].mxu1 }
 0x5ea   :  { %v616_v30 = vmul.f32 0.35355338, %v609_v29  ;;  %v1374_v31 = vpop.f32.mrb[17].mxu1 }
 0x5eb   :  { %v612_v32 = vpop.f32.mrb[18].mxu1 }
 0x5ec   :  { %v617_v33 = vmul.f32 0.35355338, %v612_v32  ;;  %v1375_v34 = vpop.f32.mrb[19].mxu1  ;;  %v618_v35 = vadd.f32 %v616_v30, %v1677_v56 }
 0x5ee   :  { %v620_v36 = vsel %vm257_vm4, %v618_v35, -inf  ;;  %v619_v37 = vadd.f32 %v617_v33, %v1682_v60 }
 0x5ef   :  { %621 = vmax.xlane.f32.xlu1 %v620_v36 }
 0x5f0   :  { %v623_v38 = vsel %vm261_vm5, %v619_v37, -inf }
 0x5f1   :  { %624 = vmax.xlane.f32.xlu0 %v623_v38 }
 0x600   :  { %643 = vrot.lane.b32.xlu1 %v1658_v49, %s1504_s30 }
 0x604   :  { %746 = vrot.lane.b32.xlu1 %v1658_v49, %s1505_s20 }
 0x67c   :  { %v622_v39 = vpop.xlane.xlu1 %621 }
 0x67d   :  { %v626_v40 = vsub.f32 %v618_v35, %v622_v39 }
 0x67e   :  { %v625_v41 = vpop.xlane.xlu0 %624 }
 0x67f   :  { %v628_v42 = vmul.f32 1.442695, %v626_v40  ;;  %v627_v43 = vsub.f32 %v619_v37, %v625_v41 }
 0x680   :  { %v644_v44 = vpop.permute.xlu1 %643 }
 0x681   :  { %1467 = vpow2.f32 %v628_v42  ;;  %v630_v45 = vmul.f32 1.442695, %v627_v43  ;;  %v649_v46 = vsel %vm287_vm6, %v644_v44, 0 }
 0x682   :  { %1377 = vmatpush3.bf16.msra.mxu0 %v649_v46 }
 0x683   :  { %1469 = vpow2.f32 %v630_v45  ;;  %1388 = vmatprep.subr.bf16.mxu0 %v1495_v10 }
 0x684   :  { %v747_v6 = vpop.permute.xlu1 %746 }
 0x68b   :  { %v1468_v47 = vpop.eup %1467 }
 0x68c   :  { %v632_v48 = vsel %vm257_vm4, %v1468_v47, 0.0 }
 0x68d   :  { %v1470_v50 = vpop.eup %1469  ;;  %633 = vadd.xlane.f32.xlu0 %v632_v48 }
 0x68e   :  { %v635_v51 = vsel %vm261_vm5, %v1470_v50, 0.0 }
 0x691   :  { %636 = vadd.xlane.f32.xlu0 %v635_v51 }
 0x6a7   :  { %748 = vrot.lane.b32.xlu0 %v1658_v49, %s1506_s21 }
 0x71a   :  { %v634_v52 = vpop.xlane.xlu0 %633 }
 0x71b   :  { %1471 = vrcp.f32 %v634_v52 }
 0x71e   :  { %v637_v53 = vpop.xlane.xlu0 %636 }
 0x71f   :  { %1473 = vrcp.f32 %v637_v53 }
 0x722   :  { %v749_v0 = vpop.permute.xlu0 %748 }
 0x723   :  { %v754_v5 = vsel %vm205_vm3, %v749_v0, 0 }
 0x725   :  { %v1472_v54 = vpop.eup %1471 }
 0x726   :  { %v639_v55 = vmul.f32 %v1472_v54, %v1468_v47 }
 0x728   :  { %v743_v57 = vrot.slane %v639_v55, 6 }
 0x729   :  { %v1474_v58 = vpop.eup %1473 }
 0x72a   :  { %v745_v59 = vsel %vm336_vm7, %v639_v55, %v743_v57  ;;  %v641_v61 = vmul.f32 %v1474_v58, %v1470_v50 }
 0x72b   :  { %v931_v63 = vrot.slane %v745_v59, 4 }
 0x72c   :  { %v642_v1 = vpack.c.bf16 %v641_v61, %v639_v55  ;;  %v1274_v61 = vld [vmem:[%s1891_s7] ss:$0 sm:$0xff] }
 0x72d   :  { %v1753_v4 = vsel %vm469_vm9, %v1709_v62, %v931_v63  ;;  %v200_v62 = vld [vmem:[%s1889_s6 + $0x8] sm:$0xf] }
 0x72e   :  { %1379 = vmatmul.mubr.msk.bf16.vlgmr.msra.gmra.mrb[12].mxu0 %vm257_vm4, %v642_v1  ;;  %v697_v7 = vsel %vm469_vm9, %v200_v62, 0  ;;  %v1275_v1 = vld [vmem:[%s1892_s8] ss:$0 sm:$0xff] }
 0x72f   :  { %1389 = vmatpush3.bf16.xpose.msra.mxu0 %v754_v5  ;;  %1390 = vmatprep.mubr.msk.bf16.mxu0 %vm1496_vm2, %v1495_v10 }
 0x730   :  { %1400 = vmatprep.subr.bf16.mxu0 %v1495_v10  ;;  %1383 = vmatpush3.bf16.msra.mxu1 %v697_v7 }
 0x731   :  { %1394 = vmatprep.subr.bf16.mxu1 %v1495_v10 }
 0x736   :  { %1391 = vmatmul.mubr.msk.bf16.vlgmr.msra.gmra.mrb[16].mxu0 %vm205_vm3, %v747_v6 }
 0x737   :  { %1402 = vmatprep.mubr.msk.bf16.mxu0 %vm1496_vm2, %v1495_v10 }
 0x801   :  { %v685_v8 = vpop.f32.mrb[12].mxu0 }
 0x802   :  { %v1380_v9 = vpop.f32.mrb[13].mxu0 }
 0x803   :  { %v688_v11 = vpop.f32.mrb[14].mxu0 }
 0x804   :  { %v692_v12 = vpack.c.bf16 %v688_v11, %v685_v8  ;;  %v1381_v13 = vpop.f32.mrb[15].mxu0 }
 0x806   :  { %1385 = vmatmul.mubr.msk.bf16.vlgmr.msra.gmra.mrb[20].mxu1 %vm205_vm3, %v692_v12 }
 0x807   :  { %1396 = vmatprep.mubr.msk.bf16.mxu1 %vm1496_vm2, %v1495_v10 }
 0x809   :  { %v790_v14 = vpop.f32.mrb[16].mxu0 }
 0x80a   :  { %v797_v15 = vmul.f32 0.35355338, %v790_v14  ;;  %v1392_v16 = vpop.f32.mrb[17].mxu0 }
 0x80b   :  { %v793_v17 = vpop.f32.mrb[18].mxu0 }
 0x80c   :  { %v798_v18 = vmul.f32 0.35355338, %v793_v17  ;;  %v1393_v19 = vpop.f32.mrb[19].mxu0  ;;  %v799_v20 = vadd.f32 %v797_v15, %v1677_v56  ;;  %v1441_v17 = vld [vmem:[%s1893_s11] sm:$0xff]  }
 0x80e   :  { %v801_v21 = vsel %vm257_vm4, %v799_v20, -inf  ;;  %v800_v22 = vadd.f32 %v798_v18, %v1682_v60  ;;  %v201_v60 = vld [vmem:[%s1889_s6 + $0xc] sm:$0xf] }
 0x80f   :  { %802 = vmax.xlane.f32.xlu1 %v801_v21  ;;  %v878_v35 = vsel %vm469_vm9, %v201_v60, 0  ;;  %v1442_v18 = vld [vmem:[%s1893_s11 + $0x8] sm:$0xff]  }
 0x810   :  { %v804_v23 = vsel %vm261_vm5, %v800_v22, -inf  ;;  %1401 = vmatpush3.bf16.msra.mxu0 %v878_v35 }
 0x811   :  { %805 = vmax.xlane.f32.xlu0 %v804_v23  ;;  %1414 = vmatprep.subr.bf16.mxu0 %v1495_v10 }
 0x89c   :  { %v803_v25 = vpop.xlane.xlu1 %802 }
 0x89d   :  { %v807_v26 = vsub.f32 %v799_v20, %v803_v25 }
 0x89e   :  { %v806_v28 = vpop.xlane.xlu0 %805 }
 0x89f   :  { %v809_v29 = vmul.f32 1.442695, %v807_v26  ;;  %v808_v30 = vsub.f32 %v800_v22, %v806_v28 }
 0x8a1   :  { %1475 = vpow2.f32 %v809_v29  ;;  %v811_v31 = vmul.f32 1.442695, %v808_v30 }
 0x8a3   :  { %1477 = vpow2.f32 %v811_v31 }
 0x8ab   :  { %v1476_v32 = vpop.eup %1475 }
 0x8ac   :  { %v813_v33 = vsel %vm257_vm4, %v1476_v32, 0.0 }
 0x8ad   :  { %v1478_v56 = vpop.eup %1477  ;;  %814 = vadd.xlane.f32.xlu0 %v813_v33 }
 0x8ae   :  { %v816_v34 = vsel %vm261_vm5, %v1478_v56, 0.0 }
 0x8af   :  { %817 = vadd.xlane.f32.xlu1 %v816_v34 }
 0x8c3   :  { %824 = vrot.lane.b32.xlu0 %v1658_v49, %s1507_s5 }
 0x8d9   :  { %v733_v36 = vpop.f32.mrb[20].mxu1 }
 0x8da   :  { %v740_v37 = vadd.f32 %v733_v36, %v1735_v24  ;;  %v1386_v38 = vpop.f32.mrb[21].mxu1 }
 0x8db   :  { %v736_v39 = vpop.f32.mrb[22].mxu1  ;;  %v1276_v38 = vld [vmem:[%s1894_s9] ss:$0 sm:$0xff] }
 0x8dc   :  { %v741_v40 = vadd.f32 %v736_v39, %v1737_v27  ;;  %v1387_v41 = vpop.f32.mrb[23].mxu1 }
 0x93a   :  { %v815_v42 = vpop.xlane.xlu0 %814 }
 0x93b   :  { %1479 = vrcp.f32 %v815_v42 }
 0x93c   :  { %v818_v49 = vpop.xlane.xlu1 %817 }
 0x93d   :  { %1481 = vrcp.f32 %v818_v49  ;;  %v1277_v49 = vld [vmem:[%s1895_s10] ss:$0 sm:$0xff] }
 0x93e   :  { %v825_v43 = vpop.permute.xlu0 %824 }
 0x93f   :  { %v830_v44 = vsel %vm287_vm6, %v825_v43, 0 }
 0x940   :  { %1395 = vmatpush3.bf16.msra.mxu1 %v830_v44 }
 0x941   :  { %1406 = vmatprep.subr.bf16.mxu1 %v1495_v10 }
 0x945   :  { %v1480_v45 = vpop.eup %1479 }
 0x946   :  { %v820_v46 = vmul.f32 %v1480_v45, %v1476_v32 }
 0x947   :  { %v1482_v47 = vpop.eup %1481 }
 0x948   :  { %v924_v48 = vrot.slane %v820_v46, 6  ;;  %v822_v24 = vmul.f32 %v1482_v47, %v1478_v56  ;;  %v1443_v47 = vld [vmem:[%s1896_s13] sm:$0xff]  }
 0x94a   :  { %v926_v50 = vsel %vm336_vm7, %v820_v46, %v924_v48  ;;  %v823_v27 = vpack.c.bf16 %v822_v24, %v820_v46  ;;  %v1444_v48 = vld [vmem:[%s1896_s13 + $0x8] sm:$0xff]   ;;  %v1445_v24 = vld [vmem:[%s1896_s13 + $0x10] sm:$0xff]  }
 0x94b   :  { %v934_v51 = vrot.slane %v926_v50, 2  ;;  %v1446_v50 = vld [vmem:[%s1896_s13 + $0x18] sm:$0xff]  }
 0x94c   :  { %1397 = vmatmul.mubr.msk.bf16.vlgmr.msra.gmra.mrb[24].mxu1 %vm257_vm4, %v823_v27  ;;  %v1278_v27 = vld [vmem:[%s1897_s12] ss:$0 sm:$0xff] }
 0x94d   :  { %v940_v52 = vsel %vm939_vm10, %v1753_v4, %v934_v51  ;;  %1410 = vmatprep.mubr.msk.bf16.mxu1 %vm1496_vm2, %v1495_v10  ;;  %1407 = vmatpush3.bf16.msra.mxu1 %v1441_v17 }
 0x94e   :  { %941 = vst.msk [vmem:[%s1890_s19] sm:$0xff] %vm257_vm4, %v940_v52  ;;  %1408 = vmatprep.subr.bf16.mxu1 %v1495_v10 }
 0x951   :  { %1409 = vmatpush3.bf16.msra.mxu1 %v1442_v18  ;;  %v1288_v18 = vld [vmem:[%s1899_s15] ss:$0 sm:$0xff] }
 0xa1f   :  { %v866_v53 = vpop.f32.mrb[24].mxu1 }
 0xa20   :  { %v1398_v54 = vpop.f32.mrb[25].mxu1 }
 0xa21   :  { %v869_v55 = vpop.f32.mrb[26].mxu1 }
 0xa22   :  { %v873_v57 = vpack.c.bf16 %v869_v55, %v866_v53  ;;  %v1399_v58 = vpop.f32.mrb[27].mxu1 }
 0xa24   :  { %1403 = vmatmul.mubr.msk.bf16.vlgmr.msra.gmra.mrb[20].mxu0 %vm205_vm3, %v873_v57 }
 0xa25   :  { %1422 = vmatprep.mubr.msk.bf16.mxu0 %vm1496_vm2, %v1495_v10  ;;  %1415 = vmatpush3.bf16.msra.mxu0 %v1443_v47 }
 0xa26   :  { %1416 = vmatprep.subr.bf16.mxu0 %v1495_v10 }
 0xa29   :  { %1417 = vmatpush3.bf16.msra.mxu0 %v1444_v48 }
 0xa2a   :  { %1418 = vmatprep.subr.bf16.mxu0 %v1495_v10 }
 0xa2d   :  { %1419 = vmatpush3.bf16.msra.mxu0 %v1445_v24  ;;  %v1289_v24 = vld [vmem:[%s1900_s16] ss:$0 sm:$0xff] }
 0xa2e   :  { %1420 = vmatprep.subr.bf16.mxu0 %v1495_v10 }
 0xa31   :  { %1421 = vmatpush3.bf16.msra.mxu0 %v1446_v50 }
 0xaf7   :  { %v914_v59 = vpop.f32.mrb[20].mxu0 }
 0xaf8   :  { %v921_v63 = vadd.f32 %v914_v59, %v740_v37  ;;  %v1404_v0 = vpop.f32.mrb[21].mxu0 }
 0xaf9   :  { %v917_v4 = vpop.f32.mrb[22].mxu0 }
 0xafa   :  { %v950_v5 = vadd.f32 %v1274_v61, %v921_v63  ;;  %v922_v6 = vadd.f32 %v917_v4, %v741_v40  ;;  %v1405_v62 = vpop.f32.mrb[23].mxu0 }
 0xafc   :  { %v958_v7 = vmul.f32 %v1275_v1, %v950_v5  ;;  %v951_v8 = vadd.f32 %v1274_v61, %v922_v6 }
 0xafe   :  { %v1806_v9 = vadd.f32 %v958_v7, %v1616_v2  ;;  %v959_v11 = vmul.f32 %v1275_v1, %v951_v8 }
 0xb00   :  { %v1809_v12 = vadd.f32 %v959_v11, %v1618_v3  ;;  %v964_v13 = vsel %vm68_vm0, %v1806_v9, 0.0  ;;  %v972_v15 = vmul.f32 %v1806_v9, %v1806_v9 }
 0xb01   :  { %965 = vadd.xlane.f32.xlu1 %v964_v13 }
 0xb02   :  { %v967_v14 = vsel %vm70_vm1, %v1809_v12, 0.0  ;;  %v974_v16 = vsel %vm68_vm0, %v972_v15, 0.0  ;;  %v973_v2 = vmul.f32 %v1809_v12, %v1809_v12 }
 0xb04   :  { %v977_v3 = vsel %vm70_vm1, %v973_v2, 0.0 }
 0xb05   :  { %968 = vadd.xlane.f32.xlu1 %v967_v14 }
 0xb09   :  { %975 = vadd.xlane.f32.xlu1 %v974_v16 }
 0xb0d   :  { %978 = vadd.xlane.f32.xlu1 %v977_v3  ;;  %v1282_v3 = vld [vmem:[%s1898_s14] ss:$0 sm:$0xff] }
 0xb8e   :  { %v966_v19 = vpop.xlane.xlu1 %965 }
 0xb8f   :  { %v970_v21 = vmul.f32 0.03125, %v966_v19 }
 0xb91   :  { %v982_v23 = vmul.f32 %v970_v21, %v970_v21  ;;  %v988_v35 = vsub.f32 %v1806_v9, %v970_v21 }
 0xb92   :  { %v969_v20 = vpop.xlane.xlu1 %968 }
 0xb93   :  { %v971_v25 = vmul.f32 0.03125, %v969_v20 }
 0xb95   :  { %v983_v30 = vmul.f32 %v971_v25, %v971_v25  ;;  %v989_v39 = vsub.f32 %v1809_v12, %v971_v25 }
 0xb96   :  { %v976_v22 = vpop.xlane.xlu1 %975 }
 0xb97   :  { %v980_v26 = vmul.f32 0.03125, %v976_v22 }
 0xb99   :  { %v984_v28 = vsub.f32 %v980_v26, %v982_v23 }
 0xb9a   :  { %v979_v29 = vpop.xlane.xlu1 %978 }
 0xb9b   :  { %v986_v31 = vmax.f32 %v984_v28, 0.0  ;;  %v981_v32 = vmul.f32 0.03125, %v979_v29 }
 0xb9d   :  { %v990_v33 = vadd.f32 1e-06, %v986_v31  ;;  %v985_v56 = vsub.f32 %v981_v32, %v983_v30 }
 0xb9f   :  { %1483 = vrsqrt.f32 %v990_v33  ;;  %v987_v34 = vmax.f32 %v985_v56, 0.0 }
 0xba1   :  { %v991_v60 = vadd.f32 1e-06, %v987_v34 }
 0xba3   :  { %1485 = vrsqrt.f32 %v991_v60 }
 0xba9   :  { %v1484_v36 = vpop.eup %1483 }
 0xbaa   :  { %v994_v37 = vmul.f32 %v1484_v36, %v988_v35 }
 0xbac   :  { %v1002_v42 = vmul.f32 %v1276_v38, %v994_v37 }
 0xbad   :  { %v1486_v40 = vpop.eup %1485 }
 0xbae   :  { %v995_v41 = vmul.f32 %v1486_v40, %v989_v39  ;;  %v1010_v44 = vadd.f32 %v1277_v49, %v1002_v42 }
 0xbb0   :  { %v1003_v43 = vmul.f32 %v1276_v38, %v995_v41 }
 0xbb2   :  { %v1011_v45 = vadd.f32 %v1277_v49, %v1003_v43 }
 0xbb4   :  { %v1012_v46 = vpack.c.bf16 %v1011_v45, %v1010_v44 }
 0xbb6   :  { %1411 = vmatmul.mubr.msk.bf16.vlgmr.msra.gmra.mrb[28].mxu1 %vm68_vm0, %v1012_v46 }
 0xc89   :  { %v1073_v51 = vpop.f32.mrb[28].mxu1 }
 0xc8a   :  { %v1074_v52 = vadd.f32 %v1278_v27, %v1073_v51  ;;  %v1412_v53 = vpop.f32.mrb[29].mxu1 }
 0xc8b   :  { %v1076_v54 = vpop.f32.mrb[30].mxu1 }
 0xc8c   :  { %v1080_v55 = vmul.f32 %v1074_v52, %v1074_v52  ;;  %v1077_v57 = vadd.f32 %v1278_v27, %v1076_v54  ;;  %v1413_v58 = vpop.f32.mrb[31].mxu1  ;;  %v1290_v27 = vld [vmem:[%s1901_s17] ss:$0 sm:$0xff] }
 0xc8e   :  { %v1082_v59 = vmul.f32 %v1080_v55, %v1074_v52  ;;  %v1081_v61 = vmul.f32 %v1077_v57, %v1077_v57 }
 0xc90   :  { %v1084_v63 = vmul.f32 0.044715, %v1082_v59  ;;  %v1083_v10 = vmul.f32 %v1081_v61, %v1077_v57 }
 0xc92   :  { %v1086_v0 = vadd.f32 %v1084_v63, %v1074_v52  ;;  %v1085_v1 = vmul.f32 0.044715, %v1083_v10 }
 0xc94   :  { %v1088_v4 = vmul.f32 0.7978846, %v1086_v0  ;;  %v1087_v5 = vadd.f32 %v1085_v1, %v1077_v57 }
 0xc96   :  { %1487 = vtanh.f32 %v1088_v4  ;;  %v1089_v6 = vmul.f32 0.7978846, %v1087_v5 }
 0xc98   :  { %1489 = vtanh.f32 %v1089_v6 }
 0xca0   :  { %v1488_v62 = vpop.eup %1487 }
 0xca1   :  { %v1092_v7 = vadd.f32 1.0, %v1488_v62 }
 0xca2   :  { %v1490_v8 = vpop.eup %1489 }
 0xca3   :  { %v1094_v11 = vmul.f32 0.5, %v1092_v7  ;;  %v1093_v13 = vadd.f32 1.0, %v1490_v8 }
 0xca5   :  { %v1095_v14 = vmul.f32 0.5, %v1093_v13  ;;  %v1096_v15 = vmul.f32 %v1094_v11, %v1074_v52 }
 0xca7   :  { %v1097_v16 = vmul.f32 %v1095_v14, %v1077_v57 }
 0xca9   :  { %v1098_v2 = vpack.c.bf16 %v1097_v16, %v1096_v15 }
 0xcab   :  { %1423 = vmatmul.mubr.msk.bf16.vlgmr.msra.gmra.mrb[24].mxu0 %vm1138_vm11, %v1098_v2 }
 0xd7e   :  { %v1176_v17 = vpop.f32.mrb[24].mxu0 }
 0xd7f   :  { %v1177_v19 = vadd.f32 %v1282_v3, %v1176_v17  ;;  %v1424_v20 = vpop.f32.mrb[25].mxu0 }
 0xd80   :  { %v1179_v21 = vpop.f32.mrb[26].mxu0 }
 0xd81   :  { %v1190_v22 = vmul.f32 %v1288_v18, %v1177_v19  ;;  %v1180_v23 = vadd.f32 %v1282_v3, %v1179_v21  ;;  %v1425_v25 = vpop.f32.mrb[27].mxu0 }
 0xd83   :  { %v1192_v26 = vadd.f32 %v1190_v22, %v1806_v9  ;;  %v1191_v28 = vmul.f32 %v1288_v18, %v1180_v23 }
 0xd85   :  { %v1193_v29 = vadd.f32 %v1191_v28, %v1809_v12  ;;  %v1196_v30 = vsel %vm68_vm0, %v1192_v26, 0.0  ;;  %v1204_v31 = vmul.f32 %v1192_v26, %v1192_v26 }
 0xd86   :  { %1197 = vadd.xlane.f32.xlu1 %v1196_v30 }
 0xd87   :  { %v1206_v32 = vsel %vm68_vm0, %v1204_v31, 0.0  ;;  %v1199_v33 = vsel %vm70_vm1, %v1193_v29, 0.0  ;;  %v1205_v56 = vmul.f32 %v1193_v29, %v1193_v29 }
 0xd88   :  { %1207 = vadd.xlane.f32.xlu0 %v1206_v32 }
 0xd89   :  { %v1209_v34 = vsel %vm70_vm1, %v1205_v56, 0.0 }
 0xd8a   :  { %1200 = vadd.xlane.f32.xlu1 %v1199_v33 }
 0xd8e   :  { %1210 = vadd.xlane.f32.xlu1 %v1209_v34 }
 0xe13   :  { %v1198_v60 = vpop.xlane.xlu1 %1197 }
 0xe14   :  { %v1202_v35 = vmul.f32 0.03125, %v1198_v60 }
 0xe15   :  { %v1208_v9 = vpop.xlane.xlu0 %1207 }
 0xe16   :  { %v1214_v36 = vmul.f32 %v1202_v35, %v1202_v35  ;;  %v1212_v37 = vmul.f32 0.03125, %v1208_v9  ;;  %v1220_v47 = vsub.f32 %v1192_v26, %v1202_v35 }
 0xe17   :  { %v1201_v12 = vpop.xlane.xlu1 %1200 }
 0xe18   :  { %v1216_v38 = vsub.f32 %v1212_v37, %v1214_v36  ;;  %v1203_v39 = vmul.f32 0.03125, %v1201_v12 }
 0xe1a   :  { %v1218_v40 = vmax.f32 %v1216_v38, 0.0  ;;  %v1215_v49 = vmul.f32 %v1203_v39, %v1203_v39  ;;  %v1221_v53 = vsub.f32 %v1193_v29, %v1203_v39 }
 0xe1b   :  { %v1211_v41 = vpop.xlane.xlu1 %1210 }
 0xe1c   :  { %v1222_v42 = vadd.f32 1e-06, %v1218_v40  ;;  %v1213_v43 = vmul.f32 0.03125, %v1211_v41 }
 0xe1e   :  { %1491 = vrsqrt.f32 %v1222_v42  ;;  %v1217_v44 = vsub.f32 %v1213_v43, %v1215_v49 }
 0xe20   :  { %v1219_v45 = vmax.f32 %v1217_v44, 0.0 }
 0xe22   :  { %v1223_v46 = vadd.f32 1e-06, %v1219_v45 }
 0xe24   :  { %1493 = vrsqrt.f32 %v1223_v46 }
 0xe28   :  { %v1492_v48 = vpop.eup %1491 }
 0xe29   :  { %v1226_v50 = vmul.f32 %v1492_v48, %v1220_v47 }
 0xe2b   :  { %v1234_v51 = vmul.f32 %v1289_v24, %v1226_v50 }
 0xe2d   :  { %v1242_v52 = vadd.f32 %v1290_v27, %v1234_v51 }
 0xe2e   :  { %v1494_v54 = vpop.eup %1493 }
 0xe2f   :  { %1244 = vst.msk [vmem:[#allocation2] sm:$0xff] %vm68_vm0, %v1242_v52  ;;  %1246 = vst.msk [vmem:[%s1902_s18] sm:$0xff] %vm68_vm0, %v1242_v52  ;;  %v1227_v55 = vmul.f32 %v1494_v54, %v1221_v53 }
 0xe31   :  { %v1235_v57 = vmul.f32 %v1289_v24, %v1227_v55 }
 0xe33   :  { %v1243_v58 = vadd.f32 %v1290_v27, %v1235_v57 }
 0xe35   :  { %1245 = vst.msk [vmem:[#allocation2 + $0x8] sm:$0x3f] %vm70_vm1, %v1243_v58  ;;  %1247 = vst.msk [vmem:[%s1902_s18 + $0x8] sm:$0x3f] %vm70_vm1, %v1243_v58 }

// kernel: ielt_encoder_forward.7
= control target key start
LH: loop header
LB: loop body
LE: loop exit
PB: predicated region body
PF: predicated region fallthrough
CT: control target
= control target key end

     0   :  { %s1929_s0 = inlined_call_operand.vmem [shape: f32[14,32], index: 0, kind: input, shape index: {}]   ;;  %s1930_s1 = inlined_call_operand.vmem [shape: f32[14,14], index: 1, kind: input, shape index: {}]   ;;  %s1931_s2 = inlined_call_operand.vmem [shape: f32[1,1,32], index: 2, kind: input, shape index: {}]   ;;  %s1932_s3 = inlined_call_operand.vmem [shape: f32[1,1,32], index: 3, kind: input, shape index: {}]   ;;  %s1933_s4 = inlined_call_operand.vmem [shape: bf16[1,32,96], index: 4, kind: input, shape index: {}]   ;;  %s1934_s5 = inlined_call_operand.vmem [shape: f32[1,1,96], index: 5, kind: input, shape index: {}]   ;;  %s1935_s6 = inlined_call_operand.vmem [shape: bf16[1,4,8,32], index: 6, kind: input, shape index: {}]   ;;  %s1936_s7 = inlined_call_operand.vmem [shape: f32[1,1,32], index: 7, kind: input, shape index: {}]   ;;  %s1937_s8 = inlined_call_operand.vmem [shape: f32[1,1,32], index: 8, kind: input, shape index: {}]   ;;  %s1938_s9 = inlined_call_operand.vmem [shape: f32[1,1,32], index: 9, kind: input, shape index: {}]   ;;  %s1939_s10 = inlined_call_operand.vmem [shape: f32[1,1,32], index: 10, kind: input, shape index: {}]   ;;  %s1940_s11 = inlined_call_operand.vmem [shape: bf16[1,32,64], index: 11, kind: input, shape index: {}]   ;;  %s1941_s12 = inlined_call_operand.vmem [shape: f32[1,1,64], index: 12, kind: input, shape index: {}]   ;;  %s1942_s13 = inlined_call_operand.vmem [shape: bf16[1,64,32], index: 13, kind: input, shape index: {}]   ;;  %s1943_s14 = inlined_call_operand.vmem [shape: f32[1,1,32], index: 14, kind: input, shape index: {}]   ;;  %s1944_s15 = inlined_call_operand.vmem [shape: f32[1,1,32], index: 15, kind: input, shape index: {}]   ;;  %s1945_s16 = inlined_call_operand.vmem [shape: f32[1,1,32], index: 16, kind: input, shape index: {}]   ;;  %s1946_s17 = inlined_call_operand.vmem [shape: f32[1,1,32], index: 17, kind: input, shape index: {}]   ;;  %s1947_s18 = inlined_call_operand.vmem [shape: f32[1,14,32], index: 18, kind: output, shape index: {0}]   ;;  %s1948_s19 = inlined_call_operand.hbm [shape: f32[1,8,14], index: 19, kind: output, shape index: {1}]  }
   0x1   :  { %1951 = sst [smem:[#allocation6_spill]] %s1929_s0 }
   0x2   :  { %1952 = sst [smem:[#allocation7_spill]] %s1930_s1 }
   0x3   :  { %1953 = sst [smem:[#allocation8_spill]] %s1931_s2 }
   0x4   :  { %1954 = sst [smem:[#allocation9_spill]] %s1932_s3 }
   0x5   :  { %s1955_s20 = sld [smem:[#allocation6_spill]]  ;;  %vm69_vm0 = vcmask 261120   ;;  %vm71_vm1 = vcmask 259072  }
   0xb   :  { %v67_v0 = vld [vmem:[%s1955_s20] sm:$0xff]  ;;  %v68_v1 = vld [vmem:[%s1955_s20 + $0x8] sm:$0x3f] }
   0xc   :  { %70 = vst.msk [vmem:[#allocation2] sm:$0xff] %vm69_vm0, %v67_v0 }
   0xd   :  { %72 = vst.msk [vmem:[#allocation2 + $0x8] sm:$0x3f] %vm71_vm1, %v68_v1 }
   0xe   :  { %25 = vsyncpa [#allocation4], 0  ;;  %v1451_v10 = vld [vmem:[%s1933_s4] sm:$0xff]   ;;  %v1531_v11 = vmov 0.0   ;;  %vm1532_vm2 = vmmov 0   ;;  %v1452_v12 = vld [vmem:[%s1933_s4 + $0x8] sm:$0xff]  }
   0xf   :  { %1337 = vmatprep.subr.bf16.mxu1 %v1531_v11  ;;  %1341 = vmatprep.mubr.msk.bf16.mxu1 %vm1532_vm2, %v1531_v11  ;;  %s1956_s3 = sld [smem:[#allocation8_spill]]  ;;  %s1957_s28 = sld [smem:[#allocation9_spill]]  ;;  %v1269_v42 = vld [vmem:[%s1934_s5] ss:$0 sm:$0xff]  ;;  %vm206_vm3 = vcmask 64512   ;;  %vm258_vm4 = vcmask 113664  }
  0x10   :  { %1338 = vmatpush3.bf16.msra.mxu1 %v1451_v10  ;;  %1351 = vmatprep.subr.bf16.mxu0 %v1531_v11  ;;  %s1533_s30 = smov 88   ;;  %s1534_s20 = smov 96   ;;  %vm262_vm5 = vcmask 111616   ;;  %vm288_vm6 = vcmask 1046528   ;;  %vm337_vm7 = vcmask 1040384   ;;  %vm937_vm8 = vcmask 1041408  }
  0x11   :  { %1339 = vmatprep.subr.bf16.mxu1 %v1531_v11  ;;  %1353 = vmatprep.mubr.msk.bf16.mxu0 %vm1532_vm2, %v1531_v11  ;;  %s1535_s21 = smov 120   ;;  %s1958_s22 = sld [smem:[#allocation7_spill]]  ;;  %vm470_vm9 = vcmask 1043456   ;;  %vm940_vm10 = vcmask 1045504   ;;  %vm1139_vm11 = vcmask 523264  }
  0x12   :  { %s1536_s24 = smov 64   ;;  %s1537_s4 = smov 80  }
  0x13   :  { %v1653_v2 = vld [vmem:[#allocation2] sm:$0xff]  ;;  %s1538_s25 = smov 112   ;;  %s1540_s0 = smov 48  }
  0x14   :  { %v1655_v3 = vld [vmem:[#allocation2 + $0x8] sm:$0x3f]  ;;  %v78_v4 = vsel %vm69_vm0, %v1653_v2, 0.0  ;;  %v88_v5 = vmul.f32 %v1653_v2, %v1653_v2  ;;  %1340 = vmatpush3.bf16.msra.mxu1 %v1452_v12  ;;  %s1543_s1 = smov 40  }
  0x15   :  { %v89_v6 = vmul.f32 %v1655_v3, %v1655_v3  ;;  %79 = vadd.xlane.f32.xlu0 %v78_v4  ;;  %v82_v8 = vsel %vm71_vm1, %v1655_v3, 0.0  ;;  %1345 = vmatprep.subr.bf16.mxu1 %v1531_v11  ;;  %v1267_v32 = vld [vmem:[%s1956_s3] ss:$0 sm:$0xff]  ;;  %s1539_s3 = smov 56  }
  0x16   :  { %v90_v7 = vsel %vm69_vm0, %v88_v5, 0.0  ;;  %v1268_v37 = vld [vmem:[%s1957_s28] ss:$0 sm:$0xff] }
  0x17   :  { %91 = vadd.xlane.f32.xlu1 %v90_v7  ;;  %v93_v9 = vsel %vm71_vm1, %v89_v6, 0.0  ;;  %v1714_v56 = vld [vmem:[%s1958_s22] sm:$0xff]  ;;  %v1719_v60 = vld [vmem:[%s1958_s22 + $0x8] sm:$0x3f] }
  0x19   :  { %83 = vadd.xlane.f32.xlu0 %v82_v8 }
  0x1b   :  { %94 = vadd.xlane.f32.xlu1 %v93_v9 }
  0xa2   :  { %v80_v13 = vpop.xlane.xlu0 %79 }
  0xa3   :  { %v86_v14 = vmul.f32 0.03125, %v80_v13 }
  0xa4   :  { %v92_v15 = vpop.xlane.xlu1 %91 }
  0xa5   :  { %v98_v16 = vmul.f32 %v86_v14, %v86_v14  ;;  %v96_v17 = vmul.f32 0.03125, %v92_v15  ;;  %v104_v29 = vsub.f32 %v1653_v2, %v86_v14 }
  0xa6   :  { %v84_v18 = vpop.xlane.xlu0 %83 }
  0xa7   :  { %v100_v19 = vsub.f32 %v96_v17, %v98_v16  ;;  %v87_v20 = vmul.f32 0.03125, %v84_v18 }
  0xa8   :  { %v95_v21 = vpop.xlane.xlu1 %94 }
  0xa9   :  { %v102_v22 = vmax.f32 %v100_v19, 0.0  ;;  %v99_v23 = vmul.f32 %v87_v20, %v87_v20  ;;  %v97_v24 = vmul.f32 0.03125, %v95_v21  ;;  %v105_v33 = vsub.f32 %v1655_v3, %v87_v20 }
  0xab   :  { %v106_v25 = vadd.f32 1e-06, %v102_v22  ;;  %v101_v26 = vsub.f32 %v97_v24, %v99_v23 }
  0xad   :  { %1459 = vrsqrt.f32 %v106_v25  ;;  %v103_v27 = vmax.f32 %v101_v26, 0.0 }
  0xaf   :  { %v107_v28 = vadd.f32 1e-06, %v103_v27 }
  0xb1   :  { %1461 = vrsqrt.f32 %v107_v28 }
  0xb7   :  { %v1460_v30 = vpop.eup %1459 }
  0xb8   :  { %v110_v31 = vmul.f32 %v1460_v30, %v104_v29 }
  0xba   :  { %v118_v36 = vmul.f32 %v1267_v32, %v110_v31 }
  0xbb   :  { %v1462_v34 = vpop.eup %1461 }
  0xbc   :  { %v111_v35 = vmul.f32 %v1462_v34, %v105_v33  ;;  %v126_v39 = vadd.f32 %v1268_v37, %v118_v36 }
  0xbe   :  { %v119_v38 = vmul.f32 %v1267_v32, %v111_v35 }
  0xc0   :  { %v127_v40 = vadd.f32 %v1268_v37, %v119_v38 }
  0xc2   :  { %v128_v41 = vpack.c.bf16 %v127_v40, %v126_v39 }
  0xc4   :  { %1342 = vmatmul.mubr.msk.bf16.vlgmr.msra.gmra.mrb[0].mxu1 %vm69_vm0, %v128_v41 }
  0xc5   :  { %1347 = vmatprep.mubr.msk.bf16.mxu1 %vm1532_vm2, %v1531_v11 }
 0x197   :  { %v189_v43 = vpop.f32.mrb[0].mxu1 }
 0x198   :  { %v1343_v44 = vpop.f32.mrb[1].mxu1  ;;  %v190_v46 = vadd.f32 %v1269_v42, %v189_v43 }
 0x199   :  { %v192_v45 = vpop.f32.mrb[2].mxu1 }
 0x19a   :  { %v193_v47 = vadd.f32 %v1269_v42, %v192_v45  ;;  %v1344_v48 = vpop.f32.mrb[3].mxu1 }
 0x19c   :  { %v1695_v49 = vpack.c.bf16 %v193_v47, %v190_v46 }
 0x19e   :  { %341 = vrot.lane.b32.xlu1 %v1695_v49, %s1533_s30  ;;  %204 = vrot.lane.b32.xlu0 %v1695_v49, %s1534_s20  ;;  %s1541_s30 = smov 104   ;;  %s1542_s20 = smov 72  }
 0x1a2   :  { %339 = vrot.lane.b32.xlu1 %v1695_v49, %s1535_s21 }
 0x210   :  { %v205_v50 = vpop.permute.xlu0 %204  ;;  %v342_v52 = vpop.permute.xlu1 %341 }
 0x211   :  { %v211_v51 = vsel %vm206_vm3, %v205_v50, 0  ;;  %v347_v53 = vsel %vm206_vm3, %v342_v52, 0 }
 0x212   :  { %1346 = vmatpush3.bf16.xpose.msra.mxu1 %v211_v51 }
 0x213   :  { %1357 = vmatprep.subr.bf16.mxu1 %v1531_v11 }
 0x214   :  { %v340_v54 = vpop.permute.xlu1 %339 }
 0x219   :  { %1348 = vmatmul.mubr.msk.bf16.vlgmr.msra.gmra.mrb[4].mxu1 %vm206_vm3, %v1695_v49 }
 0x21a   :  { %1358 = vmatpush3.bf16.xpose.msra.mxu1 %v347_v53  ;;  %1359 = vmatprep.mubr.msk.bf16.mxu1 %vm1532_vm2, %v1531_v11 }
 0x21b   :  { %1369 = vmatprep.subr.bf16.mxu1 %v1531_v11 }
 0x221   :  { %1360 = vmatmul.mubr.msk.bf16.vlgmr.msra.gmra.mrb[8].mxu1 %vm206_vm3, %v340_v54 }
 0x222   :  { %1371 = vmatprep.mubr.msk.bf16.mxu1 %vm1532_vm2, %v1531_v11 }
 0x2ec   :  { %v247_v55 = vpop.f32.mrb[4].mxu1 }
 0x2ed   :  { %v254_v57 = vmul.f32 0.35355338, %v247_v55  ;;  %v1349_v58 = vpop.f32.mrb[5].mxu1 }
 0x2ee   :  { %v250_v59 = vpop.f32.mrb[6].mxu1 }
 0x2ef   :  { %v255_v61 = vmul.f32 0.35355338, %v250_v59  ;;  %v1350_v62 = vpop.f32.mrb[7].mxu1  ;;  %v256_v63 = vadd.f32 %v254_v57, %v1714_v56 }
 0x2f1   :  { %v259_v0 = vsel %vm258_vm4, %v256_v63, -inf  ;;  %v257_v1 = vadd.f32 %v255_v61, %v1719_v60 }
 0x2f2   :  { %260 = vmax.xlane.f32.xlu1 %v259_v0 }
 0x2f3   :  { %v263_v4 = vsel %vm262_vm5, %v257_v1, -inf }
 0x2f4   :  { %264 = vmax.xlane.f32.xlu0 %v263_v4  ;;  %v383_v5 = vpop.f32.mrb[8].mxu1 }
 0x2f5   :  { %v390_v6 = vmul.f32 0.35355338, %v383_v5  ;;  %v1361_v7 = vpop.f32.mrb[9].mxu1 }
 0x2f6   :  { %v386_v8 = vpop.f32.mrb[10].mxu1 }
 0x2f7   :  { %v391_v9 = vmul.f32 0.35355338, %v386_v8  ;;  %v1362_v10 = vpop.f32.mrb[11].mxu1  ;;  %v392_v12 = vadd.f32 %v390_v6, %v1714_v56 }
 0x2f9   :  { %v394_v13 = vsel %vm258_vm4, %v392_v12, -inf  ;;  %v393_v14 = vadd.f32 %v391_v9, %v1719_v60 }
 0x2fa   :  { %395 = vmax.xlane.f32.xlu0 %v394_v13 }
 0x2fb   :  { %v397_v15 = vsel %vm262_vm5, %v393_v14, -inf }
 0x2fe   :  { %398 = vmax.xlane.f32.xlu0 %v397_v15 }
 0x37f   :  { %v261_v16 = vpop.xlane.xlu1 %260 }
 0x380   :  { %v266_v17 = vsub.f32 %v256_v63, %v261_v16  ;;  %v199_v63 = vld [vmem:[%s1935_s6] sm:$0xf] }
 0x381   :  { %v265_v18 = vpop.xlane.xlu0 %264  ;;  %v519_v0 = vsel %vm470_vm9, %v199_v63, 0 }
 0x382   :  { %v268_v19 = vmul.f32 1.442695, %v266_v17  ;;  %v267_v20 = vsub.f32 %v257_v1, %v265_v18  ;;  %v200_v1 = vld [vmem:[%s1935_s6 + $0x4] sm:$0xf] }
 0x383   :  { %v472_v4 = vsel %vm470_vm9, %v200_v1, 0 }
 0x384   :  { %1463 = vpow2.f32 %v268_v19  ;;  %v270_v21 = vmul.f32 1.442695, %v267_v20  ;;  %1370 = vmatpush3.bf16.msra.mxu1 %v472_v4 }
 0x385   :  { %1381 = vmatprep.subr.bf16.mxu1 %v1531_v11 }
 0x386   :  { %1465 = vpow2.f32 %v270_v21 }
 0x387   :  { %v396_v22 = vpop.xlane.xlu0 %395 }
 0x388   :  { %v400_v23 = vsub.f32 %v392_v12, %v396_v22 }
 0x38a   :  { %v402_v24 = vmul.f32 1.442695, %v400_v23 }
 0x38b   :  { %v399_v25 = vpop.xlane.xlu0 %398 }
 0x38c   :  { %1467 = vpow2.f32 %v402_v24  ;;  %v401_v26 = vsub.f32 %v393_v14, %v399_v25 }
 0x38e   :  { %v1464_v27 = vpop.eup %1463  ;;  %v404_v28 = vmul.f32 1.442695, %v401_v26 }
 0x38f   :  { %v272_v29 = vsel %vm258_vm4, %v1464_v27, 0.0 }
 0x390   :  { %v1466_v30 = vpop.eup %1465  ;;  %1469 = vpow2.f32 %v404_v28  ;;  %273 = vadd.xlane.f32.xlu1 %v272_v29 }
 0x391   :  { %v275_v31 = vsel %vm262_vm5, %v1466_v30, 0.0 }
 0x392   :  { %276 = vadd.xlane.f32.xlu0 %v275_v31 }
 0x396   :  { %v1468_v32 = vpop.eup %1467 }
 0x397   :  { %v406_v33 = vsel %vm258_vm4, %v1468_v32, 0.0 }
 0x398   :  { %407 = vadd.xlane.f32.xlu1 %v406_v33 }
 0x39a   :  { %v1470_v34 = vpop.eup %1469 }
 0x39b   :  { %v409_v35 = vsel %vm262_vm5, %v1470_v34, 0.0 }
 0x39c   :  { %410 = vadd.xlane.f32.xlu0 %v409_v35 }
 0x3a9   :  { %283 = vrot.lane.b32.xlu1 %v1695_v49, %s1536_s24 }
 0x3ad   :  { %568 = vrot.lane.b32.xlu1 %v1695_v49, %s1537_s4 }
 0x3b1   :  { %566 = vrot.lane.b32.xlu1 %v1695_v49, %s1538_s25 }
 0x3b2   :  { %417 = vrot.lane.b32.xlu0 %v1695_v49, %s1539_s3 }
 0x41d   :  { %v274_v36 = vpop.xlane.xlu1 %273 }
 0x41e   :  { %1471 = vrcp.f32 %v274_v36 }
 0x41f   :  { %v277_v37 = vpop.xlane.xlu0 %276 }
 0x420   :  { %1473 = vrcp.f32 %v277_v37 }
 0x425   :  { %v408_v38 = vpop.xlane.xlu1 %407 }
 0x426   :  { %1475 = vrcp.f32 %v408_v38 }
 0x428   :  { %v1472_v39 = vpop.eup %1471 }
 0x429   :  { %v284_v40 = vpop.permute.xlu1 %283  ;;  %v411_v41 = vpop.xlane.xlu0 %410  ;;  %v279_v44 = vmul.f32 %v1472_v39, %v1464_v27 }
 0x42a   :  { %v1474_v42 = vpop.eup %1473  ;;  %1477 = vrcp.f32 %v411_v41  ;;  %v290_v43 = vsel %vm288_vm6, %v284_v40, 0 }
 0x42b   :  { %1352 = vmatpush3.bf16.msra.mxu0 %v290_v43  ;;  %v281_v45 = vmul.f32 %v1474_v42, %v1466_v30  ;;  %v335_v53 = vrot.slane %v279_v44, 6 }
 0x42c   :  { %1363 = vmatprep.subr.bf16.mxu0 %v1531_v11 }
 0x42d   :  { %v418_v46 = vpop.permute.xlu0 %417  ;;  %v282_v47 = vpack.c.bf16 %v281_v45, %v279_v44  ;;  %v338_v61 = vsel %vm337_vm7, %v279_v44, %v335_v53  ;;  %v569_v13 = vpop.permute.xlu1 %568 }
 0x42e   :  { %v423_v48 = vsel %vm288_vm6, %v418_v46, 0  ;;  %v574_v17 = vsel %vm206_vm3, %v569_v13, 0 }
 0x42f   :  { %1354 = vmatmul.mubr.msk.bf16.vlgmr.msra.gmra.mrb[0].mxu0 %vm258_vm4, %v282_v47 }
 0x430   :  { %v1476_v50 = vpop.eup %1475  ;;  %1364 = vmatpush3.bf16.msra.mxu0 %v423_v48  ;;  %1365 = vmatprep.mubr.msk.bf16.mxu0 %vm1532_vm2, %v1531_v11 }
 0x431   :  { %v413_v51 = vmul.f32 %v1476_v50, %v1468_v32  ;;  %1375 = vmatprep.subr.bf16.mxu0 %v1531_v11  ;;  %v567_v18 = vpop.permute.xlu1 %566 }
 0x433   :  { %v563_v52 = vrot.slane %v413_v51, 6 }
 0x434   :  { %v1478_v54 = vpop.eup %1477 }
 0x435   :  { %v415_v55 = vmul.f32 %v1478_v54, %v1470_v34  ;;  %v565_v57 = vsel %vm337_vm7, %v413_v51, %v563_v52 }
 0x436   :  { %v929_v58 = vrot.slane %v565_v57, 6 }
 0x437   :  { %v416_v59 = vpack.c.bf16 %v415_v55, %v413_v51 }
 0x438   :  { %v1746_v62 = vsel %vm937_vm8, %v338_v61, %v929_v58 }
 0x439   :  { %1366 = vmatmul.mubr.msk.bf16.vlgmr.msra.gmra.mrb[4].mxu0 %vm258_vm4, %v416_v59 }
 0x43a   :  { %1377 = vmatprep.mubr.msk.bf16.mxu0 %vm1532_vm2, %v1531_v11  ;;  %1376 = vmatpush3.bf16.msra.mxu0 %v519_v0 }
 0x43b   :  { %1387 = vmatprep.subr.bf16.mxu0 %v1531_v11 }
 0x502   :  { %v326_v5 = vpop.f32.mrb[0].mxu0 }
 0x503   :  { %v1355_v6 = vpop.f32.mrb[1].mxu0 }
 0x504   :  { %v329_v7 = vpop.f32.mrb[2].mxu0 }
 0x505   :  { %v333_v8 = vpack.c.bf16 %v329_v7, %v326_v5  ;;  %v1356_v9 = vpop.f32.mrb[3].mxu0 }
 0x507   :  { %1378 = vmatmul.mubr.msk.bf16.vlgmr.msra.gmra.mrb[8].mxu0 %vm206_vm3, %v333_v8 }
 0x508   :  { %1389 = vmatprep.mubr.msk.bf16.mxu0 %vm1532_vm2, %v1531_v11 }
 0x50c   :  { %v459_v10 = vpop.f32.mrb[4].mxu0 }
 0x50d   :  { %v1367_v12 = vpop.f32.mrb[5].mxu0 }
 0x50e   :  { %v462_v14 = vpop.f32.mrb[6].mxu0 }
 0x50f   :  { %v466_v15 = vpack.c.bf16 %v462_v14, %v459_v10  ;;  %v1368_v16 = vpop.f32.mrb[7].mxu0 }
 0x511   :  { %1372 = vmatmul.mubr.msk.bf16.vlgmr.msra.gmra.mrb[12].mxu1 %vm206_vm3, %v466_v15 }
 0x512   :  { %1382 = vmatpush3.bf16.xpose.msra.mxu1 %v574_v17  ;;  %1383 = vmatprep.mubr.msk.bf16.mxu1 %vm1532_vm2, %v1531_v11 }
 0x513   :  { %1393 = vmatprep.subr.bf16.mxu1 %v1531_v11 }
 0x519   :  { %1384 = vmatmul.mubr.msk.bf16.vlgmr.msra.gmra.mrb[16].mxu1 %vm206_vm3, %v567_v18 }
 0x51a   :  { %1395 = vmatprep.mubr.msk.bf16.mxu1 %vm1532_vm2, %v1531_v11 }
 0x5da   :  { %v555_v19 = vpop.f32.mrb[8].mxu0 }
 0x5db   :  { %v1379_v20 = vpop.f32.mrb[9].mxu0 }
 0x5dc   :  { %v558_v21 = vpop.f32.mrb[10].mxu0 }
 0x5dd   :  { %v1380_v22 = vpop.f32.mrb[11].mxu0 }
 0x5e4   :  { %v508_v23 = vpop.f32.mrb[12].mxu1 }
 0x5e5   :  { %v1772_v24 = vadd.f32 %v555_v19, %v508_v23  ;;  %v1373_v25 = vpop.f32.mrb[13].mxu1 }
 0x5e6   :  { %v511_v26 = vpop.f32.mrb[14].mxu1 }
 0x5e7   :  { %v1774_v27 = vadd.f32 %v558_v21, %v511_v26  ;;  %v1374_v28 = vpop.f32.mrb[15].mxu1 }
 0x5ec   :  { %v610_v29 = vpop.f32.mrb[16].mxu1 }
 0x5ed   :  { %v617_v30 = vmul.f32 0.35355338, %v610_v29  ;;  %v1385_v31 = vpop.f32.mrb[17].mxu1 }
 0x5ee   :  { %v613_v32 = vpop.f32.mrb[18].mxu1 }
 0x5ef   :  { %v618_v33 = vmul.f32 0.35355338, %v613_v32  ;;  %v1386_v34 = vpop.f32.mrb[19].mxu1  ;;  %v619_v35 = vadd.f32 %v617_v30, %v1714_v56 }
 0x5f1   :  { %v621_v36 = vsel %vm258_vm4, %v619_v35, -inf  ;;  %v620_v37 = vadd.f32 %v618_v33, %v1719_v60 }
 0x5f2   :  { %622 = vmax.xlane.f32.xlu1 %v621_v36 }
 0x5f3   :  { %v624_v38 = vsel %vm262_vm5, %v620_v37, -inf }
 0x5f4   :  { %625 = vmax.xlane.f32.xlu0 %v624_v38 }
 0x603   :  { %644 = vrot.lane.b32.xlu1 %v1695_v49, %s1540_s0 }
 0x607   :  { %747 = vrot.lane.b32.xlu1 %v1695_v49, %s1541_s30 }
 0x67f   :  { %v623_v39 = vpop.xlane.xlu1 %622 }
 0x680   :  { %v627_v40 = vsub.f32 %v619_v35, %v623_v39 }
 0x681   :  { %v626_v41 = vpop.xlane.xlu0 %625 }
 0x682   :  { %v629_v42 = vmul.f32 1.442695, %v627_v40  ;;  %v628_v43 = vsub.f32 %v620_v37, %v626_v41 }
 0x683   :  { %v645_v44 = vpop.permute.xlu1 %644 }
 0x684   :  { %1479 = vpow2.f32 %v629_v42  ;;  %v631_v45 = vmul.f32 1.442695, %v628_v43  ;;  %v650_v46 = vsel %vm288_vm6, %v645_v44, 0 }
 0x685   :  { %1388 = vmatpush3.bf16.msra.mxu0 %v650_v46 }
 0x686   :  { %1481 = vpow2.f32 %v631_v45  ;;  %1399 = vmatprep.subr.bf16.mxu0 %v1531_v11 }
 0x687   :  { %v748_v6 = vpop.permute.xlu1 %747 }
 0x68e   :  { %v1480_v47 = vpop.eup %1479 }
 0x68f   :  { %v633_v48 = vsel %vm258_vm4, %v1480_v47, 0.0 }
 0x690   :  { %v1482_v50 = vpop.eup %1481  ;;  %634 = vadd.xlane.f32.xlu0 %v633_v48 }
 0x691   :  { %v636_v51 = vsel %vm262_vm5, %v1482_v50, 0.0 }
 0x694   :  { %637 = vadd.xlane.f32.xlu0 %v636_v51 }
 0x6aa   :  { %749 = vrot.lane.b32.xlu0 %v1695_v49, %s1542_s20 }
 0x71d   :  { %v635_v52 = vpop.xlane.xlu0 %634 }
 0x71e   :  { %1483 = vrcp.f32 %v635_v52 }
 0x721   :  { %v638_v53 = vpop.xlane.xlu0 %637 }
 0x722   :  { %1485 = vrcp.f32 %v638_v53 }
 0x725   :  { %v750_v63 = vpop.permute.xlu0 %749 }
 0x726   :  { %v755_v5 = vsel %vm206_vm3, %v750_v63, 0 }
 0x728   :  { %v1484_v54 = vpop.eup %1483 }
 0x729   :  { %v640_v55 = vmul.f32 %v1484_v54, %v1480_v47 }
 0x72b   :  { %v744_v57 = vrot.slane %v640_v55, 6 }
 0x72c   :  { %v1486_v58 = vpop.eup %1485 }
 0x72d   :  { %v642_v59 = vmul.f32 %v1486_v58, %v1482_v50  ;;  %v746_v61 = vsel %vm337_vm7, %v640_v55, %v744_v57 }
 0x72e   :  { %v932_v0 = vrot.slane %v746_v61, 4  ;;  %v1285_v61 = vld [vmem:[%s1936_s7] ss:$0 sm:$0xff] }
 0x72f   :  { %v643_v1 = vpack.c.bf16 %v642_v59, %v640_v55 }
 0x730   :  { %v1790_v4 = vsel %vm470_vm9, %v1746_v62, %v932_v0  ;;  %v201_v62 = vld [vmem:[%s1935_s6 + $0x8] sm:$0xf] }
 0x731   :  { %1390 = vmatmul.mubr.msk.bf16.vlgmr.msra.gmra.mrb[12].mxu0 %vm258_vm4, %v643_v1  ;;  %v698_v7 = vsel %vm470_vm9, %v201_v62, 0  ;;  %v1286_v1 = vld [vmem:[%s1937_s8] ss:$0 sm:$0xff] }
 0x732   :  { %1400 = vmatpush3.bf16.xpose.msra.mxu0 %v755_v5  ;;  %1401 = vmatprep.mubr.msk.bf16.mxu0 %vm1532_vm2, %v1531_v11 }
 0x733   :  { %1411 = vmatprep.subr.bf16.mxu0 %v1531_v11  ;;  %1394 = vmatpush3.bf16.msra.mxu1 %v698_v7 }
 0x734   :  { %1405 = vmatprep.subr.bf16.mxu1 %v1531_v11 }
 0x739   :  { %1402 = vmatmul.mubr.msk.bf16.vlgmr.msra.gmra.mrb[16].mxu0 %vm206_vm3, %v748_v6 }
 0x73a   :  { %1413 = vmatprep.mubr.msk.bf16.mxu0 %vm1532_vm2, %v1531_v11 }
 0x804   :  { %v686_v8 = vpop.f32.mrb[12].mxu0 }
 0x805   :  { %v1391_v9 = vpop.f32.mrb[13].mxu0 }
 0x806   :  { %v689_v10 = vpop.f32.mrb[14].mxu0 }
 0x807   :  { %v693_v12 = vpack.c.bf16 %v689_v10, %v686_v8  ;;  %v1392_v13 = vpop.f32.mrb[15].mxu0 }
 0x809   :  { %1396 = vmatmul.mubr.msk.bf16.vlgmr.msra.gmra.mrb[20].mxu1 %vm206_vm3, %v693_v12 }
 0x80a   :  { %1407 = vmatprep.mubr.msk.bf16.mxu1 %vm1532_vm2, %v1531_v11 }
 0x80c   :  { %v791_v14 = vpop.f32.mrb[16].mxu0 }
 0x80d   :  { %v798_v15 = vmul.f32 0.35355338, %v791_v14  ;;  %v1403_v16 = vpop.f32.mrb[17].mxu0 }
 0x80e   :  { %v794_v17 = vpop.f32.mrb[18].mxu0 }
 0x80f   :  { %v799_v18 = vmul.f32 0.35355338, %v794_v17  ;;  %v1404_v19 = vpop.f32.mrb[19].mxu0  ;;  %v800_v20 = vadd.f32 %v798_v15, %v1714_v56  ;;  %v1453_v17 = vld [vmem:[%s1940_s11] sm:$0xff]  }
 0x811   :  { %v802_v21 = vsel %vm258_vm4, %v800_v20, -inf  ;;  %v801_v22 = vadd.f32 %v799_v18, %v1719_v60  ;;  %v202_v60 = vld [vmem:[%s1935_s6 + $0xc] sm:$0xf] }
 0x812   :  { %803 = vmax.xlane.f32.xlu1 %v802_v21  ;;  %v879_v35 = vsel %vm470_vm9, %v202_v60, 0  ;;  %v1454_v18 = vld [vmem:[%s1940_s11 + $0x8] sm:$0xff]  }
 0x813   :  { %v805_v23 = vsel %vm262_vm5, %v801_v22, -inf  ;;  %1412 = vmatpush3.bf16.msra.mxu0 %v879_v35 }
 0x814   :  { %806 = vmax.xlane.f32.xlu0 %v805_v23  ;;  %1425 = vmatprep.subr.bf16.mxu0 %v1531_v11 }
 0x89f   :  { %v804_v25 = vpop.xlane.xlu1 %803 }
 0x8a0   :  { %v808_v26 = vsub.f32 %v800_v20, %v804_v25 }
 0x8a1   :  { %v807_v28 = vpop.xlane.xlu0 %806 }
 0x8a2   :  { %v810_v29 = vmul.f32 1.442695, %v808_v26  ;;  %v809_v30 = vsub.f32 %v801_v22, %v807_v28 }
 0x8a4   :  { %1487 = vpow2.f32 %v810_v29  ;;  %v812_v31 = vmul.f32 1.442695, %v809_v30 }
 0x8a6   :  { %1489 = vpow2.f32 %v812_v31 }
 0x8ae   :  { %v1488_v32 = vpop.eup %1487 }
 0x8af   :  { %v814_v33 = vsel %vm258_vm4, %v1488_v32, 0.0 }
 0x8b0   :  { %v1490_v56 = vpop.eup %1489  ;;  %815 = vadd.xlane.f32.xlu0 %v814_v33 }
 0x8b1   :  { %v817_v34 = vsel %vm262_vm5, %v1490_v56, 0.0 }
 0x8b2   :  { %818 = vadd.xlane.f32.xlu1 %v817_v34 }
 0x8c6   :  { %825 = vrot.lane.b32.xlu0 %v1695_v49, %s1543_s1 }
 0x8dc   :  { %v734_v36 = vpop.f32.mrb[20].mxu1 }
 0x8dd   :  { %v741_v37 = vadd.f32 %v734_v36, %v1772_v24  ;;  %v1397_v38 = vpop.f32.mrb[21].mxu1 }
 0x8de   :  { %v737_v39 = vpop.f32.mrb[22].mxu1  ;;  %v1287_v38 = vld [vmem:[%s1938_s9] ss:$0 sm:$0xff] }
 0x8df   :  { %v742_v40 = vadd.f32 %v737_v39, %v1774_v27  ;;  %v1398_v41 = vpop.f32.mrb[23].mxu1 }
 0x93d   :  { %v816_v42 = vpop.xlane.xlu0 %815 }
 0x93e   :  { %1491 = vrcp.f32 %v816_v42 }
 0x93f   :  { %v819_v49 = vpop.xlane.xlu1 %818 }
 0x940   :  { %1493 = vrcp.f32 %v819_v49  ;;  %v1288_v49 = vld [vmem:[%s1939_s10] ss:$0 sm:$0xff] }
 0x941   :  { %v826_v43 = vpop.permute.xlu0 %825 }
 0x942   :  { %v831_v44 = vsel %vm288_vm6, %v826_v43, 0 }
 0x943   :  { %1406 = vmatpush3.bf16.msra.mxu1 %v831_v44 }
 0x944   :  { %1417 = vmatprep.subr.bf16.mxu1 %v1531_v11 }
 0x948   :  { %v1492_v45 = vpop.eup %1491 }
 0x949   :  { %v821_v46 = vmul.f32 %v1492_v45, %v1488_v32 }
 0x94a   :  { %v1494_v47 = vpop.eup %1493 }
 0x94b   :  { %v823_v48 = vmul.f32 %v1494_v47, %v1490_v56  ;;  %v925_v24 = vrot.slane %v821_v46, 6  ;;  %v1455_v47 = vld [vmem:[%s1942_s13] sm:$0xff]  }
 0x94d   :  { %v824_v50 = vpack.c.bf16 %v823_v48, %v821_v46  ;;  %v927_v51 = vsel %vm337_vm7, %v821_v46, %v925_v24  ;;  %v1456_v48 = vld [vmem:[%s1942_s13 + $0x8] sm:$0xff]   ;;  %v1457_v24 = vld [vmem:[%s1942_s13 + $0x10] sm:$0xff]  }
 0x94e   :  { %v935_v27 = vrot.slane %v927_v51, 2  ;;  %v1289_v51 = vld [vmem:[%s1941_s12] ss:$0 sm:$0xff] }
 0x94f   :  { %1408 = vmatmul.mubr.msk.bf16.vlgmr.msra.gmra.mrb[24].mxu1 %vm258_vm4, %v824_v50  ;;  %v1458_v50 = vld [vmem:[%s1942_s13 + $0x18] sm:$0xff]  }
 0x950   :  { %1421 = vmatprep.mubr.msk.bf16.mxu1 %vm1532_vm2, %v1531_v11  ;;  %v941_v52 = vsel %vm940_vm10, %v1790_v4, %v935_v27  ;;  %1418 = vmatpush3.bf16.msra.mxu1 %v1453_v17 }
 0x951   :  { %942 = vst.msk [vmem:[#allocation3] sm:$0xff] %vm258_vm4, %v941_v52  ;;  %1419 = vmatprep.subr.bf16.mxu1 %v1531_v11 }
 0x954   :  { %1420 = vmatpush3.bf16.msra.mxu1 %v1454_v18  ;;  %v1299_v18 = vld [vmem:[%s1944_s15] ss:$0 sm:$0xff] }
 0xa22   :  { %v867_v53 = vpop.f32.mrb[24].mxu1 }
 0xa23   :  { %v1409_v54 = vpop.f32.mrb[25].mxu1 }
 0xa24   :  { %v870_v55 = vpop.f32.mrb[26].mxu1 }
 0xa25   :  { %v874_v57 = vpack.c.bf16 %v870_v55, %v867_v53  ;;  %v1410_v58 = vpop.f32.mrb[27].mxu1 }
 0xa27   :  { %1414 = vmatmul.mubr.msk.bf16.vlgmr.msra.gmra.mrb[20].mxu0 %vm206_vm3, %v874_v57 }
 0xa28   :  { %1433 = vmatprep.mubr.msk.bf16.mxu0 %vm1532_vm2, %v1531_v11  ;;  %1426 = vmatpush3.bf16.msra.mxu0 %v1455_v47 }
 0xa29   :  { %1427 = vmatprep.subr.bf16.mxu0 %v1531_v11 }
 0xa2c   :  { %1428 = vmatpush3.bf16.msra.mxu0 %v1456_v48 }
 0xa2d   :  { %1429 = vmatprep.subr.bf16.mxu0 %v1531_v11 }
 0xa30   :  { %1430 = vmatpush3.bf16.msra.mxu0 %v1457_v24 }
 0xa31   :  { %1431 = vmatprep.subr.bf16.mxu0 %v1531_v11 }
 0xa34   :  { %1432 = vmatpush3.bf16.msra.mxu0 %v1458_v50 }
 0xafa   :  { %v915_v59 = vpop.f32.mrb[20].mxu0 }
 0xafb   :  { %v922_v63 = vadd.f32 %v915_v59, %v741_v37  ;;  %v1415_v0 = vpop.f32.mrb[21].mxu0 }
 0xafc   :  { %v918_v4 = vpop.f32.mrb[22].mxu0 }
 0xafd   :  { %v951_v5 = vadd.f32 %v1285_v61, %v922_v63  ;;  %v923_v6 = vadd.f32 %v918_v4, %v742_v40  ;;  %v1416_v62 = vpop.f32.mrb[23].mxu0 }
 0xaff   :  { %v959_v7 = vmul.f32 %v1286_v1, %v951_v5  ;;  %v952_v8 = vadd.f32 %v1285_v61, %v923_v6 }
 0xb01   :  { %v1840_v9 = vadd.f32 %v959_v7, %v1653_v2  ;;  %v960_v10 = vmul.f32 %v1286_v1, %v952_v8 }
 0xb03   :  { %v1843_v12 = vadd.f32 %v960_v10, %v1655_v3  ;;  %v965_v13 = vsel %vm69_vm0, %v1840_v9, 0.0  ;;  %v973_v15 = vmul.f32 %v1840_v9, %v1840_v9 }
 0xb04   :  { %966 = vadd.xlane.f32.xlu1 %v965_v13 }
 0xb05   :  { %v968_v14 = vsel %vm71_vm1, %v1843_v12, 0.0  ;;  %v975_v16 = vsel %vm69_vm0, %v973_v15, 0.0  ;;  %v974_v2 = vmul.f32 %v1843_v12, %v1843_v12 }
 0xb07   :  { %v978_v3 = vsel %vm71_vm1, %v974_v2, 0.0 }
 0xb08   :  { %969 = vadd.xlane.f32.xlu1 %v968_v14 }
 0xb0c   :  { %976 = vadd.xlane.f32.xlu1 %v975_v16 }
 0xb10   :  { %979 = vadd.xlane.f32.xlu1 %v978_v3  ;;  %v1293_v3 = vld [vmem:[%s1943_s14] ss:$0 sm:$0xff]  ;;  %s1544_s14 = smov [#allocation3]  }
 0xb11   :  { %s1257_s15 = sshll.u32 %s1544_s14, 4  ;;  %s1258_s15 = int_to_ptr.vmem [resolvable:$true] %s1257_s15 }
 0xb12   :  { %s1507_s23 = scalar_lea.vmem %s1258_s15, 128  ;;  %p1512_p1 = scmp.lt.s32.totalorder %s1258_s15, %s1258_s15 }
 0xb13   :  { %p1508_p0 = scmp.ne.s32.totalorder %s1258_s15, %s1507_s23  ;;  %p1513_p2 = scmp.lt.s32.totalorder %s1507_s23, %s1507_s23 }
 0xb15   :  { %p1514_p3 = por %p1513_p2, %p1512_p1 }
 0xb17   :  { %p1515_p4 = pnand %p1514_p3, %p1508_p0 }
 0xb91   :  { %v967_v19 = vpop.xlane.xlu1 %966 }
 0xb92   :  { %v971_v21 = vmul.f32 0.03125, %v967_v19 }
 0xb94   :  { %v983_v23 = vmul.f32 %v971_v21, %v971_v21  ;;  %v989_v35 = vsub.f32 %v1840_v9, %v971_v21 }
 0xb95   :  { %v970_v20 = vpop.xlane.xlu1 %969 }
 0xb96   :  { %v972_v25 = vmul.f32 0.03125, %v970_v20 }
 0xb98   :  { %v984_v30 = vmul.f32 %v972_v25, %v972_v25  ;;  %v990_v39 = vsub.f32 %v1843_v12, %v972_v25 }
 0xb99   :  { %v977_v22 = vpop.xlane.xlu1 %976 }
 0xb9a   :  { %v981_v26 = vmul.f32 0.03125, %v977_v22 }
 0xb9c   :  { %v985_v28 = vsub.f32 %v981_v26, %v983_v23 }
 0xb9d   :  { %v980_v29 = vpop.xlane.xlu1 %979 }
 0xb9e   :  { %v987_v31 = vmax.f32 %v985_v28, 0.0  ;;  %v982_v32 = vmul.f32 0.03125, %v980_v29 }
 0xba0   :  { %v991_v33 = vadd.f32 1e-06, %v987_v31  ;;  %v986_v56 = vsub.f32 %v982_v32, %v984_v30 }
 0xba2   :  { %1495 = vrsqrt.f32 %v991_v33  ;;  %v988_v34 = vmax.f32 %v986_v56, 0.0 }
 0xba4   :  { %v992_v60 = vadd.f32 1e-06, %v988_v34 }
 0xba6   :  { %1497 = vrsqrt.f32 %v992_v60 }
 0xbac   :  { %v1496_v36 = vpop.eup %1495 }
 0xbad   :  { %v995_v37 = vmul.f32 %v1496_v36, %v989_v35 }
 0xbaf   :  { %v1003_v42 = vmul.f32 %v1287_v38, %v995_v37 }
 0xbb0   :  { %v1498_v40 = vpop.eup %1497 }
 0xbb1   :  { %v996_v41 = vmul.f32 %v1498_v40, %v990_v39  ;;  %v1011_v44 = vadd.f32 %v1288_v49, %v1003_v42 }
 0xbb3   :  { %v1004_v43 = vmul.f32 %v1287_v38, %v996_v41 }
 0xbb5   :  { %v1012_v45 = vadd.f32 %v1288_v49, %v1004_v43 }
 0xbb7   :  { %v1013_v46 = vpack.c.bf16 %v1012_v45, %v1011_v44 }
 0xbb9   :  { %1422 = vmatmul.mubr.msk.bf16.vlgmr.msra.gmra.mrb[28].mxu1 %vm69_vm0, %v1013_v46 }
 0xc8c   :  { %v1074_v27 = vpop.f32.mrb[28].mxu1 }
 0xc8d   :  { %v1075_v52 = vadd.f32 %v1289_v51, %v1074_v27  ;;  %v1423_v53 = vpop.f32.mrb[29].mxu1 }
 0xc8e   :  { %v1077_v54 = vpop.f32.mrb[30].mxu1 }
 0xc8f   :  { %v1081_v55 = vmul.f32 %v1075_v52, %v1075_v52  ;;  %v1078_v57 = vadd.f32 %v1289_v51, %v1077_v54  ;;  %v1424_v58 = vpop.f32.mrb[31].mxu1 }
 0xc91   :  { %v1083_v59 = vmul.f32 %v1081_v55, %v1075_v52  ;;  %v1082_v61 = vmul.f32 %v1078_v57, %v1078_v57 }
 0xc93   :  { %v1085_v63 = vmul.f32 0.044715, %v1083_v59  ;;  %v1084_v11 = vmul.f32 %v1082_v61, %v1078_v57 }
 0xc95   :  { %v1087_v0 = vadd.f32 %v1085_v63, %v1075_v52  ;;  %v1086_v1 = vmul.f32 0.044715, %v1084_v11 }
 0xc97   :  { %v1089_v4 = vmul.f32 0.7978846, %v1087_v0  ;;  %v1088_v5 = vadd.f32 %v1086_v1, %v1078_v57 }
 0xc99   :  { %1499 = vtanh.f32 %v1089_v4  ;;  %v1090_v6 = vmul.f32 0.7978846, %v1088_v5 }
 0xc9b   :  { %1501 = vtanh.f32 %v1090_v6 }
 0xca3   :  { %v1500_v62 = vpop.eup %1499 }
 0xca4   :  { %v1093_v7 = vadd.f32 1.0, %v1500_v62 }
 0xca5   :  { %v1502_v8 = vpop.eup %1501 }
 0xca6   :  { %v1095_v10 = vmul.f32 0.5, %v1093_v7  ;;  %v1094_v13 = vadd.f32 1.0, %v1502_v8 }
 0xca8   :  { %v1096_v14 = vmul.f32 0.5, %v1094_v13  ;;  %v1097_v15 = vmul.f32 %v1095_v10, %v1075_v52 }
 0xcaa   :  { %v1098_v16 = vmul.f32 %v1096_v14, %v1078_v57 }
 0xcac   :  { %v1099_v2 = vpack.c.bf16 %v1098_v16, %v1097_v15 }
 0xcae   :  { %1434 = vmatmul.mubr.msk.bf16.vlgmr.msra.gmra.mrb[24].mxu0 %vm1139_vm11, %v1099_v2 }
 0xd81   :  { %v1177_v17 = vpop.f32.mrb[24].mxu0 }
 0xd82   :  { %v1178_v19 = vadd.f32 %v1293_v3, %v1177_v17  ;;  %v1435_v20 = vpop.f32.mrb[25].mxu0 }
 0xd83   :  { %v1180_v21 = vpop.f32.mrb[26].mxu0 }
 0xd84   :  { %v1191_v22 = vmul.f32 %v1299_v18, %v1178_v19  ;;  %v1181_v23 = vadd.f32 %v1293_v3, %v1180_v21  ;;  %v1436_v25 = vpop.f32.mrb[27].mxu0 }
 0xd86   :  { %v1193_v26 = vadd.f32 %v1191_v22, %v1840_v9  ;;  %v1192_v28 = vmul.f32 %v1299_v18, %v1181_v23 }
 0xd88   :  { %v1194_v29 = vadd.f32 %v1192_v28, %v1843_v12  ;;  %v1197_v30 = vsel %vm69_vm0, %v1193_v26, 0.0  ;;  %v1205_v31 = vmul.f32 %v1193_v26, %v1193_v26 }
 0xd89   :  { %1198 = vadd.xlane.f32.xlu1 %v1197_v30 }
 0xd8a   :  { %v1207_v32 = vsel %vm69_vm0, %v1205_v31, 0.0  ;;  %v1200_v33 = vsel %vm71_vm1, %v1194_v29, 0.0  ;;  %v1206_v56 = vmul.f32 %v1194_v29, %v1194_v29 }
 0xd8b   :  { %1208 = vadd.xlane.f32.xlu0 %v1207_v32 }
 0xd8c   :  { %v1210_v34 = vsel %vm71_vm1, %v1206_v56, 0.0 }
 0xd8d   :  { %1201 = vadd.xlane.f32.xlu1 %v1200_v33 }
 0xd91   :  { %1211 = vadd.xlane.f32.xlu1 %v1210_v34 }
 0xd92   :  { %1518 = shalt.err (!%p1515_p4)
}
 0xd93   :  { %s1519_s7 = scalar_lea.hbm %s1948_s19, 128 }
 0xd94   :  { %p1520_p5 = scmp.ne.s32.totalorder %s1948_s19, %s1519_s7  ;;  %p1523_p6 = scmp.lt.u32.totalorder %s1519_s7, %s1948_s19 }
 0xd96   :  { %p1525_p7 = pnand %p1523_p6, %p1520_p5 }
 0xd98   :  { %1528 = shalt.err (!%p1525_p7)
}
 0xd99   :  { %1260 = dma.vmem_to_hbm [thread:$0]  %s1258_s15, 128, %s1948_s19, [#allocation4]   ;;  %v1300_v24 = vld [vmem:[%s1945_s16] ss:$0 sm:$0xff] }
 0xd9a   :  { %v1301_v51 = vld [vmem:[%s1946_s17] ss:$0 sm:$0xff] }
 0xe16   :  { %v1199_v9 = vpop.xlane.xlu1 %1198 }
 0xe17   :  { %v1203_v12 = vmul.f32 0.03125, %v1199_v9 }
 0xe18   :  { %v1209_v60 = vpop.xlane.xlu0 %1208 }
 0xe19   :  { %v1215_v35 = vmul.f32 %v1203_v12, %v1203_v12  ;;  %v1213_v36 = vmul.f32 0.03125, %v1209_v60  ;;  %v1221_v47 = vsub.f32 %v1193_v26, %v1203_v12 }
 0xe1a   :  { %v1202_v37 = vpop.xlane.xlu1 %1201 }
 0xe1b   :  { %v1217_v38 = vsub.f32 %v1213_v36, %v1215_v35  ;;  %v1204_v39 = vmul.f32 0.03125, %v1202_v37 }
 0xe1d   :  { %v1219_v40 = vmax.f32 %v1217_v38, 0.0  ;;  %v1216_v49 = vmul.f32 %v1204_v39, %v1204_v39  ;;  %v1222_v53 = vsub.f32 %v1194_v29, %v1204_v39 }
 0xe1e   :  { %v1212_v41 = vpop.xlane.xlu1 %1211 }
 0xe1f   :  { %v1223_v42 = vadd.f32 1e-06, %v1219_v40  ;;  %v1214_v43 = vmul.f32 0.03125, %v1212_v41 }
 0xe21   :  { %1503 = vrsqrt.f32 %v1223_v42  ;;  %v1218_v44 = vsub.f32 %v1214_v43, %v1216_v49 }
 0xe23   :  { %v1220_v45 = vmax.f32 %v1218_v44, 0.0 }
 0xe25   :  { %v1224_v46 = vadd.f32 1e-06, %v1220_v45 }
 0xe27   :  { %1505 = vrsqrt.f32 %v1224_v46 }
 0xe2b   :  { %v1504_v48 = vpop.eup %1503 }
 0xe2c   :  { %v1227_v50 = vmul.f32 %v1504_v48, %v1221_v47 }
 0xe2e   :  { %v1235_v27 = vmul.f32 %v1300_v24, %v1227_v50 }
 0xe30   :  { %v1243_v52 = vadd.f32 %v1301_v51, %v1235_v27 }
 0xe31   :  { %v1506_v54 = vpop.eup %1505 }
 0xe32   :  { %1245 = vst.msk [vmem:[#allocation2] sm:$0xff] %vm69_vm0, %v1243_v52  ;;  %1247 = vst.msk [vmem:[%s1947_s18] sm:$0xff] %vm69_vm0, %v1243_v52  ;;  %v1228_v55 = vmul.f32 %v1506_v54, %v1222_v53 }
 0xe34   :  { %v1236_v57 = vmul.f32 %v1300_v24, %v1228_v55 }
 0xe36   :  { %v1244_v58 = vadd.f32 %v1301_v51, %v1236_v57 }
 0xe38   :  { %1246 = vst.msk [vmem:[#allocation2 + $0x8] sm:$0x3f] %vm71_vm1, %v1244_v58  ;;  %1248 = vst.msk [vmem:[%s1947_s18 + $0x8] sm:$0x3f] %vm71_vm1, %v1244_v58 }
 0xe39   :  { %1529 = dma.done.wait [#allocation4], 128  }
 0xe3a   :  { %1530 = vsyncadd [#allocation4], 4294967168 }
 0xe3b   :  { %1266 = vsyncpa [#allocation4], 1 }

</bundles_post_ra>
